<compile_context>
chip_gen: v7x
topology: tpu7x:2x2x1
jax: 0.10.0
libtpu: 0.0.40
codegen_flags: <defaults>
</compile_context>

<pallas_src>
import numpy as np
import jax
import jax.numpy as jnp
from jax import lax
from jax.experimental import pallas as pl
from jax.experimental.pallas import tpu as pltpu

N      = 16   # number of nodes
IN_C   = 3    # in_channels (3-D vertex positions)
HIDDEN = 32   # hidden_channels
K      = 5    # knn k
LANE   = 128  # pad node dim to a multiple of this for lane-dense tiles

_BIG = 1e30
_NEG = -1e30


# --------------------------------------------------------------------------- #
# Fused Pallas kernel: knn + DevConv + attention + S @ A @ S^T
# --------------------------------------------------------------------------- #
def _fused_edge_predictor_kernel(x_ref, em_ref, valid_ref,
                                 wth_ref, bth_ref, wph_ref, bph_ref,
                                 wq_ref, wk_ref,
                                 adj_ref, agg_ref):
    f32 = jnp.float32
    x     = x_ref[...]       # (NP, C)   zero-padded vertex positions
    em    = em_ref[...]      # (NP, NP)  original edge mask (row=center, col=neighbor)
    valid = valid_ref[...]   # (1, NP)   1.0 for real nodes, 0.0 for padding
    n_pad = em.shape[0]
    hid   = bth_ref.shape[1]

    # ---- 1. pairwise squared distances (knn_graph hot path) ------------------
    # HIGHEST precision so the bf16 MXU truncation cannot flip knn selections.
    sq = jnp.sum(x * x, axis=-1, keepdims=True)                               # (NP,1)
    gram = lax.dot_general(x, x, (((1,), (1,)), ((), ())),
                           preferred_element_type=f32,
                           precision=lax.Precision.HIGHEST)                   # (NP,NP)
    d = sq + sq.T - 2.0 * gram

    ri = lax.broadcasted_iota(jnp.int32, (n_pad, n_pad), 0)
    ci = lax.broadcasted_iota(jnp.int32, (n_pad, n_pad), 1)
    neighbor_ok = (valid > 0.0) & (ri != ci)          # no self loops, no padded cols
    d = jnp.where(neighbor_ok, d, _BIG)

    # ---- 2. in-kernel top-K nearest-neighbor mask -----------------------------
    # One lane reduction per iteration (tie-break reduce dropped: exact squared
    # distance ties are vanishingly rare and at worst add an extra union edge).
    # `rowmin < BIG` guards rows that run out of eligible neighbors.
    knn = jnp.zeros((n_pad, n_pad), f32)
    dd = d
    for _ in range(K):                                # K static & tiny -> unrolled
        rowmin = jnp.min(dd, axis=1, keepdims=True)                           # (NP,1)
        sel = (dd <= rowmin) & (rowmin < 0.5 * _BIG)
        knn = jnp.where(sel, 1.0, knn)
        dd = jnp.where(sel, _BIG, dd)

    # union of original edges and knn edges (== torch.cat + torch.unique)
    ext_bool = (em > 0.0) | (knn > 0.0)

    # ---- 3. DevConv -----------------------------------------------------------
    # out_i = W_phi x_i + b_phi + max_{j in N_ext(i)} (W_theta (x_i - x_j) + b_theta)
    # TODO(synk): DevConv source was not provided; reconstructed from the repo/paper
    # formulation (linear W_theta on relative positions, max aggregation, W_phi skip).
    # max_j masked(tx_i - tx_j) == tx_i + max_j masked(-tx_j): no rank-3 subtract.
    tx   = jnp.dot(x, wth_ref[...], preferred_element_type=f32)              # (NP,H)
    phix = jnp.dot(x, wph_ref[...], preferred_element_type=f32)              # (NP,H)
    # Transposed theta features (H, NP) via a second tiny matmul (avoids an XLU
    # transpose of tx); row h is a full-lane (1,NP) vector of neighbor values.
    tx_t = lax.dot_general(wth_ref[...], x, (((0,), (1,)), ((), ())),
                           preferred_element_type=f32)                        # (H,NP)
    neg_tx_t = -tx_t

    # Per-feature 2-D masked max: neighbor axis j in lanes (full 128-lane vregs),
    # reduce over lanes, store each (NP,1) column into the VMEM scratch.
    for hh in range(hid):                              # H static -> unrolled
        row = neg_tx_t[hh:hh + 1, :]                                           # (1,NP)
        masked = jnp.where(ext_bool, row, _NEG)                                # (NP,NP)
        agg_ref[:, hh:hh + 1] = jnp.max(masked, axis=1, keepdims=True)         # (NP,1)
    agg = agg_ref[...]                                                         # (NP,H)

    # every row has >= K kNN neighbors, so no empty-neighborhood guard needed
    feats = phix + bph_ref[...] + tx + bth_ref[...] + agg                      # (NP,H)

    # ---- 4. attention over ORIGINAL edges (scatter_softmax over the row node) -
    q = jnp.dot(feats, wq_ref[...], preferred_element_type=f32)               # (NP,H)
    k = jnp.dot(feats, wk_ref[...], preferred_element_type=f32)               # (NP,H)
    logits = lax.dot_general(q, k, (((1,), (1,)), ((), ())),
                             preferred_element_type=f32)                      # q_i . k_j
    em_bool = em > 0.0
    mlog = jnp.where(em_bool, logits, _NEG)
    row_max = jnp.max(mlog, axis=1, keepdims=True)
    row_max = jnp.where(row_max > 0.5 * _NEG, row_max, 0.0)                   # empty-row guard
    e = jnp.where(em_bool, jnp.exp(mlog - row_max), 0.0)                      # exp of MASKED logits
    denom = jnp.sum(e, axis=1, keepdims=True)                                 # >= 1 on non-empty rows
    att = e * pl.reciprocal(jnp.maximum(denom, 1e-12), approx=True)           # dense S

    # ---- 5. simplified adjacency A_s = S @ A @ S^T (dense values) -------------
    # (structural nonzero pattern of the sparse product is computed in the wrapper)
    sa = jnp.dot(att, em, preferred_element_type=f32)                         # S @ A
    adj_ref[...] = lax.dot_general(sa, att, (((1,), (1,)), ((), ())),
                                   preferred_element_type=f32)                # (S A) S^T


def _edge_predictor_pallas(x_pad, em, valid, w_theta, b_theta, w_phi, b_phi, w_q, w_k):
    n_pad = x_pad.shape[0]
    hidden = w_theta.shape[1]
    # No grid: single invocation, full arrays resident in VMEM, no pipelining /
    # double-buffering of the (NP,NP) operands.
    return pl.pallas_call(
        _fused_edge_predictor_kernel,
        out_shape=jax.ShapeDtypeStruct((n_pad, n_pad), jnp.float32),   # dense A_s
        scratch_shapes=[pltpu.VMEM((n_pad, hidden), jnp.float32)],     # DevConv agg
        compiler_params=pltpu.CompilerParams(vmem_limit_bytes=32 * 1024 * 1024),
    )(x_pad, em, valid, w_theta, b_theta, w_phi, b_phi, w_q, w_k)


# --------------------------------------------------------------------------- #
# Wrapper == EdgePredictor.forward
# --------------------------------------------------------------------------- #
def edge_predictor_forward(params, x, edge_index):
    if edge_index.size == 0:
        raise ValueError("Edge index is empty")
    n, c = x.shape
    n_pad = max(LANE, int(np.ceil(n / LANE)) * LANE)   # lane-dense padded node count

    x_pad = jnp.zeros((n_pad, c), jnp.float32).at[:n].set(x.astype(jnp.float32))
    em = jnp.zeros((n_pad, n_pad), jnp.float32).at[edge_index[0], edge_index[1]].set(1.0)
    valid = (jnp.arange(n_pad) < n).astype(jnp.float32).reshape(1, n_pad)

    a_s = _edge_predictor_pallas(x_pad, em, valid,
                                 params["w_theta"], params["b_theta"],
                                 params["w_phi"], params["b_phi"],
                                 params["w_q"], params["w_k"])
    a_s = a_s[:n, :n]

    # Structural nonzero pattern of S@A@S^T (pattern(S) = pattern(A) = em):
    # depends only on the wrapper-built edge mask, so plain XLA here (counts are
    # small integers, exact in f32).
    em_nn = em[:n, :n]
    pat = ((em_nn @ em_nn) @ em_nn.T) > 0.0

    # COO extraction of the STRUCTURAL sparsity of S@A@S^T, done on device.
    # Only host sync: the scalar nonzero count (the COO length is data-dependent).
    nnz = int(jnp.sum(pat))
    rows, cols = jnp.nonzero(pat, size=nnz)
    indices = jnp.stack([rows, cols], axis=0).astype(jnp.int32)
    values = a_s[rows, cols].astype(jnp.float32)
    return indices, values


# --------------------------------------------------------------------------- #
# Deterministic parameter init (nn.Linear-style uniform)
# --------------------------------------------------------------------------- #
def init_params(key):
    ks = jax.random.split(key, 6)

    def lin_w(k, fan_in, fan_out):   # stored pre-transposed: (in, out)
        b = 1.0 / np.sqrt(fan_in)
        return jax.random.uniform(k, (fan_in, fan_out), jnp.float32, -b, b)

    def lin_b(k, fan_in, fan_out):
        b = 1.0 / np.sqrt(fan_in)
        return jax.random.uniform(k, (1, fan_out), jnp.float32, -b, b)

    return {
        "w_theta": lin_w(ks[0], IN_C, HIDDEN),
        "b_theta": lin_b(ks[1], IN_C, HIDDEN),
        "w_phi":   lin_w(ks[2], IN_C, HIDDEN),
        "b_phi":   lin_b(ks[3], IN_C, HIDDEN),
        "w_q":     lin_w(ks[4], HIDDEN, HIDDEN),   # bias=False
        "w_k":     lin_w(ks[5], HIDDEN, HIDDEN),   # bias=False
    }


if __name__ == "__main__":
    key = jax.random.PRNGKey(0)
    k_x, k_p = jax.random.split(key)
    x = jax.random.normal(k_x, (N, IN_C), dtype=jnp.float32)

    # deterministic ring graph (both directions) as edge_index, shape (2, 2N)
    src = np.arange(N)
    edge_index = np.concatenate(
        [np.stack([src, (src + 1) % N]), np.stack([src, (src - 1) % N])], axis=1
    ).astype(np.int32)
    edge_index = jnp.asarray(edge_index)

    params = init_params(k_p)
    indices, values = edge_predictor_forward(params, x, edge_index)
    jax.block_until_ready(values)
    assert indices.shape[0] == 2 and indices.shape[1] == values.shape[0]
    print("KERNEL_OK")
</pallas_src>

<mosaic_0001>
module attributes {stable_mosaic.version = 11 : i64} {
  func.func @_fused_edge_predictor_kernel(%arg0: memref<128x3xf32, #tpu.memory_space<vmem>>, %arg1: memref<128x128xf32, #tpu.memory_space<vmem>>, %arg2: memref<1x128xf32, #tpu.memory_space<vmem>>, %arg3: memref<3x32xf32, #tpu.memory_space<vmem>>, %arg4: memref<1x32xf32, #tpu.memory_space<vmem>>, %arg5: memref<3x32xf32, #tpu.memory_space<vmem>>, %arg6: memref<1x32xf32, #tpu.memory_space<vmem>>, %arg7: memref<32x32xf32, #tpu.memory_space<vmem>>, %arg8: memref<32x32xf32, #tpu.memory_space<vmem>>, %arg9: memref<128x128xf32, #tpu.memory_space<vmem>>, %arg10: memref<128x32xf32, #tpu.memory_space<vmem>>) attributes {dimension_semantics = [], scalar_prefetch = 0 : i64, scratch_operands = 1 : i64, tpu.core_type = #tpu.core_type<tc>} {
    %c0 = arith.constant 0 : index
    %c0_0 = arith.constant 0 : index
    %0 = vector.load %arg0[%c0, %c0_0] : memref<128x3xf32, #tpu.memory_space<vmem>>, vector<128x3xf32>
    %c0_1 = arith.constant 0 : index
    %c0_2 = arith.constant 0 : index
    %1 = vector.load %arg1[%c0_1, %c0_2] : memref<128x128xf32, #tpu.memory_space<vmem>>, vector<128x128xf32>
    %c0_3 = arith.constant 0 : index
    %c0_4 = arith.constant 0 : index
    %2 = vector.load %arg2[%c0_3, %c0_4] : memref<1x128xf32, #tpu.memory_space<vmem>>, vector<1x128xf32>
    %3 = arith.mulf %0, %0 : vector<128x3xf32>
    %cst = arith.constant dense<0.000000e+00> : vector<128xf32>
    %4 = vector.multi_reduction <add>, %3, %cst [1] : vector<128x3xf32> to vector<128xf32>
    %5 = vector.shape_cast %4 : vector<128xf32> to vector<128x1xf32>
    %cst_5 = arith.constant dense<0.000000e+00> : vector<128x128xf32>
    %6 = tpu.matmul %0, %0, %cst_5 {dimension_numbers = #tpu.dot_dimension_numbers<[1], [1], [0], [0], [0, 0, 1, 0], [], []>, precision = #tpu.contract_precision<fp32>} : vector<128x3xf32>, vector<128x3xf32>, vector<128x128xf32> -> vector<128x128xf32>
    %7 = tpu.transpose %5, [1, 0] : vector<128x1xf32> -> vector<1x128xf32>
    %8 = vector.broadcast %5 : vector<128x1xf32> to vector<128x128xf32>
    %9 = vector.broadcast %7 : vector<1x128xf32> to vector<128x128xf32>
    %10 = arith.addf %8, %9 : vector<128x128xf32>
    %cst_6 = arith.constant 2.000000e+00 : f32
    %11 = vector.broadcast %cst_6 : f32 to vector<128x128xf32>
    %12 = arith.mulf %11, %6 : vector<128x128xf32>
    %13 = arith.subf %10, %12 : vector<128x128xf32>
    %14 = tpu.iota {dimensions = array<i32: 0>} : vector<128x128xi32>
    %15 = tpu.iota {dimensions = array<i32: 1>} : vector<128x128xi32>
    %cst_7 = arith.constant 0.000000e+00 : f32
    %16 = vector.broadcast %cst_7 : f32 to vector<1x128xf32>
    %17 = arith.cmpf ogt, %2, %16 : vector<1x128xf32>
    %18 = arith.cmpi ne, %14, %15 : vector<128x128xi32>
    %19 = vector.broadcast %17 : vector<1x128xi1> to vector<128x128xi1>
    %20 = arith.andi %19, %18 : vector<128x128xi1>
    %cst_8 = arith.constant 1.000000e+30 : f32
    %21 = vector.broadcast %cst_8 : f32 to vector<128x128xf32>
    %22 = arith.select %20, %13, %21 : vector<128x128xi1>, vector<128x128xf32>
    %cst_9 = arith.constant 0.000000e+00 : f32
    %23 = vector.broadcast %cst_9 : f32 to vector<128x128xf32>
    %cst_10 = arith.constant dense<0x7F800000> : vector<128xf32>
    %24 = vector.multi_reduction <minimumf>, %22, %cst_10 [1] : vector<128x128xf32> to vector<128xf32>
    %25 = vector.shape_cast %24 : vector<128xf32> to vector<128x1xf32>
    %26 = vector.broadcast %25 : vector<128x1xf32> to vector<128x128xf32>
    %27 = arith.cmpf ole, %22, %26 : vector<128x128xf32>
    %cst_11 = arith.constant 5.000000e+29 : f32
    %28 = vector.broadcast %cst_11 : f32 to vector<128x1xf32>
    %29 = arith.cmpf olt, %25, %28 : vector<128x1xf32>
    %30 = vector.broadcast %29 : vector<128x1xi1> to vector<128x128xi1>
    %31 = arith.andi %27, %30 : vector<128x128xi1>
    %cst_12 = arith.constant 1.000000e+00 : f32
    %32 = vector.broadcast %cst_12 : f32 to vector<128x128xf32>
    %33 = arith.select %31, %32, %23 : vector<128x128xi1>, vector<128x128xf32>
    %cst_13 = arith.constant 1.000000e+30 : f32
    %34 = vector.broadcast %cst_13 : f32 to vector<128x128xf32>
    %35 = arith.select %31, %34, %22 : vector<128x128xi1>, vector<128x128xf32>
    %cst_14 = arith.constant dense<0x7F800000> : vector<128xf32>
    %36 = vector.multi_reduction <minimumf>, %35, %cst_14 [1] : vector<128x128xf32> to vector<128xf32>
    %37 = vector.shape_cast %36 : vector<128xf32> to vector<128x1xf32>
    %38 = vector.broadcast %37 : vector<128x1xf32> to vector<128x128xf32>
    %39 = arith.cmpf ole, %35, %38 : vector<128x128xf32>
    %cst_15 = arith.constant 5.000000e+29 : f32
    %40 = vector.broadcast %cst_15 : f32 to vector<128x1xf32>
    %41 = arith.cmpf olt, %37, %40 : vector<128x1xf32>
    %42 = vector.broadcast %41 : vector<128x1xi1> to vector<128x128xi1>
    %43 = arith.andi %39, %42 : vector<128x128xi1>
    %cst_16 = arith.constant 1.000000e+00 : f32
    %44 = vector.broadcast %cst_16 : f32 to vector<128x128xf32>
    %45 = arith.select %43, %44, %33 : vector<128x128xi1>, vector<128x128xf32>
    %cst_17 = arith.constant 1.000000e+30 : f32
    %46 = vector.broadcast %cst_17 : f32 to vector<128x128xf32>
    %47 = arith.select %43, %46, %35 : vector<128x128xi1>, vector<128x128xf32>
    %cst_18 = arith.constant dense<0x7F800000> : vector<128xf32>
    %48 = vector.multi_reduction <minimumf>, %47, %cst_18 [1] : vector<128x128xf32> to vector<128xf32>
    %49 = vector.shape_cast %48 : vector<128xf32> to vector<128x1xf32>
    %50 = vector.broadcast %49 : vector<128x1xf32> to vector<128x128xf32>
    %51 = arith.cmpf ole, %47, %50 : vector<128x128xf32>
    %cst_19 = arith.constant 5.000000e+29 : f32
    %52 = vector.broadcast %cst_19 : f32 to vector<128x1xf32>
    %53 = arith.cmpf olt, %49, %52 : vector<128x1xf32>
    %54 = vector.broadcast %53 : vector<128x1xi1> to vector<128x128xi1>
    %55 = arith.andi %51, %54 : vector<128x128xi1>
    %cst_20 = arith.constant 1.000000e+00 : f32
    %56 = vector.broadcast %cst_20 : f32 to vector<128x128xf32>
    %57 = arith.select %55, %56, %45 : vector<128x128xi1>, vector<128x128xf32>
    %cst_21 = arith.constant 1.000000e+30 : f32
    %58 = vector.broadcast %cst_21 : f32 to vector<128x128xf32>
    %59 = arith.select %55, %58, %47 : vector<128x128xi1>, vector<128x128xf32>
    %cst_22 = arith.constant dense<0x7F800000> : vector<128xf32>
    %60 = vector.multi_reduction <minimumf>, %59, %cst_22 [1] : vector<128x128xf32> to vector<128xf32>
    %61 = vector.shape_cast %60 : vector<128xf32> to vector<128x1xf32>
    %62 = vector.broadcast %61 : vector<128x1xf32> to vector<128x128xf32>
    %63 = arith.cmpf ole, %59, %62 : vector<128x128xf32>
    %cst_23 = arith.constant 5.000000e+29 : f32
    %64 = vector.broadcast %cst_23 : f32 to vector<128x1xf32>
    %65 = arith.cmpf olt, %61, %64 : vector<128x1xf32>
    %66 = vector.broadcast %65 : vector<128x1xi1> to vector<128x128xi1>
    %67 = arith.andi %63, %66 : vector<128x128xi1>
    %cst_24 = arith.constant 1.000000e+00 : f32
    %68 = vector.broadcast %cst_24 : f32 to vector<128x128xf32>
    %69 = arith.select %67, %68, %57 : vector<128x128xi1>, vector<128x128xf32>
    %cst_25 = arith.constant 1.000000e+30 : f32
    %70 = vector.broadcast %cst_25 : f32 to vector<128x128xf32>
    %71 = arith.select %67, %70, %59 : vector<128x128xi1>, vector<128x128xf32>
    %cst_26 = arith.constant dense<0x7F800000> : vector<128xf32>
    %72 = vector.multi_reduction <minimumf>, %71, %cst_26 [1] : vector<128x128xf32> to vector<128xf32>
    %73 = vector.shape_cast %72 : vector<128xf32> to vector<128x1xf32>
    %74 = vector.broadcast %73 : vector<128x1xf32> to vector<128x128xf32>
    %75 = arith.cmpf ole, %71, %74 : vector<128x128xf32>
    %cst_27 = arith.constant 5.000000e+29 : f32
    %76 = vector.broadcast %cst_27 : f32 to vector<128x1xf32>
    %77 = arith.cmpf olt, %73, %76 : vector<128x1xf32>
    %78 = vector.broadcast %77 : vector<128x1xi1> to vector<128x128xi1>
    %79 = arith.andi %75, %78 : vector<128x128xi1>
    %cst_28 = arith.constant 1.000000e+00 : f32
    %80 = vector.broadcast %cst_28 : f32 to vector<128x128xf32>
    %81 = arith.select %79, %80, %69 : vector<128x128xi1>, vector<128x128xf32>
    %cst_29 = arith.constant 0.000000e+00 : f32
    %82 = vector.broadcast %cst_29 : f32 to vector<128x128xf32>
    %83 = arith.cmpf ogt, %1, %82 : vector<128x128xf32>
    %cst_30 = arith.constant 0.000000e+00 : f32
    %84 = vector.broadcast %cst_30 : f32 to vector<128x128xf32>
    %85 = arith.cmpf ogt, %81, %84 : vector<128x128xf32>
    %86 = arith.ori %83, %85 : vector<128x128xi1>
    %c0_31 = arith.constant 0 : index
    %c0_32 = arith.constant 0 : index
    %87 = vector.load %arg3[%c0_31, %c0_32] : memref<3x32xf32, #tpu.memory_space<vmem>>, vector<3x32xf32>
    %cst_33 = arith.constant dense<0.000000e+00> : vector<128x32xf32>
    %88 = tpu.matmul %0, %87, %cst_33 {dimension_numbers = #tpu.dot_dimension_numbers<[1], [0], [0], [1], [0, 0, 1, 1], [], []>} : vector<128x3xf32>, vector<3x32xf32>, vector<128x32xf32> -> vector<128x32xf32>
    %c0_34 = arith.constant 0 : index
    %c0_35 = arith.constant 0 : index
    %89 = vector.load %arg5[%c0_34, %c0_35] : memref<3x32xf32, #tpu.memory_space<vmem>>, vector<3x32xf32>
    %cst_36 = arith.constant dense<0.000000e+00> : vector<128x32xf32>
    %90 = tpu.matmul %0, %89, %cst_36 {dimension_numbers = #tpu.dot_dimension_numbers<[1], [0], [0], [1], [0, 0, 1, 1], [], []>} : vector<128x3xf32>, vector<3x32xf32>, vector<128x32xf32> -> vector<128x32xf32>
    %c0_37 = arith.constant 0 : index
    %c0_38 = arith.constant 0 : index
    %91 = vector.load %arg3[%c0_37, %c0_38] : memref<3x32xf32, #tpu.memory_space<vmem>>, vector<3x32xf32>
    %cst_39 = arith.constant dense<0.000000e+00> : vector<32x128xf32>
    %92 = tpu.matmul %91, %0, %cst_39 {dimension_numbers = #tpu.dot_dimension_numbers<[0], [1], [1], [0], [0, 1, 1, 0], [], []>} : vector<3x32xf32>, vector<128x3xf32>, vector<32x128xf32> -> vector<32x128xf32>
    %cst_40 = arith.constant 0.000000e+00 : f32
    %93 = vector.broadcast %cst_40 : f32 to vector<32x128xf32>
    %94 = arith.subf %93, %92 : vector<32x128xf32>
    %95 = vector.extract_strided_slice %94 {offsets = [0, 0], sizes = [1, 128], strides = [1, 1]} : vector<32x128xf32> to vector<1x128xf32>
    %cst_41 = arith.constant -1.000000e+30 : f32
    %96 = vector.shape_cast %95 : vector<1x128xf32> to vector<1x128xf32>
    %97 = vector.broadcast %96 : vector<1x128xf32> to vector<128x128xf32>
    %98 = vector.broadcast %cst_41 : f32 to vector<128x128xf32>
    %99 = arith.select %86, %97, %98 : vector<128x128xi1>, vector<128x128xf32>
    %cst_42 = arith.constant dense<0xFF800000> : vector<128xf32>
    %100 = vector.multi_reduction <maximumf>, %99, %cst_42 [1] : vector<128x128xf32> to vector<128xf32>
    %101 = vector.shape_cast %100 : vector<128xf32> to vector<128x1xf32>
    %c0_43 = arith.constant 0 : index
    %c0_44 = arith.constant 0 : index
    %102 = vector.load %arg10[%c0_43, %c0_44] : memref<128x32xf32, #tpu.memory_space<vmem>>, vector<128x1xf32>
    tpu.vector_store %arg10[%c0_43, %c0_44], %101 {strides = array<i32>} : memref<128x32xf32, #tpu.memory_space<vmem>>, vector<128x1xf32>,
    %103 = vector.extract_strided_slice %94 {offsets = [1, 0], sizes = [1, 128], strides = [1, 1]} : vector<32x128xf32> to vector<1x128xf32>
    %cst_45 = arith.constant -1.000000e+30 : f32
    %104 = vector.shape_cast %103 : vector<1x128xf32> to vector<1x128xf32>
    %105 = vector.broadcast %104 : vector<1x128xf32> to vector<128x128xf32>
    %106 = vector.broadcast %cst_45 : f32 to vector<128x128xf32>
    %107 = arith.select %86, %105, %106 : vector<128x128xi1>, vector<128x128xf32>
    %cst_46 = arith.constant dense<0xFF800000> : vector<128xf32>
    %108 = vector.multi_reduction <maximumf>, %107, %cst_46 [1] : vector<128x128xf32> to vector<128xf32>
    %109 = vector.shape_cast %108 : vector<128xf32> to vector<128x1xf32>
    %c0_47 = arith.constant 0 : index
    %c1 = arith.constant 1 : index
    %110 = vector.load %arg10[%c0_47, %c1] : memref<128x32xf32, #tpu.memory_space<vmem>>, vector<128x1xf32>
    tpu.vector_store %arg10[%c0_47, %c1], %109 {strides = array<i32>} : memref<128x32xf32, #tpu.memory_space<vmem>>, vector<128x1xf32>,
    %111 = vector.extract_strided_slice %94 {offsets = [2, 0], sizes = [1, 128], strides = [1, 1]} : vector<32x128xf32> to vector<1x128xf32>
    %cst_48 = arith.constant -1.000000e+30 : f32
    %112 = vector.shape_cast %111 : vector<1x128xf32> to vector<1x128xf32>
    %113 = vector.broadcast %112 : vector<1x128xf32> to vector<128x128xf32>
    %114 = vector.broadcast %cst_48 : f32 to vector<128x128xf32>
    %115 = arith.select %86, %113, %114 : vector<128x128xi1>, vector<128x128xf32>
    %cst_49 = arith.constant dense<0xFF800000> : vector<128xf32>
    %116 = vector.multi_reduction <maximumf>, %115, %cst_49 [1] : vector<128x128xf32> to vector<128xf32>
    %117 = vector.shape_cast %116 : vector<128xf32> to vector<128x1xf32>
    %c0_50 = arith.constant 0 : index
    %c2 = arith.constant 2 : index
    %118 = vector.load %arg10[%c0_50, %c2] : memref<128x32xf32, #tpu.memory_space<vmem>>, vector<128x1xf32>
    tpu.vector_store %arg10[%c0_50, %c2], %117 {strides = array<i32>} : memref<128x32xf32, #tpu.memory_space<vmem>>, vector<128x1xf32>,
    %119 = vector.extract_strided_slice %94 {offsets = [3, 0], sizes = [1, 128], strides = [1, 1]} : vector<32x128xf32> to vector<1x128xf32>
    %cst_51 = arith.constant -1.000000e+30 : f32
    %120 = vector.shape_cast %119 : vector<1x128xf32> to vector<1x128xf32>
    %121 = vector.broadcast %120 : vector<1x128xf32> to vector<128x128xf32>
    %122 = vector.broadcast %cst_51 : f32 to vector<128x128xf32>
    %123 = arith.select %86, %121, %122 : vector<128x128xi1>, vector<128x128xf32>
    %cst_52 = arith.constant dense<0xFF800000> : vector<128xf32>
    %124 = vector.multi_reduction <maximumf>, %123, %cst_52 [1] : vector<128x128xf32> to vector<128xf32>
    %125 = vector.shape_cast %124 : vector<128xf32> to vector<128x1xf32>
    %c0_53 = arith.constant 0 : index
    %c3 = arith.constant 3 : index
    %126 = vector.load %arg10[%c0_53, %c3] : memref<128x32xf32, #tpu.memory_space<vmem>>, vector<128x1xf32>
    tpu.vector_store %arg10[%c0_53, %c3], %125 {strides = array<i32>} : memref<128x32xf32, #tpu.memory_space<vmem>>, vector<128x1xf32>,
    %127 = vector.extract_strided_slice %94 {offsets = [4, 0], sizes = [1, 128], strides = [1, 1]} : vector<32x128xf32> to vector<1x128xf32>
    %cst_54 = arith.constant -1.000000e+30 : f32
    %128 = vector.shape_cast %127 : vector<1x128xf32> to vector<1x128xf32>
    %129 = vector.broadcast %128 : vector<1x128xf32> to vector<128x128xf32>
    %130 = vector.broadcast %cst_54 : f32 to vector<128x128xf32>
    %131 = arith.select %86, %129, %130 : vector<128x128xi1>, vector<128x128xf32>
    %cst_55 = arith.constant dense<0xFF800000> : vector<128xf32>
    %132 = vector.multi_reduction <maximumf>, %131, %cst_55 [1] : vector<128x128xf32> to vector<128xf32>
    %133 = vector.shape_cast %132 : vector<128xf32> to vector<128x1xf32>
    %c0_56 = arith.constant 0 : index
    %c4 = arith.constant 4 : index
    %134 = vector.load %arg10[%c0_56, %c4] : memref<128x32xf32, #tpu.memory_space<vmem>>, vector<128x1xf32>
    tpu.vector_store %arg10[%c0_56, %c4], %133 {strides = array<i32>} : memref<128x32xf32, #tpu.memory_space<vmem>>, vector<128x1xf32>,
    %135 = vector.extract_strided_slice %94 {offsets = [5, 0], sizes = [1, 128], strides = [1, 1]} : vector<32x128xf32> to vector<1x128xf32>
    %cst_57 = arith.constant -1.000000e+30 : f32
    %136 = vector.shape_cast %135 : vector<1x128xf32> to vector<1x128xf32>
    %137 = vector.broadcast %136 : vector<1x128xf32> to vector<128x128xf32>
    %138 = vector.broadcast %cst_57 : f32 to vector<128x128xf32>
    %139 = arith.select %86, %137, %138 : vector<128x128xi1>, vector<128x128xf32>
    %cst_58 = arith.constant dense<0xFF800000> : vector<128xf32>
    %140 = vector.multi_reduction <maximumf>, %139, %cst_58 [1] : vector<128x128xf32> to vector<128xf32>
    %141 = vector.shape_cast %140 : vector<128xf32> to vector<128x1xf32>
    %c0_59 = arith.constant 0 : index
    %c5 = arith.constant 5 : index
    %142 = vector.load %arg10[%c0_59, %c5] : memref<128x32xf32, #tpu.memory_space<vmem>>, vector<128x1xf32>
    tpu.vector_store %arg10[%c0_59, %c5], %141 {strides = array<i32>} : memref<128x32xf32, #tpu.memory_space<vmem>>, vector<128x1xf32>,
    %143 = vector.extract_strided_slice %94 {offsets = [6, 0], sizes = [1, 128], strides = [1, 1]} : vector<32x128xf32> to vector<1x128xf32>
    %cst_60 = arith.constant -1.000000e+30 : f32
    %144 = vector.shape_cast %143 : vector<1x128xf32> to vector<1x128xf32>
    %145 = vector.broadcast %144 : vector<1x128xf32> to vector<128x128xf32>
    %146 = vector.broadcast %cst_60 : f32 to vector<128x128xf32>
    %147 = arith.select %86, %145, %146 : vector<128x128xi1>, vector<128x128xf32>
    %cst_61 = arith.constant dense<0xFF800000> : vector<128xf32>
    %148 = vector.multi_reduction <maximumf>, %147, %cst_61 [1] : vector<128x128xf32> to vector<128xf32>
    %149 = vector.shape_cast %148 : vector<128xf32> to vector<128x1xf32>
    %c0_62 = arith.constant 0 : index
    %c6 = arith.constant 6 : index
    %150 = vector.load %arg10[%c0_62, %c6] : memref<128x32xf32, #tpu.memory_space<vmem>>, vector<128x1xf32>
    tpu.vector_store %arg10[%c0_62, %c6], %149 {strides = array<i32>} : memref<128x32xf32, #tpu.memory_space<vmem>>, vector<128x1xf32>,
    %151 = vector.extract_strided_slice %94 {offsets = [7, 0], sizes = [1, 128], strides = [1, 1]} : vector<32x128xf32> to vector<1x128xf32>
    %cst_63 = arith.constant -1.000000e+30 : f32
    %152 = vector.shape_cast %151 : vector<1x128xf32> to vector<1x128xf32>
    %153 = vector.broadcast %152 : vector<1x128xf32> to vector<128x128xf32>
    %154 = vector.broadcast %cst_63 : f32 to vector<128x128xf32>
    %155 = arith.select %86, %153, %154 : vector<128x128xi1>, vector<128x128xf32>
    %cst_64 = arith.constant dense<0xFF800000> : vector<128xf32>
    %156 = vector.multi_reduction <maximumf>, %155, %cst_64 [1] : vector<128x128xf32> to vector<128xf32>
    %157 = vector.shape_cast %156 : vector<128xf32> to vector<128x1xf32>
    %c0_65 = arith.constant 0 : index
    %c7 = arith.constant 7 : index
    %158 = vector.load %arg10[%c0_65, %c7] : memref<128x32xf32, #tpu.memory_space<vmem>>, vector<128x1xf32>
    tpu.vector_store %arg10[%c0_65, %c7], %157 {strides = array<i32>} : memref<128x32xf32, #tpu.memory_space<vmem>>, vector<128x1xf32>,
    %159 = vector.extract_strided_slice %94 {offsets = [8, 0], sizes = [1, 128], strides = [1, 1]} : vector<32x128xf32> to vector<1x128xf32>
    %cst_66 = arith.constant -1.000000e+30 : f32
    %160 = vector.shape_cast %159 : vector<1x128xf32> to vector<1x128xf32>
    %161 = vector.broadcast %160 : vector<1x128xf32> to vector<128x128xf32>
    %162 = vector.broadcast %cst_66 : f32 to vector<128x128xf32>
    %163 = arith.select %86, %161, %162 : vector<128x128xi1>, vector<128x128xf32>
    %cst_67 = arith.constant dense<0xFF800000> : vector<128xf32>
    %164 = vector.multi_reduction <maximumf>, %163, %cst_67 [1] : vector<128x128xf32> to vector<128xf32>
    %165 = vector.shape_cast %164 : vector<128xf32> to vector<128x1xf32>
    %c0_68 = arith.constant 0 : index
    %c8 = arith.constant 8 : index
    %166 = vector.load %arg10[%c0_68, %c8] : memref<128x32xf32, #tpu.memory_space<vmem>>, vector<128x1xf32>
    tpu.vector_store %arg10[%c0_68, %c8], %165 {strides = array<i32>} : memref<128x32xf32, #tpu.memory_space<vmem>>, vector<128x1xf32>,
    %167 = vector.extract_strided_slice %94 {offsets = [9, 0], sizes = [1, 128], strides = [1, 1]} : vector<32x128xf32> to vector<1x128xf32>
    %cst_69 = arith.constant -1.000000e+30 : f32
    %168 = vector.shape_cast %167 : vector<1x128xf32> to vector<1x128xf32>
    %169 = vector.broadcast %168 : vector<1x128xf32> to vector<128x128xf32>
    %170 = vector.broadcast %cst_69 : f32 to vector<128x128xf32>
    %171 = arith.select %86, %169, %170 : vector<128x128xi1>, vector<128x128xf32>
    %cst_70 = arith.constant dense<0xFF800000> : vector<128xf32>
    %172 = vector.multi_reduction <maximumf>, %171, %cst_70 [1] : vector<128x128xf32> to vector<128xf32>
    %173 = vector.shape_cast %172 : vector<128xf32> to vector<128x1xf32>
    %c0_71 = arith.constant 0 : index
    %c9 = arith.constant 9 : index
    %174 = vector.load %arg10[%c0_71, %c9] : memref<128x32xf32, #tpu.memory_space<vmem>>, vector<128x1xf32>
    tpu.vector_store %arg10[%c0_71, %c9], %173 {strides = array<i32>} : memref<128x32xf32, #tpu.memory_space<vmem>>, vector<128x1xf32>,
    %175 = vector.extract_strided_slice %94 {offsets = [10, 0], sizes = [1, 128], strides = [1, 1]} : vector<32x128xf32> to vector<1x128xf32>
    %cst_72 = arith.constant -1.000000e+30 : f32
    %176 = vector.shape_cast %175 : vector<1x128xf32> to vector<1x128xf32>
    %177 = vector.broadcast %176 : vector<1x128xf32> to vector<128x128xf32>
    %178 = vector.broadcast %cst_72 : f32 to vector<128x128xf32>
    %179 = arith.select %86, %177, %178 : vector<128x128xi1>, vector<128x128xf32>
    %cst_73 = arith.constant dense<0xFF800000> : vector<128xf32>
    %180 = vector.multi_reduction <maximumf>, %179, %cst_73 [1] : vector<128x128xf32> to vector<128xf32>
    %181 = vector.shape_cast %180 : vector<128xf32> to vector<128x1xf32>
    %c0_74 = arith.constant 0 : index
    %c10 = arith.constant 10 : index
    %182 = vector.load %arg10[%c0_74, %c10] : memref<128x32xf32, #tpu.memory_space<vmem>>, vector<128x1xf32>
    tpu.vector_store %arg10[%c0_74, %c10], %181 {strides = array<i32>} : memref<128x32xf32, #tpu.memory_space<vmem>>, vector<128x1xf32>,
    %183 = vector.extract_strided_slice %94 {offsets = [11, 0], sizes = [1, 128], strides = [1, 1]} : vector<32x128xf32> to vector<1x128xf32>
    %cst_75 = arith.constant -1.000000e+30 : f32
    %184 = vector.shape_cast %183 : vector<1x128xf32> to vector<1x128xf32>
    %185 = vector.broadcast %184 : vector<1x128xf32> to vector<128x128xf32>
    %186 = vector.broadcast %cst_75 : f32 to vector<128x128xf32>
    %187 = arith.select %86, %185, %186 : vector<128x128xi1>, vector<128x128xf32>
    %cst_76 = arith.constant dense<0xFF800000> : vector<128xf32>
    %188 = vector.multi_reduction <maximumf>, %187, %cst_76 [1] : vector<128x128xf32> to vector<128xf32>
    %189 = vector.shape_cast %188 : vector<128xf32> to vector<128x1xf32>
    %c0_77 = arith.constant 0 : index
    %c11 = arith.constant 11 : index
    %190 = vector.load %arg10[%c0_77, %c11] : memref<128x32xf32, #tpu.memory_space<vmem>>, vector<128x1xf32>
    tpu.vector_store %arg10[%c0_77, %c11], %189 {strides = array<i32>} : memref<128x32xf32, #tpu.memory_space<vmem>>, vector<128x1xf32>,
    %191 = vector.extract_strided_slice %94 {offsets = [12, 0], sizes = [1, 128], strides = [1, 1]} : vector<32x128xf32> to vector<1x128xf32>
    %cst_78 = arith.constant -1.000000e+30 : f32
    %192 = vector.shape_cast %191 : vector<1x128xf32> to vector<1x128xf32>
    %193 = vector.broadcast %192 : vector<1x128xf32> to vector<128x128xf32>
    %194 = vector.broadcast %cst_78 : f32 to vector<128x128xf32>
    %195 = arith.select %86, %193, %194 : vector<128x128xi1>, vector<128x128xf32>
    %cst_79 = arith.constant dense<0xFF800000> : vector<128xf32>
    %196 = vector.multi_reduction <maximumf>, %195, %cst_79 [1] : vector<128x128xf32> to vector<128xf32>
    %197 = vector.shape_cast %196 : vector<128xf32> to vector<128x1xf32>
    %c0_80 = arith.constant 0 : index
    %c12 = arith.constant 12 : index
    %198 = vector.load %arg10[%c0_80, %c12] : memref<128x32xf32, #tpu.memory_space<vmem>>, vector<128x1xf32>
    tpu.vector_store %arg10[%c0_80, %c12], %197 {strides = array<i32>} : memref<128x32xf32, #tpu.memory_space<vmem>>, vector<128x1xf32>,
    %199 = vector.extract_strided_slice %94 {offsets = [13, 0], sizes = [1, 128], strides = [1, 1]} : vector<32x128xf32> to vector<1x128xf32>
    %cst_81 = arith.constant -1.000000e+30 : f32
    %200 = vector.shape_cast %199 : vector<1x128xf32> to vector<1x128xf32>
    %201 = vector.broadcast %200 : vector<1x128xf32> to vector<128x128xf32>
    %202 = vector.broadcast %cst_81 : f32 to vector<128x128xf32>
    %203 = arith.select %86, %201, %202 : vector<128x128xi1>, vector<128x128xf32>
    %cst_82 = arith.constant dense<0xFF800000> : vector<128xf32>
    %204 = vector.multi_reduction <maximumf>, %203, %cst_82 [1] : vector<128x128xf32> to vector<128xf32>
    %205 = vector.shape_cast %204 : vector<128xf32> to vector<128x1xf32>
    %c0_83 = arith.constant 0 : index
    %c13 = arith.constant 13 : index
    %206 = vector.load %arg10[%c0_83, %c13] : memref<128x32xf32, #tpu.memory_space<vmem>>, vector<128x1xf32>
    tpu.vector_store %arg10[%c0_83, %c13], %205 {strides = array<i32>} : memref<128x32xf32, #tpu.memory_space<vmem>>, vector<128x1xf32>,
    %207 = vector.extract_strided_slice %94 {offsets = [14, 0], sizes = [1, 128], strides = [1, 1]} : vector<32x128xf32> to vector<1x128xf32>
    %cst_84 = arith.constant -1.000000e+30 : f32
    %208 = vector.shape_cast %207 : vector<1x128xf32> to vector<1x128xf32>
    %209 = vector.broadcast %208 : vector<1x128xf32> to vector<128x128xf32>
    %210 = vector.broadcast %cst_84 : f32 to vector<128x128xf32>
    %211 = arith.select %86, %209, %210 : vector<128x128xi1>, vector<128x128xf32>
    %cst_85 = arith.constant dense<0xFF800000> : vector<128xf32>
    %212 = vector.multi_reduction <maximumf>, %211, %cst_85 [1] : vector<128x128xf32> to vector<128xf32>
    %213 = vector.shape_cast %212 : vector<128xf32> to vector<128x1xf32>
    %c0_86 = arith.constant 0 : index
    %c14 = arith.constant 14 : index
    %214 = vector.load %arg10[%c0_86, %c14] : memref<128x32xf32, #tpu.memory_space<vmem>>, vector<128x1xf32>
    tpu.vector_store %arg10[%c0_86, %c14], %213 {strides = array<i32>} : memref<128x32xf32, #tpu.memory_space<vmem>>, vector<128x1xf32>,
    %215 = vector.extract_strided_slice %94 {offsets = [15, 0], sizes = [1, 128], strides = [1, 1]} : vector<32x128xf32> to vector<1x128xf32>
    %cst_87 = arith.constant -1.000000e+30 : f32
    %216 = vector.shape_cast %215 : vector<1x128xf32> to vector<1x128xf32>
    %217 = vector.broadcast %216 : vector<1x128xf32> to vector<128x128xf32>
    %218 = vector.broadcast %cst_87 : f32 to vector<128x128xf32>
    %219 = arith.select %86, %217, %218 : vector<128x128xi1>, vector<128x128xf32>
    %cst_88 = arith.constant dense<0xFF800000> : vector<128xf32>
    %220 = vector.multi_reduction <maximumf>, %219, %cst_88 [1] : vector<128x128xf32> to vector<128xf32>
    %221 = vector.shape_cast %220 : vector<128xf32> to vector<128x1xf32>
    %c0_89 = arith.constant 0 : index
    %c15 = arith.constant 15 : index
    %222 = vector.load %arg10[%c0_89, %c15] : memref<128x32xf32, #tpu.memory_space<vmem>>, vector<128x1xf32>
    tpu.vector_store %arg10[%c0_89, %c15], %221 {strides = array<i32>} : memref<128x32xf32, #tpu.memory_space<vmem>>, vector<128x1xf32>,
    %223 = vector.extract_strided_slice %94 {offsets = [16, 0], sizes = [1, 128], strides = [1, 1]} : vector<32x128xf32> to vector<1x128xf32>
    %cst_90 = arith.constant -1.000000e+30 : f32
    %224 = vector.shape_cast %223 : vector<1x128xf32> to vector<1x128xf32>
    %225 = vector.broadcast %224 : vector<1x128xf32> to vector<128x128xf32>
    %226 = vector.broadcast %cst_90 : f32 to vector<128x128xf32>
    %227 = arith.select %86, %225, %226 : vector<128x128xi1>, vector<128x128xf32>
    %cst_91 = arith.constant dense<0xFF800000> : vector<128xf32>
    %228 = vector.multi_reduction <maximumf>, %227, %cst_91 [1] : vector<128x128xf32> to vector<128xf32>
    %229 = vector.shape_cast %228 : vector<128xf32> to vector<128x1xf32>
    %c0_92 = arith.constant 0 : index
    %c16 = arith.constant 16 : index
    %230 = vector.load %arg10[%c0_92, %c16] : memref<128x32xf32, #tpu.memory_space<vmem>>, vector<128x1xf32>
    tpu.vector_store %arg10[%c0_92, %c16], %229 {strides = array<i32>} : memref<128x32xf32, #tpu.memory_space<vmem>>, vector<128x1xf32>,
    %231 = vector.extract_strided_slice %94 {offsets = [17, 0], sizes = [1, 128], strides = [1, 1]} : vector<32x128xf32> to vector<1x128xf32>
    %cst_93 = arith.constant -1.000000e+30 : f32
    %232 = vector.shape_cast %231 : vector<1x128xf32> to vector<1x128xf32>
    %233 = vector.broadcast %232 : vector<1x128xf32> to vector<128x128xf32>
    %234 = vector.broadcast %cst_93 : f32 to vector<128x128xf32>
    %235 = arith.select %86, %233, %234 : vector<128x128xi1>, vector<128x128xf32>
    %cst_94 = arith.constant dense<0xFF800000> : vector<128xf32>
    %236 = vector.multi_reduction <maximumf>, %235, %cst_94 [1] : vector<128x128xf32> to vector<128xf32>
    %237 = vector.shape_cast %236 : vector<128xf32> to vector<128x1xf32>
    %c0_95 = arith.constant 0 : index
    %c17 = arith.constant 17 : index
    %238 = vector.load %arg10[%c0_95, %c17] : memref<128x32xf32, #tpu.memory_space<vmem>>, vector<128x1xf32>
    tpu.vector_store %arg10[%c0_95, %c17], %237 {strides = array<i32>} : memref<128x32xf32, #tpu.memory_space<vmem>>, vector<128x1xf32>,
    %239 = vector.extract_strided_slice %94 {offsets = [18, 0], sizes = [1, 128], strides = [1, 1]} : vector<32x128xf32> to vector<1x128xf32>
    %cst_96 = arith.constant -1.000000e+30 : f32
    %240 = vector.shape_cast %239 : vector<1x128xf32> to vector<1x128xf32>
    %241 = vector.broadcast %240 : vector<1x128xf32> to vector<128x128xf32>
    %242 = vector.broadcast %cst_96 : f32 to vector<128x128xf32>
    %243 = arith.select %86, %241, %242 : vector<128x128xi1>, vector<128x128xf32>
    %cst_97 = arith.constant dense<0xFF800000> : vector<128xf32>
    %244 = vector.multi_reduction <maximumf>, %243, %cst_97 [1] : vector<128x128xf32> to vector<128xf32>
    %245 = vector.shape_cast %244 : vector<128xf32> to vector<128x1xf32>
    %c0_98 = arith.constant 0 : index
    %c18 = arith.constant 18 : index
    %246 = vector.load %arg10[%c0_98, %c18] : memref<128x32xf32, #tpu.memory_space<vmem>>, vector<128x1xf32>
    tpu.vector_store %arg10[%c0_98, %c18], %245 {strides = array<i32>} : memref<128x32xf32, #tpu.memory_space<vmem>>, vector<128x1xf32>,
    %247 = vector.extract_strided_slice %94 {offsets = [19, 0], sizes = [1, 128], strides = [1, 1]} : vector<32x128xf32> to vector<1x128xf32>
    %cst_99 = arith.constant -1.000000e+30 : f32
    %248 = vector.shape_cast %247 : vector<1x128xf32> to vector<1x128xf32>
    %249 = vector.broadcast %248 : vector<1x128xf32> to vector<128x128xf32>
    %250 = vector.broadcast %cst_99 : f32 to vector<128x128xf32>
    %251 = arith.select %86, %249, %250 : vector<128x128xi1>, vector<128x128xf32>
    %cst_100 = arith.constant dense<0xFF800000> : vector<128xf32>
    %252 = vector.multi_reduction <maximumf>, %251, %cst_100 [1] : vector<128x128xf32> to vector<128xf32>
    %253 = vector.shape_cast %252 : vector<128xf32> to vector<128x1xf32>
    %c0_101 = arith.constant 0 : index
    %c19 = arith.constant 19 : index
    %254 = vector.load %arg10[%c0_101, %c19] : memref<128x32xf32, #tpu.memory_space<vmem>>, vector<128x1xf32>
    tpu.vector_store %arg10[%c0_101, %c19], %253 {strides = array<i32>} : memref<128x32xf32, #tpu.memory_space<vmem>>, vector<128x1xf32>,
    %255 = vector.extract_strided_slice %94 {offsets = [20, 0], sizes = [1, 128], strides = [1, 1]} : vector<32x128xf32> to vector<1x128xf32>
    %cst_102 = arith.constant -1.000000e+30 : f32
    %256 = vector.shape_cast %255 : vector<1x128xf32> to vector<1x128xf32>
    %257 = vector.broadcast %256 : vector<1x128xf32> to vector<128x128xf32>
    %258 = vector.broadcast %cst_102 : f32 to vector<128x128xf32>
    %259 = arith.select %86, %257, %258 : vector<128x128xi1>, vector<128x128xf32>
    %cst_103 = arith.constant dense<0xFF800000> : vector<128xf32>
    %260 = vector.multi_reduction <maximumf>, %259, %cst_103 [1] : vector<128x128xf32> to vector<128xf32>
    %261 = vector.shape_cast %260 : vector<128xf32> to vector<128x1xf32>
    %c0_104 = arith.constant 0 : index
    %c20 = arith.constant 20 : index
    %262 = vector.load %arg10[%c0_104, %c20] : memref<128x32xf32, #tpu.memory_space<vmem>>, vector<128x1xf32>
    tpu.vector_store %arg10[%c0_104, %c20], %261 {strides = array<i32>} : memref<128x32xf32, #tpu.memory_space<vmem>>, vector<128x1xf32>,
    %263 = vector.extract_strided_slice %94 {offsets = [21, 0], sizes = [1, 128], strides = [1, 1]} : vector<32x128xf32> to vector<1x128xf32>
    %cst_105 = arith.constant -1.000000e+30 : f32
    %264 = vector.shape_cast %263 : vector<1x128xf32> to vector<1x128xf32>
    %265 = vector.broadcast %264 : vector<1x128xf32> to vector<128x128xf32>
    %266 = vector.broadcast %cst_105 : f32 to vector<128x128xf32>
    %267 = arith.select %86, %265, %266 : vector<128x128xi1>, vector<128x128xf32>
    %cst_106 = arith.constant dense<0xFF800000> : vector<128xf32>
    %268 = vector.multi_reduction <maximumf>, %267, %cst_106 [1] : vector<128x128xf32> to vector<128xf32>
    %269 = vector.shape_cast %268 : vector<128xf32> to vector<128x1xf32>
    %c0_107 = arith.constant 0 : index
    %c21 = arith.constant 21 : index
    %270 = vector.load %arg10[%c0_107, %c21] : memref<128x32xf32, #tpu.memory_space<vmem>>, vector<128x1xf32>
    tpu.vector_store %arg10[%c0_107, %c21], %269 {strides = array<i32>} : memref<128x32xf32, #tpu.memory_space<vmem>>, vector<128x1xf32>,
    %271 = vector.extract_strided_slice %94 {offsets = [22, 0], sizes = [1, 128], strides = [1, 1]} : vector<32x128xf32> to vector<1x128xf32>
    %cst_108 = arith.constant -1.000000e+30 : f32
    %272 = vector.shape_cast %271 : vector<1x128xf32> to vector<1x128xf32>
    %273 = vector.broadcast %272 : vector<1x128xf32> to vector<128x128xf32>
    %274 = vector.broadcast %cst_108 : f32 to vector<128x128xf32>
    %275 = arith.select %86, %273, %274 : vector<128x128xi1>, vector<128x128xf32>
    %cst_109 = arith.constant dense<0xFF800000> : vector<128xf32>
    %276 = vector.multi_reduction <maximumf>, %275, %cst_109 [1] : vector<128x128xf32> to vector<128xf32>
    %277 = vector.shape_cast %276 : vector<128xf32> to vector<128x1xf32>
    %c0_110 = arith.constant 0 : index
    %c22 = arith.constant 22 : index
    %278 = vector.load %arg10[%c0_110, %c22] : memref<128x32xf32, #tpu.memory_space<vmem>>, vector<128x1xf32>
    tpu.vector_store %arg10[%c0_110, %c22], %277 {strides = array<i32>} : memref<128x32xf32, #tpu.memory_space<vmem>>, vector<128x1xf32>,
    %279 = vector.extract_strided_slice %94 {offsets = [23, 0], sizes = [1, 128], strides = [1, 1]} : vector<32x128xf32> to vector<1x128xf32>
    %cst_111 = arith.constant -1.000000e+30 : f32
    %280 = vector.shape_cast %279 : vector<1x128xf32> to vector<1x128xf32>
    %281 = vector.broadcast %280 : vector<1x128xf32> to vector<128x128xf32>
    %282 = vector.broadcast %cst_111 : f32 to vector<128x128xf32>
    %283 = arith.select %86, %281, %282 : vector<128x128xi1>, vector<128x128xf32>
    %cst_112 = arith.constant dense<0xFF800000> : vector<128xf32>
    %284 = vector.multi_reduction <maximumf>, %283, %cst_112 [1] : vector<128x128xf32> to vector<128xf32>
    %285 = vector.shape_cast %284 : vector<128xf32> to vector<128x1xf32>
    %c0_113 = arith.constant 0 : index
    %c23 = arith.constant 23 : index
    %286 = vector.load %arg10[%c0_113, %c23] : memref<128x32xf32, #tpu.memory_space<vmem>>, vector<128x1xf32>
    tpu.vector_store %arg10[%c0_113, %c23], %285 {strides = array<i32>} : memref<128x32xf32, #tpu.memory_space<vmem>>, vector<128x1xf32>,
    %287 = vector.extract_strided_slice %94 {offsets = [24, 0], sizes = [1, 128], strides = [1, 1]} : vector<32x128xf32> to vector<1x128xf32>
    %cst_114 = arith.constant -1.000000e+30 : f32
    %288 = vector.shape_cast %287 : vector<1x128xf32> to vector<1x128xf32>
    %289 = vector.broadcast %288 : vector<1x128xf32> to vector<128x128xf32>
    %290 = vector.broadcast %cst_114 : f32 to vector<128x128xf32>
    %291 = arith.select %86, %289, %290 : vector<128x128xi1>, vector<128x128xf32>
    %cst_115 = arith.constant dense<0xFF800000> : vector<128xf32>
    %292 = vector.multi_reduction <maximumf>, %291, %cst_115 [1] : vector<128x128xf32> to vector<128xf32>
    %293 = vector.shape_cast %292 : vector<128xf32> to vector<128x1xf32>
    %c0_116 = arith.constant 0 : index
    %c24 = arith.constant 24 : index
    %294 = vector.load %arg10[%c0_116, %c24] : memref<128x32xf32, #tpu.memory_space<vmem>>, vector<128x1xf32>
    tpu.vector_store %arg10[%c0_116, %c24], %293 {strides = array<i32>} : memref<128x32xf32, #tpu.memory_space<vmem>>, vector<128x1xf32>,
    %295 = vector.extract_strided_slice %94 {offsets = [25, 0], sizes = [1, 128], strides = [1, 1]} : vector<32x128xf32> to vector<1x128xf32>
    %cst_117 = arith.constant -1.000000e+30 : f32
    %296 = vector.shape_cast %295 : vector<1x128xf32> to vector<1x128xf32>
    %297 = vector.broadcast %296 : vector<1x128xf32> to vector<128x128xf32>
    %298 = vector.broadcast %cst_117 : f32 to vector<128x128xf32>
    %299 = arith.select %86, %297, %298 : vector<128x128xi1>, vector<128x128xf32>
    %cst_118 = arith.constant dense<0xFF800000> : vector<128xf32>
    %300 = vector.multi_reduction <maximumf>, %299, %cst_118 [1] : vector<128x128xf32> to vector<128xf32>
    %301 = vector.shape_cast %300 : vector<128xf32> to vector<128x1xf32>
    %c0_119 = arith.constant 0 : index
    %c25 = arith.constant 25 : index
    %302 = vector.load %arg10[%c0_119, %c25] : memref<128x32xf32, #tpu.memory_space<vmem>>, vector<128x1xf32>
    tpu.vector_store %arg10[%c0_119, %c25], %301 {strides = array<i32>} : memref<128x32xf32, #tpu.memory_space<vmem>>, vector<128x1xf32>,
    %303 = vector.extract_strided_slice %94 {offsets = [26, 0], sizes = [1, 128], strides = [1, 1]} : vector<32x128xf32> to vector<1x128xf32>
    %cst_120 = arith.constant -1.000000e+30 : f32
    %304 = vector.shape_cast %303 : vector<1x128xf32> to vector<1x128xf32>
    %305 = vector.broadcast %304 : vector<1x128xf32> to vector<128x128xf32>
    %306 = vector.broadcast %cst_120 : f32 to vector<128x128xf32>
    %307 = arith.select %86, %305, %306 : vector<128x128xi1>, vector<128x128xf32>
    %cst_121 = arith.constant dense<0xFF800000> : vector<128xf32>
    %308 = vector.multi_reduction <maximumf>, %307, %cst_121 [1] : vector<128x128xf32> to vector<128xf32>
    %309 = vector.shape_cast %308 : vector<128xf32> to vector<128x1xf32>
    %c0_122 = arith.constant 0 : index
    %c26 = arith.constant 26 : index
    %310 = vector.load %arg10[%c0_122, %c26] : memref<128x32xf32, #tpu.memory_space<vmem>>, vector<128x1xf32>
    tpu.vector_store %arg10[%c0_122, %c26], %309 {strides = array<i32>} : memref<128x32xf32, #tpu.memory_space<vmem>>, vector<128x1xf32>,
    %311 = vector.extract_strided_slice %94 {offsets = [27, 0], sizes = [1, 128], strides = [1, 1]} : vector<32x128xf32> to vector<1x128xf32>
    %cst_123 = arith.constant -1.000000e+30 : f32
    %312 = vector.shape_cast %311 : vector<1x128xf32> to vector<1x128xf32>
    %313 = vector.broadcast %312 : vector<1x128xf32> to vector<128x128xf32>
    %314 = vector.broadcast %cst_123 : f32 to vector<128x128xf32>
    %315 = arith.select %86, %313, %314 : vector<128x128xi1>, vector<128x128xf32>
    %cst_124 = arith.constant dense<0xFF800000> : vector<128xf32>
    %316 = vector.multi_reduction <maximumf>, %315, %cst_124 [1] : vector<128x128xf32> to vector<128xf32>
    %317 = vector.shape_cast %316 : vector<128xf32> to vector<128x1xf32>
    %c0_125 = arith.constant 0 : index
    %c27 = arith.constant 27 : index
    %318 = vector.load %arg10[%c0_125, %c27] : memref<128x32xf32, #tpu.memory_space<vmem>>, vector<128x1xf32>
    tpu.vector_store %arg10[%c0_125, %c27], %317 {strides = array<i32>} : memref<128x32xf32, #tpu.memory_space<vmem>>, vector<128x1xf32>,
    %319 = vector.extract_strided_slice %94 {offsets = [28, 0], sizes = [1, 128], strides = [1, 1]} : vector<32x128xf32> to vector<1x128xf32>
    %cst_126 = arith.constant -1.000000e+30 : f32
    %320 = vector.shape_cast %319 : vector<1x128xf32> to vector<1x128xf32>
    %321 = vector.broadcast %320 : vector<1x128xf32> to vector<128x128xf32>
    %322 = vector.broadcast %cst_126 : f32 to vector<128x128xf32>
    %323 = arith.select %86, %321, %322 : vector<128x128xi1>, vector<128x128xf32>
    %cst_127 = arith.constant dense<0xFF800000> : vector<128xf32>
    %324 = vector.multi_reduction <maximumf>, %323, %cst_127 [1] : vector<128x128xf32> to vector<128xf32>
    %325 = vector.shape_cast %324 : vector<128xf32> to vector<128x1xf32>
    %c0_128 = arith.constant 0 : index
    %c28 = arith.constant 28 : index
    %326 = vector.load %arg10[%c0_128, %c28] : memref<128x32xf32, #tpu.memory_space<vmem>>, vector<128x1xf32>
    tpu.vector_store %arg10[%c0_128, %c28], %325 {strides = array<i32>} : memref<128x32xf32, #tpu.memory_space<vmem>>, vector<128x1xf32>,
    %327 = vector.extract_strided_slice %94 {offsets = [29, 0], sizes = [1, 128], strides = [1, 1]} : vector<32x128xf32> to vector<1x128xf32>
    %cst_129 = arith.constant -1.000000e+30 : f32
    %328 = vector.shape_cast %327 : vector<1x128xf32> to vector<1x128xf32>
    %329 = vector.broadcast %328 : vector<1x128xf32> to vector<128x128xf32>
    %330 = vector.broadcast %cst_129 : f32 to vector<128x128xf32>
    %331 = arith.select %86, %329, %330 : vector<128x128xi1>, vector<128x128xf32>
    %cst_130 = arith.constant dense<0xFF800000> : vector<128xf32>
    %332 = vector.multi_reduction <maximumf>, %331, %cst_130 [1] : vector<128x128xf32> to vector<128xf32>
    %333 = vector.shape_cast %332 : vector<128xf32> to vector<128x1xf32>
    %c0_131 = arith.constant 0 : index
    %c29 = arith.constant 29 : index
    %334 = vector.load %arg10[%c0_131, %c29] : memref<128x32xf32, #tpu.memory_space<vmem>>, vector<128x1xf32>
    tpu.vector_store %arg10[%c0_131, %c29], %333 {strides = array<i32>} : memref<128x32xf32, #tpu.memory_space<vmem>>, vector<128x1xf32>,
    %335 = vector.extract_strided_slice %94 {offsets = [30, 0], sizes = [1, 128], strides = [1, 1]} : vector<32x128xf32> to vector<1x128xf32>
    %cst_132 = arith.constant -1.000000e+30 : f32
    %336 = vector.shape_cast %335 : vector<1x128xf32> to vector<1x128xf32>
    %337 = vector.broadcast %336 : vector<1x128xf32> to vector<128x128xf32>
    %338 = vector.broadcast %cst_132 : f32 to vector<128x128xf32>
    %339 = arith.select %86, %337, %338 : vector<128x128xi1>, vector<128x128xf32>
    %cst_133 = arith.constant dense<0xFF800000> : vector<128xf32>
    %340 = vector.multi_reduction <maximumf>, %339, %cst_133 [1] : vector<128x128xf32> to vector<128xf32>
    %341 = vector.shape_cast %340 : vector<128xf32> to vector<128x1xf32>
    %c0_134 = arith.constant 0 : index
    %c30 = arith.constant 30 : index
    %342 = vector.load %arg10[%c0_134, %c30] : memref<128x32xf32, #tpu.memory_space<vmem>>, vector<128x1xf32>
    tpu.vector_store %arg10[%c0_134, %c30], %341 {strides = array<i32>} : memref<128x32xf32, #tpu.memory_space<vmem>>, vector<128x1xf32>,
    %343 = vector.extract_strided_slice %94 {offsets = [31, 0], sizes = [1, 128], strides = [1, 1]} : vector<32x128xf32> to vector<1x128xf32>
    %cst_135 = arith.constant -1.000000e+30 : f32
    %344 = vector.shape_cast %343 : vector<1x128xf32> to vector<1x128xf32>
    %345 = vector.broadcast %344 : vector<1x128xf32> to vector<128x128xf32>
    %346 = vector.broadcast %cst_135 : f32 to vector<128x128xf32>
    %347 = arith.select %86, %345, %346 : vector<128x128xi1>, vector<128x128xf32>
    %cst_136 = arith.constant dense<0xFF800000> : vector<128xf32>
    %348 = vector.multi_reduction <maximumf>, %347, %cst_136 [1] : vector<128x128xf32> to vector<128xf32>
    %349 = vector.shape_cast %348 : vector<128xf32> to vector<128x1xf32>
    %c0_137 = arith.constant 0 : index
    %c31 = arith.constant 31 : index
    %350 = vector.load %arg10[%c0_137, %c31] : memref<128x32xf32, #tpu.memory_space<vmem>>, vector<128x1xf32>
    tpu.vector_store %arg10[%c0_137, %c31], %349 {strides = array<i32>} : memref<128x32xf32, #tpu.memory_space<vmem>>, vector<128x1xf32>,
    %c0_138 = arith.constant 0 : index
    %c0_139 = arith.constant 0 : index
    %351 = vector.load %arg10[%c0_138, %c0_139] : memref<128x32xf32, #tpu.memory_space<vmem>>, vector<128x32xf32>
    %c0_140 = arith.constant 0 : index
    %c0_141 = arith.constant 0 : index
    %352 = vector.load %arg6[%c0_140, %c0_141] : memref<1x32xf32, #tpu.memory_space<vmem>>, vector<1x32xf32>
    %353 = vector.broadcast %352 : vector<1x32xf32> to vector<128x32xf32>
    %354 = arith.addf %90, %353 : vector<128x32xf32>
    %355 = arith.addf %354, %88 : vector<128x32xf32>
    %c0_142 = arith.constant 0 : index
    %c0_143 = arith.constant 0 : index
    %356 = vector.load %arg4[%c0_142, %c0_143] : memref<1x32xf32, #tpu.memory_space<vmem>>, vector<1x32xf32>
    %357 = vector.broadcast %356 : vector<1x32xf32> to vector<128x32xf32>
    %358 = arith.addf %355, %357 : vector<128x32xf32>
    %359 = arith.addf %358, %351 : vector<128x32xf32>
    %c0_144 = arith.constant 0 : index
    %c0_145 = arith.constant 0 : index
    %360 = vector.load %arg7[%c0_144, %c0_145] : memref<32x32xf32, #tpu.memory_space<vmem>>, vector<32x32xf32>
    %cst_146 = arith.constant dense<0.000000e+00> : vector<128x32xf32>
    %361 = tpu.matmul %359, %360, %cst_146 {dimension_numbers = #tpu.dot_dimension_numbers<[1], [0], [0], [1], [0, 0, 1, 1], [], []>} : vector<128x32xf32>, vector<32x32xf32>, vector<128x32xf32> -> vector<128x32xf32>
    %c0_147 = arith.constant 0 : index
    %c0_148 = arith.constant 0 : index
    %362 = vector.load %arg8[%c0_147, %c0_148] : memref<32x32xf32, #tpu.memory_space<vmem>>, vector<32x32xf32>
    %cst_149 = arith.constant dense<0.000000e+00> : vector<128x32xf32>
    %363 = tpu.matmul %359, %362, %cst_149 {dimension_numbers = #tpu.dot_dimension_numbers<[1], [0], [0], [1], [0, 0, 1, 1], [], []>} : vector<128x32xf32>, vector<32x32xf32>, vector<128x32xf32> -> vector<128x32xf32>
    %cst_150 = arith.constant dense<0.000000e+00> : vector<128x128xf32>
    %364 = tpu.matmul %361, %363, %cst_150 {dimension_numbers = #tpu.dot_dimension_numbers<[1], [1], [0], [0], [0, 0, 1, 0], [], []>} : vector<128x32xf32>, vector<128x32xf32>, vector<128x128xf32> -> vector<128x128xf32>
    %cst_151 = arith.constant 0.000000e+00 : f32
    %365 = vector.broadcast %cst_151 : f32 to vector<128x128xf32>
    %366 = arith.cmpf ogt, %1, %365 : vector<128x128xf32>
    %cst_152 = arith.constant -1.000000e+30 : f32
    %367 = vector.broadcast %cst_152 : f32 to vector<128x128xf32>
    %368 = arith.select %366, %364, %367 : vector<128x128xi1>, vector<128x128xf32>
    %cst_153 = arith.constant dense<0xFF800000> : vector<128xf32>
    %369 = vector.multi_reduction <maximumf>, %368, %cst_153 [1] : vector<128x128xf32> to vector<128xf32>
    %370 = vector.shape_cast %369 : vector<128xf32> to vector<128x1xf32>
    %cst_154 = arith.constant -5.000000e+29 : f32
    %371 = vector.broadcast %cst_154 : f32 to vector<128x1xf32>
    %372 = arith.cmpf ogt, %370, %371 : vector<128x1xf32>
    %cst_155 = arith.constant 0.000000e+00 : f32
    %373 = vector.broadcast %cst_155 : f32 to vector<128x1xf32>
    %374 = arith.select %372, %370, %373 : vector<128x1xi1>, vector<128x1xf32>
    %375 = vector.broadcast %374 : vector<128x1xf32> to vector<128x128xf32>
    %376 = arith.subf %368, %375 : vector<128x128xf32>
    %377 = math.exp %376 : vector<128x128xf32>
    %cst_156 = arith.constant 0.000000e+00 : f32
    %378 = vector.broadcast %cst_156 : f32 to vector<128x128xf32>
    %379 = arith.select %366, %377, %378 : vector<128x128xi1>, vector<128x128xf32>
    %cst_157 = arith.constant dense<0.000000e+00> : vector<128xf32>
    %380 = vector.multi_reduction <add>, %379, %cst_157 [1] : vector<128x128xf32> to vector<128xf32>
    %381 = vector.shape_cast %380 : vector<128xf32> to vector<128x1xf32>
    %cst_158 = arith.constant 9.99999996E-13 : f32
    %382 = vector.broadcast %cst_158 : f32 to vector<128x1xf32>
    %383 = arith.maximumf %381, %382 : vector<128x1xf32>
    %384 = tpu.reciprocal %383 {approx = true} : vector<128x1xf32> -> vector<128x1xf32>
    %385 = vector.broadcast %384 : vector<128x1xf32> to vector<128x128xf32>
    %386 = arith.mulf %379, %385 : vector<128x128xf32>
    %cst_159 = arith.constant dense<0.000000e+00> : vector<128x128xf32>
    %387 = tpu.matmul %386, %1, %cst_159 {dimension_numbers = #tpu.dot_dimension_numbers<[1], [0], [0], [1], [0, 0, 1, 1], [], []>} : vector<128x128xf32>, vector<128x128xf32>, vector<128x128xf32> -> vector<128x128xf32>
    %cst_160 = arith.constant dense<0.000000e+00> : vector<128x128xf32>
    %388 = tpu.matmul %387, %386, %cst_160 {dimension_numbers = #tpu.dot_dimension_numbers<[1], [1], [0], [0], [0, 0, 1, 0], [], []>} : vector<128x128xf32>, vector<128x128xf32>, vector<128x128xf32> -> vector<128x128xf32>
    %c0_161 = arith.constant 0 : index
    %c0_162 = arith.constant 0 : index
    %389 = vector.load %arg9[%c0_161, %c0_162] : memref<128x128xf32, #tpu.memory_space<vmem>>, vector<128x128xf32>
    tpu.vector_store %arg9[%c0_161, %c0_162], %388 {strides = array<i32>} : memref<128x128xf32, #tpu.memory_space<vmem>>, vector<128x128xf32>,
    return
  }
}

</mosaic_0001>

<bundles_post_ra>
// kernel: tpu_custom_call.1
= control target key start
LH: loop header
LB: loop body
LE: loop exit
PB: predicated region body
PF: predicated region fallthrough
CT: control target
= control target key end

     0   :  { %14 = vsyncpa [#allocation4], 0  ;;  %s13116_s0 = inlined_call_operand.vmem [shape: f32[128,3], index: 0, kind: input, shape index: {}]   ;;  %s13117_s1 = inlined_call_operand.vmem [shape: f32[128,128], index: 1, kind: input, shape index: {}]   ;;  %s13118_s2 = inlined_call_operand.vmem [shape: f32[1,128], index: 2, kind: input, shape index: {}]   ;;  %s13119_s3 = inlined_call_operand.hbm [shape: f32[3,32], index: 3, kind: input, shape index: {}]   ;;  %s13120_s4 = inlined_call_operand.vmem [shape: f32[1,32], index: 4, kind: input, shape index: {}]   ;;  %s13121_s5 = inlined_call_operand.hbm [shape: f32[3,32], index: 5, kind: input, shape index: {}]   ;;  %s13122_s6 = inlined_call_operand.hbm [shape: f32[1,32], index: 6, kind: input, shape index: {}]   ;;  %s13123_s7 = inlined_call_operand.hbm [shape: f32[32,32], index: 7, kind: input, shape index: {}]   ;;  %s13124_s8 = inlined_call_operand.vmem [shape: f32[32,32], index: 8, kind: input, shape index: {}]   ;;  %s13125_s9 = inlined_call_operand.hbm [shape: f32[128,128], index: 9, kind: output, shape index: {}]  }
   0x1   :  { %15 = vsyncpa [#allocation7], 0 }
   0x2   :  { %16 = vsyncpa [#allocation10], 0 }
   0x3   :  { %17 = vsyncpa [#allocation5], 0  ;;  %s8159_s30 = smov [#allocation6]   ;;  %s8160_s11 = smov [#allocation3]  }
   0x4   :  { %s42_s10 = sshll.u32 %s8159_s30, 4  ;;  %s30_s12 = sshll.u32 %s8160_s11, 4  ;;  %s43_s10 = int_to_ptr.vmem [resolvable:$true] %s42_s10  ;;  %s31_s12 = int_to_ptr.vmem [resolvable:$true] %s30_s12 }
   0x5   :  { %s8041_s15 = scalar_lea.hbm %s13121_s5, 64 }
   0x6   :  { %p8042_p0 = scmp.ne.s32.totalorder %s13121_s5, %s8041_s15  ;;  %p8045_p1 = scmp.lt.u32.totalorder %s8041_s15, %s13121_s5 }
   0x8   :  { %p8047_p2 = pnand %p8045_p1, %p8042_p0 }
   0xa   :  { %8050 = shalt.err (!%p8047_p2)
}
   0xb   :  { %s8051_s20 = scalar_lea.vmem %s43_s10, 64  ;;  %p8056_p4 = scmp.lt.s32.totalorder %s43_s10, %s43_s10 }
   0xc   :  { %p8052_p3 = scmp.ne.s32.totalorder %s43_s10, %s8051_s20  ;;  %p8057_p5 = scmp.lt.s32.totalorder %s8051_s20, %s8051_s20 }
   0xe   :  { %p8058_p6 = por %p8057_p5, %p8056_p4 }
  0x10   :  { %p8059_p7 = pnand %p8058_p6, %p8052_p3 }
  0x12   :  { %8062 = shalt.err (!%p8059_p7)
}
  0x13   :  { %45 = dma.hbm_to_vmem [thread:$0]  %s13121_s5, 64, %s43_s10, [#allocation7]  }
  0x14   :  { %s8063_s25 = scalar_lea.hbm %s13119_s3, 64 }
  0x15   :  { %p8064_p8 = scmp.ne.s32.totalorder %s13119_s3, %s8063_s25  ;;  %p8067_p9 = scmp.lt.u32.totalorder %s8063_s25, %s13119_s3 }
  0x17   :  { %p8069_p10 = pnand %p8067_p9, %p8064_p8 }
  0x19   :  { %8072 = shalt.err (!%p8069_p10)
}
  0x1a   :  { %s8073_s30 = scalar_lea.vmem %s31_s12, 64  ;;  %p8078_p12 = scmp.lt.s32.totalorder %s31_s12, %s31_s12 }
  0x1b   :  { %p8074_p11 = scmp.ne.s32.totalorder %s31_s12, %s8073_s30  ;;  %p8079_p13 = scmp.lt.s32.totalorder %s8073_s30, %s8073_s30 }
  0x1d   :  { %p8080_p0 = por %p8079_p13, %p8078_p12 }
  0x1f   :  { %p8081_p1 = pnand %p8080_p0, %p8074_p11 }
  0x21   :  { %8084 = shalt.err (!%p8081_p1)
}
  0x22   :  { %33 = dma.hbm_to_vmem [thread:$0]  %s13119_s3, 64, %s31_s12, [#allocation4]  }
  0x23   :  { %s8161_s11 = smov [#allocation8]   ;;  %s8162_s14 = smov [#allocation9]  }
  0x24   :  { %s52_s13 = sshll.u32 %s8161_s11, 4  ;;  %s61_s15 = sshll.u32 %s8162_s14, 4  ;;  %s53_s13 = int_to_ptr.vmem [resolvable:$true] %s52_s13  ;;  %s8242_s15 = int_to_ptr.vmem [resolvable:$true] %s61_s15 }
  0x25   :  { %s8085_s18 = scalar_lea.hbm %s13122_s6, 16 }
  0x26   :  { %p8086_p2 = scmp.ne.s32.totalorder %s13122_s6, %s8085_s18  ;;  %p8089_p3 = scmp.lt.u32.totalorder %s8085_s18, %s13122_s6 }
  0x28   :  { %p8091_p4 = pnand %p8089_p3, %p8086_p2 }
  0x2a   :  { %8094 = shalt.err (!%p8091_p4)
}
  0x2b   :  { %s8095_s3 = scalar_lea.vmem %s53_s13, 16  ;;  %s8099_s12 = scalar_lea.vmem %s53_s13, 32 }
  0x2c   :  { %p8096_p5 = scmp.ne.s32.totalorder %s53_s13, %s8095_s3  ;;  %p8100_p6 = scmp.lt.s32.totalorder %s53_s13, %s53_s13 }
  0x2d   :  { %p8101_p7 = scmp.lt.s32.totalorder %s8099_s12, %s8095_s3 }
  0x2f   :  { %p8102_p8 = por %p8101_p7, %p8100_p6 }
  0x31   :  { %p8103_p9 = pnand %p8102_p8, %p8096_p5 }
  0x33   :  { %8106 = shalt.err (!%p8103_p9)
}
  0x34   :  { %55 = dma.hbm_to_vmem [thread:$0]  %s13122_s6, 16, %s53_s13, [#allocation7]  }
  0x35   :  { %s8107_s27 = scalar_lea.hbm %s13123_s7, 512 }
  0x36   :  { %p8108_p10 = scmp.ne.s32.totalorder %s13123_s7, %s8107_s27  ;;  %p8111_p11 = scmp.lt.u32.totalorder %s8107_s27, %s13123_s7 }
  0x38   :  { %p8113_p12 = pnand %p8111_p11, %p8108_p10 }
  0x3a   :  { %8116 = shalt.err (!%p8113_p12)
}
  0x3b   :  { %s8117_s10 = scalar_lea.vmem %s8242_s15, 512  ;;  %p8122_p0 = scmp.lt.s32.totalorder %s8242_s15, %s8242_s15 }
  0x3c   :  { %p8118_p13 = scmp.ne.s32.totalorder %s8242_s15, %s8117_s10  ;;  %p8123_p1 = scmp.lt.s32.totalorder %s8117_s10, %s8117_s10 }
  0x3e   :  { %p8124_p2 = por %p8123_p1, %p8122_p0 }
  0x40   :  { %p8125_p3 = pnand %p8124_p2, %p8118_p13 }
  0x42   :  { %8128 = shalt.err (!%p8125_p3)
}
  0x43   :  { %s8163_s6 = smov 128   ;;  %s8164_s11 = smov 8  }
  0x44   :  { %67 = dma.hbm_to_vmem [thread:$0]  %s13123_s7, 512, %s8242_s15, [#allocation10], %s8163_s6, %s8163_s6, %s8164_s11  }
  0x45   :  { %8151 = dma.done.wait [#allocation4], 64  }
  0x46   :  { %8152 = vsyncadd [#allocation4], 4294967232 }
  0x47   :  { %8153 = dma.done.wait [#allocation7], 80  }
  0x48   :  { %8154 = vsyncadd [#allocation7], 4294967216 }
  0x49   :  { %8155 = dma.done.wait [#allocation10], 512  }
  0x4a   :  { %8156 = vsyncadd [#allocation10], 4294966784  ;;  %vm13175_vm0 = vcmask 23552   ;;  %v8279_v0 = vld [vmem:[%s13116_s0] sm:$0xff]  ;;  %v8284_v1 = vld [vmem:[%s13116_s0 + $0x8] sm:$0xff]  ;;  %vm13176_vm1 = vcmask 1042432  }
  0x4b   :  { %v8289_v2 = vld [vmem:[%s13116_s0 + $0x10] sm:$0xff]  ;;  %v181_v3 = vsel %vm13175_vm0, %v8279_v0, 0  ;;  %v8295_v4 = vsel %vm13175_vm0, %v8284_v1, 0  ;;  %v8300_v5 = vld [vmem:[%s13116_s0 + $0x18] sm:$0xff]  ;;  %v8321_v11 = vld [vmem:[%s13116_s0 + $0x20] sm:$0xff]  ;;  %v115_v45 = vmul.f32 %v8279_v0, %v8279_v0  ;;  %v116_v46 = vmul.f32 %v8284_v1, %v8284_v1 }
  0x4c   :  { %13279 = vst [vmem:[#allocation16_spill] sm:$0xff] %v8289_v2  ;;  %13280 = vst [vmem:[#allocation17_spill] sm:$0xff] %v8300_v5  ;;  %v8304_v6 = vsel %vm13175_vm0, %v8289_v2, 0  ;;  %v8306_v7 = vand.u32 4294901760, %v181_v3  ;;  %v8309_v8 = vand.u32 4294901760, %v8295_v4  ;;  %v8313_v9 = vsel %vm13175_vm0, %v8300_v5, 0 }
  0x4d   :  { %v8316_v10 = vand.u32 4294901760, %v8304_v6  ;;  %13281 = vst [vmem:[#allocation18_spill] sm:$0xff] %v8321_v11  ;;  %v8326_v12 = vld [vmem:[%s13116_s0 + $0x28] sm:$0xff]  ;;  %v8329_v13 = vand.u32 4294901760, %v8313_v9  ;;  %v8338_v15 = vld [vmem:[%s13116_s0 + $0x50] sm:$0xff]  ;;  %v8346_v17 = vsel %vm13175_vm0, %v8321_v11, 0  ;;  %v119_v55 = vmul.f32 %v8321_v11, %v8321_v11  ;;  %vm8846_vm2 = vmpackc.low %vm13175_vm0, %vm13175_vm0 }
  0x4e   :  { %v8333_v14 = vpack.c.bf16 %v8309_v8, %v8306_v7  ;;  %13282 = vst [vmem:[#allocation19_spill] sm:$0xff] %v8338_v15  ;;  %v8350_v18 = vsel %vm13175_vm0, %v8326_v12, 0  ;;  %v8355_v19 = vsel %vm13175_vm0, %v8338_v15, 0  ;;  %v8357_v20 = vld [vmem:[#allocation3] sm:$0x7]  ;;  %v8367_v22 = vand.u32 4294901760, %v8346_v17 }
  0x4f   :  { %v8342_v16 = vpack.c.bf16 %v8329_v13, %v8316_v10  ;;  %v8362_v21 = vand.u32 4294901760, %v8355_v19  ;;  %2575 = vxpose.xlu1.b32.start.end [1/1] (short) (narrow) %v8357_v20, 32  ;;  %v8370_v23 = vand.u32 4294901760, %v8350_v18  ;;  %v8378_v24 = vld [vmem:[%s13116_s0 + $0x30] sm:$0xff]  ;;  %v8383_v25 = vld [vmem:[%s13116_s0 + $0x38] sm:$0xff]  ;;  %v8386_v26 = vsub.f32 %v181_v3, %v8306_v7  ;;  %v8420_v35 = vld [vmem:[%s13116_s0 + $0x40] sm:$0xff] }
  0x50   :  { %7440 = vmatprep.subr.bf16.mxu0 %v8333_v14  ;;  %7807 = vmatprep.subr.bf16.mxu1 %v8333_v14  ;;  %13283 = vst [vmem:[#allocation20_spill] sm:$0xff] %v8378_v24  ;;  %13284 = vst [vmem:[#allocation21_spill] sm:$0xff] %v8383_v25  ;;  %v8397_v29 = vsel %vm13175_vm0, %v8378_v24, 0  ;;  %v8401_v30 = vsel %vm13175_vm0, %v8383_v25, 0  ;;  %v8425_v36 = vld [vmem:[%s13116_s0 + $0x48] sm:$0xff]  ;;  %v8434_v38 = vsel %vm13175_vm0, %v8420_v35, 0  ;;  %v8527_v62 = vsub.f32 %v8295_v4, %v8309_v8 }
  0x51   :  { %7442 = vmatpush3.bf16.xpose.msra.mxu0 %v8333_v14  ;;  %7815 = vmatpush3.bf16.xpose.msra.mxu1 %v8333_v14  ;;  %v8390_v27 = vpack.c.bf16 %v8370_v23, %v8367_v22  ;;  %v8393_v28 = vand.u32 4294901760, %v8386_v26  ;;  %v8408_v32 = vand.u32 4294901760, %v8397_v29  ;;  %v8411_v33 = vand.u32 4294901760, %v8401_v30  ;;  %13285 = vst [vmem:[#allocation22_spill] sm:$0xff] %v8420_v35  ;;  %13286 = vst [vmem:[#allocation23_spill] sm:$0xff] %v8425_v36  ;;  %v8453_v42 = vld [vmem:[%s13116_s0 + $0x58] sm:$0xff] }
  0x52   :  { %7444 = vmatprep.subr.bf16.mxu0 %v8342_v16  ;;  %7808 = vmatprep.subr.bf16.mxu1 %v8342_v16  ;;  %v8438_v39 = vsel %vm13175_vm0, %v8425_v36, 0  ;;  %v8443_v40 = vand.u32 4294901760, %v8434_v38  ;;  %v8461_v44 = vsel %vm13175_vm0, %v8453_v42, 0  ;;  %v132_v47 = vsel %vm13175_vm0, %v115_v45, 0.0  ;;  %v8478_v50 = vld [vmem:[%s13116_s0 + $0x60] sm:$0xff]  ;;  %v8483_v51 = vld [vmem:[%s13116_s0 + $0x68] sm:$0xff] }
  0x53   :  { %7108 = vmatprep.mubr.f32.mxu1 %v8362_v21  ;;  %v312_v31 = vsub.f32 %v8386_v26, %v8393_v28  ;;  %v8430_v37 = vpack.c.bf16 %v8411_v33, %v8408_v32  ;;  %v8446_v41 = vand.u32 4294901760, %v8438_v39  ;;  %v8471_v48 = vand.u32 4294901760, %v8461_v44  ;;  %133 = vadd.xlane.f32.xlu0 %v132_v47  ;;  %v8513_v59 = vld [vmem:[%s13116_s0 + $0x70] sm:$0xff]  ;;  %v8518_v60 = vld [vmem:[%s13116_s0 + $0x78] sm:$0xff] }
  0x54   :  { %v135_v49 = vsel %vm13175_vm0, %v116_v46, 0.0  ;;  %v8492_v53 = vsel %vm13175_vm0, %v8478_v50, 0  ;;  %v8496_v54 = vsel %vm13175_vm0, %v8483_v51, 0  ;;  %v144_v58 = vsel %vm13175_vm0, %v119_v55, 0.0  ;;  %13288 = vst [vmem:[#allocation25_spill] sm:$0xff] %v8518_v60 }
  0x55   :  { %v8413_v34 = vand.u32 4294901760, %v312_v31  ;;  %v8457_v43 = vpack.c.bf16 %v8446_v41, %v8443_v40  ;;  %v8488_v52 = vpack.c.bf16 %v8471_v48, %v8362_v21  ;;  %v8503_v56 = vand.u32 4294901760, %v8492_v53 }
  0x56   :  { %v8506_v57 = vand.u32 4294901760, %v8496_v54  ;;  %v8531_v63 = vsel %vm13175_vm0, %v8513_v59, 0  ;;  %v8535_v3 = vsel %vm13175_vm0, %v8518_v60, 0  ;;  %v121_v31 = vmul.f32 %v8378_v24, %v8378_v24 }
  0x57   :  { %6813 = vmatprep.mubr.f32.mxu0 %v8413_v34  ;;  %13287 = vst [vmem:[#allocation24_spill] sm:$0xff] %v8488_v52  ;;  %136 = vadd.xlane.f32.xlu0 %v135_v49  ;;  %v8542_v45 = vand.u32 4294901760, %v8531_v63  ;;  %v8545_v4 = vand.u32 4294901760, %v8535_v3  ;;  %v8548_v46 = vand.u32 4294901760, %v8527_v62  ;;  %v117_v49 = vmul.f32 %v8289_v2, %v8289_v2 }
  0x58   :  { %v8523_v61 = vpack.c.bf16 %v8506_v57, %v8503_v56  ;;  %v150_v47 = vsel %vm13175_vm0, %v121_v31, 0.0  ;;  %v8563_v24 = vsub.f32 %v8304_v6, %v8316_v10  ;;  %v8567_v31 = vsub.f32 %v8313_v9, %v8329_v13 }
  0x59   :  { %7446 = vmatpush3.bf16.xpose.msra.mxu0 %v8342_v16  ;;  %7816 = vmatpush3.bf16.xpose.msra.mxu1 %v8342_v16  ;;  %13290 = vst [vmem:[#allocation27_spill] sm:$0xff] %v8548_v46  ;;  %v8557_v55 = vpack.c.bf16 %v8545_v4, %v8542_v45  ;;  %v118_v11 = vmul.f32 %v8300_v5, %v8300_v5 }
  0x5a   :  { %7448 = vmatprep.subr.bf16.mxu0 %v8390_v27  ;;  %7809 = vmatprep.subr.bf16.mxu1 %v8390_v27  ;;  %13289 = vst [vmem:[#allocation26_spill] sm:$0xff] %v8523_v61  ;;  %v8577_v6 = vand.u32 4294901760, %v8563_v24  ;;  %v8580_v2 = vand.u32 4294901760, %v8567_v31 }
  0x5b   :  { %145 = vadd.xlane.f32.xlu0 %v144_v58  ;;  %13291 = vst [vmem:[#allocation28_spill] sm:$0xff] %v8557_v55  ;;  %v322_v58 = vsub.f32 %v8527_v62, %v8548_v46 }
  0x5c   :  { %13292 = vst [vmem:[#allocation29_spill] sm:$0xff] %v8577_v6  ;;  %13293 = vst [vmem:[#allocation30_spill] sm:$0xff] %v8580_v2 }
  0x5d   :  { %v323_v46 = vand.u32 4294901760, %v322_v58  ;;  %v120_v58 = vmul.f32 %v8326_v12, %v8326_v12 }
  0x5f   :  { %151 = vadd.xlane.f32.xlu0 %v150_v47  ;;  %v138_v47 = vsel %vm13175_vm0, %v117_v49, 0.0  ;;  %v8586_v49 = vsub.f32 %v8346_v17, %v8367_v22  ;;  %v7471_v5 = vpack.c.bf16 %v323_v46, %v8413_v34  ;;  %v147_v17 = vsel %vm13175_vm0, %v120_v58, 0.0 }
  0x60   :  { %v122_v34 = vmul.f32 %v8383_v25, %v8383_v25  ;;  %v8621_v58 = vsub.f32 %v8401_v30, %v8411_v33 }
  0x61   :  { %7450 = vmatpush3.bf16.xpose.msra.mxu0 %v8390_v27  ;;  %7817 = vmatpush3.bf16.xpose.msra.mxu1 %v8390_v27 }
  0x62   :  { %7452 = vmatprep.subr.bf16.mxu0 %v8430_v37  ;;  %7810 = vmatprep.subr.bf16.mxu1 %v8430_v37  ;;  %v8638_v30 = vand.u32 4294901760, %v8621_v58 }
  0x64   :  { %13297 = vst [vmem:[#allocation34_spill] sm:$0xff] %v8638_v30 }
  0x69   :  { %7454 = vmatpush3.bf16.xpose.msra.mxu0 %v8430_v37  ;;  %7818 = vmatpush3.bf16.xpose.msra.mxu1 %v8430_v37 }
  0x6a   :  { %7456 = vmatprep.subr.bf16.mxu0 %v8457_v43  ;;  %7811 = vmatprep.subr.bf16.mxu1 %v8457_v43 }
  0x71   :  { %7458 = vmatpush3.bf16.xpose.msra.mxu0 %v8457_v43  ;;  %7819 = vmatpush3.bf16.xpose.msra.mxu1 %v8457_v43 }
  0x72   :  { %7460 = vmatprep.subr.bf16.mxu0 %v8488_v52  ;;  %7812 = vmatprep.subr.bf16.mxu1 %v8488_v52 }
  0x79   :  { %7462 = vmatpush3.bf16.xpose.msra.mxu0 %v8488_v52  ;;  %7820 = vmatpush3.bf16.xpose.msra.mxu1 %v8488_v52  ;;  %v123_v52 = vmul.f32 %v8420_v35, %v8420_v35  ;;  %v141_v35 = vsel %vm13175_vm0, %v118_v11, 0.0  ;;  %v8604_v11 = vsub.f32 %v8397_v29, %v8408_v32 }
  0x7a   :  { %7464 = vmatprep.subr.bf16.mxu0 %v8523_v61  ;;  %7813 = vmatprep.subr.bf16.mxu1 %v8523_v61 }
  0x7b   :  { %v156_v9 = vsel %vm13175_vm0, %v123_v52, 0.0  ;;  %v332_v52 = vsub.f32 %v8563_v24, %v8577_v6  ;;  %v125_v6 = vmul.f32 %v8338_v15, %v8338_v15  ;;  %v153_v15 = vsel %vm13175_vm0, %v122_v34, 0.0 }
  0x7c   :  { %157 = vadd.xlane.f32.xlu0 %v156_v9  ;;  %v8599_v9 = vsub.f32 %v8350_v18, %v8370_v23  ;;  %v8612_v18 = vand.u32 4294901760, %v8586_v49 }
  0x7d   :  { %v162_v29 = vsel %vm13175_vm0, %v125_v6, 0.0 }
  0x7e   :  { %13294 = vst [vmem:[#allocation31_spill] sm:$0xff] %v8612_v18  ;;  %v352_v25 = vsub.f32 %v8586_v49, %v8612_v18 }
  0x80   :  { %163 = vadd.xlane.f32.xlu0 %v162_v29  ;;  %v126_v29 = vmul.f32 %v8453_v42, %v8453_v42  ;;  %v353_v18 = vand.u32 4294901760, %v352_v25  ;;  %v382_v25 = vsub.f32 %v8621_v58, %v8638_v30 }
  0x81   :  { %7466 = vmatpush3.bf16.xpose.msra.mxu0 %v8523_v61  ;;  %7821 = vmatpush3.bf16.xpose.msra.mxu1 %v8523_v61 }
  0x82   :  { %7468 = vmatprep.subr.bf16.mxu0 %v8557_v55  ;;  %139 = vadd.xlane.f32.xlu1 %v138_v47  ;;  %v342_v47 = vsub.f32 %v8567_v31, %v8580_v2  ;;  %v333_v2 = vand.u32 4294901760, %v332_v52  ;;  %v124_v52 = vmul.f32 %v8425_v36, %v8425_v36 }
  0x83   :  { %7814 = vmatprep.subr.bf16.mxu1 %v8557_v55 }
  0x84   :  { %v343_v61 = vand.u32 4294901760, %v342_v47  ;;  %v159_v34 = vsel %vm13175_vm0, %v124_v52, 0.0 }
  0x86   :  { %142 = vadd.xlane.f32.xlu1 %v141_v35  ;;  %v8615_v35 = vand.u32 4294901760, %v8599_v9  ;;  %v7475_v47 = vpack.c.bf16 %v343_v61, %v333_v2 }
  0x88   :  { %13295 = vst [vmem:[#allocation32_spill] sm:$0xff] %v8615_v35  ;;  %v362_v6 = vsub.f32 %v8599_v9, %v8615_v35  ;;  %v127_v35 = vmul.f32 %v8478_v50, %v8478_v50 }
  0x89   :  { %7470 = vmatpush3.bf16.xpose.msra.mxu0 %v8557_v55  ;;  %7822 = vmatpush3.bf16.xpose.msra.mxu1 %v8557_v55  ;;  %v8631_v55 = vand.u32 4294901760, %v8604_v11 }
  0x8a   :  { %7472 = vmatprep.subr.bf16.mxu0 %v7471_v5  ;;  %148 = vadd.xlane.f32.xlu1 %v147_v17  ;;  %v8635_v17 = vsub.f32 %v8434_v38, %v8443_v40  ;;  %v363_v36 = vand.u32 4294901760, %v362_v6 }
  0x8b   :  { %13296 = vst [vmem:[#allocation33_spill] sm:$0xff] %v8631_v55  ;;  %v372_v38 = vsub.f32 %v8604_v11, %v8631_v55  ;;  %7117 = vmatprep.subr.msk.mxu1 %vm13176_vm1, %v8357_v20 }
  0x8c   :  { %v7479_v52 = vpack.c.bf16 %v363_v36, %v353_v18 }
  0x8d   :  { %v373_v6 = vand.u32 4294901760, %v372_v38  ;;  %v129_v38 = vmul.f32 %v8513_v59, %v8513_v59 }
  0x8e   :  { %154 = vadd.xlane.f32.xlu1 %v153_v15  ;;  %v8657_v15 = vsub.f32 %v8355_v19, %v8362_v21  ;;  %v8669_v19 = vsub.f32 %v8461_v44, %v8471_v48  ;;  %v383_v44 = vand.u32 4294901760, %v382_v25 }
  0x90   :  { %6814 = vmatmul.mubr.f32.vlgmr.msra.gmra.mrb[0].mxu0 %v323_v46  ;;  %7109 = vmatmul.mubr.f32.vlgmr.msra.gmra.mrb[0].mxu1 %v8471_v48  ;;  %v168_v46 = vsel %vm13175_vm0, %v127_v35, 0.0  ;;  %v8675_v35 = vand.u32 4294901760, %v8657_v15 }
  0x91   :  { %7474 = vmatpush3.bf16.xpose.msra.mxu0 %v7471_v5  ;;  %6816 = vmatprep.mubr.f32.mxu0 %v333_v2  ;;  %v8649_v5 = vsub.f32 %v8438_v39, %v8446_v41  ;;  %v8653_v2 = vand.u32 4294901760, %v8635_v17  ;;  %v165_v39 = vsel %vm13175_vm0, %v126_v29, 0.0 }
  0x92   :  { %7476 = vmatprep.subr.bf16.mxu0 %v7475_v47  ;;  %7111 = vmatprep.mubr.f32.mxu1 %v8503_v56  ;;  %13300 = vst [vmem:[#allocation37_spill] sm:$0xff] %v8675_v35  ;;  %v412_v25 = vsub.f32 %v8657_v15, %v8675_v35  ;;  %v8716_v35 = vsub.f32 %v8535_v3, %v8545_v4 }
  0x93   :  { %13298 = vst [vmem:[#allocation35_spill] sm:$0xff] %v8653_v2  ;;  %160 = vadd.xlane.f32.xlu1 %v159_v34  ;;  %169 = vadd.xlane.f32.xlu0 %v168_v46  ;;  %v8665_v55 = vand.u32 4294901760, %v8649_v5  ;;  %v8679_v34 = vsub.f32 %v8492_v53, %v8503_v56  ;;  %v8690_v46 = vand.u32 4294901760, %v8669_v19 }
  0x94   :  { %6817 = vmatmul.mubr.f32.gmra.mrb[2].mxu0 %v343_v61  ;;  %7112 = vmatmul.mubr.f32.gmra.mrb[2].mxu1 %v8506_v57  ;;  %v392_v61 = vsub.f32 %v8635_v17, %v8653_v2  ;;  %v8694_v2 = vsub.f32 %v8496_v54, %v8506_v57  ;;  %v7483_v54 = vpack.c.bf16 %v383_v44, %v373_v6 }
  0x95   :  { %6819 = vmatprep.mubr.f32.mxu0 %v353_v18  ;;  %13299 = vst [vmem:[#allocation36_spill] sm:$0xff] %v8665_v55  ;;  %v128_v18 = vmul.f32 %v8483_v51, %v8483_v51  ;;  %7114 = vmatprep.mubr.f32.mxu1 %v8542_v45  ;;  %v402_v53 = vsub.f32 %v8649_v5, %v8665_v55  ;;  %13301 = vst [vmem:[#allocation38_spill] sm:$0xff] %v8690_v46 }
  0x96   :  { %v8712_v55 = vand.u32 4294901760, %v8694_v2  ;;  %7118 = vmatpush3.msk.msra.mxu1 %vm13176_vm1, %v8357_v20 }
  0x97   :  { %166 = vadd.xlane.f32.xlu1 %v165_v39  ;;  %v171_v29 = vsel %vm13175_vm0, %v128_v18, 0.0  ;;  %v8704_v39 = vand.u32 4294901760, %v8679_v34  ;;  %v174_v18 = vsel %vm13175_vm0, %v129_v38, 0.0  ;;  %v413_v38 = vand.u32 4294901760, %v412_v25 }
  0x98   :  { %6820 = vmatmul.mubr.f32.gmra.mrb[4].mxu0 %v363_v36  ;;  %v8698_v36 = vsub.f32 %v8531_v63, %v8542_v45  ;;  %7115 = vmatmul.mubr.f32.gmra.mrb[4].mxu1 %v8545_v4  ;;  %v403_v63 = vand.u32 4294901760, %v402_v53  ;;  %v442_v3 = vsub.f32 %v8694_v2, %v8712_v55  ;;  %v8729_v25 = vand.u32 4294901760, %v8716_v35 }
  0x99   :  { %7478 = vmatpush3.bf16.xpose.msra.mxu0 %v7475_v47  ;;  %6822 = vmatprep.mubr.f32.mxu0 %v373_v6  ;;  %v393_v47 = vand.u32 4294901760, %v392_v61  ;;  %13302 = vst [vmem:[#allocation39_spill] sm:$0xff] %v8704_v39  ;;  %v422_v61 = vsub.f32 %v8669_v19, %v8690_v46  ;;  %v432_v30 = vsub.f32 %v8679_v34, %v8704_v39 }
  0x9a   :  { %7480 = vmatprep.subr.bf16.mxu0 %v7479_v52  ;;  %7119 = vmatprep.mubr.msk.f32.mxu1 %vm13175_vm0, %v8279_v0  ;;  %v130_v6 = vmul.f32 %v8518_v60, %v8518_v60 }
  0x9b   :  { %172 = vadd.xlane.f32.xlu1 %v171_v29  ;;  %175 = vadd.xlane.f32.xlu0 %v174_v18  ;;  %v8721_v29 = vand.u32 4294901760, %v8698_v36  ;;  %v423_v53 = vand.u32 4294901760, %v422_v61  ;;  %v433_v18 = vand.u32 4294901760, %v432_v30  ;;  %v7487_v46 = vpack.c.bf16 %v403_v63, %v393_v47 }
  0x9c   :  { %6823 = vmatmul.mubr.f32.gmra.mrb[6].mxu0 %v383_v44  ;;  %v177_v44 = vsel %vm13175_vm0, %v130_v6, 0.0  ;;  %v462_v6 = vsub.f32 %v8716_v35, %v8729_v25  ;;  %7120 = vmatmul.mubr.msk.f32.vlgmr.msra.gmra.mrb[6].mxu1 %vm13175_vm0, %v8284_v1 }
  0x9d   :  { %6825 = vmatprep.mubr.f32.mxu0 %v393_v47  ;;  %v452_v39 = vsub.f32 %v8698_v36, %v8721_v29  ;;  %v7491_v30 = vpack.c.bf16 %v423_v53, %v413_v38  ;;  %v7595_v20 = vpack.c.bf16 %v8729_v25, %v8721_v29 }
  0x9e   :  { %v463_v61 = vand.u32 4294901760, %v462_v6 }
  0x9f   :  { %178 = vadd.xlane.f32.xlu1 %v177_v44  ;;  %v453_v60 = vand.u32 4294901760, %v452_v39  ;;  %v7503_v39 = vpack.c.bf16 %v8527_v62, %v8386_v26 }
  0xa0   :  { %6826 = vmatmul.mubr.f32.gmra.mrb[8].mxu0 %v403_v63  ;;  %v7519_v63 = vpack.c.bf16 %v8649_v5, %v8635_v17 }
  0xa1   :  { %7482 = vmatpush3.bf16.xpose.msra.mxu0 %v7479_v52  ;;  %6828 = vmatprep.mubr.f32.mxu0 %v413_v38  ;;  %v443_v52 = vand.u32 4294901760, %v442_v3  ;;  %v7499_v47 = vpack.c.bf16 %v463_v61, %v453_v60  ;;  %v7523_v38 = vpack.c.bf16 %v8669_v19, %v8657_v15 }
  0xa2   :  { %7484 = vmatprep.subr.bf16.mxu0 %v7483_v54 }
  0xa3   :  { %v7495_v44 = vpack.c.bf16 %v443_v52, %v433_v18 }
  0xa4   :  { %6829 = vmatmul.mubr.f32.gmra.mrb[10].mxu0 %v423_v53  ;;  %v7527_v53 = vpack.c.bf16 %v8694_v2, %v8679_v34 }
  0xa5   :  { %6831 = vmatprep.mubr.f32.mxu0 %v433_v18 }
  0xa8   :  { %6832 = vmatmul.mubr.f32.gmra.mrb[12].mxu0 %v443_v52 }
  0xa9   :  { %7486 = vmatpush3.bf16.xpose.msra.mxu0 %v7483_v54  ;;  %6834 = vmatprep.mubr.f32.mxu0 %v453_v60  ;;  %v7507_v54 = vpack.c.bf16 %v8567_v31, %v8563_v24  ;;  %v7511_v60 = vpack.c.bf16 %v8599_v9, %v8586_v49 }
  0xaa   :  { %7488 = vmatprep.subr.bf16.mxu0 %v7487_v46 }
  0xac   :  { %6835 = vmatmul.mubr.f32.gmra.mrb[14].mxu0 %v463_v61 }
  0xad   :  { %6869 = vmatprep.mubr.f32.mxu0 %v8306_v7 }
  0xb1   :  { %7490 = vmatpush3.bf16.xpose.msra.mxu0 %v7487_v46  ;;  %v7515_v46 = vpack.c.bf16 %v8621_v58, %v8604_v11 }
  0xb2   :  { %7492 = vmatprep.subr.bf16.mxu0 %v7491_v30 }
  0xb9   :  { %7494 = vmatpush3.bf16.xpose.msra.mxu0 %v7491_v30 }
  0xba   :  { %7496 = vmatprep.subr.bf16.mxu0 %v7495_v44 }
  0xc1   :  { %7498 = vmatpush3.bf16.xpose.msra.mxu0 %v7495_v44 }
  0xc2   :  { %7500 = vmatprep.subr.bf16.mxu0 %v7499_v47 }
  0xc9   :  { %7502 = vmatpush3.bf16.xpose.msra.mxu0 %v7499_v47 }
  0xca   :  { %7504 = vmatprep.subr.bf16.mxu0 %v7503_v39 }
  0xcf   :  { %v8769_v18 = vpop.trf.xlu1 }
  0xd0   :  { %6870 = vmatmul.mubr.f32.vlgmr.msra.gmra.mrb[0].mxu0 %v8309_v8 }
  0xd1   :  { %7506 = vmatpush3.bf16.xpose.msra.mxu0 %v7503_v39  ;;  %6872 = vmatprep.mubr.f32.mxu0 %v8316_v10 }
  0xd2   :  { %7508 = vmatprep.subr.bf16.mxu0 %v7507_v54 }
  0xd3   :  { %v8776_v6 = vpop.trf.xlu1 }
  0xd4   :  { %6873 = vmatmul.mubr.f32.gmra.mrb[2].mxu0 %v8329_v13 }
  0xd5   :  { %6875 = vmatprep.mubr.f32.mxu0 %v8367_v22 }
  0xd7   :  { %v8778_v61 = vpop.trf.xlu1 }
  0xd8   :  { %6876 = vmatmul.mubr.f32.gmra.mrb[4].mxu0 %v8370_v23 }
  0xd9   :  { %7510 = vmatpush3.bf16.xpose.msra.mxu0 %v7507_v54  ;;  %6878 = vmatprep.mubr.f32.mxu0 %v8408_v32  ;;  %v13312_v54 = vld [vmem:[#allocation26_spill] sm:$0xff] }
  0xda   :  { %7512 = vmatprep.subr.bf16.mxu0 %v7511_v60 }
  0xdb   :  { %v8781_v30 = vpop.trf.xlu1 }
  0xdc   :  { %6879 = vmatmul.mubr.f32.gmra.mrb[6].mxu0 %v8411_v33 }
  0xdd   :  { %6881 = vmatprep.mubr.f32.mxu0 %v8443_v40 }
  0xe0   :  { %6882 = vmatmul.mubr.f32.gmra.mrb[8].mxu0 %v8446_v41  ;;  %v8766_v3 = vpop.xlane.xlu0 %133 }
  0xe1   :  { %7514 = vmatpush3.bf16.xpose.msra.mxu0 %v7511_v60  ;;  %6884 = vmatprep.mubr.f32.mxu0 %v8362_v21 }
  0xe2   :  { %7516 = vmatprep.subr.bf16.mxu0 %v7515_v46  ;;  %1514 = vxpose.xlu0.b32.start [1/16] (narrow) %v8766_v3, 8 }
  0xe4   :  { %6885 = vmatmul.mubr.f32.gmra.mrb[10].mxu0 %v8471_v48  ;;  %v8771_v52 = vpop.xlane.xlu0 %136 }
  0xe5   :  { %6887 = vmatprep.mubr.f32.mxu0 %v8503_v56 }
  0xe6   :  { %1515 = vxpose.xlu0.b32.cont [2/16] (narrow) %v8771_v52, 8 }
  0xe8   :  { %6888 = vmatmul.mubr.f32.gmra.mrb[12].mxu0 %v8506_v57  ;;  %v8795_v39 = vpop.xlane.xlu0 %145 }
  0xe9   :  { %7518 = vmatpush3.bf16.xpose.msra.mxu0 %v7515_v46  ;;  %6890 = vmatprep.mubr.f32.mxu0 %v8542_v45  ;;  %13303 = vst [vmem:[#allocation40_spill] sm:$0xff] %v8795_v39  ;;  %v13313_v46 = vld [vmem:[#allocation22_spill] sm:$0xff] }
  0xea   :  { %7520 = vmatprep.subr.bf16.mxu0 %v7519_v63 }
  0xec   :  { %6891 = vmatmul.mubr.f32.gmra.mrb[14].mxu0 %v8545_v4 }
  0xed   :  { %6925 = vmatprep.mubr.f32.mxu0 %v8386_v26  ;;  %v7531_v26 = vpack.c.bf16 %v8716_v35, %v8698_v36 }
  0xf1   :  { %7522 = vmatpush3.bf16.xpose.msra.mxu0 %v7519_v63  ;;  %v13314_v63 = vld [vmem:[#allocation23_spill] sm:$0xff] }
  0xf2   :  { %7524 = vmatprep.subr.bf16.mxu0 %v7523_v38 }
  0xf9   :  { %7526 = vmatpush3.bf16.xpose.msra.mxu0 %v7523_v38  ;;  %v13315_v38 = vld [vmem:[#allocation19_spill] sm:$0xff] }
  0xfa   :  { %7528 = vmatprep.subr.bf16.mxu0 %v7527_v53 }
 0x101   :  { %7530 = vmatpush3.bf16.xpose.msra.mxu0 %v7527_v53 }
 0x102   :  { %7532 = vmatprep.subr.bf16.mxu0 %v7531_v26 }
 0x109   :  { %7534 = vmatpush3.bf16.xpose.msra.mxu0 %v7531_v26 }
 0x10a   :  { %7536 = vmatprep.subr.bf16.mxu0 %v8333_v14 }
 0x10f   :  { %v8786_v44 = vpop.xlane.xlu1 %139 }
 0x110   :  { %6926 = vmatmul.mubr.f32.vlgmr.msra.gmra.mrb[0].mxu0 %v8527_v62  ;;  %1516 = vxpose.xlu0.b32.cont [3/16] (narrow) %v8786_v44, 8  ;;  %v8807_v62 = vpop.xlane.xlu0 %151 }
 0x111   :  { %7538 = vmatpush3.bf16.xpose.msra.mxu0 %v8333_v14  ;;  %6928 = vmatprep.mubr.f32.mxu0 %v8563_v24 }
 0x112   :  { %7540 = vmatprep.subr.bf16.mxu0 %v8342_v16 }
 0x113   :  { %v8792_v47 = vpop.xlane.xlu1 %142 }
 0x114   :  { %6929 = vmatmul.mubr.f32.gmra.mrb[2].mxu0 %v8567_v31  ;;  %1517 = vxpose.xlu0.b32.cont [4/16] (narrow) %v8792_v47, 8 }
 0x115   :  { %6931 = vmatprep.mubr.f32.mxu0 %v8586_v49  ;;  %v8819_v49 = vpop.xlane.xlu0 %157 }
 0x117   :  { %v8802_v24 = vpop.xlane.xlu1 %148 }
 0x118   :  { %6932 = vmatmul.mubr.f32.gmra.mrb[4].mxu0 %v8599_v9  ;;  %1518 = vxpose.xlu0.b32.cont [5/16] (narrow) %v8795_v39, 8 }
 0x119   :  { %7542 = vmatpush3.bf16.xpose.msra.mxu0 %v8342_v16  ;;  %6934 = vmatprep.mubr.f32.mxu0 %v8604_v11  ;;  %v13304_v11 = vld [vmem:[#allocation16_spill] sm:$0xff] }
 0x11a   :  { %7544 = vmatprep.subr.bf16.mxu0 %v8390_v27  ;;  %7122 = vmatprep.mubr.msk.f32.mxu1 %vm13175_vm0, %v13304_v11 }
 0x11b   :  { %v8814_v31 = vpop.xlane.xlu1 %154 }
 0x11c   :  { %6935 = vmatmul.mubr.f32.gmra.mrb[6].mxu0 %v8621_v58  ;;  %1519 = vxpose.xlu0.b32.cont [6/16] (narrow) %v8802_v24, 8  ;;  %v8839_v58 = vpop.xlane.xlu0 %163 }
 0x11d   :  { %6937 = vmatprep.mubr.f32.mxu0 %v8635_v17  ;;  %v7631_v17 = vpack.c.bf16 %v8284_v1, %v8279_v0  ;;  %v13309_v1 = vld [vmem:[#allocation18_spill] sm:$0xff] }
 0x11e   :  { %v7643_v26 = vpack.c.bf16 %v8326_v12, %v13309_v1 }
 0x11f   :  { %7633 = vmatprep.subr.msk.bf16.mxu1 %vm8846_vm2, %v7631_v17 }
 0x120   :  { %6938 = vmatmul.mubr.f32.gmra.mrb[8].mxu0 %v8649_v5  ;;  %1520 = vxpose.xlu0.b32.cont [7/16] (narrow) %v8807_v62, 8  ;;  %v8826_v9 = vpop.xlane.xlu1 %160  ;;  %v13307_v5 = vld [vmem:[#allocation17_spill] sm:$0xff] }
 0x121   :  { %7546 = vmatpush3.bf16.xpose.msra.mxu0 %v8390_v27  ;;  %6940 = vmatprep.mubr.f32.mxu0 %v8657_v15 }
 0x122   :  { %7548 = vmatprep.subr.bf16.mxu0 %v8430_v37  ;;  %7123 = vmatmul.mubr.msk.f32.gmra.mrb[8].mxu1 %vm13175_vm0, %v13307_v5 }
 0x123   :  { %7125 = vmatprep.mubr.msk.f32.mxu1 %vm13175_vm0, %v13309_v1  ;;  %7636 = vmatpush3.bf16.xpose.msk.msra.mxu1 %vm8846_vm2, %v7631_v17 }
 0x124   :  { %6941 = vmatmul.mubr.f32.gmra.mrb[10].mxu0 %v8669_v19  ;;  %1521 = vxpose.xlu0.b32.cont [8/16] (narrow) %v8814_v31, 8  ;;  %v8854_v15 = vpop.xlane.xlu1 %166  ;;  %v13310_v19 = vld [vmem:[#allocation20_spill] sm:$0xff] }
 0x125   :  { %6943 = vmatprep.mubr.f32.mxu0 %v8679_v34  ;;  %v7637_v34 = vpack.c.bf16 %v13307_v5, %v13304_v11  ;;  %v13316_v11 = vld [vmem:[#allocation28_spill] sm:$0xff] }
 0x126   :  { %7126 = vmatmul.mubr.msk.f32.gmra.mrb[10].mxu1 %vm13175_vm0, %v8326_v12  ;;  %v13317_v12 = vld [vmem:[#allocation27_spill] sm:$0xff] }
 0x127   :  { %7128 = vmatprep.mubr.msk.f32.mxu1 %vm13175_vm0, %v13310_v19  ;;  %7639 = vmatprep.subr.msk.bf16.mxu1 %vm8846_vm2, %v7637_v34  ;;  %v7567_v5 = vpack.c.bf16 %v13317_v12, %v8393_v28 }
 0x128   :  { %6944 = vmatmul.mubr.f32.gmra.mrb[12].mxu0 %v8694_v2  ;;  %1522 = vxpose.xlu0.b32.cont [9/16] (narrow) %v8819_v49, 8  ;;  %v13308_v2 = vld [vmem:[#allocation24_spill] sm:$0xff]  ;;  %v8876_v60 = vpop.xlane.xlu1 %172 }
 0x129   :  { %7550 = vmatpush3.bf16.xpose.msra.mxu0 %v8430_v37  ;;  %6946 = vmatprep.mubr.f32.mxu0 %v8698_v36  ;;  %v13311_v36 = vld [vmem:[#allocation21_spill] sm:$0xff] }
 0x12a   :  { %7552 = vmatprep.subr.bf16.mxu0 %v8457_v43  ;;  %7129 = vmatmul.mubr.msk.f32.gmra.mrb[12].mxu1 %vm13175_vm0, %v13311_v36  ;;  %v7649_v1 = vpack.c.bf16 %v13311_v36, %v13310_v19  ;;  %v7655_v19 = vpack.c.bf16 %v13314_v63, %v13313_v46  ;;  %v13322_v36 = vld [vmem:[#allocation32_spill] sm:$0xff] }
 0x12b   :  { %7131 = vmatprep.mubr.msk.f32.mxu1 %vm13175_vm0, %v13313_v46  ;;  %7642 = vmatpush3.bf16.xpose.msk.msra.mxu1 %vm8846_vm2, %v7637_v34  ;;  %v13318_v34 = vld [vmem:[#allocation25_spill] sm:$0xff]  ;;  %v7661_v46 = vpack.c.bf16 %v8453_v42, %v13315_v38 }
 0x12c   :  { %6947 = vmatmul.mubr.f32.gmra.mrb[14].mxu0 %v8716_v35  ;;  %1523 = vxpose.xlu0.b32.cont [10/16] (narrow) %v8826_v9, 8  ;;  %v8867_v35 = vpop.xlane.xlu0 %169  ;;  %v8898_v17 = vpop.xlane.xlu1 %178 }
 0x12d   :  { %6981 = vmatprep.mubr.f32.mxu0 %v8393_v28  ;;  %7645 = vmatprep.subr.msk.bf16.mxu1 %vm8846_vm2, %v7643_v26  ;;  %v13319_v28 = vld [vmem:[#allocation29_spill] sm:$0xff] }
 0x12e   :  { %7132 = vmatmul.mubr.msk.f32.gmra.mrb[14].mxu1 %vm13175_vm0, %v13314_v63  ;;  %v13323_v63 = vld [vmem:[#allocation33_spill] sm:$0xff] }
 0x12f   :  { %7134 = vmatprep.mubr.msk.f32.mxu1 %vm13175_vm0, %v13315_v38  ;;  %v7673_v38 = vpack.c.bf16 %v13318_v34, %v8513_v59 }
 0x130   :  { %1524 = vxpose.xlu0.b32.cont [11/16] (narrow) %v8839_v58, 8  ;;  %v8889_v53 = vpop.xlane.xlu0 %175 }
 0x131   :  { %7554 = vmatpush3.bf16.xpose.msra.mxu0 %v8457_v43 }
 0x132   :  { %7556 = vmatprep.subr.bf16.mxu0 %v13308_v2  ;;  %7135 = vmatmul.mubr.msk.f32.gmra.mrb[16].mxu1 %vm13175_vm0, %v8453_v42  ;;  %v7667_v42 = vpack.c.bf16 %v8483_v51, %v8478_v50 }
 0x133   :  { %7137 = vmatprep.mubr.msk.f32.mxu1 %vm13175_vm0, %v8478_v50  ;;  %7648 = vmatpush3.bf16.xpose.msk.msra.mxu1 %vm8846_vm2, %v7643_v26  ;;  %v13320_v26 = vld [vmem:[#allocation30_spill] sm:$0xff] }
 0x134   :  { %1525 = vxpose.xlu0.b32.cont [12/16] (narrow) %v8854_v15, 8  ;;  %7651 = vmatprep.subr.msk.bf16.mxu1 %vm8846_vm2, %v7649_v1  ;;  %v7571_v39 = vpack.c.bf16 %v13320_v26, %v13319_v28 }
 0x136   :  { %7138 = vmatmul.mubr.msk.f32.gmra.mrb[18].mxu1 %vm13175_vm0, %v8483_v51 }
 0x137   :  { %7140 = vmatprep.mubr.msk.f32.mxu1 %vm13175_vm0, %v8513_v59 }
 0x138   :  { %1526 = vxpose.xlu0.b32.cont [13/16] (narrow) %v8867_v35, 8 }
 0x139   :  { %7558 = vmatpush3.bf16.xpose.msra.mxu0 %v13308_v2 }
 0x13a   :  { %7560 = vmatprep.subr.bf16.mxu0 %v13312_v54  ;;  %7141 = vmatmul.mubr.msk.f32.gmra.mrb[20].mxu1 %vm13175_vm0, %v13318_v34 }
 0x13b   :  { %7175 = vmatprep.mubr.msk.f32.mxu1 %vm13175_vm0, %v8769_v18  ;;  %7654 = vmatpush3.bf16.xpose.msk.msra.mxu1 %vm8846_vm2, %v7649_v1  ;;  %v13321_v18 = vld [vmem:[#allocation31_spill] sm:$0xff] }
 0x13c   :  { %1527 = vxpose.xlu0.b32.cont [14/16] (narrow) %v8876_v60, 8  ;;  %7657 = vmatprep.subr.msk.bf16.mxu1 %vm8846_vm2, %v7655_v19  ;;  %v13325_v1 = vld [vmem:[#allocation35_spill] sm:$0xff] }
 0x140   :  { %1528 = vxpose.xlu0.b32.cont [15/16] (narrow) %v8889_v53, 8 }
 0x141   :  { %7562 = vmatpush3.bf16.xpose.msra.mxu0 %v13312_v54 }
 0x142   :  { %7564 = vmatprep.subr.bf16.mxu0 %v13316_v11 }
 0x143   :  { %7660 = vmatpush3.bf16.xpose.msk.msra.mxu1 %vm8846_vm2, %v7655_v19  ;;  %v13328_v19 = vld [vmem:[#allocation38_spill] sm:$0xff] }
 0x144   :  { %1529 = vxpose.xlu0.b32.end [16/16] (narrow) %v8898_v17, 8  ;;  %7663 = vmatprep.subr.msk.bf16.mxu1 %vm8846_vm2, %v7661_v46 }
 0x149   :  { %7566 = vmatpush3.bf16.xpose.msra.mxu0 %v13316_v11 }
 0x14a   :  { %7568 = vmatprep.subr.bf16.mxu0 %v7567_v5 }
 0x14b   :  { %7666 = vmatpush3.bf16.xpose.msk.msra.mxu1 %vm8846_vm2, %v7661_v46 }
 0x14c   :  { %7669 = vmatprep.subr.msk.bf16.mxu1 %vm8846_vm2, %v7667_v42 }
 0x150   :  { %6982 = vmatmul.mubr.f32.vlgmr.msra.gmra.mrb[0].mxu0 %v13317_v12  ;;  %v7575_v12 = vpack.c.bf16 %v13322_v36, %v13321_v18 }
 0x151   :  { %7570 = vmatpush3.bf16.xpose.msra.mxu0 %v7567_v5  ;;  %6984 = vmatprep.mubr.f32.mxu0 %v13319_v28  ;;  %v13324_v5 = vld [vmem:[#allocation34_spill] sm:$0xff] }
 0x152   :  { %7572 = vmatprep.subr.bf16.mxu0 %v7571_v39  ;;  %v7579_v28 = vpack.c.bf16 %v13324_v5, %v13323_v63 }
 0x153   :  { %7672 = vmatpush3.bf16.xpose.msk.msra.mxu1 %vm8846_vm2, %v7667_v42 }
 0x154   :  { %6985 = vmatmul.mubr.f32.gmra.mrb[2].mxu0 %v13320_v26  ;;  %v13326_v26 = vld [vmem:[#allocation36_spill] sm:$0xff]  ;;  %7675 = vmatprep.subr.msk.bf16.mxu1 %vm8846_vm2, %v7673_v38 }
 0x155   :  { %6987 = vmatprep.mubr.f32.mxu0 %v13321_v18  ;;  %v13329_v18 = vld [vmem:[#allocation39_spill] sm:$0xff]  ;;  %v7583_v51 = vpack.c.bf16 %v13326_v26, %v13325_v1 }
 0x156   :  { %v7591_v34 = vpack.c.bf16 %v8712_v55, %v13329_v18 }
 0x158   :  { %6988 = vmatmul.mubr.f32.gmra.mrb[4].mxu0 %v13322_v36 }
 0x159   :  { %7574 = vmatpush3.bf16.xpose.msra.mxu0 %v7571_v39  ;;  %6990 = vmatprep.mubr.f32.mxu0 %v13323_v63  ;;  %v13327_v39 = vld [vmem:[#allocation37_spill] sm:$0xff] }
 0x15a   :  { %7576 = vmatprep.subr.bf16.mxu0 %v7575_v12  ;;  %v7587_v59 = vpack.c.bf16 %v13328_v19, %v13327_v39 }
 0x15b   :  { %7678 = vmatpush3.bf16.xpose.msk.msra.mxu1 %vm8846_vm2, %v7673_v38 }
 0x15c   :  { %6991 = vmatmul.mubr.f32.gmra.mrb[6].mxu0 %v13324_v5 }
 0x15d   :  { %6993 = vmatprep.mubr.f32.mxu0 %v13325_v1 }
 0x160   :  { %6994 = vmatmul.mubr.f32.gmra.mrb[8].mxu0 %v13326_v26 }
 0x161   :  { %7578 = vmatpush3.bf16.xpose.msra.mxu0 %v7575_v12  ;;  %6996 = vmatprep.mubr.f32.mxu0 %v13327_v39 }
 0x162   :  { %7580 = vmatprep.subr.bf16.mxu0 %v7579_v28  ;;  %7176 = vmatmul.mubr.msk.f32.vlgmr.msra.gmra.mrb[22].mxu1 %vm13175_vm0, %v8776_v6 }
 0x163   :  { %v8964_v50 = vpop.f32.mrb[0].mxu1  ;;  %7178 = vmatprep.mubr.msk.f32.mxu1 %vm13175_vm0, %v8778_v61 }
 0x164   :  { %6997 = vmatmul.mubr.f32.gmra.mrb[10].mxu0 %v13328_v19 }
 0x165   :  { %6999 = vmatprep.mubr.f32.mxu0 %v13329_v18 }
 0x166   :  { %7179 = vmatmul.mubr.msk.f32.gmra.mrb[24].mxu1 %vm13175_vm0, %v8781_v30 }
 0x167   :  { %7183 = vmatprep.mubr.msk.f32.mxu1 %vm13175_vm0, %v8279_v0  ;;  %v1480_v0 = vpop.f32.mrb[1].mxu1 }
 0x168   :  { %7000 = vmatmul.mubr.f32.gmra.mrb[12].mxu0 %v8712_v55 }
 0x169   :  { %7582 = vmatpush3.bf16.xpose.msra.mxu0 %v7579_v28  ;;  %7002 = vmatprep.mubr.f32.mxu0 %v8721_v29 }
 0x16a   :  { %7584 = vmatprep.subr.bf16.mxu0 %v7583_v51 }
 0x16c   :  { %7003 = vmatmul.mubr.f32.gmra.mrb[14].mxu0 %v8729_v25 }
 0x16d   :  { %7037 = vmatprep.mubr.f32.mxu0 %v8306_v7 }
 0x171   :  { %7586 = vmatpush3.bf16.xpose.msra.mxu0 %v7583_v51 }
 0x172   :  { %7588 = vmatprep.subr.bf16.mxu0 %v7587_v59 }
 0x179   :  { %7590 = vmatpush3.bf16.xpose.msra.mxu0 %v7587_v59 }
 0x17a   :  { %7592 = vmatprep.subr.bf16.mxu0 %v7591_v34 }
 0x181   :  { %7594 = vmatpush3.bf16.xpose.msra.mxu0 %v7591_v34 }
 0x182   :  { %7596 = vmatprep.subr.bf16.mxu0 %v7595_v20 }
 0x188   :  { %v1530_v30 = vpop.trf.xlu0 }
 0x189   :  { %7598 = vmatpush3.bf16.xpose.msra.mxu0 %v7595_v20 }
 0x18a   :  { %7600 = vmatprep.subr.bf16.mxu0 %v8333_v14 }
 0x190   :  { %7038 = vmatmul.mubr.f32.vlgmr.msra.gmra.mrb[0].mxu0 %v8309_v8 }
 0x191   :  { %7602 = vmatpush3.bf16.xpose.msra.mxu0 %v8333_v14  ;;  %7040 = vmatprep.mubr.f32.mxu0 %v8316_v10 }
 0x192   :  { %7604 = vmatprep.subr.bf16.mxu0 %v8342_v16 }
 0x194   :  { %7041 = vmatmul.mubr.f32.gmra.mrb[2].mxu0 %v8329_v13 }
 0x195   :  { %7043 = vmatprep.mubr.f32.mxu0 %v8367_v22 }
 0x198   :  { %7044 = vmatmul.mubr.f32.gmra.mrb[4].mxu0 %v8370_v23 }
 0x199   :  { %7606 = vmatpush3.bf16.xpose.msra.mxu0 %v8342_v16  ;;  %7046 = vmatprep.mubr.f32.mxu0 %v8408_v32 }
 0x19a   :  { %7608 = vmatprep.subr.bf16.mxu0 %v8390_v27 }
 0x19c   :  { %7047 = vmatmul.mubr.f32.gmra.mrb[6].mxu0 %v8411_v33 }
 0x19d   :  { %7049 = vmatprep.mubr.f32.mxu0 %v8443_v40 }
 0x1a0   :  { %7050 = vmatmul.mubr.f32.gmra.mrb[8].mxu0 %v8446_v41 }
 0x1a1   :  { %7610 = vmatpush3.bf16.xpose.msra.mxu0 %v8390_v27  ;;  %7052 = vmatprep.mubr.f32.mxu0 %v8362_v21 }
 0x1a2   :  { %7612 = vmatprep.subr.bf16.mxu0 %v8430_v37 }
 0x1a4   :  { %7053 = vmatmul.mubr.f32.gmra.mrb[10].mxu0 %v8471_v48 }
 0x1a5   :  { %7055 = vmatprep.mubr.f32.mxu0 %v8503_v56 }
 0x1a8   :  { %7056 = vmatmul.mubr.f32.gmra.mrb[12].mxu0 %v8506_v57 }
 0x1a9   :  { %7614 = vmatpush3.bf16.xpose.msra.mxu0 %v8430_v37  ;;  %7058 = vmatprep.mubr.f32.mxu0 %v8542_v45 }
 0x1aa   :  { %7616 = vmatprep.subr.bf16.mxu0 %v8457_v43 }
 0x1ac   :  { %7059 = vmatmul.mubr.f32.gmra.mrb[14].mxu0 %v8545_v4 }
 0x1ad   :  { %7093 = vmatprep.mubr.f32.mxu0 %v8306_v7  ;;  %v7113_v7 = vpop.f32.mrb[2].mxu1 }
 0x1ae   :  { %v1492_v14 = vpop.f32.mrb[3].mxu1 }
 0x1b1   :  { %7618 = vmatpush3.bf16.xpose.msra.mxu0 %v8457_v43 }
 0x1b2   :  { %7620 = vmatprep.subr.bf16.mxu0 %v13308_v2 }
 0x1b9   :  { %7622 = vmatpush3.bf16.xpose.msra.mxu0 %v13308_v2 }
 0x1ba   :  { %7624 = vmatprep.subr.bf16.mxu0 %v13312_v54 }
 0x1c1   :  { %7626 = vmatpush3.bf16.xpose.msra.mxu0 %v13312_v54 }
 0x1c2   :  { %7628 = vmatprep.subr.bf16.mxu0 %v13316_v11 }
 0x1c9   :  { %7630 = vmatpush3.bf16.xpose.msra.mxu0 %v13316_v11 }
 0x1d0   :  { %7094 = vmatmul.mubr.f32.vlgmr.msra.gmra.mrb[0].mxu0 %v8309_v8  ;;  %v7116_v8 = vpop.f32.mrb[4].mxu1 }
 0x1d1   :  { %7096 = vmatprep.mubr.f32.mxu0 %v8316_v10  ;;  %v1504_v16 = vpop.f32.mrb[5].mxu1  ;;  %v1546_v10 = vlaneseq }
 0x1d3   :  { %v9032_v21 = vshrl.u32 %v1546_v10, 7 }
 0x1d4   :  { %7097 = vmatmul.mubr.f32.gmra.mrb[2].mxu0 %v8329_v13  ;;  %v114_v13 = vld [vmem:[%s13118_s2] sm:$0x1] }
 0x1d5   :  { %7099 = vmatprep.mubr.f32.mxu0 %v8367_v22  ;;  %vm1617_vm3 = vcmp.gt.f32.partialorder %v114_v13, 0.0  ;;  %v8165_v22 = vmov 0   ;;  %v9035_v27 = vsub.s32 0, %v9032_v21  ;;  %v1606_v37 = vadd.s32 56, %v9032_v21 }
 0x1d6   :  { %v1608_v56 = vadd.s32 72, %v9032_v21  ;;  %v1607_v57 = vadd.s32 64, %v9032_v21  ;;  %v1610_v61 = vadd.s32 88, %v9032_v21  ;;  %v1609_v12 = vadd.s32 80, %v9032_v21 }
 0x1d7   :  { %v9086_v54 = vrot.slane %v1530_v30, %v9035_v27  ;;  %v1612_v19 = vadd.s32 104, %v9032_v21 }
 0x1d8   :  { %7100 = vmatmul.mubr.f32.gmra.mrb[4].mxu0 %v8370_v23  ;;  %v1634_v23 = vsel %vm1617_vm3, 1, %v8165_v22 }
 0x1d9   :  { %7102 = vmatprep.mubr.f32.mxu0 %v8408_v32  ;;  %v1638_v32 = vrot.slane %v1634_v23, %v9035_v27  ;;  %v1561_v63 = vadd.f32 %v9086_v54, %v8854_v15  ;;  %v1560_v1 = vadd.f32 %v9086_v54, %v8839_v58  ;;  %v1563_v58 = vadd.f32 %v9086_v54, %v8876_v60 }
 0x1da   :  { %v1562_v22 = vadd.f32 %v9086_v54, %v8867_v35  ;;  %v1614_v60 = vadd.s32 120, %v9032_v21  ;;  %v1613_v35 = vadd.s32 112, %v9032_v21 }
 0x1db   :  { %vm9042_vm4 = vcmp.eq.s32.totalorder %v1638_v32, 1 }
 0x1dc   :  { %7103 = vmatmul.mubr.f32.gmra.mrb[6].mxu0 %v8411_v33  ;;  %v9038_v33 = vand.u32 127, %v1546_v10 }
 0x1dd   :  { %7105 = vmatprep.mubr.f32.mxu0 %v8443_v40  ;;  %v1605_v40 = vadd.s32 48, %v9032_v21 }
 0x1de   :  { %vm1625_vm5 = vcmp.ne.s32.totalorder %v1606_v37, %v9038_v33  ;;  %vm1627_vm9 = vcmp.ne.s32.totalorder %v1608_v56, %v9038_v33  ;;  %vm1626_vm11 = vcmp.ne.s32.totalorder %v1607_v57, %v9038_v33  ;;  %vm1629_vm13 = vcmp.ne.s32.totalorder %v1610_v61, %v9038_v33 }
 0x1df   :  { %vm9049_vm6 = vmand %vm9042_vm4, %vm1625_vm5  ;;  %vm1624_vm7 = vcmp.ne.s32.totalorder %v1605_v40, %v9038_v33  ;;  %vm1628_vm15 = vcmp.ne.s32.totalorder %v1609_v12, %v9038_v33  ;;  %vm1631_vm3 = vcmp.ne.s32.totalorder %v1612_v19, %v9038_v33  ;;  %v1564_v57 = vadd.f32 %v9086_v54, %v8889_v53 }
 0x1e0   :  { %7106 = vmatmul.mubr.f32.gmra.mrb[8].mxu0 %v8446_v41  ;;  %vm9056_vm8 = vmand %vm9042_vm4, %vm1624_vm7  ;;  %v1551_v53 = vadd.f32 %v9086_v54, %v8771_v52 }
 0x1e1   :  { %vm9065_vm10 = vmand %vm9042_vm4, %vm1627_vm9 }
 0x1e2   :  { %vm9072_vm12 = vmand %vm9042_vm4, %vm1626_vm11  ;;  %vm1633_vm11 = vcmp.ne.s32.totalorder %v1614_v60, %v9038_v33  ;;  %v1556_v60 = vadd.f32 %v9086_v54, %v8807_v62  ;;  %v1559_v62 = vadd.f32 %v9086_v54, %v8826_v9 }
 0x1e3   :  { %vm1651_vm14 = vmand %vm9042_vm4, %vm1629_vm13 }
 0x1e4   :  { %vm1650_vm2 = vmand %vm9042_vm4, %vm1628_vm15 }
 0x1e5   :  { %vm1653_vm5 = vmand %vm9042_vm4, %vm1631_vm3 }
 0x1e6   :  { %vm1655_vm13 = vmand %vm9042_vm4, %vm1633_vm11 }
 0x235   :  { %v9076_v55 = vpop.f32.mrb[22].mxu1 }
 0x236   :  { %v9078_v29 = vpop.f32.mrb[23].mxu1 }
 0x239   :  { %v9080_v25 = vpop.f32.mrb[24].mxu1 }
 0x23a   :  { %v9082_v6 = vpop.f32.mrb[25].mxu1 }
 0x277   :  { %v7054_v2 = vpop.f32.mrb[10].mxu0 }
 0x278   :  { %v7823_v11 = vadd.f32 %v8964_v50, %v7054_v2  ;;  %v1303_v36 = vpop.f32.mrb[11].mxu0  ;;  %v1600_v2 = vadd.s32 8, %v9032_v21 }
 0x279   :  { %v7824_v46 = vadd.f32 %v1480_v0, %v1303_v36  ;;  %v1611_v0 = vadd.s32 96, %v9032_v21 }
 0x27a   :  { %v1577_v5 = vmul.f32 2.0, %v7823_v11 }
 0x27b   :  { %v1576_v28 = vmul.f32 2.0, %v7824_v46  ;;  %v7057_v26 = vpop.f32.mrb[12].mxu0  ;;  %vm1630_vm7 = vcmp.ne.s32.totalorder %v1611_v0, %v9038_v33 }
 0x27c   :  { %v1593_v42 = vsub.f32 %v1561_v63, %v1577_v5  ;;  %v7825_v39 = vadd.f32 %v7113_v7, %v7057_v26  ;;  %v1315_v38 = vpop.f32.mrb[13].mxu0  ;;  %vm1652_vm9 = vmand %vm9042_vm4, %vm1630_vm7  ;;  %v1550_v5 = vadd.f32 %v9086_v54, %v8766_v3  ;;  %v1601_v3 = vadd.s32 16, %v9032_v21 }
 0x27d   :  { %v7826_v18 = vadd.f32 %v1492_v14, %v1315_v38  ;;  %v1592_v50 = vsub.f32 %v1560_v1, %v1576_v28  ;;  %v1602_v1 = vadd.s32 24, %v9032_v21  ;;  %v1553_v38 = vadd.f32 %v9086_v54, %v8792_v47 }
 0x27e   :  { %v1579_v51 = vmul.f32 2.0, %v7825_v39  ;;  %v9099_v15 = vsel %vm1651_vm14, %v1593_v42, 1e+30  ;;  %vm1632_vm14 = vcmp.ne.s32.totalorder %v1613_v35, %v9038_v33  ;;  %v1604_v47 = vadd.s32 40, %v9032_v21 }
 0x27f   :  { %v7060_v59 = vpop.f32.mrb[14].mxu0  ;;  %1694 = vmin.xlane.f32.xlu1 %v9099_v15  ;;  %v1578_v10 = vmul.f32 2.0, %v7826_v18  ;;  %v9108_v13 = vsel %vm1650_vm2, %v1592_v50, 1e+30  ;;  %vm1654_vm15 = vmand %vm9042_vm4, %vm1632_vm14  ;;  %vm1619_vm2 = vcmp.ne.s32.totalorder %v1600_v2, %v9038_v33 }
 0x280   :  { %v7827_v34 = vadd.f32 %v7116_v8, %v7060_v59  ;;  %v1327_v20 = vpop.f32.mrb[15].mxu0  ;;  %v1595_v14 = vsub.f32 %v1563_v58, %v1579_v51  ;;  %vm1641_vm3 = vmand %vm9042_vm4, %vm1619_vm2  ;;  %v1552_v58 = vadd.f32 %v9086_v54, %v8786_v44  ;;  %v1555_v44 = vadd.f32 %v9086_v54, %v8802_v24 }
 0x281   :  { %v7828_v7 = vadd.f32 %v1504_v16, %v1327_v20  ;;  %v1594_v8 = vsub.f32 %v1562_v22, %v1578_v10  ;;  %v1565_v16 = vadd.f32 %v9086_v54, %v8898_v17  ;;  %v1557_v20 = vadd.f32 %v9086_v54, %v8814_v31 }
 0x282   :  { %v1581_v23 = vmul.f32 2.0, %v7827_v34  ;;  %v9117_v32 = vsel %vm1653_vm5, %v1595_v14, 1e+30  ;;  %vm1618_vm5 = vcmp.ne.s32.totalorder %v9032_v21, %v9038_v33  ;;  %v1603_v31 = vadd.s32 32, %v9032_v21 }
 0x283   :  { %1692 = vmin.xlane.f32.xlu1 %v9108_v13  ;;  %v1580_v40 = vmul.f32 2.0, %v7828_v7  ;;  %v9126_v56 = vsel %vm1652_vm9, %v1594_v8, 1e+30  ;;  %vm1640_vm7 = vmand %vm9042_vm4, %vm1618_vm5  ;;  %vm1621_vm9 = vcmp.ne.s32.totalorder %v1602_v1, %v9038_v33  ;;  %v1558_v24 = vadd.f32 %v9086_v54, %v8819_v49 }
 0x284   :  { %v1597_v37 = vsub.f32 %v1565_v16, %v1581_v23  ;;  %vm1643_vm11 = vmand %vm9042_vm4, %vm1621_vm9 }
 0x285   :  { %v1596_v61 = vsub.f32 %v1564_v57, %v1580_v40 }
 0x286   :  { %v9134_v17 = vsel %vm1655_vm13, %v1597_v37, 1e+30  ;;  %vm1620_vm13 = vcmp.ne.s32.totalorder %v1601_v3, %v9038_v33 }
 0x287   :  { %1698 = vmin.xlane.f32.xlu1 %v9117_v32  ;;  %v9139_v30 = vsel %vm1654_vm15, %v1596_v61, 1e+30  ;;  %vm1642_vm14 = vmand %vm9042_vm4, %vm1620_vm13  ;;  %vm1623_vm15 = vcmp.ne.s32.totalorder %v1604_v47, %v9038_v33 }
 0x288   :  { %vm1645_vm2 = vmand %vm9042_vm4, %vm1623_vm15 }
 0x28b   :  { %1696 = vmin.xlane.f32.xlu1 %v9126_v56 }
 0x28f   :  { %1702 = vmin.xlane.f32.xlu1 %v9134_v17 }
 0x293   :  { %1700 = vmin.xlane.f32.xlu1 %v9139_v30 }
 0x2a3   :  { %v7095_v11 = vpop.f32.mrb[0].mxu0 }
 0x2a4   :  { %v1567_v36 = vmul.f32 2.0, %v7095_v11  ;;  %v1420_v12 = vpop.f32.mrb[1].mxu0 }
 0x2a5   :  { %v1566_v46 = vmul.f32 2.0, %v1420_v12 }
 0x2a6   :  { %v1583_v63 = vsub.f32 %v1551_v53, %v1567_v36  ;;  %v13340_v36 = vld [vmem:[#allocation40_spill] sm:$0xff] }
 0x2a7   :  { %v7098_v28 = vpop.f32.mrb[2].mxu0  ;;  %v1582_v26 = vsub.f32 %v1550_v5, %v1566_v46  ;;  %v1554_v12 = vadd.f32 %v9086_v54, %v13340_v36  ;;  %v8166_v36 = vmov 0.0  }
 0x2a8   :  { %v1569_v42 = vmul.f32 2.0, %v7098_v28  ;;  %v1432_v39 = vpop.f32.mrb[3].mxu0  ;;  %v9153_v52 = vsel %vm1641_vm3, %v1583_v63, 1e+30 }
 0x2a9   :  { %1674 = vmin.xlane.f32.xlu1 %v9153_v52  ;;  %v1568_v50 = vmul.f32 2.0, %v1432_v39  ;;  %v9162_v59 = vsel %vm1640_vm7, %v1582_v26, 1e+30 }
 0x2aa   :  { %v1585_v18 = vsub.f32 %v1553_v38, %v1569_v42 }
 0x2ab   :  { %v7101_v19 = vpop.f32.mrb[4].mxu0  ;;  %v1584_v0 = vsub.f32 %v1552_v58, %v1568_v50 }
 0x2ac   :  { %v1444_v51 = vpop.f32.mrb[5].mxu0  ;;  %v1571_v7 = vmul.f32 2.0, %v7101_v19  ;;  %v9173_v22 = vsel %vm1643_vm11, %v1585_v18, 1e+30 }
 0x2ad   :  { %1672 = vmin.xlane.f32.xlu1 %v9162_v59  ;;  %v1570_v16 = vmul.f32 2.0, %v1444_v51  ;;  %v9186_v2 = vsel %vm1642_vm14, %v1584_v0, 1e+30 }
 0x2ae   :  { %v1587_v40 = vsub.f32 %v1555_v44, %v1571_v7  ;;  %v13363_v44 = vmov 0 }
 0x2af   :  { %v7104_v34 = vpop.f32.mrb[6].mxu0  ;;  %v1586_v63 = vsub.f32 %v1554_v12, %v1570_v16  ;;  %v13365_v16 = vmov 0 }
 0x2b0   :  { %v1573_v14 = vmul.f32 2.0, %v7104_v34  ;;  %v1456_v10 = vpop.f32.mrb[7].mxu0  ;;  %v9204_v5 = vsel %vm1645_vm2, %v1587_v40, 1e+30 }
 0x2b1   :  { %v1572_v8 = vmul.f32 2.0, %v1456_v10  ;;  %1678 = vmin.xlane.f32.xlu1 %v9173_v22 }
 0x2b2   :  { %v1589_v23 = vsub.f32 %v1557_v20, %v1573_v14 }
 0x2b3   :  { %v1588_v35 = vsub.f32 %v1556_v60, %v1572_v8  ;;  %v7107_v37 = vpop.f32.mrb[8].mxu0 }
 0x2b4   :  { %v1575_v57 = vmul.f32 2.0, %v7107_v37  ;;  %v1468_v61 = vpop.f32.mrb[9].mxu0  ;;  %v9190_v11 = vsel %vm9049_vm6, %v1589_v23, 1e+30  ;;  %vm1622_vm6 = vcmp.ne.s32.totalorder %v1603_v31, %v9038_v33 }
 0x2b5   :  { %v1574_v53 = vmul.f32 2.0, %v1468_v61  ;;  %1676 = vmin.xlane.f32.xlu1 %v9186_v2  ;;  %v9199_v9 = vsel %vm9056_vm8, %v1588_v35, 1e+30  ;;  %vm1644_vm8 = vmand %vm9042_vm4, %vm1622_vm6 }
 0x2b6   :  { %v1591_v46 = vsub.f32 %v1559_v62, %v1575_v57  ;;  %v9217_v54 = vsel %vm1644_vm8, %v1586_v63, 1e+30  ;;  %v13367_v62 = vmov 0 }
 0x2b7   :  { %v1590_v43 = vsub.f32 %v1558_v24, %v1574_v53 }
 0x2b8   :  { %v9208_v49 = vsel %vm9065_vm10, %v1591_v46, 1e+30 }
 0x2b9   :  { %1682 = vmin.xlane.f32.xlu1 %v9204_v5  ;;  %v9215_v48 = vsel %vm9072_vm12, %v1590_v43, 1e+30 }
 0x2bd   :  { %1680 = vmin.xlane.f32.xlu1 %v9217_v54 }
 0x2c1   :  { %1686 = vmin.xlane.f32.xlu1 %v9190_v11 }
 0x2c5   :  { %1684 = vmin.xlane.f32.xlu1 %v9199_v9 }
 0x2c9   :  { %1690 = vmin.xlane.f32.xlu1 %v9208_v49 }
 0x2cd   :  { %1688 = vmin.xlane.f32.xlu1 %v9215_v48 }
 0x30c   :  { %v1695_v33 = vpop.xlane.xlu1 %1694 }
 0x30d   :  { %vm1715_vm10 = vcmp.le.f32.partialorder %v9099_v15, %v1695_v33  ;;  %vm1731_vm4 = vcmp.lt.f32.partialorder %v1695_v33, 5e+29 }
 0x30e   :  { %vm9225_vm3 = vmand %vm1715_vm10, %vm1731_vm4 }
 0x30f   :  { %v9232_v45 = vsel %vm9225_vm3, 1e+30, %v9099_v15  ;;  %v9404_v12 = vsel %vm9225_vm3, 1.0, %v8166_v36 }
 0x310   :  { %1838 = vmin.xlane.f32.xlu0 %v9232_v45  ;;  %v1693_v4 = vpop.xlane.xlu1 %1692 }
 0x311   :  { %vm1714_vm12 = vcmp.le.f32.partialorder %v9108_v13, %v1693_v4  ;;  %vm1730_vm5 = vcmp.lt.f32.partialorder %v1693_v4, 5e+29 }
 0x312   :  { %vm9236_vm7 = vmand %vm1714_vm12, %vm1730_vm5 }
 0x313   :  { %v9243_v28 = vsel %vm9236_vm7, 1e+30, %v9108_v13 }
 0x314   :  { %v1699_v26 = vpop.xlane.xlu1 %1698  ;;  %1836 = vmin.xlane.f32.xlu1 %v9243_v28 }
 0x315   :  { %vm1717_vm9 = vcmp.le.f32.partialorder %v9117_v32, %v1699_v26  ;;  %vm1733_vm11 = vcmp.lt.f32.partialorder %v1699_v26, 5e+29 }
 0x316   :  { %vm9247_vm13 = vmand %vm1717_vm9, %vm1733_vm11 }
 0x317   :  { %v9254_v42 = vsel %vm9247_vm13, 1e+30, %v9117_v32 }
 0x318   :  { %v1697_v39 = vpop.xlane.xlu1 %1696  ;;  %1842 = vmin.xlane.f32.xlu1 %v9254_v42 }
 0x319   :  { %vm1716_vm14 = vcmp.le.f32.partialorder %v9126_v56, %v1697_v39  ;;  %vm1732_vm15 = vcmp.lt.f32.partialorder %v1697_v39, 5e+29 }
 0x31a   :  { %vm9258_vm2 = vmand %vm1716_vm14, %vm1732_vm15 }
 0x31b   :  { %v9265_v38 = vsel %vm9258_vm2, 1e+30, %v9126_v56  ;;  %v9461_v15 = vsel %vm9258_vm2, 1.0, %v8166_v36  ;;  %v8008_v56 = vld [vmem:[%s13116_s0 + $0x8] sm:$0xff] }
 0x31c   :  { %v1703_v3 = vpop.xlane.xlu1 %1702  ;;  %1840 = vmin.xlane.f32.xlu1 %v9265_v38 }
 0x31d   :  { %vm1719_vm6 = vcmp.le.f32.partialorder %v9134_v17, %v1703_v3  ;;  %vm1735_vm8 = vcmp.lt.f32.partialorder %v1703_v3, 5e+29 }
 0x31e   :  { %vm9269_vm10 = vmand %vm1719_vm6, %vm1735_vm8 }
 0x31f   :  { %v9276_v19 = vsel %vm9269_vm10, 1e+30, %v9134_v17  ;;  %v9480_v13 = vsel %vm9269_vm10, 1.0, %v8166_v36  ;;  %v13417_v17 = vmov 0 }
 0x320   :  { %v1701_v18 = vpop.xlane.xlu1 %1700  ;;  %1846 = vmin.xlane.f32.xlu1 %v9276_v19 }
 0x321   :  { %vm1718_vm4 = vcmp.le.f32.partialorder %v9139_v30, %v1701_v18  ;;  %vm1734_vm12 = vcmp.lt.f32.partialorder %v1701_v18, 5e+29 }
 0x322   :  { %vm9280_vm5 = vmand %vm1718_vm4, %vm1734_vm12 }
 0x323   :  { %v9287_v50 = vsel %vm9280_vm5, 1e+30, %v9139_v30  ;;  %v9499_v32 = vsel %vm9280_vm5, 1.0, %v8166_v36 }
 0x324   :  { %1844 = vmin.xlane.f32.xlu1 %v9287_v50 }
 0x336   :  { %v1675_v51 = vpop.xlane.xlu1 %1674 }
 0x337   :  { %vm1705_vm9 = vcmp.le.f32.partialorder %v9153_v52, %v1675_v51  ;;  %vm1721_vm11 = vcmp.lt.f32.partialorder %v1675_v51, 5e+29 }
 0x338   :  { %vm9291_vm14 = vmand %vm1705_vm9, %vm1721_vm11 }
 0x339   :  { %v9298_v58 = vsel %vm9291_vm14, 1e+30, %v9153_v52  ;;  %v13412_v52 = vmov 0 }
 0x33a   :  { %1818 = vmin.xlane.f32.xlu1 %v9298_v58  ;;  %v1673_v47 = vpop.xlane.xlu1 %1672 }
 0x33b   :  { %vm1704_vm15 = vcmp.le.f32.partialorder %v9162_v59, %v1673_v47  ;;  %vm1720_vm6 = vcmp.lt.f32.partialorder %v1673_v47, 5e+29 }
 0x33c   :  { %vm9302_vm8 = vmand %vm1704_vm15, %vm1720_vm6 }
 0x33d   :  { %v9309_v34 = vsel %vm9302_vm8, 1e+30, %v9162_v59 }
 0x33e   :  { %1816 = vmin.xlane.f32.xlu1 %v9309_v34  ;;  %v1679_v20 = vpop.xlane.xlu1 %1678 }
 0x33f   :  { %vm1707_vm4 = vcmp.le.f32.partialorder %v9173_v22, %v1679_v20  ;;  %vm1723_vm12 = vcmp.lt.f32.partialorder %v1679_v20, 5e+29 }
 0x340   :  { %vm9313_vm9 = vmand %vm1707_vm4, %vm1723_vm12 }
 0x341   :  { %v9320_v0 = vsel %vm9313_vm9, 1e+30, %v9173_v22  ;;  %v13361_v22 = vmov 0 }
 0x342   :  { %1822 = vmin.xlane.f32.xlu1 %v9320_v0  ;;  %v1677_v7 = vpop.xlane.xlu1 %1676 }
 0x343   :  { %vm1706_vm11 = vcmp.le.f32.partialorder %v9186_v2, %v1677_v7  ;;  %vm1722_vm15 = vcmp.lt.f32.partialorder %v1677_v7, 5e+29  ;;  %v13383_v7 = vmov 0 }
 0x344   :  { %vm9324_vm6 = vmand %vm1706_vm11, %vm1722_vm15 }
 0x345   :  { %v9331_v14 = vsel %vm9324_vm6, 1e+30, %v9186_v2 }
 0x346   :  { %1820 = vmin.xlane.f32.xlu1 %v9331_v14  ;;  %v1683_v10 = vpop.xlane.xlu1 %1682 }
 0x347   :  { %vm1709_vm4 = vcmp.le.f32.partialorder %v9204_v5, %v1683_v10  ;;  %vm1725_vm12 = vcmp.lt.f32.partialorder %v1683_v10, 5e+29  ;;  %v13419_v10 = vmov 0 }
 0x348   :  { %vm9335_vm0 = vmand %vm1709_vm4, %vm1725_vm12 }
 0x349   :  { %v13362_v22 = vsel %vm9335_vm0, 4294967295, %v13361_v22  ;;  %v9342_v60 = vsel %vm9335_vm0, 1e+30, %v9204_v5 }
 0x34a   :  { %1826 = vmin.xlane.f32.xlu1 %v9342_v60  ;;  %v1681_v8 = vpop.xlane.xlu1 %1680 }
 0x34b   :  { %vm1708_vm11 = vcmp.le.f32.partialorder %v9217_v54, %v1681_v8  ;;  %vm1724_vm15 = vcmp.lt.f32.partialorder %v1681_v8, 5e+29  ;;  %v2574_v8 = vld [vmem:[#allocation6] sm:$0x7] }
 0x34c   :  { %vm9346_vm1 = vmand %vm1708_vm11, %vm1724_vm15 }
 0x34d   :  { %v13364_v44 = vsel %vm9346_vm1, 4294967295, %v13363_v44  ;;  %v9353_v23 = vsel %vm9346_vm1, 1e+30, %v9217_v54 }
 0x34e   :  { %1824 = vmin.xlane.f32.xlu1 %v9353_v23  ;;  %v1687_v31 = vpop.xlane.xlu1 %1686 }
 0x34f   :  { %vm1711_vm4 = vcmp.le.f32.partialorder %v9190_v11, %v1687_v31  ;;  %vm1727_vm12 = vcmp.lt.f32.partialorder %v1687_v31, 5e+29  ;;  %v8010_v31 = vld [vmem:[%s13116_s0 + $0x18] sm:$0xff] }
 0x350   :  { %vm9357_vm0 = vmand %vm1711_vm4, %vm1727_vm12 }
 0x351   :  { %v13366_v16 = vsel %vm9357_vm0, 4294967295, %v13365_v16  ;;  %v9364_v35 = vsel %vm9357_vm0, 1e+30, %v9190_v11 }
 0x352   :  { %1830 = vmin.xlane.f32.xlu1 %v9364_v35  ;;  %v1685_v37 = vpop.xlane.xlu1 %1684 }
 0x353   :  { %vm1710_vm11 = vcmp.le.f32.partialorder %v9199_v9, %v1685_v37  ;;  %vm1726_vm15 = vcmp.lt.f32.partialorder %v1685_v37, 5e+29  ;;  %v8011_v37 = vld [vmem:[%s13116_s0 + $0x20] sm:$0xff] }
 0x354   :  { %vm9368_vm1 = vmand %vm1710_vm11, %vm1726_vm15 }
 0x355   :  { %v13368_v62 = vsel %vm9368_vm1, 4294967295, %v13367_v62  ;;  %v9375_v40 = vsel %vm9368_vm1, 1e+30, %v9199_v9 }
 0x356   :  { %1828 = vmin.xlane.f32.xlu1 %v9375_v40  ;;  %v1691_v57 = vpop.xlane.xlu1 %1690 }
 0x357   :  { %vm1713_vm4 = vcmp.le.f32.partialorder %v9208_v49, %v1691_v57  ;;  %vm1729_vm12 = vcmp.lt.f32.partialorder %v1691_v57, 5e+29  ;;  %v8012_v57 = vld [vmem:[%s13116_s0 + $0x28] sm:$0xff] }
 0x358   :  { %vm9379_vm0 = vmand %vm1713_vm4, %vm1729_vm12 }
 0x359   :  { %v9386_v2 = vsel %vm9379_vm0, 1e+30, %v9208_v49  ;;  %v9423_v49 = vsel %vm9236_vm7, 1.0, %v8166_v36 }
 0x35a   :  { %1834 = vmin.xlane.f32.xlu1 %v9386_v2  ;;  %v1689_v11 = vpop.xlane.xlu1 %1688 }
 0x35b   :  { %vm1712_vm11 = vcmp.le.f32.partialorder %v9215_v48, %v1689_v11  ;;  %vm1728_vm15 = vcmp.lt.f32.partialorder %v1689_v11, 5e+29  ;;  %v8013_v11 = vld [vmem:[%s13116_s0 + $0x30] sm:$0xff] }
 0x35c   :  { %vm9390_vm1 = vmand %vm1712_vm11, %vm1728_vm15 }
 0x35d   :  { %v9397_v53 = vsel %vm9390_vm1, 1e+30, %v9215_v48  ;;  %v9751_v61 = vsel %vm9390_vm1, 1.0, %v8166_v36 }
 0x35e   :  { %1832 = vmin.xlane.f32.xlu1 %v9397_v53 }
 0x39d   :  { %v1839_v9 = vpop.xlane.xlu0 %1838 }
 0x39e   :  { %vm1859_vm4 = vcmp.le.f32.partialorder %v9232_v45, %v1839_v9  ;;  %vm1875_vm12 = vcmp.lt.f32.partialorder %v1839_v9, 5e+29 }
 0x39f   :  { %vm9406_vm11 = vmand %vm1859_vm4, %vm1875_vm12 }
 0x3a0   :  { %v9413_v43 = vsel %vm9406_vm11, 1e+30, %v9232_v45  ;;  %v1939_v63 = vsel %vm9406_vm11, 1.0, %v9404_v12  ;;  %v9442_v45 = vsel %vm9247_vm13, 1.0, %v8166_v36 }
 0x3a1   :  { %1982 = vmin.xlane.f32.xlu0 %v9413_v43  ;;  %v1837_v5 = vpop.xlane.xlu1 %1836 }
 0x3a2   :  { %vm1858_vm15 = vcmp.le.f32.partialorder %v9243_v28, %v1837_v5  ;;  %vm1874_vm3 = vcmp.lt.f32.partialorder %v1837_v5, 5e+29  ;;  %v9544_v5 = vsel %vm9291_vm14, 1.0, %v8166_v36 }
 0x3a3   :  { %vm9425_vm4 = vmand %vm1858_vm15, %vm1874_vm3 }
 0x3a4   :  { %v9432_v54 = vsel %vm9425_vm4, 1e+30, %v9243_v28  ;;  %v1938_v33 = vsel %vm9425_vm4, 1.0, %v9423_v49 }
 0x3a5   :  { %1980 = vmin.xlane.f32.xlu0 %v9432_v54  ;;  %v1843_v41 = vpop.xlane.xlu1 %1842 }
 0x3a6   :  { %vm1861_vm12 = vcmp.le.f32.partialorder %v9254_v42, %v1843_v41  ;;  %vm1877_vm7 = vcmp.lt.f32.partialorder %v1843_v41, 5e+29 }
 0x3a7   :  { %vm9444_vm15 = vmand %vm1861_vm12, %vm1877_vm7 }
 0x3a8   :  { %v9451_v1 = vsel %vm9444_vm15, 1e+30, %v9254_v42  ;;  %v1941_v28 = vsel %vm9444_vm15, 1.0, %v9442_v45 }
 0x3a9   :  { %1986 = vmin.xlane.f32.xlu0 %v9451_v1  ;;  %v1841_v26 = vpop.xlane.xlu1 %1840 }
 0x3aa   :  { %vm1860_vm3 = vcmp.le.f32.partialorder %v9265_v38, %v1841_v26  ;;  %vm1876_vm13 = vcmp.lt.f32.partialorder %v1841_v26, 5e+29  ;;  %v8014_v26 = vld [vmem:[%s13116_s0 + $0x38] sm:$0xff] }
 0x3ab   :  { %vm9463_vm12 = vmand %vm1860_vm3, %vm1876_vm13 }
 0x3ac   :  { %v9470_v42 = vsel %vm9463_vm12, 1e+30, %v9265_v38  ;;  %v1940_v3 = vsel %vm9463_vm12, 1.0, %v9461_v15 }
 0x3ad   :  { %1984 = vmin.xlane.f32.xlu0 %v9470_v42  ;;  %v1847_v18 = vpop.xlane.xlu1 %1846 }
 0x3ae   :  { %vm1863_vm7 = vcmp.le.f32.partialorder %v9276_v19, %v1847_v18  ;;  %vm1879_vm2 = vcmp.lt.f32.partialorder %v1847_v18, 5e+29 }
 0x3af   :  { %vm9482_vm3 = vmand %vm1863_vm7, %vm1879_vm2  ;;  %vm13385_vm2 = vcmask 1042432  }
 0x3b0   :  { %v9489_v38 = vsel %vm9482_vm3, 1e+30, %v9276_v19  ;;  %v1943_v47 = vsel %vm9482_vm3, 1.0, %v9480_v13  ;;  %7181 = vmatprep.subr.msk.mxu1 %vm13385_vm2, %v2574_v8  ;;  %vm13386_vm5 = vmmov %vm13385_vm2 }
 0x3b1   :  { %1990 = vmin.xlane.f32.xlu0 %v9489_v38  ;;  %v1845_v20 = vpop.xlane.xlu1 %1844  ;;  %7182 = vmatpush3.msk.msra.mxu1 %vm13386_vm5, %v2574_v8 }
 0x3b2   :  { %vm1862_vm13 = vcmp.le.f32.partialorder %v9287_v50, %v1845_v20  ;;  %vm1878_vm10 = vcmp.lt.f32.partialorder %v1845_v20, 5e+29  ;;  %v8015_v20 = vld [vmem:[%s13116_s0 + $0x40] sm:$0xff] }
 0x3b3   :  { %vm9501_vm7 = vmand %vm1862_vm13, %vm1878_vm10  ;;  %vm13387_vm13 = vcmask 23552  }
 0x3b4   :  { %v13384_v7 = vsel %vm9501_vm7, 4294967295, %v13383_v7  ;;  %v9508_v19 = vsel %vm9501_vm7, 1e+30, %v9287_v50  ;;  %7184 = vmatmul.mubr.msk.f32.vlgmr.msra.gmra.mrb[6].mxu1 %vm13387_vm13, %v8008_v56  ;;  %v8009_v50 = vld [vmem:[%s13116_s0 + $0x10] sm:$0xff]  ;;  %vm13388_vm10 = vmmov %vm13387_vm13 }
 0x3b5   :  { %1988 = vmin.xlane.f32.xlu0 %v9508_v19  ;;  %7186 = vmatprep.mubr.msk.f32.mxu1 %vm13388_vm10, %v8009_v50  ;;  %vm13389_vm7 = vmmov %vm13388_vm10  ;;  %v8016_v50 = vld [vmem:[%s13116_s0 + $0x48] sm:$0xff] }
 0x3b6   :  { %vm13390_vm2 = vmmov %vm13389_vm7 }
 0x3b7   :  { %vm13391_vm5 = vmmov %vm13390_vm2 }
 0x3b8   :  { %7187 = vmatmul.mubr.msk.f32.gmra.mrb[8].mxu1 %vm13389_vm7, %v8010_v31  ;;  %vm13392_vm13 = vmmov %vm13390_vm2 }
 0x3b9   :  { %7189 = vmatprep.mubr.msk.f32.mxu1 %vm13390_vm2, %v8011_v37  ;;  %vm13395_vm14 = vmmov %vm13391_vm5  ;;  %v8017_v37 = vld [vmem:[%s13116_s0 + $0x50] sm:$0xff] }
 0x3bc   :  { %7190 = vmatmul.mubr.msk.f32.gmra.mrb[10].mxu1 %vm13391_vm5, %v8012_v57 }
 0x3bd   :  { %7192 = vmatprep.mubr.msk.f32.mxu1 %vm13392_vm13, %v8013_v11 }
 0x3c0   :  { %7193 = vmatmul.mubr.msk.f32.gmra.mrb[12].mxu1 %vm13391_vm5, %v8014_v26 }
 0x3c1   :  { %7195 = vmatprep.mubr.msk.f32.mxu1 %vm13395_vm14, %v8015_v20  ;;  %v8019_v20 = vld [vmem:[%s13116_s0 + $0x60] sm:$0xff] }
 0x3c4   :  { %7196 = vmatmul.mubr.msk.f32.gmra.mrb[14].mxu1 %vm13391_vm5, %v8016_v50 }
 0x3c7   :  { %v1819_v9 = vpop.xlane.xlu1 %1818 }
 0x3c8   :  { %vm1849_vm7 = vcmp.le.f32.partialorder %v9298_v58, %v1819_v9  ;;  %vm1865_vm10 = vcmp.lt.f32.partialorder %v1819_v9, 5e+29  ;;  %v8018_v9 = vld [vmem:[%s13116_s0 + $0x58] sm:$0xff] }
 0x3c9   :  { %vm9546_vm2 = vmand %vm1849_vm7, %vm1865_vm10 }
 0x3ca   :  { %v9557_v18 = vsel %vm9546_vm2, 1e+30, %v9298_v58  ;;  %v9571_v58 = vsel %vm9302_vm8, 1.0, %v8166_v36  ;;  %vm13398_vm8 = vmmov %vm13391_vm5 }
 0x3cb   :  { %1962 = vmin.xlane.f32.xlu0 %v9557_v18  ;;  %v1817_v8 = vpop.xlane.xlu1 %1816  ;;  %7198 = vmatprep.mubr.msk.f32.mxu1 %vm13398_vm8, %v8017_v37  ;;  %v8020_v37 = vld [vmem:[%s13116_s0 + $0x68] sm:$0xff] }
 0x3cc   :  { %vm1848_vm13 = vcmp.le.f32.partialorder %v9309_v34, %v1817_v8  ;;  %vm1864_vm7 = vcmp.lt.f32.partialorder %v1817_v8, 5e+29  ;;  %7199 = vmatmul.mubr.msk.f32.gmra.mrb[16].mxu1 %vm13391_vm5, %v8018_v9  ;;  %v8021_v9 = vld [vmem:[%s13116_s0 + $0x70] sm:$0xff] }
 0x3cd   :  { %vm9573_vm10 = vmand %vm1848_vm13, %vm1864_vm7 }
 0x3ce   :  { %v9584_v31 = vsel %vm9573_vm10, 1e+30, %v9309_v34  ;;  %v9598_v34 = vsel %vm9313_vm9, 1.0, %v8166_v36  ;;  %vm13401_vm9 = vmmov %vm13391_vm5 }
 0x3cf   :  { %1960 = vmin.xlane.f32.xlu0 %v9584_v31  ;;  %v1823_v57 = vpop.xlane.xlu1 %1822  ;;  %7201 = vmatprep.mubr.msk.f32.mxu1 %vm13401_vm9, %v8019_v20 }
 0x3d0   :  { %vm1851_vm14 = vcmp.le.f32.partialorder %v9320_v0, %v1823_v57  ;;  %vm1867_vm13 = vcmp.lt.f32.partialorder %v1823_v57, 5e+29  ;;  %7202 = vmatmul.mubr.msk.f32.gmra.mrb[18].mxu1 %vm13391_vm5, %v8020_v37  ;;  %v8022_v37 = vld [vmem:[%s13116_s0 + $0x78] sm:$0xff] }
 0x3d1   :  { %vm9600_vm7 = vmand %vm1851_vm14, %vm1867_vm13 }
 0x3d2   :  { %v9611_v26 = vsel %vm9600_vm7, 1e+30, %v9320_v0  ;;  %v9625_v0 = vsel %vm9324_vm6, 1.0, %v8166_v36  ;;  %vm13404_vm6 = vmmov %vm13391_vm5 }
 0x3d3   :  { %1966 = vmin.xlane.f32.xlu0 %v9611_v26  ;;  %v1821_v8 = vpop.xlane.xlu1 %1820  ;;  %7204 = vmatprep.mubr.msk.f32.mxu1 %vm13404_vm6, %v8021_v9 }
 0x3d4   :  { %vm1850_vm8 = vcmp.le.f32.partialorder %v9331_v14, %v1821_v8  ;;  %vm1866_vm14 = vcmp.lt.f32.partialorder %v1821_v8, 5e+29  ;;  %v13406_v8 = vmov 0  ;;  %7205 = vmatmul.mubr.msk.f32.gmra.mrb[20].mxu1 %vm13404_vm6, %v8022_v37  ;;  %v13409_v37 = vmov 0 }
 0x3d5   :  { %vm9627_vm13 = vmand %vm1850_vm8, %vm1866_vm14  ;;  %vm13405_vm14 = vnez %v13362_v22 }
 0x3d6   :  { %v9638_v57 = vsel %vm9627_vm13, 1e+30, %v9331_v14  ;;  %v9652_v14 = vsel %vm13405_vm14, 1.0, %v8166_v36  ;;  %vm13408_vm14 = vnez %v13364_v44 }
 0x3d7   :  { %1964 = vmin.xlane.f32.xlu0 %v9638_v57  ;;  %v1827_v20 = vpop.xlane.xlu1 %1826  ;;  %v9675_v59 = vsel %vm13408_vm14, 1.0, %v8166_v36 }
 0x3d8   :  { %vm1853_vm9 = vcmp.le.f32.partialorder %v9342_v60, %v1827_v20  ;;  %vm1869_vm8 = vcmp.lt.f32.partialorder %v1827_v20, 5e+29 }
 0x3d9   :  { %vm9654_vm5 = vmand %vm1853_vm9, %vm1869_vm8 }
 0x3da   :  { %v13407_v8 = vsel %vm9654_vm5, 4294967295, %v13406_v8  ;;  %v9665_v9 = vsel %vm9654_vm5, 1e+30, %v9342_v60 }
 0x3db   :  { %1970 = vmin.xlane.f32.xlu0 %v9665_v9  ;;  %v1825_v20 = vpop.xlane.xlu1 %1824 }
 0x3dc   :  { %vm1852_vm9 = vcmp.le.f32.partialorder %v9353_v23, %v1825_v20  ;;  %vm1868_vm8 = vcmp.lt.f32.partialorder %v1825_v20, 5e+29 }
 0x3dd   :  { %vm9677_vm6 = vmand %vm1852_vm9, %vm1868_vm8  ;;  %vm13411_vm9 = vnez %v13366_v16 }
 0x3de   :  { %v13410_v37 = vsel %vm9677_vm6, 4294967295, %v13409_v37  ;;  %v9684_v60 = vsel %vm9677_vm6, 1e+30, %v9353_v23  ;;  %v9694_v44 = vsel %vm13411_vm9, 1.0, %v8166_v36 }
 0x3df   :  { %1968 = vmin.xlane.f32.xlu0 %v9684_v60  ;;  %v1831_v20 = vpop.xlane.xlu1 %1830 }
 0x3e0   :  { %vm1855_vm5 = vcmp.le.f32.partialorder %v9364_v35, %v1831_v20  ;;  %vm1871_vm14 = vcmp.lt.f32.partialorder %v1831_v20, 5e+29 }
 0x3e1   :  { %vm9696_vm8 = vmand %vm1855_vm5, %vm1871_vm14  ;;  %vm13414_vm5 = vnez %v13368_v62  ;;  %v9732_v62 = vsel %vm9379_vm0, 1.0, %v8166_v36 }
 0x3e2   :  { %v13413_v52 = vsel %vm9696_vm8, 4294967295, %v13412_v52  ;;  %v9703_v23 = vsel %vm9696_vm8, 1e+30, %v9364_v35  ;;  %v9713_v16 = vsel %vm13414_vm5, 1.0, %v8166_v36 }
 0x3e3   :  { %1974 = vmin.xlane.f32.xlu1 %v9703_v23  ;;  %v1829_v20 = vpop.xlane.xlu1 %1828 }
 0x3e4   :  { %vm1854_vm6 = vcmp.le.f32.partialorder %v9375_v40, %v1829_v20  ;;  %vm1870_vm9 = vcmp.lt.f32.partialorder %v1829_v20, 5e+29 }
 0x3e5   :  { %vm9715_vm14 = vmand %vm1854_vm6, %vm1870_vm9 }
 0x3e6   :  { %v9722_v35 = vsel %vm9715_vm14, 1e+30, %v9375_v40 }
 0x3e7   :  { %1972 = vmin.xlane.f32.xlu0 %v9722_v35  ;;  %v1835_v20 = vpop.xlane.xlu1 %1834 }
 0x3e8   :  { %vm1857_vm8 = vcmp.le.f32.partialorder %v9386_v2, %v1835_v20  ;;  %vm1873_vm5 = vcmp.lt.f32.partialorder %v1835_v20, 5e+29 }
 0x3e9   :  { %vm9734_vm6 = vmand %vm1857_vm8, %vm1873_vm5 }
 0x3ea   :  { %v13418_v17 = vsel %vm9734_vm6, 4294967295, %v13417_v17  ;;  %v9741_v40 = vsel %vm9734_vm6, 1e+30, %v9386_v2 }
 0x3eb   :  { %1978 = vmin.xlane.f32.xlu0 %v9741_v40  ;;  %v1833_v20 = vpop.xlane.xlu1 %1832 }
 0x3ec   :  { %vm1856_vm9 = vcmp.le.f32.partialorder %v9397_v53, %v1833_v20  ;;  %vm1872_vm0 = vcmp.lt.f32.partialorder %v1833_v20, 5e+29 }
 0x3ed   :  { %vm9753_vm8 = vmand %vm1856_vm9, %vm1872_vm0 }
 0x3ee   :  { %v13420_v10 = vsel %vm9753_vm8, 4294967295, %v13419_v10  ;;  %v9760_v2 = vsel %vm9753_vm8, 1e+30, %v9397_v53 }
 0x3ef   :  { %1976 = vmin.xlane.f32.xlu0 %v9760_v2 }
 0x42e   :  { %v1983_v20 = vpop.xlane.xlu0 %1982 }
 0x42f   :  { %vm2003_vm5 = vcmp.le.f32.partialorder %v9413_v43, %v1983_v20  ;;  %vm2019_vm1 = vcmp.lt.f32.partialorder %v1983_v20, 5e+29 }
 0x430   :  { %vm2067_vm6 = vmand %vm2003_vm5, %vm2019_vm1 }
 0x431   :  { %v9771_v24 = vsel %vm2067_vm6, 1.0, %v1939_v63  ;;  %v9774_v53 = vsel %vm2067_vm6, 1e+30, %v9413_v43 }
 0x432   :  { %v1981_v36 = vpop.xlane.xlu0 %1980  ;;  %2126 = vmin.xlane.f32.xlu1 %v9774_v53 }
 0x433   :  { %vm2002_vm9 = vcmp.le.f32.partialorder %v9432_v54, %v1981_v36  ;;  %vm2018_vm0 = vcmp.lt.f32.partialorder %v1981_v36, 5e+29 }
 0x434   :  { %vm2066_vm8 = vmand %vm2002_vm9, %vm2018_vm0 }
 0x435   :  { %v9779_v22 = vsel %vm2066_vm8, 1e+30, %v9432_v54  ;;  %v9785_v12 = vsel %vm2066_vm8, 1.0, %v1938_v33 }
 0x436   :  { %v1987_v46 = vpop.xlane.xlu0 %1986  ;;  %2124 = vmin.xlane.f32.xlu0 %v9779_v22 }
 0x437   :  { %vm2005_vm11 = vcmp.le.f32.partialorder %v9451_v1, %v1987_v46  ;;  %vm2021_vm6 = vcmp.lt.f32.partialorder %v1987_v46, 5e+29 }
 0x438   :  { %vm2069_vm5 = vmand %vm2005_vm11, %vm2021_vm6 }
 0x439   :  { %v9793_v43 = vsel %vm2069_vm5, 1.0, %v1941_v28  ;;  %v9796_v63 = vsel %vm2069_vm5, 1e+30, %v9451_v1  ;;  %vm13421_vm5 = vnez %v13384_v7 }
 0x43a   :  { %v1985_v48 = vpop.xlane.xlu0 %1984  ;;  %2130 = vmin.xlane.f32.xlu1 %v9796_v63  ;;  %v13422_v15 = vsel %vm13421_vm5, 1.0, %v9499_v32  ;;  %v13424_v32 = vsel %vm9573_vm10, 1.0, %v9571_v58 }
 0x43b   :  { %vm2004_vm4 = vcmp.le.f32.partialorder %v9470_v42, %v1985_v48  ;;  %vm2020_vm8 = vcmp.lt.f32.partialorder %v1985_v48, 5e+29 }
 0x43c   :  { %vm2068_vm1 = vmand %vm2004_vm4, %vm2020_vm8 }
 0x43d   :  { %v9801_v49 = vsel %vm2068_vm1, 1e+30, %v9470_v42  ;;  %v9807_v54 = vsel %vm2068_vm1, 1.0, %v1940_v3  ;;  %v13423_v3 = vsel %vm9546_vm2, 1.0, %v9544_v5  ;;  %v13425_v5 = vsel %vm9600_vm7, 1.0, %v9598_v34 }
 0x43e   :  { %v1991_v33 = vpop.xlane.xlu0 %1990  ;;  %2128 = vmin.xlane.f32.xlu0 %v9801_v49 }
 0x43f   :  { %vm2007_vm15 = vcmp.le.f32.partialorder %v9489_v38, %v1991_v33  ;;  %vm2023_vm9 = vcmp.lt.f32.partialorder %v1991_v33, 5e+29 }
 0x440   :  { %vm2071_vm0 = vmand %vm2007_vm15, %vm2023_vm9 }
 0x441   :  { %v9815_v45 = vsel %vm2071_vm0, 1.0, %v1943_v47  ;;  %v9818_v4 = vsel %vm2071_vm0, 1e+30, %v9489_v38 }
 0x442   :  { %v1989_v1 = vpop.xlane.xlu0 %1988  ;;  %2134 = vmin.xlane.f32.xlu1 %v9818_v4 }
 0x443   :  { %vm2006_vm12 = vcmp.le.f32.partialorder %v9508_v19, %v1989_v1  ;;  %vm2022_vm11 = vcmp.lt.f32.partialorder %v1989_v1, 5e+29 }
 0x444   :  { %vm2070_vm6 = vmand %vm2006_vm12, %vm2022_vm11 }
 0x445   :  { %v9823_v28 = vsel %vm2070_vm6, 1e+30, %v9508_v19  ;;  %v9829_v39 = vsel %vm2070_vm6, 1.0, %v13422_v15  ;;  %v6316_v15 = vld [vmem:[#allocation8] ss:$0 sm:$0xff] }
 0x446   :  { %2132 = vmin.xlane.f32.xlu0 %v9823_v28 }
 0x458   :  { %v1963_v42 = vpop.xlane.xlu0 %1962 }
 0x459   :  { %vm1993_vm3 = vcmp.le.f32.partialorder %v9557_v18, %v1963_v42  ;;  %vm2009_vm4 = vcmp.lt.f32.partialorder %v1963_v42, 5e+29 }
 0x45a   :  { %vm2057_vm8 = vmand %vm1993_vm3, %vm2009_vm4  ;;  %vm13429_vm4 = vnez %v13407_v8 }
 0x45b   :  { %v9837_v13 = vsel %vm2057_vm8, 1.0, %v13423_v3  ;;  %v9840_v51 = vsel %vm2057_vm8, 1e+30, %v9557_v18 }
 0x45c   :  { %v1961_v38 = vpop.xlane.xlu0 %1960  ;;  %2106 = vmin.xlane.f32.xlu0 %v9840_v51 }
 0x45d   :  { %vm1992_vm1 = vcmp.le.f32.partialorder %v9584_v31, %v1961_v38  ;;  %vm2008_vm15 = vcmp.lt.f32.partialorder %v1961_v38, 5e+29 }
 0x45e   :  { %vm2056_vm9 = vmand %vm1992_vm1, %vm2008_vm15  ;;  %vm13432_vm15 = vnez %v13410_v37 }
 0x45f   :  { %v9845_v47 = vsel %vm2056_vm9, 1e+30, %v9584_v31  ;;  %v9851_v7 = vsel %vm2056_vm9, 1.0, %v13424_v32  ;;  %v13427_v31 = vsel %vm9627_vm13, 1.0, %v9625_v0  ;;  %v13433_v8 = vsel %vm13432_vm15, 1.0, %v9675_v59 }
 0x460   :  { %v1967_v19 = vpop.xlane.xlu0 %1966  ;;  %2104 = vmin.xlane.f32.xlu0 %v9845_v47 }
 0x461   :  { %vm1995_vm2 = vcmp.le.f32.partialorder %v9611_v26, %v1967_v19  ;;  %vm2011_vm0 = vcmp.lt.f32.partialorder %v1967_v19, 5e+29 }
 0x462   :  { %vm2059_vm12 = vmand %vm1995_vm2, %vm2011_vm0 }
 0x463   :  { %v9859_v41 = vsel %vm2059_vm12, 1.0, %v13425_v5  ;;  %v9862_v18 = vsel %vm2059_vm12, 1e+30, %v9611_v26  ;;  %v13430_v26 = vsel %vm13429_vm4, 1.0, %v9652_v14  ;;  %vm13435_vm12 = vnez %v13413_v52 }
 0x464   :  { %13426 = vst [vmem:[#allocation16_spill] sm:$0xff] %v9859_v41  ;;  %v1965_v56 = vpop.xlane.xlu0 %1964  ;;  %2110 = vmin.xlane.f32.xlu0 %v9862_v18  ;;  %vm13440_vm4 = vnez %v13418_v17 }
 0x465   :  { %vm1994_vm10 = vcmp.le.f32.partialorder %v9638_v57, %v1965_v56  ;;  %vm2010_vm11 = vcmp.lt.f32.partialorder %v1965_v56, 5e+29 }
 0x466   :  { %vm2058_vm6 = vmand %vm1994_vm10, %vm2010_vm11 }
 0x467   :  { %v9867_v58 = vsel %vm2058_vm6, 1e+30, %v9638_v57  ;;  %v9873_v34 = vsel %vm2058_vm6, 1.0, %v13427_v31 }
 0x468   :  { %13428 = vst [vmem:[#allocation17_spill] sm:$0xff] %v9873_v34  ;;  %v1971_v11 = vpop.xlane.xlu0 %1970  ;;  %2108 = vmin.xlane.f32.xlu0 %v9867_v58  ;;  %v2707_v34 = vsub.f32 0.0, %v9080_v25 }
 0x469   :  { %vm1997_vm7 = vcmp.le.f32.partialorder %v9665_v9, %v1971_v11  ;;  %vm2013_vm5 = vcmp.lt.f32.partialorder %v1971_v11, 5e+29 }
 0x46a   :  { %vm2061_vm3 = vmand %vm1997_vm7, %vm2013_vm5 }
 0x46b   :  { %v9881_v20 = vsel %vm2061_vm3, 1.0, %v13430_v26  ;;  %v9884_v57 = vsel %vm2061_vm3, 1e+30, %v9665_v9 }
 0x46c   :  { %13431 = vst [vmem:[#allocation24_spill] sm:$0xff] %v9881_v20  ;;  %v1969_v50 = vpop.xlane.xlu0 %1968  ;;  %2114 = vmin.xlane.f32.xlu1 %v9884_v57 }
 0x46d   :  { %vm1996_vm13 = vcmp.le.f32.partialorder %v9684_v60, %v1969_v50  ;;  %vm2012_vm8 = vcmp.lt.f32.partialorder %v1969_v50, 5e+29 }
 0x46e   :  { %vm2060_vm1 = vmand %vm1996_vm13, %vm2012_vm8 }
 0x46f   :  { %v9889_v0 = vsel %vm2060_vm1, 1e+30, %v9684_v60  ;;  %v9895_v14 = vsel %vm2060_vm1, 1.0, %v13433_v8  ;;  %v13436_v60 = vsel %vm13435_vm12, 1.0, %v9694_v44  ;;  %v13441_v44 = vsel %vm13440_vm4, 1.0, %v9732_v62 }
 0x470   :  { %13434 = vst [vmem:[#allocation18_spill] sm:$0xff] %v9895_v14  ;;  %2112 = vmin.xlane.f32.xlu0 %v9889_v0  ;;  %v1975_v9 = vpop.xlane.xlu1 %1974  ;;  %vm13443_vm1 = vnez %v13420_v10 }
 0x471   :  { %vm1999_vm9 = vcmp.le.f32.partialorder %v9703_v23, %v1975_v9  ;;  %vm2015_vm2 = vcmp.lt.f32.partialorder %v1975_v9, 5e+29  ;;  %v13444_v17 = vsel %vm13443_vm1, 1.0, %v9751_v61 }
 0x472   :  { %vm2063_vm0 = vmand %vm1999_vm9, %vm2015_vm2 }
 0x473   :  { %v9900_v36 = vsel %vm2063_vm0, 1e+30, %v9703_v23  ;;  %v9906_v46 = vsel %vm2063_vm0, 1.0, %v13436_v60  ;;  %v13438_v23 = vsel %vm9715_vm14, 1.0, %v9713_v16 }
 0x474   :  { %13437 = vst [vmem:[#allocation20_spill] sm:$0xff] %v9906_v46  ;;  %v1973_v37 = vpop.xlane.xlu0 %1972  ;;  %2118 = vmin.xlane.f32.xlu1 %v9900_v36 }
 0x475   :  { %vm1998_vm10 = vcmp.le.f32.partialorder %v9722_v35, %v1973_v37  ;;  %vm2014_vm11 = vcmp.lt.f32.partialorder %v1973_v37, 5e+29 }
 0x476   :  { %vm2062_vm6 = vmand %vm1998_vm10, %vm2014_vm11 }
 0x477   :  { %v9911_v59 = vsel %vm2062_vm6, 1e+30, %v9722_v35  ;;  %v9917_v48 = vsel %vm2062_vm6, 1.0, %v13438_v23 }
 0x478   :  { %13439 = vst [vmem:[#allocation21_spill] sm:$0xff] %v9917_v48  ;;  %v1979_v52 = vpop.xlane.xlu0 %1978  ;;  %2116 = vmin.xlane.f32.xlu0 %v9911_v59 }
 0x479   :  { %vm2001_vm7 = vcmp.le.f32.partialorder %v9741_v40, %v1979_v52  ;;  %vm2017_vm5 = vcmp.lt.f32.partialorder %v1979_v52, 5e+29 }
 0x47a   :  { %vm2065_vm3 = vmand %vm2001_vm7, %vm2017_vm5 }
 0x47b   :  { %v9925_v33 = vsel %vm2065_vm3, 1.0, %v13441_v44  ;;  %v9928_v35 = vsel %vm2065_vm3, 1e+30, %v9741_v40 }
 0x47c   :  { %13442 = vst [vmem:[#allocation26_spill] sm:$0xff] %v9925_v33  ;;  %v1977_v30 = vpop.xlane.xlu0 %1976  ;;  %2122 = vmin.xlane.f32.xlu1 %v9928_v35 }
 0x47d   :  { %vm2000_vm14 = vcmp.le.f32.partialorder %v9760_v2, %v1977_v30  ;;  %vm2016_vm13 = vcmp.lt.f32.partialorder %v1977_v30, 5e+29 }
 0x47e   :  { %vm2064_vm8 = vmand %vm2000_vm14, %vm2016_vm13 }
 0x47f   :  { %v9933_v16 = vsel %vm2064_vm8, 1e+30, %v9760_v2  ;;  %v9939_v62 = vsel %vm2064_vm8, 1.0, %v13444_v17  ;;  %v6334_v2 = vld [vmem:[%s13120_s4] ss:$0 sm:$0xff] }
 0x480   :  { %13445 = vst [vmem:[#allocation22_spill] sm:$0xff] %v9939_v62  ;;  %2120 = vmin.xlane.f32.xlu0 %v9933_v16 }
 0x487   :  { %v9942_v40 = vpop.f32.mrb[6].mxu1 }
 0x488   :  { %13446 = vst [vmem:[#allocation23_spill] sm:$0xff] %v9942_v40  ;;  %v9944_v1 = vpop.f32.mrb[7].mxu1 }
 0x489   :  { %13447 = vst [vmem:[#allocation19_spill] sm:$0xff] %v9944_v1 }
 0x48b   :  { %v7188_v42 = vpop.f32.mrb[8].mxu1 }
 0x48c   :  { %v5024_v3 = vadd.f32 %v7188_v42, %v6316_v15  ;;  %v5018_v38 = vpop.f32.mrb[9].mxu1 }
 0x48d   :  { %v5019_v32 = vadd.f32 %v6316_v15, %v5018_v38 }
 0x48e   :  { %v9949_v10 = vadd.f32 %v6334_v2, %v5024_v3 }
 0x48f   :  { %v9951_v61 = vadd.f32 %v6334_v2, %v5019_v32  ;;  %v7191_v19 = vpop.f32.mrb[10].mxu1 }
 0x490   :  { %13448 = vst [vmem:[#allocation28_spill] sm:$0xff] %v9949_v10  ;;  %v5034_v5 = vadd.f32 %v7191_v19, %v6316_v15  ;;  %v5028_v56 = vpop.f32.mrb[11].mxu1 }
 0x491   :  { %13449 = vst [vmem:[#allocation27_spill] sm:$0xff] %v9951_v61  ;;  %v5029_v31 = vadd.f32 %v6316_v15, %v5028_v56 }
 0x492   :  { %v9953_v11 = vadd.f32 %v6334_v2, %v5034_v5 }
 0x493   :  { %v9955_v26 = vadd.f32 %v6334_v2, %v5029_v31  ;;  %v7194_v50 = vpop.f32.mrb[12].mxu1 }
 0x494   :  { %13450 = vst [vmem:[#allocation25_spill] sm:$0xff] %v9953_v11  ;;  %v5044_v8 = vadd.f32 %v7194_v50, %v6316_v15  ;;  %v5038_v9 = vpop.f32.mrb[13].mxu1  ;;  %v2704_v11 = vsub.f32 0.0, %v9078_v29 }
 0x495   :  { %13451 = vst [vmem:[#allocation29_spill] sm:$0xff] %v9955_v26  ;;  %v5039_v60 = vadd.f32 %v6316_v15, %v5038_v9 }
 0x496   :  { %v9957_v37 = vadd.f32 %v6334_v2, %v5044_v8  ;;  %v10223_v29 = vrot.slane %v2704_v11, %v9035_v27 }
 0x497   :  { %v9959_v23 = vadd.f32 %v6334_v2, %v5039_v60  ;;  %v7197_v52 = vpop.f32.mrb[14].mxu1 }
 0x498   :  { %13452 = vst [vmem:[#allocation30_spill] sm:$0xff] %v9957_v37  ;;  %v5054_v44 = vadd.f32 %v7197_v52, %v6316_v15  ;;  %v5048_v30 = vpop.f32.mrb[15].mxu1 }
 0x499   :  { %13453 = vst [vmem:[#allocation31_spill] sm:$0xff] %v9959_v23  ;;  %v5049_v17 = vadd.f32 %v6316_v15, %v5048_v30 }
 0x49a   :  { %v9961_v42 = vadd.f32 %v6334_v2, %v5054_v44 }
 0x49b   :  { %v9963_v3 = vadd.f32 %v6334_v2, %v5049_v17 }
 0x49c   :  { %13454 = vst [vmem:[#allocation32_spill] sm:$0xff] %v9961_v42 }
 0x49d   :  { %13455 = vst [vmem:[#allocation33_spill] sm:$0xff] %v9963_v3 }
 0x49f   :  { %v7200_v38 = vpop.f32.mrb[16].mxu1 }
 0x4a0   :  { %v5064_v32 = vadd.f32 %v7200_v38, %v6316_v15  ;;  %v5058_v19 = vpop.f32.mrb[17].mxu1 }
 0x4a1   :  { %v5059_v5 = vadd.f32 %v6316_v15, %v5058_v19 }
 0x4a2   :  { %v9965_v56 = vadd.f32 %v6334_v2, %v5064_v32 }
 0x4a3   :  { %v9967_v31 = vadd.f32 %v6334_v2, %v5059_v5  ;;  %v7203_v50 = vpop.f32.mrb[18].mxu1 }
 0x4a4   :  { %13456 = vst [vmem:[#allocation34_spill] sm:$0xff] %v9965_v56  ;;  %v5074_v8 = vadd.f32 %v7203_v50, %v6316_v15  ;;  %v5068_v9 = vpop.f32.mrb[19].mxu1 }
 0x4a5   :  { %13457 = vst [vmem:[#allocation35_spill] sm:$0xff] %v9967_v31  ;;  %v5069_v60 = vadd.f32 %v6316_v15, %v5068_v9 }
 0x4a6   :  { %v9969_v37 = vadd.f32 %v6334_v2, %v5074_v8 }
 0x4a7   :  { %v9971_v52 = vadd.f32 %v6334_v2, %v5069_v60  ;;  %v7206_v44 = vpop.f32.mrb[20].mxu1 }
 0x4a8   :  { %13458 = vst [vmem:[#allocation36_spill] sm:$0xff] %v9969_v37  ;;  %v5084_v30 = vadd.f32 %v7206_v44, %v6316_v15  ;;  %v5078_v17 = vpop.f32.mrb[21].mxu1 }
 0x4a9   :  { %13459 = vst [vmem:[#allocation37_spill] sm:$0xff] %v9971_v52  ;;  %v5079_v42 = vadd.f32 %v6316_v15, %v5078_v17 }
 0x4aa   :  { %v9973_v3 = vadd.f32 %v6334_v2, %v5084_v30 }
 0x4ab   :  { %v9975_v38 = vadd.f32 %v6334_v2, %v5079_v42 }
 0x4ac   :  { %13460 = vst [vmem:[#allocation38_spill] sm:$0xff] %v9973_v3 }
 0x4ad   :  { %13461 = vst [vmem:[#allocation39_spill] sm:$0xff] %v9975_v38 }
 0x4bf   :  { %v2127_v32 = vpop.xlane.xlu1 %2126 }
 0x4c0   :  { %vm2147_vm15 = vcmp.le.f32.partialorder %v9774_v53, %v2127_v32  ;;  %vm2163_vm9 = vcmp.lt.f32.partialorder %v2127_v32, 5e+29 }
 0x4c1   :  { %vm9978_vm2 = vmand %vm2147_vm15, %vm2163_vm9 }
 0x4c2   :  { %v9985_v5 = vsel %vm9978_vm2, 1e+30, %v9774_v53 }
 0x4c3   :  { %v2125_v50 = vpop.xlane.xlu0 %2124  ;;  %2270 = vmin.xlane.f32.xlu1 %v9985_v5 }
 0x4c4   :  { %vm2146_vm0 = vcmp.le.f32.partialorder %v9779_v22, %v2125_v50  ;;  %vm2162_vm12 = vcmp.lt.f32.partialorder %v2125_v50, 5e+29 }
 0x4c5   :  { %vm9992_vm10 = vmand %vm2146_vm0, %vm2162_vm12 }
 0x4c6   :  { %v9999_v42 = vsel %vm9992_vm10, 1e+30, %v9779_v22 }
 0x4c7   :  { %2268 = vmin.xlane.f32.xlu0 %v9999_v42  ;;  %v2131_v8 = vpop.xlane.xlu1 %2130 }
 0x4c8   :  { %vm2149_vm11 = vcmp.le.f32.partialorder %v9796_v63, %v2131_v8  ;;  %vm2165_vm6 = vcmp.lt.f32.partialorder %v2131_v8, 5e+29 }
 0x4c9   :  { %vm10006_vm7 = vmand %vm2149_vm11, %vm2165_vm6 }
 0x4ca   :  { %v10013_v60 = vsel %vm10006_vm7, 1e+30, %v9796_v63 }
 0x4cb   :  { %v2129_v44 = vpop.xlane.xlu0 %2128  ;;  %2274 = vmin.xlane.f32.xlu1 %v10013_v60 }
 0x4cc   :  { %vm2148_vm5 = vcmp.le.f32.partialorder %v9801_v49, %v2129_v44  ;;  %vm2164_vm3 = vcmp.lt.f32.partialorder %v2129_v44, 5e+29 }
 0x4cd   :  { %vm10020_vm4 = vmand %vm2148_vm5, %vm2164_vm3 }
 0x4ce   :  { %v10027_v17 = vsel %vm10020_vm4, 1e+30, %v9801_v49 }
 0x4cf   :  { %2272 = vmin.xlane.f32.xlu0 %v10027_v17  ;;  %v2135_v32 = vpop.xlane.xlu1 %2134 }
 0x4d0   :  { %vm2151_vm14 = vcmp.le.f32.partialorder %v9818_v4, %v2135_v32  ;;  %vm2167_vm13 = vcmp.lt.f32.partialorder %v2135_v32, 5e+29 }
 0x4d1   :  { %vm10034_vm8 = vmand %vm2151_vm14, %vm2167_vm13 }
 0x4d2   :  { %v10041_v8 = vsel %vm10034_vm8, 1e+30, %v9818_v4 }
 0x4d3   :  { %v2133_v44 = vpop.xlane.xlu0 %2132  ;;  %2278 = vmin.xlane.f32.xlu1 %v10041_v8 }
 0x4d4   :  { %vm2150_vm1 = vcmp.le.f32.partialorder %v9823_v28, %v2133_v44  ;;  %vm2166_vm15 = vcmp.lt.f32.partialorder %v2133_v44, 5e+29 }
 0x4d5   :  { %vm10048_vm9 = vmand %vm2150_vm1, %vm2166_vm15 }
 0x4d6   :  { %v10055_v63 = vsel %vm10048_vm9, 1e+30, %v9823_v28 }
 0x4d7   :  { %2276 = vmin.xlane.f32.xlu0 %v10055_v63 }
 0x4e9   :  { %v2107_v49 = vpop.xlane.xlu0 %2106 }
 0x4ea   :  { %vm2137_vm0 = vcmp.le.f32.partialorder %v9840_v51, %v2107_v49  ;;  %vm2153_vm12 = vcmp.lt.f32.partialorder %v2107_v49, 5e+29 }
 0x4eb   :  { %vm10062_vm11 = vmand %vm2137_vm0, %vm2153_vm12 }
 0x4ec   :  { %v10072_v28 = vsel %vm10062_vm11, 1e+30, %v9840_v51 }
 0x4ed   :  { %v2105_v4 = vpop.xlane.xlu0 %2104  ;;  %2250 = vmin.xlane.f32.xlu1 %v10072_v28 }
 0x4ee   :  { %vm2136_vm6 = vcmp.le.f32.partialorder %v9845_v47, %v2105_v4  ;;  %vm2152_vm5 = vcmp.lt.f32.partialorder %v2105_v4, 5e+29  ;;  %v13478_v4 = vmov 0 }
 0x4ef   :  { %vm10076_vm3 = vmand %vm2136_vm6, %vm2152_vm5 }
 0x4f0   :  { %v10083_v53 = vsel %vm10076_vm3, 1e+30, %v9845_v47 }
 0x4f1   :  { %2248 = vmin.xlane.f32.xlu0 %v10083_v53  ;;  %v2111_v22 = vpop.xlane.xlu0 %2110 }
 0x4f2   :  { %vm2139_vm14 = vcmp.le.f32.partialorder %v9862_v18, %v2111_v22  ;;  %vm2155_vm13 = vcmp.lt.f32.partialorder %v2111_v22, 5e+29  ;;  %v13481_v22 = vmov 0 }
 0x4f3   :  { %vm10090_vm1 = vmand %vm2139_vm14, %vm2155_vm13 }
 0x4f4   :  { %v13479_v4 = vsel %vm10090_vm1, 4294967295, %v13478_v4  ;;  %v10100_v47 = vsel %vm10090_vm1, 1e+30, %v9862_v18 }
 0x4f5   :  { %13480 = vst [vmem:[#allocation40_spill] sm:$0xff] %v13479_v4  ;;  %v2109_v51 = vpop.xlane.xlu0 %2108  ;;  %2254 = vmin.xlane.f32.xlu1 %v10100_v47 }
 0x4f6   :  { %vm2138_vm15 = vcmp.le.f32.partialorder %v9867_v58, %v2109_v51  ;;  %vm2154_vm0 = vcmp.lt.f32.partialorder %v2109_v51, 5e+29  ;;  %v13485_v51 = vmov 0 }
 0x4f7   :  { %vm10104_vm12 = vmand %vm2138_vm15, %vm2154_vm0 }
 0x4f8   :  { %v13482_v22 = vsel %vm10104_vm12, 4294967295, %v13481_v22  ;;  %v10111_v3 = vsel %vm10104_vm12, 1e+30, %v9867_v58 }
 0x4f9   :  { %13483 = vst [vmem:[#allocation41_spill] sm:$0xff] %v13482_v22  ;;  %13484 = vst [vmem:[#allocation42_spill] sm:$0xff] %v10111_v3  ;;  %2252 = vmin.xlane.f32.xlu0 %v10111_v3  ;;  %v2115_v15 = vpop.xlane.xlu1 %2114 }
 0x4fa   :  { %vm2141_vm6 = vcmp.le.f32.partialorder %v9884_v57, %v2115_v15  ;;  %vm2157_vm5 = vcmp.lt.f32.partialorder %v2115_v15, 5e+29  ;;  %v13489_v15 = vmov 0 }
 0x4fb   :  { %vm10118_vm14 = vmand %vm2141_vm6, %vm2157_vm5 }
 0x4fc   :  { %v13486_v51 = vsel %vm10118_vm14, 4294967295, %v13485_v51  ;;  %v10125_v38 = vsel %vm10118_vm14, 1e+30, %v9884_v57 }
 0x4fd   :  { %13487 = vst [vmem:[#allocation43_spill] sm:$0xff] %v13486_v51  ;;  %13488 = vst [vmem:[#allocation44_spill] sm:$0xff] %v10125_v38  ;;  %v2113_v18 = vpop.xlane.xlu0 %2112  ;;  %2258 = vmin.xlane.f32.xlu1 %v10125_v38 }
 0x4fe   :  { %vm2140_vm13 = vcmp.le.f32.partialorder %v9889_v0, %v2113_v18  ;;  %vm2156_vm15 = vcmp.lt.f32.partialorder %v2113_v18, 5e+29  ;;  %v13493_v18 = vmov 0 }
 0x4ff   :  { %vm10132_vm0 = vmand %vm2140_vm13, %vm2156_vm15 }
 0x500   :  { %v13490_v15 = vsel %vm10132_vm0, 4294967295, %v13489_v15  ;;  %v10139_v37 = vsel %vm10132_vm0, 1e+30, %v9889_v0 }
 0x501   :  { %13491 = vst [vmem:[#allocation45_spill] sm:$0xff] %v13490_v15  ;;  %13492 = vst [vmem:[#allocation46_spill] sm:$0xff] %v10139_v37  ;;  %2256 = vmin.xlane.f32.xlu0 %v10139_v37  ;;  %v2119_v58 = vpop.xlane.xlu1 %2118 }
 0x502   :  { %vm2143_vm6 = vcmp.le.f32.partialorder %v9900_v36, %v2119_v58  ;;  %vm2159_vm5 = vcmp.lt.f32.partialorder %v2119_v58, 5e+29  ;;  %v13497_v58 = vmov 0 }
 0x503   :  { %vm10146_vm14 = vmand %vm2143_vm6, %vm2159_vm5 }
 0x504   :  { %v13494_v18 = vsel %vm10146_vm14, 4294967295, %v13493_v18  ;;  %v10153_v52 = vsel %vm10146_vm14, 1e+30, %v9900_v36 }
 0x505   :  { %13495 = vst [vmem:[#allocation47_spill] sm:$0xff] %v13494_v18  ;;  %13496 = vst [vmem:[#allocation48_spill] sm:$0xff] %v10153_v52  ;;  %v2117_v57 = vpop.xlane.xlu0 %2116  ;;  %2262 = vmin.xlane.f32.xlu1 %v10153_v52 }
 0x506   :  { %vm2142_vm13 = vcmp.le.f32.partialorder %v9911_v59, %v2117_v57  ;;  %vm2158_vm15 = vcmp.lt.f32.partialorder %v2117_v57, 5e+29  ;;  %v13501_v57 = vmov 0 }
 0x507   :  { %vm10160_vm0 = vmand %vm2142_vm13, %vm2158_vm15 }
 0x508   :  { %v13498_v58 = vsel %vm10160_vm0, 4294967295, %v13497_v58  ;;  %v10167_v56 = vsel %vm10160_vm0, 1e+30, %v9911_v59  ;;  %v10204_v59 = vld [vmem:[%s13117_s1 + $0x58] sm:$0xff] }
 0x509   :  { %13499 = vst [vmem:[#allocation49_spill] sm:$0xff] %v13498_v58  ;;  %13500 = vst [vmem:[#allocation50_spill] sm:$0xff] %v10167_v56  ;;  %2260 = vmin.xlane.f32.xlu0 %v10167_v56  ;;  %v2123_v0 = vpop.xlane.xlu1 %2122 }
 0x50a   :  { %vm2145_vm6 = vcmp.le.f32.partialorder %v9928_v35, %v2123_v0  ;;  %vm2161_vm5 = vcmp.lt.f32.partialorder %v2123_v0, 5e+29  ;;  %v13505_v0 = vmov 0  ;;  %13509 = vst [vmem:[#allocation55_spill] sm:$0xff] %v10204_v59 }
 0x50b   :  { %vm10174_vm14 = vmand %vm2145_vm6, %vm2161_vm5 }
 0x50c   :  { %v13502_v57 = vsel %vm10174_vm14, 4294967295, %v13501_v57  ;;  %v10181_v31 = vsel %vm10174_vm14, 1e+30, %v9928_v35  ;;  %v13510_v35 = vsel %vm9978_vm2, 1.0, %v9771_v24 }
 0x50d   :  { %13503 = vst [vmem:[#allocation51_spill] sm:$0xff] %v13502_v57  ;;  %13504 = vst [vmem:[#allocation52_spill] sm:$0xff] %v10181_v31  ;;  %v2121_v36 = vpop.xlane.xlu0 %2120  ;;  %2266 = vmin.xlane.f32.xlu1 %v10181_v31  ;;  %v10262_v57 = vsub.s32 7, %v9032_v21 }
 0x50e   :  { %vm2144_vm13 = vcmp.le.f32.partialorder %v9933_v16, %v2121_v36  ;;  %vm2160_vm15 = vcmp.lt.f32.partialorder %v2121_v36, 5e+29  ;;  %v10207_v36 = vsub.s32 3, %v9032_v21 }
 0x50f   :  { %vm10188_vm0 = vmand %vm2144_vm13, %vm2160_vm15  ;;  %vm13229_vm13 = vcmp.gt.f32.partialorder %v10204_v59, 0.0  ;;  %v10281_v56 = vrot.slane %v2704_v11, %v10262_v57 }
 0x510   :  { %v13506_v0 = vsel %vm10188_vm0, 4294967295, %v13505_v0  ;;  %v10195_v23 = vsel %vm10188_vm0, 1e+30, %v9933_v16  ;;  %v10213_v16 = vsub.s32 1, %v9032_v21 }
 0x511   :  { %13507 = vst [vmem:[#allocation53_spill] sm:$0xff] %v13506_v0  ;;  %13508 = vst [vmem:[#allocation54_spill] sm:$0xff] %v10195_v23  ;;  %2264 = vmin.xlane.f32.xlu0 %v10195_v23  ;;  %v10220_v0 = vsub.s32 4, %v9032_v21 }
 0x512   :  { %v10247_v59 = vrot.slane %v2704_v11, %v10213_v16 }
 0x513   :  { %v10250_v23 = vrot.slane %v2704_v11, %v10220_v0  ;;  %v10391_v25 = vrot.slane %v2707_v34, %v10220_v0 }
 0x550   :  { %v2271_v26 = vpop.xlane.xlu1 %2270 }
 0x551   :  { %vm2291_vm6 = vcmp.le.f32.partialorder %v9985_v5, %v2271_v26  ;;  %vm2307_vm5 = vcmp.lt.f32.partialorder %v2271_v26, 5e+29  ;;  %v10226_v5 = vrot.slane %v2704_v11, %v10207_v36 }
 0x552   :  { %vm2355_vm15 = vmand %vm2291_vm6, %vm2307_vm5 }
 0x553   :  { %v2371_v62 = vsel %vm2355_vm15, 1.0, %v13510_v35  ;;  %v10241_v35 = vsub.s32 2, %v9032_v21 }
 0x554   :  { %vm2403_vm0 = vcmp.gt.f32.partialorder %v2371_v62, 0.0  ;;  %v10244_v62 = vsub.s32 5, %v9032_v21 }
 0x555   :  { %vm10230_vm6 = vmor %vm13229_vm13, %vm2403_vm0  ;;  %v10265_v31 = vrot.slane %v2704_v11, %v10241_v35  ;;  %vm13232_vm13 = vcmask 56368  }
 0x556   :  { %v2930_v24 = vsel %vm10230_vm6, %v10226_v5, -1e+30  ;;  %v2723_v19 = vsel %vm10230_vm6, %v10223_v29, -1e+30  ;;  %v2999_v33 = vsel %vm10230_vm6, %v10250_v23, -1e+30  ;;  %v10268_v48 = vrot.slane %v2704_v11, %v10244_v62 }
 0x557   :  { %2957 = vmax.xlane.f32.xlu1 %v2930_v24  ;;  %2750 = vmax.xlane.f32.xlu0 %v2723_v19  ;;  %v2792_v24 = vsel %vm10230_vm6, %v10247_v59, -1e+30  ;;  %v10259_v19 = vsub.s32 6, %v9032_v21  ;;  %v3206_v61 = vsel %vm10230_vm6, %v10281_v56, -1e+30 }
 0x558   :  { %v3068_v58 = vsel %vm10230_vm6, %v10268_v48, -1e+30 }
 0x559   :  { %v10278_v21 = vrot.slane %v2704_v11, %v10259_v19 }
 0x55b   :  { %3026 = vmax.xlane.f32.xlu1 %v2999_v33  ;;  %2819 = vmax.xlane.f32.xlu0 %v2792_v24  ;;  %v2861_v33 = vsel %vm10230_vm6, %v10265_v31, -1e+30  ;;  %v2705_v24 = vsub.f32 0.0, %v9076_v55  ;;  %v3137_v10 = vsel %vm10230_vm6, %v10278_v21, -1e+30 }
 0x55d   :  { %v10293_v55 = vrot.slane %v2705_v24, %v10220_v0  ;;  %v10302_v46 = vrot.slane %v2705_v24, %v10213_v16  ;;  %v10314_v52 = vrot.slane %v2705_v24, %v10241_v35  ;;  %v10326_v15 = vrot.slane %v2705_v24, %v10207_v36 }
 0x55f   :  { %3095 = vmax.xlane.f32.xlu1 %v3068_v58  ;;  %2888 = vmax.xlane.f32.xlu0 %v2861_v33  ;;  %v10290_v58 = vrot.slane %v2705_v24, %v9035_v27  ;;  %v3551_v11 = vsel %vm10230_vm6, %v10293_v55, -1e+30  ;;  %v3344_v18 = vsel %vm10230_vm6, %v10302_v46, -1e+30  ;;  %v3413_v14 = vsel %vm10230_vm6, %v10314_v52, -1e+30 }
 0x560   :  { %v3482_v40 = vsel %vm10230_vm6, %v10326_v15, -1e+30 }
 0x561   :  { %v3275_v33 = vsel %vm10230_vm6, %v10290_v58, -1e+30 }
 0x563   :  { %3164 = vmax.xlane.f32.xlu1 %v3137_v10  ;;  %3233 = vmax.xlane.f32.xlu0 %v3206_v61  ;;  %v10305_v10 = vrot.slane %v2705_v24, %v10244_v62 }
 0x565   :  { %v3620_v61 = vsel %vm10230_vm6, %v10305_v10, -1e+30 }
 0x567   :  { %3578 = vmax.xlane.f32.xlu1 %v3551_v11  ;;  %3302 = vmax.xlane.f32.xlu0 %v3275_v33  ;;  %v10317_v11 = vrot.slane %v2705_v24, %v10259_v19 }
 0x569   :  { %v3689_v33 = vsel %vm10230_vm6, %v10317_v11, -1e+30 }
 0x56b   :  { %3647 = vmax.xlane.f32.xlu1 %v3620_v61  ;;  %3371 = vmax.xlane.f32.xlu0 %v3344_v18  ;;  %v10329_v18 = vrot.slane %v2705_v24, %v10262_v57  ;;  %v2706_v61 = vsub.f32 0.0, %v9082_v6 }
 0x56d   :  { %v3758_v37 = vsel %vm10230_vm6, %v10329_v18, -1e+30  ;;  %v10351_v1 = vrot.slane %v2706_v61, %v10213_v16  ;;  %v10363_v51 = vrot.slane %v2706_v61, %v10241_v35 }
 0x56f   :  { %3716 = vmax.xlane.f32.xlu1 %v3689_v33  ;;  %3440 = vmax.xlane.f32.xlu0 %v3413_v14  ;;  %v10339_v14 = vrot.slane %v2706_v61, %v9035_v27  ;;  %v10342_v33 = vrot.slane %v2706_v61, %v10220_v0  ;;  %v3896_v20 = vsel %vm10230_vm6, %v10351_v1, -1e+30  ;;  %v3965_v38 = vsel %vm10230_vm6, %v10363_v51, -1e+30 }
 0x571   :  { %v4103_v6 = vsel %vm10230_vm6, %v10342_v33, -1e+30  ;;  %v3827_v24 = vsel %vm10230_vm6, %v10339_v14, -1e+30 }
 0x573   :  { %3785 = vmax.xlane.f32.xlu1 %v3758_v37  ;;  %3509 = vmax.xlane.f32.xlu0 %v3482_v40  ;;  %v10354_v40 = vrot.slane %v2706_v61, %v10244_v62 }
 0x575   :  { %v4172_v37 = vsel %vm10230_vm6, %v10354_v40, -1e+30 }
 0x577   :  { %4130 = vmax.xlane.f32.xlu1 %v4103_v6  ;;  %3854 = vmax.xlane.f32.xlu0 %v3827_v24  ;;  %v10366_v6 = vrot.slane %v2706_v61, %v10259_v19 }
 0x579   :  { %v4241_v24 = vsel %vm10230_vm6, %v10366_v6, -1e+30 }
 0x57b   :  { %4199 = vmax.xlane.f32.xlu1 %v4172_v37  ;;  %3923 = vmax.xlane.f32.xlu0 %v3896_v20  ;;  %v10376_v20 = vrot.slane %v2706_v61, %v10207_v36  ;;  %v10379_v37 = vrot.slane %v2706_v61, %v10262_v57  ;;  %v4655_v61 = vsel %vm10230_vm6, %v10391_v25, -1e+30 }
 0x57d   :  { %v4310_v22 = vsel %vm10230_vm6, %v10379_v37, -1e+30  ;;  %v4034_v3 = vsel %vm10230_vm6, %v10376_v20, -1e+30 }
 0x57f   :  { %4268 = vmax.xlane.f32.xlu1 %v4241_v24  ;;  %3992 = vmax.xlane.f32.xlu0 %v3965_v38  ;;  %v10388_v38 = vrot.slane %v2707_v34, %v9035_v27  ;;  %v2269_v24 = vpop.xlane.xlu0 %2268  ;;  %v10401_v27 = vrot.slane %v2707_v34, %v10213_v16  ;;  %v10421_v16 = vld [vmem:[%s13117_s1 + $0x50] sm:$0xff] }
 0x580   :  { %vm2290_vm2 = vcmp.le.f32.partialorder %v9999_v42, %v2269_v24  ;;  %vm2306_vm0 = vcmp.lt.f32.partialorder %v2269_v24, 5e+29  ;;  %v10413_v42 = vrot.slane %v2707_v34, %v10241_v35  ;;  %13513 = vst [vmem:[#allocation56_spill] sm:$0xff] %v10421_v16  ;;  %vm13228_vm15 = vcmp.gt.f32.partialorder %v10421_v16, 0.0 }
 0x581   :  { %v4379_v41 = vsel %vm10230_vm6, %v10388_v38, -1e+30  ;;  %vm2354_vm5 = vmand %vm2290_vm2, %vm2306_vm0  ;;  %v4448_v0 = vsel %vm10230_vm6, %v10401_v27, -1e+30 }
 0x582   :  { %v4517_v35 = vsel %vm10230_vm6, %v10413_v42, -1e+30 }
 0x583   :  { %4337 = vmax.xlane.f32.xlu1 %v4310_v22  ;;  %4061 = vmax.xlane.f32.xlu0 %v4034_v3  ;;  %v10404_v3 = vrot.slane %v2707_v34, %v10244_v62  ;;  %v13514_v62 = vsel %vm9992_vm10, 1.0, %v9785_v12 }
 0x584   :  { %v2370_v24 = vsel %vm2354_vm5, 1.0, %v13514_v62 }
 0x585   :  { %v4724_v22 = vsel %vm10230_vm6, %v10404_v3, -1e+30  ;;  %vm2402_vm10 = vcmp.gt.f32.partialorder %v2370_v24, 0.0 }
 0x586   :  { %vm10448_vm2 = vmor %vm13228_vm15, %vm2402_vm10  ;;  %vm13237_vm15 = vcmask 48168  }
 0x587   :  { %4682 = vmax.xlane.f32.xlu1 %v4655_v61  ;;  %4406 = vmax.xlane.f32.xlu0 %v4379_v41  ;;  %v10416_v41 = vrot.slane %v2707_v34, %v10259_v19  ;;  %v10434_v19 = vrot.slane %v2707_v34, %v10207_v36  ;;  %v2791_v36 = vsel %vm10448_vm2, %v10247_v59, -1e+30  ;;  %v3067_v26 = vsel %vm10448_vm2, %v10268_v48, -1e+30 }
 0x588   :  { %v2860_v62 = vsel %vm10448_vm2, %v10265_v31, -1e+30  ;;  %v3136_v24 = vsel %vm10448_vm2, %v10278_v21, -1e+30 }
 0x589   :  { %v4793_v61 = vsel %vm10230_vm6, %v10416_v41, -1e+30  ;;  %v4586_v2 = vsel %vm10230_vm6, %v10434_v19, -1e+30 }
 0x58b   :  { %4751 = vmax.xlane.f32.xlu1 %v4724_v22  ;;  %4475 = vmax.xlane.f32.xlu0 %v4448_v0  ;;  %v10437_v22 = vrot.slane %v2707_v34, %v10262_v57  ;;  %v2722_v34 = vsel %vm10448_vm2, %v10223_v29, -1e+30  ;;  %v2998_v57 = vsel %vm10448_vm2, %v10250_v23, -1e+30 }
 0x58d   :  { %v4862_v12 = vsel %vm10230_vm6, %v10437_v22, -1e+30  ;;  %v4861_v9 = vsel %vm10448_vm2, %v10437_v22, -1e+30 }
 0x58f   :  { %4820 = vmax.xlane.f32.xlu1 %v4793_v61  ;;  %4544 = vmax.xlane.f32.xlu0 %v4517_v35  ;;  %v2929_v61 = vsel %vm10448_vm2, %v10226_v5, -1e+30  ;;  %v3205_v35 = vsel %vm10448_vm2, %v10281_v56, -1e+30 }
 0x593   :  { %4889 = vmax.xlane.f32.xlu1 %v4862_v12  ;;  %4613 = vmax.xlane.f32.xlu0 %v4586_v2  ;;  %v3274_v12 = vsel %vm10448_vm2, %v10290_v58, -1e+30  ;;  %v3619_v2 = vsel %vm10448_vm2, %v10305_v10, -1e+30 }
 0x597   :  { %2748 = vmax.xlane.f32.xlu1 %v2722_v34  ;;  %3024 = vmax.xlane.f32.xlu0 %v2998_v57  ;;  %v3343_v34 = vsel %vm10448_vm2, %v10302_v46, -1e+30  ;;  %v3688_v57 = vsel %vm10448_vm2, %v10317_v11, -1e+30 }
 0x59b   :  { %2817 = vmax.xlane.f32.xlu1 %v2791_v36  ;;  %3093 = vmax.xlane.f32.xlu0 %v3067_v26  ;;  %v3412_v36 = vsel %vm10448_vm2, %v10314_v52, -1e+30  ;;  %v3757_v26 = vsel %vm10448_vm2, %v10329_v18, -1e+30 }
 0x59f   :  { %2886 = vmax.xlane.f32.xlu1 %v2860_v62  ;;  %3162 = vmax.xlane.f32.xlu0 %v3136_v24  ;;  %v3481_v62 = vsel %vm10448_vm2, %v10326_v15, -1e+30  ;;  %v3826_v24 = vsel %vm10448_vm2, %v10339_v14, -1e+30 }
 0x5a3   :  { %2955 = vmax.xlane.f32.xlu1 %v2929_v61  ;;  %3231 = vmax.xlane.f32.xlu0 %v3205_v35  ;;  %v3550_v61 = vsel %vm10448_vm2, %v10293_v55, -1e+30  ;;  %v4171_v35 = vsel %vm10448_vm2, %v10354_v40, -1e+30 }
 0x5a7   :  { %3300 = vmax.xlane.f32.xlu1 %v3274_v12  ;;  %3645 = vmax.xlane.f32.xlu0 %v3619_v2  ;;  %v3895_v12 = vsel %vm10448_vm2, %v10351_v1, -1e+30  ;;  %v4240_v2 = vsel %vm10448_vm2, %v10366_v6, -1e+30 }
 0x5ab   :  { %3369 = vmax.xlane.f32.xlu1 %v3343_v34  ;;  %3714 = vmax.xlane.f32.xlu0 %v3688_v57  ;;  %v3964_v34 = vsel %vm10448_vm2, %v10363_v51, -1e+30  ;;  %v4309_v57 = vsel %vm10448_vm2, %v10379_v37, -1e+30 }
 0x5af   :  { %3438 = vmax.xlane.f32.xlu1 %v3412_v36  ;;  %3783 = vmax.xlane.f32.xlu0 %v3757_v26  ;;  %v2275_v36 = vpop.xlane.xlu1 %2274  ;;  %v4033_v26 = vsel %vm10448_vm2, %v10376_v20, -1e+30 }
 0x5b0   :  { %vm2293_vm6 = vcmp.le.f32.partialorder %v10013_v60, %v2275_v36  ;;  %vm2309_vm0 = vcmp.lt.f32.partialorder %v2275_v36, 5e+29  ;;  %v10536_v60 = vld [vmem:[%s13117_s1 + $0x68] sm:$0xff] }
 0x5b1   :  { %vm2357_vm5 = vmand %vm2293_vm6, %vm2309_vm0  ;;  %13517 = vst [vmem:[#allocation57_spill] sm:$0xff] %v10536_v60  ;;  %vm13227_vm10 = vcmp.gt.f32.partialorder %v10536_v60, 0.0  ;;  %vm13230_vm0 = vcmask 15368  }
 0x5b3   :  { %3507 = vmax.xlane.f32.xlu1 %v3481_v62  ;;  %3852 = vmax.xlane.f32.xlu0 %v3826_v24  ;;  %v4378_v62 = vsel %vm10448_vm2, %v10388_v38, -1e+30  ;;  %v4102_v24 = vsel %vm10448_vm2, %v10342_v33, -1e+30  ;;  %v10549_v36 = vpop.xlane.xlu1 %2278 }
 0x5b7   :  { %3576 = vmax.xlane.f32.xlu1 %v3550_v61  ;;  %4197 = vmax.xlane.f32.xlu0 %v4171_v35  ;;  %v4723_v61 = vsel %vm10448_vm2, %v10404_v3, -1e+30  ;;  %v10531_v35 = vpop.xlane.xlu0 %2272 }
 0x5bb   :  { %3921 = vmax.xlane.f32.xlu1 %v3895_v12  ;;  %4266 = vmax.xlane.f32.xlu0 %v4240_v2  ;;  %v13518_v12 = vsel %vm10006_vm7, 1.0, %v9793_v43  ;;  %v4516_v43 = vsel %vm10448_vm2, %v10413_v42, -1e+30 }
 0x5bc   :  { %v2373_v2 = vsel %vm2357_vm5, 1.0, %v13518_v12  ;;  %v4585_v12 = vsel %vm10448_vm2, %v10434_v19, -1e+30  ;;  %vm13240_vm5 = vcmask 23568  }
 0x5bd   :  { %vm2405_vm6 = vcmp.gt.f32.partialorder %v2373_v2, 0.0 }
 0x5be   :  { %vm10561_vm7 = vmor %vm13227_vm10, %vm2405_vm6  ;;  %vm13231_vm6 = vcmask 31768   ;;  %vm13238_vm10 = vcmask 39968  }
 0x5bf   :  { %3990 = vmax.xlane.f32.xlu1 %v3964_v34  ;;  %4335 = vmax.xlane.f32.xlu0 %v4309_v57  ;;  %v4447_v34 = vsel %vm10448_vm2, %v10401_v27, -1e+30  ;;  %v4792_v57 = vsel %vm10448_vm2, %v10416_v41, -1e+30  ;;  %v2932_v2 = vsel %vm10561_vm7, %v10226_v5, -1e+30 }
 0x5c3   :  { %4059 = vmax.xlane.f32.xlu1 %v4033_v26  ;;  %4404 = vmax.xlane.f32.xlu0 %v4378_v62  ;;  %v10551_v26 = vpop.xlane.xlu0 %2276 }
 0x5c7   :  { %4128 = vmax.xlane.f32.xlu1 %v4102_v24  ;;  %4749 = vmax.xlane.f32.xlu0 %v4723_v61  ;;  %v10565_v24 = vpop.xlane.xlu1 %2250  ;;  %v10567_v61 = vpop.xlane.xlu0 %2248 }
 0x5cb   :  { %4473 = vmax.xlane.f32.xlu1 %v4447_v34  ;;  %4818 = vmax.xlane.f32.xlu0 %v4792_v57  ;;  %v10575_v34 = vpop.xlane.xlu1 %2254  ;;  %v10577_v57 = vpop.xlane.xlu0 %2252 }
 0x5cc   :  { %13521 = vst [vmem:[#allocation58_spill] sm:$0xff] %v10577_v57 }
 0x5cf   :  { %4542 = vmax.xlane.f32.xlu1 %v4516_v43  ;;  %4887 = vmax.xlane.f32.xlu0 %v4861_v9  ;;  %v4654_v43 = vsel %vm10448_vm2, %v10391_v25, -1e+30  ;;  %v3001_v9 = vsel %vm10561_vm7, %v10250_v23, -1e+30  ;;  %v10585_v60 = vpop.xlane.xlu1 %2258  ;;  %v10587_v16 = vpop.xlane.xlu0 %2256  ;;  %vm13241_vm2 = vcmask 7168  }
 0x5d0   :  { %13522 = vst [vmem:[#allocation59_spill] sm:$0xff] %v10585_v60  ;;  %13523 = vst [vmem:[#allocation60_spill] sm:$0xff] %v10587_v16 }
 0x5d3   :  { %4611 = vmax.xlane.f32.xlu1 %v4585_v12  ;;  %2961 = vmax.xlane.f32.xlu0 %v2932_v2  ;;  %v3070_v12 = vsel %vm10561_vm7, %v10268_v48, -1e+30  ;;  %v2725_v2 = vsel %vm10561_vm7, %v10223_v29, -1e+30  ;;  %v10595_v0 = vpop.xlane.xlu1 %2262  ;;  %v10597_v57 = vpop.xlane.xlu0 %2260 }
 0x5d4   :  { %13524 = vst [vmem:[#allocation61_spill] sm:$0xff] %v10595_v0  ;;  %13525 = vst [vmem:[#allocation62_spill] sm:$0xff] %v10597_v57 }
 0x5d7   :  { %4680 = vmax.xlane.f32.xlu1 %v4654_v43  ;;  %3030 = vmax.xlane.f32.xlu0 %v3001_v9  ;;  %v3139_v43 = vsel %vm10561_vm7, %v10278_v21, -1e+30  ;;  %v2794_v9 = vsel %vm10561_vm7, %v10247_v59, -1e+30  ;;  %v10605_v16 = vpop.xlane.xlu1 %2266  ;;  %v10607_v60 = vpop.xlane.xlu0 %2264 }
 0x5d8   :  { %13526 = vst [vmem:[#allocation63_spill] sm:$0xff] %v10605_v16  ;;  %13527 = vst [vmem:[#allocation64_spill] sm:$0xff] %v10607_v60 }
 0x5db   :  { %3099 = vmax.xlane.f32.xlu0 %v3070_v12  ;;  %2754 = vmax.xlane.f32.xlu1 %v2725_v2  ;;  %v3208_v12 = vsel %vm10561_vm7, %v10281_v56, -1e+30  ;;  %v2863_v2 = vsel %vm10561_vm7, %v10265_v31, -1e+30 }
 0x5df   :  { %3168 = vmax.xlane.f32.xlu0 %v3139_v43  ;;  %2823 = vmax.xlane.f32.xlu1 %v2794_v9  ;;  %v3553_v43 = vsel %vm10561_vm7, %v10293_v55, -1e+30  ;;  %v3277_v9 = vsel %vm10561_vm7, %v10290_v58, -1e+30 }
 0x5e3   :  { %3237 = vmax.xlane.f32.xlu0 %v3208_v12  ;;  %2892 = vmax.xlane.f32.xlu1 %v2863_v2  ;;  %v3622_v12 = vsel %vm10561_vm7, %v10305_v10, -1e+30 }
 0x5e4   :  { %v2751_v57 = vpop.xlane.xlu0 %2750  ;;  %v2958_v0 = vpop.xlane.xlu1 %2957 }
 0x5e5   :  { %2772 = vst.msk [vmem:[#allocation2 + $0x58] sm:$0xff] %vm13241_vm2, %v2751_v57  ;;  %v3346_v57 = vsel %vm10561_vm7, %v10302_v46, -1e+30  ;;  %vm2308_vm2 = vcmp.lt.f32.partialorder %v10531_v35, 5e+29 }
 0x5e7   :  { %3582 = vmax.xlane.f32.xlu0 %v3553_v43  ;;  %3306 = vmax.xlane.f32.xlu1 %v3277_v9  ;;  %v3415_v9 = vsel %vm10561_vm7, %v10314_v52, -1e+30 }
 0x5e8   :  { %v2820_v60 = vpop.xlane.xlu0 %2819  ;;  %v3027_v16 = vpop.xlane.xlu1 %3026 }
 0x5e9   :  { %2841 = vst.msk [vmem:[#allocation2 + $0x58] sm:$0xff] %vm13230_vm0, %v2820_v60  ;;  %v3691_v60 = vsel %vm10561_vm7, %v10317_v11, -1e+30  ;;  %vm13236_vm0 = vcmask 64568  }
 0x5eb   :  { %3651 = vmax.xlane.f32.xlu0 %v3622_v12  ;;  %3375 = vmax.xlane.f32.xlu1 %v3346_v57 }
 0x5ec   :  { %v2889_v2 = vpop.xlane.xlu0 %2888  ;;  %v3096_v43 = vpop.xlane.xlu1 %3095 }
 0x5ed   :  { %2910 = vst.msk [vmem:[#allocation2 + $0x58] sm:$0xff] %vm13240_vm5, %v2889_v2  ;;  %v3484_v2 = vsel %vm10561_vm7, %v10326_v15, -1e+30  ;;  %vm2292_vm5 = vcmp.le.f32.partialorder %v10027_v17, %v10531_v35  ;;  %v4657_v17 = vsel %vm10561_vm7, %v10391_v25, -1e+30 }
 0x5ee   :  { %2979 = vst.msk [vmem:[#allocation2 + $0x58] sm:$0xff] %vm13231_vm6, %v2958_v0  ;;  %v3760_v0 = vsel %vm10561_vm7, %v10329_v18, -1e+30  ;;  %vm13234_vm6 = vcmask 72768  }
 0x5ef   :  { %3048 = vst.msk [vmem:[#allocation2 + $0x58] sm:$0xff] %vm13238_vm10, %v3027_v16  ;;  %3720 = vmax.xlane.f32.xlu0 %v3691_v60  ;;  %3444 = vmax.xlane.f32.xlu1 %v3415_v9  ;;  %v3829_v9 = vsel %vm10561_vm7, %v10339_v14, -1e+30  ;;  %vm13249_vm10 = vcmask 121968  }
 0x5f0   :  { %3117 = vst.msk [vmem:[#allocation2 + $0x58] sm:$0xff] %vm13237_vm15, %v3096_v43  ;;  %v3234_v12 = vpop.xlane.xlu0 %3233  ;;  %v3165_v57 = vpop.xlane.xlu1 %3164  ;;  %v4105_v43 = vsel %vm10561_vm7, %v10342_v33, -1e+30  ;;  %vm13244_vm15 = vcmask 113768  }
 0x5f1   :  { %3186 = vst.msk [vmem:[#allocation2 + $0x58] sm:$0xff] %vm13232_vm13, %v3165_v57  ;;  %vm13235_vm13 = vcmask 80968  }
 0x5f2   :  { %3255 = vst.msk [vmem:[#allocation2 + $0x58] sm:$0xff] %vm13236_vm0, %v3234_v12  ;;  %v4174_v12 = vsel %vm10561_vm7, %v10354_v40, -1e+30  ;;  %vm13243_vm0 = vcmask 105568  }
 0x5f3   :  { %3789 = vmax.xlane.f32.xlu0 %v3760_v0  ;;  %3513 = vmax.xlane.f32.xlu1 %v3484_v2  ;;  %v3898_v0 = vsel %vm10561_vm7, %v10351_v1, -1e+30 }
 0x5f4   :  { %v3303_v16 = vpop.xlane.xlu0 %3302  ;;  %v3579_v60 = vpop.xlane.xlu1 %3578 }
 0x5f5   :  { %3324 = vst.msk [vmem:[#allocation2 + $0x58] sm:$0xff] %vm13234_vm6, %v3303_v16  ;;  %vm13239_vm6 = vcmask 89168  }
 0x5f7   :  { %4134 = vmax.xlane.f32.xlu0 %v4105_v43  ;;  %3858 = vmax.xlane.f32.xlu1 %v3829_v9  ;;  %v4243_v43 = vsel %vm10561_vm7, %v10366_v6, -1e+30  ;;  %v3967_v9 = vsel %vm10561_vm7, %v10363_v51, -1e+30 }
 0x5f8   :  { %v3372_v57 = vpop.xlane.xlu0 %3371  ;;  %v3648_v4 = vpop.xlane.xlu1 %3647 }
 0x5f9   :  { %3393 = vst.msk [vmem:[#allocation2 + $0x58] sm:$0xff] %vm13235_vm13, %v3372_v57  ;;  %vm13242_vm13 = vcmask 97368  }
 0x5fb   :  { %4203 = vmax.xlane.f32.xlu0 %v4174_v12  ;;  %3927 = vmax.xlane.f32.xlu1 %v3898_v0  ;;  %v4312_v0 = vsel %vm10561_vm7, %v10379_v37, -1e+30 }
 0x5fc   :  { %v3441_v2 = vpop.xlane.xlu0 %3440  ;;  %v3717_v16 = vpop.xlane.xlu1 %3716 }
 0x5fd   :  { %3462 = vst.msk [vmem:[#allocation2 + $0x58] sm:$0xff] %vm13239_vm6, %v3441_v2  ;;  %vm13248_vm6 = vcmask 130168   ;;  %v4036_v2 = vsel %vm10561_vm7, %v10376_v20, -1e+30 }
 0x5ff   :  { %4272 = vmax.xlane.f32.xlu0 %v4243_v43  ;;  %3996 = vmax.xlane.f32.xlu1 %v3967_v9  ;;  %v10692_v9 = vld [vmem:[%s13117_s1 + $0x60] sm:$0xff] }
 0x600   :  { %v3510_v57 = vpop.xlane.xlu0 %3509  ;;  %v3786_v12 = vpop.xlane.xlu1 %3785  ;;  %13528 = vst [vmem:[#allocation65_spill] sm:$0xff] %v10692_v9 }
 0x601   :  { %3531 = vst.msk [vmem:[#allocation2 + $0x58] sm:$0xff] %vm13242_vm13, %v3510_v57  ;;  %vm13245_vm13 = vcmask 138368   ;;  %v13529_v57 = vsel %vm10020_vm4, 1.0, %v9807_v54  ;;  %v4795_v54 = vsel %vm10561_vm7, %v10416_v41, -1e+30  ;;  %vm13263_vm4 = vcmask 162968  }
 0x602   :  { %3600 = vst.msk [vmem:[#allocation2 + $0x58] sm:$0xff] %vm13243_vm0, %v3579_v60  ;;  %vm2356_vm0 = vmand %vm2292_vm5, %vm2308_vm2  ;;  %vm13247_vm2 = vcmask 154768   ;;  %vm13250_vm5 = vcmp.gt.f32.partialorder %v10692_v9, 0.0 }
 0x603   :  { %3669 = vst.msk [vmem:[#allocation2 + $0x58] sm:$0xff] %vm13244_vm15, %v3648_v4  ;;  %4341 = vmax.xlane.f32.xlu0 %v4312_v0  ;;  %4065 = vmax.xlane.f32.xlu1 %v4036_v2  ;;  %v4381_v4 = vsel %vm10561_vm7, %v10388_v38, -1e+30  ;;  %vm13246_vm15 = vcmask 146568   ;;  %v4726_v0 = vsel %vm10561_vm7, %v10404_v3, -1e+30 }
 0x604   :  { %3738 = vst.msk [vmem:[#allocation2 + $0x58] sm:$0xff] %vm13249_vm10, %v3717_v16  ;;  %v3855_v60 = vpop.xlane.xlu0 %3854  ;;  %v4131_v43 = vpop.xlane.xlu1 %4130  ;;  %v4450_v2 = vsel %vm10561_vm7, %v10401_v27, -1e+30  ;;  %vm13253_vm10 = vcmask 195768  }
 0x605   :  { %3807 = vst.msk [vmem:[#allocation2 + $0x58] sm:$0xff] %vm13248_vm6, %v3786_v12  ;;  %v2372_v12 = vsel %vm2356_vm0, 1.0, %v13529_v57  ;;  %vm13254_vm6 = vcmask 187568  }
 0x606   :  { %3876 = vst.msk [vmem:[#allocation2 + $0x58] sm:$0xff] %vm13245_vm13, %v3855_v60  ;;  %vm2404_vm13 = vcmp.gt.f32.partialorder %v2372_v12, 0.0 }
 0x607   :  { %4686 = vmax.xlane.f32.xlu0 %v4657_v17  ;;  %4410 = vmax.xlane.f32.xlu1 %v4381_v4  ;;  %v4519_v17 = vsel %vm10561_vm7, %v10413_v42, -1e+30  ;;  %vm10715_vm0 = vmor %vm13250_vm5, %vm2404_vm13  ;;  %vm13251_vm13 = vcmask 203968   ;;  %vm13252_vm5 = vcmask 212168  }
 0x608   :  { %v3924_v35 = vpop.xlane.xlu0 %3923  ;;  %v4200_v16 = vpop.xlane.xlu1 %4199  ;;  %v2724_v12 = vsel %vm10715_vm0, %v10223_v29, -1e+30 }
 0x609   :  { %3945 = vst.msk [vmem:[#allocation2 + $0x58] sm:$0xff] %vm13246_vm15, %v3924_v35  ;;  %vm13262_vm15 = vcmask 171168  }
 0x60b   :  { %4755 = vmax.xlane.f32.xlu0 %v4726_v0  ;;  %4479 = vmax.xlane.f32.xlu1 %v4450_v2  ;;  %v4588_v0 = vsel %vm10561_vm7, %v10434_v19, -1e+30 }
 0x60c   :  { %v3993_v30 = vpop.xlane.xlu0 %3992  ;;  %v4269_v60 = vpop.xlane.xlu1 %4268 }
 0x60d   :  { %4014 = vst.msk [vmem:[#allocation2 + $0x58] sm:$0xff] %vm13247_vm2, %v3993_v30  ;;  %vm13255_vm2 = vcmask 179368  }
 0x60f   :  { %4824 = vmax.xlane.f32.xlu0 %v4795_v54  ;;  %4548 = vmax.xlane.f32.xlu1 %v4519_v17  ;;  %v3000_v54 = vsel %vm10715_vm0, %v10250_v23, -1e+30 }
 0x610   :  { %v4062_v35 = vpop.xlane.xlu0 %4061  ;;  %v4338_v57 = vpop.xlane.xlu1 %4337 }
 0x611   :  { %4083 = vst.msk [vmem:[#allocation2 + $0x58] sm:$0xff] %vm13263_vm4, %v4062_v35  ;;  %v3069_v35 = vsel %vm10715_vm0, %v10268_v48, -1e+30  ;;  %vm13547_vm4 = vcmask 130168  }
 0x612   :  { %4152 = vst.msk [vmem:[#allocation2 + $0x58] sm:$0xff] %vm13262_vm15, %v4131_v43  ;;  %v2793_v43 = vsel %vm10715_vm0, %v10247_v59, -1e+30  ;;  %vm13546_vm15 = vcmask 121968  }
 0x613   :  { %4221 = vst.msk [vmem:[#allocation2 + $0x58] sm:$0xff] %vm13255_vm2, %v4200_v16  ;;  %2752 = vmax.xlane.f32.xlu0 %v2724_v12  ;;  %4617 = vmax.xlane.f32.xlu1 %v4588_v0  ;;  %v2931_v0 = vsel %vm10715_vm0, %v10226_v5, -1e+30  ;;  %vm13260_vm2 = vcmask 253168  }
 0x614   :  { %4290 = vst.msk [vmem:[#allocation2 + $0x58] sm:$0xff] %vm13254_vm6, %v4269_v60  ;;  %v4407_v2 = vpop.xlane.xlu0 %4406  ;;  %v4683_v30 = vpop.xlane.xlu1 %4682  ;;  %v2862_v60 = vsel %vm10715_vm0, %v10265_v31, -1e+30  ;;  %vm13258_vm6 = vcmask 244968  }
 0x615   :  { %4359 = vst.msk [vmem:[#allocation2 + $0x58] sm:$0xff] %vm13253_vm10, %v4338_v57  ;;  %vm13257_vm10 = vcmask 236768  }
 0x616   :  { %4428 = vst.msk [vmem:[#allocation2 + $0x58] sm:$0xff] %vm13251_vm13, %v4407_v2  ;;  %vm13256_vm13 = vcmask 220368   ;;  %v3138_v2 = vsel %vm10715_vm0, %v10278_v21, -1e+30 }
 0x617   :  { %2821 = vmax.xlane.f32.xlu0 %v2793_v43  ;;  %3028 = vmax.xlane.f32.xlu1 %v3000_v54 }
 0x618   :  { %v4476_v16 = vpop.xlane.xlu0 %4475  ;;  %v4752_v17 = vpop.xlane.xlu1 %4751 }
 0x619   :  { %4497 = vst.msk [vmem:[#allocation2 + $0x58] sm:$0xff] %vm13252_vm5, %v4476_v16  ;;  %vm13261_vm5 = vcmask 228568   ;;  %v3345_v16 = vsel %vm10715_vm0, %v10302_v46, -1e+30 }
 0x61b   :  { %2890 = vmax.xlane.f32.xlu0 %v2862_v60  ;;  %3097 = vmax.xlane.f32.xlu1 %v3069_v35  ;;  %v3207_v60 = vsel %vm10715_vm0, %v10281_v56, -1e+30 }
 0x61c   :  { %v4545_v57 = vpop.xlane.xlu0 %4544  ;;  %v4821_v12 = vpop.xlane.xlu1 %4820 }
 0x61d   :  { %4566 = vst.msk [vmem:[#allocation2 + $0x58] sm:$0xff] %vm13256_vm13, %v4545_v57  ;;  %vm13259_vm13 = vcmask 261368  }
 0x61f   :  { %2959 = vmax.xlane.f32.xlu0 %v2931_v0  ;;  %3166 = vmax.xlane.f32.xlu1 %v3138_v2  ;;  %v3276_v0 = vsel %vm10715_vm0, %v10290_v58, -1e+30 }
 0x620   :  { %v4614_v43 = vpop.xlane.xlu0 %4613  ;;  %v4890_v54 = vpop.xlane.xlu1 %4889 }
 0x621   :  { %4635 = vst.msk [vmem:[#allocation2 + $0x58] sm:$0xff] %vm13261_vm5, %v4614_v43  ;;  %v3621_v43 = vsel %vm10715_vm0, %v10305_v10, -1e+30  ;;  %vm13539_vm5 = vcmask 64568  }
 0x622   :  { %4704 = vst.msk [vmem:[#allocation2 + $0x58] sm:$0xff] %vm13257_vm10, %v4683_v30  ;;  %vm13532_vm10 = vcmask 7168   ;;  %v3414_v30 = vsel %vm10715_vm0, %v10314_v52, -1e+30 }
 0x623   :  { %4773 = vst.msk [vmem:[#allocation2 + $0x58] sm:$0xff] %vm13258_vm6, %v4752_v17  ;;  %3373 = vmax.xlane.f32.xlu0 %v3345_v16  ;;  %3235 = vmax.xlane.f32.xlu1 %v3207_v60  ;;  %vm13533_vm6 = vcmask 15368   ;;  %v3552_v60 = vsel %vm10715_vm0, %v10293_v55, -1e+30 }
 0x624   :  { %4842 = vst.msk [vmem:[#allocation2 + $0x58] sm:$0xff] %vm13260_vm2, %v4821_v12  ;;  %v3025_v35 = vpop.xlane.xlu0 %3024  ;;  %v2749_v57 = vpop.xlane.xlu1 %2748  ;;  %v3483_v12 = vsel %vm10715_vm0, %v10326_v15, -1e+30  ;;  %vm13538_vm2 = vcmask 56368  }
 0x625   :  { %4911 = vst.msk [vmem:[#allocation2 + $0x58] sm:$0xff] %vm13259_vm13, %v4890_v54  ;;  %vm13536_vm13 = vcmask 39968  }
 0x626   :  { %2771 = vst.msk [vmem:[#allocation2 + $0x50] sm:$0xff] %vm13532_vm10, %v2749_v57  ;;  %vm13534_vm10 = vcmask 23568   ;;  %v3690_v57 = vsel %vm10715_vm0, %v10317_v11, -1e+30 }
 0x627   :  { %3442 = vmax.xlane.f32.xlu0 %v3414_v30  ;;  %3304 = vmax.xlane.f32.xlu1 %v3276_v0 }
 0x628   :  { %v3094_v17 = vpop.xlane.xlu0 %3093  ;;  %v2818_v2 = vpop.xlane.xlu1 %2817 }
 0x629   :  { %2840 = vst.msk [vmem:[#allocation2 + $0x50] sm:$0xff] %vm13533_vm6, %v2818_v2  ;;  %vm13535_vm6 = vcmask 31768   ;;  %v3897_v2 = vsel %vm10715_vm0, %v10351_v1, -1e+30 }
 0x62b   :  { %3511 = vmax.xlane.f32.xlu0 %v3483_v12  ;;  %3649 = vmax.xlane.f32.xlu1 %v3621_v43  ;;  %v3759_v12 = vsel %vm10715_vm0, %v10329_v18, -1e+30 }
 0x62c   :  { %v3163_v54 = vpop.xlane.xlu0 %3162  ;;  %v2887_v16 = vpop.xlane.xlu1 %2886 }
 0x62d   :  { %2909 = vst.msk [vmem:[#allocation2 + $0x50] sm:$0xff] %vm13534_vm10, %v2887_v16  ;;  %vm13537_vm10 = vcmask 48168  }
 0x62f   :  { %3580 = vmax.xlane.f32.xlu0 %v3552_v60  ;;  %3718 = vmax.xlane.f32.xlu1 %v3690_v57  ;;  %v3828_v60 = vsel %vm10715_vm0, %v10339_v14, -1e+30 }
 0x630   :  { %v3232_v30 = vpop.xlane.xlu0 %3231  ;;  %v2956_v0 = vpop.xlane.xlu1 %2955 }
 0x631   :  { %2978 = vst.msk [vmem:[#allocation2 + $0x50] sm:$0xff] %vm13535_vm6, %v2956_v0  ;;  %vm13540_vm6 = vcmask 72768  }
 0x632   :  { %3047 = vst.msk [vmem:[#allocation2 + $0x50] sm:$0xff] %vm13536_vm13, %v3025_v35  ;;  %v3966_v35 = vsel %vm10715_vm0, %v10363_v51, -1e+30  ;;  %vm13541_vm13 = vcmask 80968  }
 0x633   :  { %3116 = vst.msk [vmem:[#allocation2 + $0x50] sm:$0xff] %vm13537_vm10, %v3094_v17  ;;  %3925 = vmax.xlane.f32.xlu0 %v3897_v2  ;;  %3787 = vmax.xlane.f32.xlu1 %v3759_v12  ;;  %v4104_v12 = vsel %vm10715_vm0, %v10342_v33, -1e+30  ;;  %vm2295_vm10 = vcmp.le.f32.partialorder %v10041_v8, %v10549_v36 }
 0x634   :  { %3185 = vst.msk [vmem:[#allocation2 + $0x50] sm:$0xff] %vm13538_vm2, %v3163_v54  ;;  %v3646_v43 = vpop.xlane.xlu0 %3645  ;;  %v3301_v16 = vpop.xlane.xlu1 %3300  ;;  %v4035_v54 = vsel %vm10715_vm0, %v10376_v20, -1e+30  ;;  %vm13542_vm2 = vcmask 89168  }
 0x635   :  { %3254 = vst.msk [vmem:[#allocation2 + $0x50] sm:$0xff] %vm13539_vm5, %v3232_v30  ;;  %v4173_v30 = vsel %vm10715_vm0, %v10354_v40, -1e+30  ;;  %vm13543_vm5 = vcmask 97368  }
 0x636   :  { %3323 = vst.msk [vmem:[#allocation2 + $0x50] sm:$0xff] %vm13540_vm6, %v3301_v16  ;;  %v4242_v16 = vsel %vm10715_vm0, %v10366_v6, -1e+30  ;;  %vm2311_vm6 = vcmp.lt.f32.partialorder %v10549_v36, 5e+29 }
 0x637   :  { %3994 = vmax.xlane.f32.xlu0 %v3966_v35  ;;  %3856 = vmax.xlane.f32.xlu1 %v3828_v60 }
 0x638   :  { %v3715_v17 = vpop.xlane.xlu0 %3714  ;;  %v3370_v57 = vpop.xlane.xlu1 %3369 }
 0x639   :  { %3392 = vst.msk [vmem:[#allocation2 + $0x50] sm:$0xff] %vm13541_vm13, %v3370_v57  ;;  %v4449_v57 = vsel %vm10715_vm0, %v10401_v27, -1e+30  ;;  %vm13544_vm13 = vcmask 105568  }
 0x63b   :  { %4063 = vmax.xlane.f32.xlu0 %v4035_v54  ;;  %4201 = vmax.xlane.f32.xlu1 %v4173_v30  ;;  %v4311_v54 = vsel %vm10715_vm0, %v10379_v37, -1e+30 }
 0x63c   :  { %v3784_v0 = vpop.xlane.xlu0 %3783  ;;  %v3439_v2 = vpop.xlane.xlu1 %3438 }
 0x63d   :  { %3461 = vst.msk [vmem:[#allocation2 + $0x50] sm:$0xff] %vm13542_vm2, %v3439_v2  ;;  %vm2359_vm2 = vmand %vm2295_vm10, %vm2311_vm6  ;;  %vm13550_vm10 = vcmask 138368   ;;  %vm13551_vm6 = vcmask 146568  }
 0x63f   :  { %4132 = vmax.xlane.f32.xlu0 %v4104_v12  ;;  %4270 = vmax.xlane.f32.xlu1 %v4242_v16  ;;  %v4518_v12 = vsel %vm10715_vm0, %v10413_v42, -1e+30  ;;  %v4380_v16 = vsel %vm10715_vm0, %v10388_v38, -1e+30 }
 0x640   :  { %v3853_v35 = vpop.xlane.xlu0 %3852  ;;  %v3508_v60 = vpop.xlane.xlu1 %3507 }
 0x641   :  { %3530 = vst.msk [vmem:[#allocation2 + $0x50] sm:$0xff] %vm13543_vm5, %v3508_v60  ;;  %vm13545_vm5 = vcmask 113768   ;;  %v13549_v60 = vsel %vm10034_vm8, 1.0, %v9815_v45  ;;  %vm13552_vm8 = vcmask 154768  }
 0x643   :  { %4477 = vmax.xlane.f32.xlu0 %v4449_v57  ;;  %4339 = vmax.xlane.f32.xlu1 %v4311_v54  ;;  %v2375_v57 = vsel %vm2359_vm2, 1.0, %v13549_v60  ;;  %v4794_v54 = vsel %vm10715_vm0, %v10416_v41, -1e+30  ;;  %vm13555_vm2 = vcmask 162968   ;;  %v4863_v60 = vsel %vm10715_vm0, %v10437_v22, -1e+30 }
 0x644   :  { %v4198_v30 = vpop.xlane.xlu0 %4197  ;;  %v3577_v2 = vpop.xlane.xlu1 %3576 }
 0x645   :  { %3599 = vst.msk [vmem:[#allocation2 + $0x50] sm:$0xff] %vm13544_vm13, %v3577_v2  ;;  %v5342_v2 = vld [vmem:[%s13124_s8 + $0x10] sm:$0xff] }
 0x646   :  { %3668 = vst.msk [vmem:[#allocation2 + $0x50] sm:$0xff] %vm13545_vm5, %v3646_v43  ;;  %v10838_v43 = vld [vmem:[%s13117_s1 + $0x78] sm:$0xff]  ;;  %vm13556_vm5 = vcmask 171168  }
 0x647   :  { %3737 = vst.msk [vmem:[#allocation2 + $0x50] sm:$0xff] %vm13546_vm15, %v3715_v17  ;;  %4546 = vmax.xlane.f32.xlu0 %v4518_v12  ;;  %4408 = vmax.xlane.f32.xlu1 %v4380_v16  ;;  %13548 = vst [vmem:[#allocation66_spill] sm:$0xff] %v10838_v43  ;;  %v4587_v17 = vsel %vm10715_vm0, %v10434_v19, -1e+30  ;;  %vm13265_vm15 = vcmp.gt.f32.partialorder %v10838_v43, 0.0 }
 0x648   :  { %3806 = vst.msk [vmem:[#allocation2 + $0x50] sm:$0xff] %vm13547_vm4, %v3784_v0  ;;  %v4267_v8 = vpop.xlane.xlu0 %4266  ;;  %v3922_v36 = vpop.xlane.xlu1 %3921  ;;  %v4725_v0 = vsel %vm10715_vm0, %v10404_v3, -1e+30  ;;  %vm2407_vm4 = vcmp.gt.f32.partialorder %v2375_v57, 0.0 }
 0x649   :  { %3875 = vst.msk [vmem:[#allocation2 + $0x50] sm:$0xff] %vm13550_vm10, %v3853_v35  ;;  %v4656_v35 = vsel %vm10715_vm0, %v10391_v25, -1e+30  ;;  %vm10862_vm13 = vmor %vm13265_vm15, %vm2407_vm4  ;;  %vm13557_vm10 = vcmask 179368   ;;  %vm13559_vm0 = vcmask 195768   ;;  %vm13560_vm4 = vcmask 203968  }
 0x64a   :  { %3944 = vst.msk [vmem:[#allocation2 + $0x50] sm:$0xff] %vm13551_vm6, %v3922_v36  ;;  %v2727_v36 = vsel %vm10862_vm13, %v10223_v29, -1e+30  ;;  %vm13558_vm6 = vcmask 187568   ;;  %vm13760_vm15 = vcmask 138368  }
 0x64b   :  { %4615 = vmax.xlane.f32.xlu0 %v4587_v17  ;;  %4753 = vmax.xlane.f32.xlu1 %v4725_v0  ;;  %v2796_v0 = vsel %vm10862_vm13, %v10247_v59, -1e+30 }
 0x64c   :  { %v4336_v50 = vpop.xlane.xlu0 %4335  ;;  %v3991_v45 = vpop.xlane.xlu1 %3990 }
 0x64d   :  { %4013 = vst.msk [vmem:[#allocation2 + $0x50] sm:$0xff] %vm13552_vm8, %v3991_v45  ;;  %v3003_v45 = vsel %vm10862_vm13, %v10250_v23, -1e+30  ;;  %vm13561_vm8 = vcmask 212168  }
 0x64f   :  { %4684 = vmax.xlane.f32.xlu0 %v4656_v35  ;;  %4822 = vmax.xlane.f32.xlu1 %v4794_v54  ;;  %v3072_v54 = vsel %vm10862_vm13, %v10268_v48, -1e+30 }
 0x650   :  { %v4405_v12 = vpop.xlane.xlu0 %4404  ;;  %v4060_v16 = vpop.xlane.xlu1 %4059 }
 0x651   :  { %4082 = vst.msk [vmem:[#allocation2 + $0x50] sm:$0xff] %vm13555_vm2, %v4060_v16  ;;  %vm13562_vm2 = vcmask 220368  }
 0x653   :  { %2758 = vmax.xlane.f32.xlu0 %v2727_v36  ;;  %4891 = vmax.xlane.f32.xlu1 %v4863_v60 }
 0x654   :  { %v4750_v57 = vpop.xlane.xlu0 %4749  ;;  %v4129_v17 = vpop.xlane.xlu1 %4128 }
 0x655   :  { %4151 = vst.msk [vmem:[#allocation2 + $0x50] sm:$0xff] %vm13556_vm5, %v4129_v17  ;;  %vm13563_vm5 = vcmask 228568   ;;  %v3279_v17 = vsel %vm10862_vm13, %v10290_v58, -1e+30 }
 0x656   :  { %4220 = vst.msk [vmem:[#allocation2 + $0x50] sm:$0xff] %vm13557_vm10, %v4198_v30  ;;  %v2865_v30 = vsel %vm10862_vm13, %v10265_v31, -1e+30  ;;  %vm13564_vm10 = vcmask 236768  }
 0x657   :  { %4289 = vst.msk [vmem:[#allocation2 + $0x50] sm:$0xff] %vm13558_vm6, %v4267_v8  ;;  %2827 = vmax.xlane.f32.xlu0 %v2796_v0  ;;  %3034 = vmax.xlane.f32.xlu1 %v3003_v45  ;;  %v3210_v0 = vsel %vm10862_vm13, %v10281_v56, -1e+30  ;;  %vm13565_vm6 = vcmask 244968  }
 0x658   :  { %4358 = vst.msk [vmem:[#allocation2 + $0x50] sm:$0xff] %vm13559_vm0, %v4336_v50  ;;  %v4819_v4 = vpop.xlane.xlu0 %4818  ;;  %v4474_v35 = vpop.xlane.xlu1 %4473  ;;  %v2934_v50 = vsel %vm10862_vm13, %v10226_v5, -1e+30  ;;  %vm13566_vm0 = vcmask 253168  }
 0x659   :  { %4427 = vst.msk [vmem:[#allocation2 + $0x50] sm:$0xff] %vm13560_vm4, %v4405_v12  ;;  %v3141_v12 = vsel %vm10862_vm13, %v10278_v21, -1e+30  ;;  %vm13567_vm4 = vcmask 261368  }
 0x65a   :  { %4496 = vst.msk [vmem:[#allocation2 + $0x50] sm:$0xff] %vm13561_vm8, %v4474_v35  ;;  %vm13568_vm8 = vcmask 7168  }
 0x65b   :  { %2896 = vmax.xlane.f32.xlu0 %v2865_v30  ;;  %3103 = vmax.xlane.f32.xlu1 %v3072_v54  ;;  %v3348_v30 = vsel %vm10862_vm13, %v10302_v46, -1e+30  ;;  %v3555_v54 = vsel %vm10862_vm13, %v10293_v55, -1e+30 }
 0x65c   :  { %v4888_v8 = vpop.xlane.xlu0 %4887  ;;  %v4543_v16 = vpop.xlane.xlu1 %4542 }
 0x65d   :  { %4565 = vst.msk [vmem:[#allocation2 + $0x50] sm:$0xff] %vm13562_vm2, %v4543_v16  ;;  %vm13569_vm2 = vcmask 15368  }
 0x65f   :  { %2965 = vmax.xlane.f32.xlu0 %v2934_v50  ;;  %3172 = vmax.xlane.f32.xlu1 %v3141_v12  ;;  %v3624_v12 = vsel %vm10862_vm13, %v10305_v10, -1e+30 }
 0x660   :  { %v2962_v36 = vpop.xlane.xlu0 %2961  ;;  %v4612_v60 = vpop.xlane.xlu1 %4611 }
 0x661   :  { %4634 = vst.msk [vmem:[#allocation2 + $0x50] sm:$0xff] %vm13563_vm5, %v4612_v60  ;;  %vm13570_vm5 = vcmask 23568  }
 0x663   :  { %3310 = vmax.xlane.f32.xlu0 %v3279_v17  ;;  %3241 = vmax.xlane.f32.xlu1 %v3210_v0  ;;  %v3693_v17 = vsel %vm10862_vm13, %v10317_v11, -1e+30 }
 0x664   :  { %v3031_v45 = vpop.xlane.xlu0 %3030  ;;  %v4681_v35 = vpop.xlane.xlu1 %4680 }
 0x665   :  { %4703 = vst.msk [vmem:[#allocation2 + $0x50] sm:$0xff] %vm13564_vm10, %v4681_v35  ;;  %vm13571_vm10 = vcmask 31768  }
 0x666   :  { %4772 = vst.msk [vmem:[#allocation2 + $0x50] sm:$0xff] %vm13565_vm6, %v4750_v57  ;;  %v3417_v57 = vsel %vm10862_vm13, %v10314_v52, -1e+30  ;;  %vm13572_vm6 = vcmask 39968  }
 0x667   :  { %4841 = vst.msk [vmem:[#allocation2 + $0x50] sm:$0xff] %vm13566_vm0, %v4819_v4  ;;  %3379 = vmax.xlane.f32.xlu0 %v3348_v30  ;;  %3586 = vmax.xlane.f32.xlu1 %v3555_v54  ;;  %v3831_v30 = vsel %vm10862_vm13, %v10339_v14, -1e+30  ;;  %v3762_v54 = vsel %vm10862_vm13, %v10329_v18, -1e+30  ;;  %vm13573_vm0 = vcmask 48168  }
 0x668   :  { %4910 = vst.msk [vmem:[#allocation2 + $0x50] sm:$0xff] %vm13567_vm4, %v4888_v8  ;;  %v3100_v16 = vpop.xlane.xlu0 %3099  ;;  %v2755_v50 = vpop.xlane.xlu1 %2754  ;;  %v3486_v8 = vsel %vm10862_vm13, %v10326_v15, -1e+30  ;;  %vm13574_vm4 = vcmask 56368  }
 0x669   :  { %2774 = vst.msk [vmem:[#allocation2 + $0x68] sm:$0xff] %vm13568_vm8, %v2755_v50  ;;  %vm13575_vm8 = vcmask 64568  }
 0x66b   :  { %3448 = vmax.xlane.f32.xlu0 %v3417_v57  ;;  %3655 = vmax.xlane.f32.xlu1 %v3624_v12  ;;  %v4107_v12 = vsel %vm10862_vm13, %v10342_v33, -1e+30 }
 0x66c   :  { %v3169_v60 = vpop.xlane.xlu0 %3168  ;;  %v2824_v4 = vpop.xlane.xlu1 %2823 }
 0x66d   :  { %2843 = vst.msk [vmem:[#allocation2 + $0x68] sm:$0xff] %vm13569_vm2, %v2824_v4  ;;  %vm2294_vm2 = vcmp.le.f32.partialorder %v10055_v63, %v10551_v26  ;;  %v4176_v4 = vsel %vm10862_vm13, %v10354_v40, -1e+30 }
 0x66f   :  { %3517 = vmax.xlane.f32.xlu0 %v3486_v8  ;;  %3724 = vmax.xlane.f32.xlu1 %v3693_v17  ;;  %v10961_v8 = vld [vmem:[%s13117_s1 + $0x70] sm:$0xff]  ;;  %v13579_v17 = vsel %vm10048_vm9, 1.0, %v9829_v39  ;;  %vm13582_vm9 = vcmask 105568   ;;  %v4383_v39 = vsel %vm10862_vm13, %v10388_v38, -1e+30 }
 0x670   :  { %v3238_v0 = vpop.xlane.xlu0 %3237  ;;  %v2893_v35 = vpop.xlane.xlu1 %2892  ;;  %13578 = vst [vmem:[#allocation67_spill] sm:$0xff] %v10961_v8 }
 0x671   :  { %2912 = vst.msk [vmem:[#allocation2 + $0x68] sm:$0xff] %vm13570_vm5, %v2893_v35  ;;  %vm2310_vm5 = vcmp.lt.f32.partialorder %v10551_v26, 5e+29  ;;  %v4038_v35 = vsel %vm10862_vm13, %v10376_v20, -1e+30 }
 0x672   :  { %2981 = vst.msk [vmem:[#allocation2 + $0x68] sm:$0xff] %vm13571_vm10, %v2962_v36  ;;  %v3900_v36 = vsel %vm10862_vm13, %v10351_v1, -1e+30  ;;  %vm13576_vm10 = vcmask 72768  }
 0x673   :  { %3050 = vst.msk [vmem:[#allocation2 + $0x68] sm:$0xff] %vm13572_vm6, %v3031_v45  ;;  %3862 = vmax.xlane.f32.xlu0 %v3831_v30  ;;  %3793 = vmax.xlane.f32.xlu1 %v3762_v54  ;;  %vm13577_vm6 = vcmask 80968   ;;  %v4245_v30 = vsel %vm10862_vm13, %v10366_v6, -1e+30 }
 0x674   :  { %3119 = vst.msk [vmem:[#allocation2 + $0x68] sm:$0xff] %vm13573_vm0, %v3100_v16  ;;  %v3583_v50 = vpop.xlane.xlu0 %3582  ;;  %v3307_v57 = vpop.xlane.xlu1 %3306  ;;  %vm2358_vm0 = vmand %vm2294_vm2, %vm2310_vm5  ;;  %vm13581_vm5 = vcmask 97368  }
 0x675   :  { %3188 = vst.msk [vmem:[#allocation2 + $0x68] sm:$0xff] %vm13574_vm4, %v3169_v60  ;;  %v3969_v60 = vsel %vm10862_vm13, %v10363_v51, -1e+30  ;;  %vm13580_vm4 = vcmask 89168  }
 0x676   :  { %3257 = vst.msk [vmem:[#allocation2 + $0x68] sm:$0xff] %vm13575_vm8, %v3238_v0  ;;  %v2374_v0 = vsel %vm2358_vm0, 1.0, %v13579_v17  ;;  %vm13264_vm8 = vcmp.gt.f32.partialorder %v10961_v8, 0.0  ;;  %vm13586_vm0 = vcmask 121968   ;;  %v13948_v8 = vld [vmem:[#allocation29_spill] sm:$0xff] }
 0x677   :  { %3326 = vst.msk [vmem:[#allocation2 + $0x68] sm:$0xff] %vm13576_vm10, %v3307_v57  ;;  %3931 = vmax.xlane.f32.xlu0 %v3900_v36  ;;  %4138 = vmax.xlane.f32.xlu1 %v4107_v12  ;;  %vm2406_vm2 = vcmp.gt.f32.partialorder %v2374_v0, 0.0  ;;  %v4314_v57 = vsel %vm10862_vm13, %v10379_v37, -1e+30 }
 0x678   :  { %v3652_v45 = vpop.xlane.xlu0 %3651  ;;  %v3376_v16 = vpop.xlane.xlu1 %3375  ;;  %vm10985_vm10 = vmor %vm13264_vm8, %vm2406_vm2  ;;  %vm13589_vm2 = vcmask 146568   ;;  %vm13733_vm8 = vcmask 195768  }
 0x679   :  { %3395 = vst.msk [vmem:[#allocation2 + $0x68] sm:$0xff] %vm13577_vm6, %v3376_v16  ;;  %vm13585_vm6 = vcmask 113768   ;;  %v4452_v16 = vsel %vm10862_vm13, %v10401_v27, -1e+30  ;;  %v4727_v62 = vsel %vm10985_vm10, %v10404_v3, -1e+30 }
 0x67b   :  { %4000 = vmax.xlane.f32.xlu0 %v3969_v60  ;;  %4207 = vmax.xlane.f32.xlu1 %v4176_v4  ;;  %v2726_v60 = vsel %vm10985_vm10, %v10223_v29, -1e+30 }
 0x67c   :  { %v3721_v63 = vpop.xlane.xlu0 %3720  ;;  %v3445_v26 = vpop.xlane.xlu1 %3444 }
 0x67d   :  { %3464 = vst.msk [vmem:[#allocation2 + $0x68] sm:$0xff] %vm13580_vm4, %v3445_v26  ;;  %vm13587_vm4 = vcmask 130168   ;;  %v2795_v26 = vsel %vm10985_vm10, %v10247_v59, -1e+30 }
 0x67f   :  { %4069 = vmax.xlane.f32.xlu0 %v4038_v35  ;;  %4276 = vmax.xlane.f32.xlu1 %v4245_v30  ;;  %v4590_v35 = vsel %vm10862_vm13, %v10434_v19, -1e+30  ;;  %v2864_v30 = vsel %vm10985_vm10, %v10265_v31, -1e+30 }
 0x680   :  { %v3790_v54 = vpop.xlane.xlu0 %3789  ;;  %v3514_v32 = vpop.xlane.xlu1 %3513 }
 0x681   :  { %3533 = vst.msk [vmem:[#allocation2 + $0x68] sm:$0xff] %vm13581_vm5, %v3514_v32  ;;  %vm13588_vm5 = vcmask 138368  }
 0x682   :  { %3602 = vst.msk [vmem:[#allocation2 + $0x68] sm:$0xff] %vm13582_vm9, %v3583_v50  ;;  %vm13590_vm9 = vcmask 154768  }
 0x683   :  { %3671 = vst.msk [vmem:[#allocation2 + $0x68] sm:$0xff] %vm13585_vm6, %v3652_v45  ;;  %4414 = vmax.xlane.f32.xlu0 %v4383_v39  ;;  %4345 = vmax.xlane.f32.xlu1 %v4314_v57  ;;  %vm13591_vm6 = vcmask 162968   ;;  %v3071_v39 = vsel %vm10985_vm10, %v10268_v48, -1e+30  ;;  %v2933_v57 = vsel %vm10985_vm10, %v10226_v5, -1e+30 }
 0x684   :  { %3740 = vst.msk [vmem:[#allocation2 + $0x68] sm:$0xff] %vm13586_vm0, %v3721_v63  ;;  %v4135_v50 = vpop.xlane.xlu0 %4134  ;;  %v3859_v12 = vpop.xlane.xlu1 %3858  ;;  %v4521_v63 = vsel %vm10862_vm13, %v10413_v42, -1e+30  ;;  %vm13592_vm0 = vcmask 171168  }
 0x685   :  { %3809 = vst.msk [vmem:[#allocation2 + $0x68] sm:$0xff] %vm13587_vm4, %v3790_v54  ;;  %vm13593_vm4 = vcmask 179368  }
 0x686   :  { %3878 = vst.msk [vmem:[#allocation2 + $0x68] sm:$0xff] %vm13588_vm5, %v3859_v12  ;;  %vm13594_vm5 = vcmask 187568  }
 0x687   :  { %4483 = vmax.xlane.f32.xlu0 %v4452_v16  ;;  %2756 = vmax.xlane.f32.xlu1 %v2726_v60  ;;  %v3002_v60 = vsel %vm10985_vm10, %v10250_v23, -1e+30 }
 0x688   :  { %v4204_v45 = vpop.xlane.xlu0 %4203  ;;  %v3928_v4 = vpop.xlane.xlu1 %3927 }
 0x689   :  { %3947 = vst.msk [vmem:[#allocation2 + $0x68] sm:$0xff] %vm13589_vm2, %v3928_v4  ;;  %vm13595_vm2 = vcmask 195768  }
 0x68b   :  { %4552 = vmax.xlane.f32.xlu0 %v4521_v63  ;;  %2825 = vmax.xlane.f32.xlu1 %v2795_v26  ;;  %v3209_v63 = vsel %vm10985_vm10, %v10281_v56, -1e+30  ;;  %v3347_v26 = vsel %vm10985_vm10, %v10302_v46, -1e+30 }
 0x68c   :  { %v4273_v17 = vpop.xlane.xlu0 %4272  ;;  %v3997_v0 = vpop.xlane.xlu1 %3996 }
 0x68d   :  { %4016 = vst.msk [vmem:[#allocation2 + $0x68] sm:$0xff] %vm13590_vm9, %v3997_v0  ;;  %vm13596_vm9 = vcmask 203968  }
 0x68f   :  { %4621 = vmax.xlane.f32.xlu0 %v4590_v35  ;;  %2894 = vmax.xlane.f32.xlu1 %v2864_v30  ;;  %v3278_v35 = vsel %vm10985_vm10, %v10290_v58, -1e+30  ;;  %v3416_v30 = vsel %vm10985_vm10, %v10314_v52, -1e+30 }
 0x690   :  { %v4342_v54 = vpop.xlane.xlu0 %4341  ;;  %v4066_v32 = vpop.xlane.xlu1 %4065 }
 0x691   :  { %4085 = vst.msk [vmem:[#allocation2 + $0x68] sm:$0xff] %vm13591_vm6, %v4066_v32  ;;  %vm13597_vm6 = vcmask 212168  }
 0x692   :  { %4154 = vst.msk [vmem:[#allocation2 + $0x68] sm:$0xff] %vm13592_vm0, %v4135_v50  ;;  %v3140_v50 = vsel %vm10985_vm10, %v10278_v21, -1e+30  ;;  %vm13598_vm0 = vcmask 220368  }
 0x693   :  { %4223 = vst.msk [vmem:[#allocation2 + $0x68] sm:$0xff] %vm13593_vm4, %v4204_v45  ;;  %3101 = vmax.xlane.f32.xlu0 %v3071_v39  ;;  %2963 = vmax.xlane.f32.xlu1 %v2933_v57  ;;  %vm13599_vm4 = vcmask 7168   ;;  %v3623_v39 = vsel %vm10985_vm10, %v10305_v10, -1e+30  ;;  %v3485_v57 = vsel %vm10985_vm10, %v10326_v15, -1e+30 }
 0x694   :  { %4292 = vst.msk [vmem:[#allocation2 + $0x68] sm:$0xff] %vm13594_vm5, %v4273_v17  ;;  %v4687_v12 = vpop.xlane.xlu0 %4686  ;;  %v4411_v16 = vpop.xlane.xlu1 %4410  ;;  %vm13600_vm5 = vcmask 228568  }
 0x695   :  { %4361 = vst.msk [vmem:[#allocation2 + $0x68] sm:$0xff] %vm13595_vm2, %v4342_v54  ;;  %vm13601_vm2 = vcmask 236768  }
 0x696   :  { %4430 = vst.msk [vmem:[#allocation2 + $0x68] sm:$0xff] %vm13596_vm9, %v4411_v16  ;;  %vm13602_vm9 = vcmask 244968  }
 0x697   :  { %3170 = vmax.xlane.f32.xlu0 %v3140_v50  ;;  %3032 = vmax.xlane.f32.xlu1 %v3002_v60  ;;  %v3554_v60 = vsel %vm10985_vm10, %v10293_v55, -1e+30 }
 0x698   :  { %v4756_v45 = vpop.xlane.xlu0 %4755  ;;  %v4480_v4 = vpop.xlane.xlu1 %4479 }
 0x699   :  { %4499 = vst.msk [vmem:[#allocation2 + $0x68] sm:$0xff] %vm13597_vm6, %v4480_v4  ;;  %vm13603_vm6 = vcmask 253168  }
 0x69b   :  { %3239 = vmax.xlane.f32.xlu0 %v3209_v63  ;;  %3377 = vmax.xlane.f32.xlu1 %v3347_v26  ;;  %v3761_v63 = vsel %vm10985_vm10, %v10329_v18, -1e+30  ;;  %v3899_v26 = vsel %vm10985_vm10, %v10351_v1, -1e+30 }
 0x69c   :  { %v4825_v17 = vpop.xlane.xlu0 %4824  ;;  %v4549_v0 = vpop.xlane.xlu1 %4548 }
 0x69d   :  { %4568 = vst.msk [vmem:[#allocation2 + $0x68] sm:$0xff] %vm13598_vm0, %v4549_v0  ;;  %vm13604_vm0 = vcmask 15368  }
 0x69f   :  { %3308 = vmax.xlane.f32.xlu0 %v3278_v35  ;;  %3446 = vmax.xlane.f32.xlu1 %v3416_v30  ;;  %v3830_v35 = vsel %vm10985_vm10, %v10339_v14, -1e+30  ;;  %v3968_v30 = vsel %vm10985_vm10, %v10363_v51, -1e+30 }
 0x6a0   :  { %v2753_v54 = vpop.xlane.xlu0 %2752  ;;  %v4618_v32 = vpop.xlane.xlu1 %4617 }
 0x6a1   :  { %2773 = vst.msk [vmem:[#allocation2 + $0x60] sm:$0xff] %vm13599_vm4, %v2753_v54  ;;  %vm13605_vm4 = vcmask 23568  }
 0x6a2   :  { %4637 = vst.msk [vmem:[#allocation2 + $0x68] sm:$0xff] %vm13600_vm5, %v4618_v32  ;;  %vm13606_vm5 = vcmask 31768  }
 0x6a3   :  { %4706 = vst.msk [vmem:[#allocation2 + $0x68] sm:$0xff] %vm13601_vm2, %v4687_v12  ;;  %3653 = vmax.xlane.f32.xlu0 %v3623_v39  ;;  %3515 = vmax.xlane.f32.xlu1 %v3485_v57  ;;  %v3692_v12 = vsel %vm10985_vm10, %v10317_v11, -1e+30  ;;  %vm13607_vm2 = vcmask 39968   ;;  %v4175_v39 = vsel %vm10985_vm10, %v10354_v40, -1e+30 }
 0x6a4   :  { %4775 = vst.msk [vmem:[#allocation2 + $0x68] sm:$0xff] %vm13602_vm9, %v4756_v45  ;;  %v2822_v16 = vpop.xlane.xlu0 %2821  ;;  %v3029_v50 = vpop.xlane.xlu1 %3028  ;;  %vm13608_vm9 = vcmask 48168   ;;  %v4037_v57 = vsel %vm10985_vm10, %v10376_v20, -1e+30 }
 0x6a5   :  { %4844 = vst.msk [vmem:[#allocation2 + $0x68] sm:$0xff] %vm13603_vm6, %v4825_v17  ;;  %vm13609_vm6 = vcmask 56368  }
 0x6a6   :  { %2842 = vst.msk [vmem:[#allocation2 + $0x60] sm:$0xff] %vm13604_vm0, %v2822_v16  ;;  %vm13610_vm0 = vcmask 64568  }
 0x6a7   :  { %3722 = vmax.xlane.f32.xlu0 %v3692_v12  ;;  %3584 = vmax.xlane.f32.xlu1 %v3554_v60  ;;  %v4244_v12 = vsel %vm10985_vm10, %v10366_v6, -1e+30  ;;  %v4106_v60 = vsel %vm10985_vm10, %v10342_v33, -1e+30 }
 0x6a8   :  { %v2891_v4 = vpop.xlane.xlu0 %2890  ;;  %v3098_v45 = vpop.xlane.xlu1 %3097 }
 0x6a9   :  { %2911 = vst.msk [vmem:[#allocation2 + $0x60] sm:$0xff] %vm13605_vm4, %v2891_v4  ;;  %vm2281_vm4 = vcmp.le.f32.partialorder %v10072_v28, %v10565_v24  ;;  %v11102_v4 = vld [vmem:[%s13117_s1 + $0x8] sm:$0xff] }
 0x6ab   :  { %3791 = vmax.xlane.f32.xlu0 %v3761_v63  ;;  %3929 = vmax.xlane.f32.xlu1 %v3899_v26  ;;  %v4313_v26 = vsel %vm10985_vm10, %v10379_v37, -1e+30 }
 0x6ac   :  { %v2960_v17 = vpop.xlane.xlu0 %2959  ;;  %v3167_v0 = vpop.xlane.xlu1 %3166 }
 0x6ad   :  { %2980 = vst.msk [vmem:[#allocation2 + $0x60] sm:$0xff] %vm13606_vm5, %v2960_v17  ;;  %vm2297_vm5 = vcmp.lt.f32.partialorder %v10565_v24, 5e+29  ;;  %v4451_v17 = vsel %vm10985_vm10, %v10401_v27, -1e+30 }
 0x6ae   :  { %3049 = vst.msk [vmem:[#allocation2 + $0x60] sm:$0xff] %vm13607_vm2, %v3029_v50  ;;  %vm13611_vm2 = vcmask 72768  }
 0x6af   :  { %3118 = vst.msk [vmem:[#allocation2 + $0x60] sm:$0xff] %vm13608_vm9, %v3098_v45  ;;  %3860 = vmax.xlane.f32.xlu0 %v3830_v35  ;;  %3998 = vmax.xlane.f32.xlu1 %v3968_v30  ;;  %vm2345_vm9 = vmand %vm2281_vm4, %vm2297_vm5  ;;  %v13614_v45 = vsel %vm10062_vm11, 1.0, %v9837_v13  ;;  %vm13615_vm4 = vcmask 97368   ;;  %vm2377_vm5 = vcmp.gt.f32.partialorder %v11102_v4, 0.0  ;;  %vm13617_vm11 = vcmask 113768  }
 0x6b0   :  { %3187 = vst.msk [vmem:[#allocation2 + $0x60] sm:$0xff] %vm13609_vm6, %v3167_v0  ;;  %v3374_v54 = vpop.xlane.xlu0 %3373  ;;  %v3236_v32 = vpop.xlane.xlu1 %3235  ;;  %vm13612_vm6 = vcmask 80968   ;;  %v2361_v63 = vsel %vm2345_vm9, 1.0, %v13614_v45  ;;  %v4382_v13 = vsel %vm10985_vm10, %v10388_v38, -1e+30 }
 0x6b1   :  { %3256 = vst.msk [vmem:[#allocation2 + $0x60] sm:$0xff] %vm13610_vm0, %v3236_v32  ;;  %vm13613_vm0 = vcmask 89168   ;;  %v4520_v35 = vsel %vm10985_vm10, %v10413_v42, -1e+30 }
 0x6b3   :  { %4205 = vmax.xlane.f32.xlu0 %v4175_v39  ;;  %4067 = vmax.xlane.f32.xlu1 %v4037_v57  ;;  %v4589_v57 = vsel %vm10985_vm10, %v10434_v19, -1e+30 }
 0x6b4   :  { %v3443_v16 = vpop.xlane.xlu0 %3442  ;;  %v3305_v50 = vpop.xlane.xlu1 %3304 }
 0x6b5   :  { %3325 = vst.msk [vmem:[#allocation2 + $0x60] sm:$0xff] %vm13611_vm2, %v3305_v50  ;;  %vm2393_vm2 = vcmp.gt.f32.partialorder %v2361_v63, 0.0 }
 0x6b6   :  { %3394 = vst.msk [vmem:[#allocation2 + $0x60] sm:$0xff] %vm13612_vm6, %v3374_v54  ;;  %vm13616_vm6 = vcmask 105568   ;;  %vm11126_vm9 = vmor %vm2377_vm5, %vm2393_vm2  ;;  %vm13622_vm2 = vcmask 138368  }
 0x6b7   :  { %3463 = vst.msk [vmem:[#allocation2 + $0x60] sm:$0xff] %vm13613_vm0, %v3443_v16  ;;  %4274 = vmax.xlane.f32.xlu0 %v4244_v12  ;;  %4136 = vmax.xlane.f32.xlu1 %v4106_v60  ;;  %vm13620_vm0 = vcmask 121968   ;;  %v2920_v39 = vsel %vm11126_vm9, %v10226_v5, -1e+30  ;;  %v2989_v12 = vsel %vm11126_vm9, %v10250_v23, -1e+30 }
 0x6b8   :  { %v3512_v28 = vpop.xlane.xlu0 %3511  ;;  %v3650_v24 = vpop.xlane.xlu1 %3649  ;;  %v4658_v60 = vsel %vm10985_vm10, %v10391_v25, -1e+30  ;;  %v3058_v45 = vsel %vm11126_vm9, %v10268_v48, -1e+30  ;;  %v2713_v63 = vsel %vm11126_vm9, %v10223_v29, -1e+30 }
 0x6b9   :  { %3532 = vst.msk [vmem:[#allocation2 + $0x60] sm:$0xff] %vm13615_vm4, %v3512_v28  ;;  %vm13621_vm4 = vcmask 130168  }
 0x6bb   :  { %4343 = vmax.xlane.f32.xlu0 %v4313_v26  ;;  %4481 = vmax.xlane.f32.xlu1 %v4451_v17 }
 0x6bc   :  { %v3581_v0 = vpop.xlane.xlu0 %3580  ;;  %v3719_v44 = vpop.xlane.xlu1 %3718 }
 0x6bd   :  { %3601 = vst.msk [vmem:[#allocation2 + $0x60] sm:$0xff] %vm13616_vm6, %v3581_v0  ;;  %vm13623_vm6 = vcmask 146568   ;;  %v3127_v0 = vsel %vm11126_vm9, %v10278_v21, -1e+30 }
 0x6be   :  { %3670 = vst.msk [vmem:[#allocation2 + $0x60] sm:$0xff] %vm13617_vm11, %v3650_v24  ;;  %vm13624_vm11 = vcmask 154768  }
 0x6bf   :  { %3739 = vst.msk [vmem:[#allocation2 + $0x60] sm:$0xff] %vm13620_vm0, %v3719_v44  ;;  %4412 = vmax.xlane.f32.xlu0 %v4382_v13  ;;  %4550 = vmax.xlane.f32.xlu1 %v4520_v35  ;;  %vm13625_vm0 = vcmask 162968   ;;  %v2782_v44 = vsel %vm11126_vm9, %v10247_v59, -1e+30 }
 0x6c0   :  { %v3926_v54 = vpop.xlane.xlu0 %3925  ;;  %v3788_v32 = vpop.xlane.xlu1 %3787 }
 0x6c1   :  { %3808 = vst.msk [vmem:[#allocation2 + $0x60] sm:$0xff] %vm13621_vm4, %v3788_v32  ;;  %vm13626_vm4 = vcmask 171168   ;;  %v2851_v32 = vsel %vm11126_vm9, %v10265_v31, -1e+30 }
 0x6c3   :  { %2937 = vmax.xlane.f32.xlu0 %v2920_v39  ;;  %4619 = vmax.xlane.f32.xlu1 %v4589_v57 }
 0x6c4   :  { %v3995_v16 = vpop.xlane.xlu0 %3994  ;;  %v3857_v50 = vpop.xlane.xlu1 %3856 }
 0x6c5   :  { %3877 = vst.msk [vmem:[#allocation2 + $0x60] sm:$0xff] %vm13622_vm2, %v3857_v50  ;;  %vm13627_vm2 = vcmask 179368   ;;  %v3196_v50 = vsel %vm11126_vm9, %v10281_v56, -1e+30 }
 0x6c6   :  { %3946 = vst.msk [vmem:[#allocation2 + $0x60] sm:$0xff] %vm13623_vm6, %v3926_v54  ;;  %vm13628_vm6 = vcmask 187568   ;;  %v3472_v54 = vsel %vm11126_vm9, %v10326_v15, -1e+30 }
 0x6c7   :  { %4015 = vst.msk [vmem:[#allocation2 + $0x60] sm:$0xff] %vm13624_vm11, %v3995_v16  ;;  %3006 = vmax.xlane.f32.xlu0 %v2989_v12  ;;  %4688 = vmax.xlane.f32.xlu1 %v4658_v60  ;;  %vm13629_vm11 = vcmask 195768   ;;  %v3541_v16 = vsel %vm11126_vm9, %v10293_v55, -1e+30 }
 0x6c8   :  { %v4064_v28 = vpop.xlane.xlu0 %4063  ;;  %v4202_v24 = vpop.xlane.xlu1 %4201 }
 0x6c9   :  { %4084 = vst.msk [vmem:[#allocation2 + $0x60] sm:$0xff] %vm13625_vm0, %v4064_v28  ;;  %vm13630_vm0 = vcmask 203968   ;;  %v3610_v28 = vsel %vm11126_vm9, %v10305_v10, -1e+30 }
 0x6cb   :  { %3075 = vmax.xlane.f32.xlu0 %v3058_v45  ;;  %2730 = vmax.xlane.f32.xlu1 %v2713_v63 }
 0x6cc   :  { %v4133_v26 = vpop.xlane.xlu0 %4132  ;;  %v4271_v17 = vpop.xlane.xlu1 %4270 }
 0x6cd   :  { %4153 = vst.msk [vmem:[#allocation2 + $0x60] sm:$0xff] %vm13626_vm4, %v4133_v26  ;;  %vm13631_vm4 = vcmask 212168   ;;  %v3679_v26 = vsel %vm11126_vm9, %v10317_v11, -1e+30 }
 0x6ce   :  { %4222 = vst.msk [vmem:[#allocation2 + $0x60] sm:$0xff] %vm13627_vm2, %v4202_v24  ;;  %vm13632_vm2 = vcmask 220368   ;;  %v3265_v24 = vsel %vm11126_vm9, %v10290_v58, -1e+30 }
 0x6cf   :  { %4291 = vst.msk [vmem:[#allocation2 + $0x60] sm:$0xff] %vm13628_vm6, %v4271_v17  ;;  %3144 = vmax.xlane.f32.xlu0 %v3127_v0  ;;  %2799 = vmax.xlane.f32.xlu1 %v2782_v44  ;;  %vm13633_vm6 = vcmask 228568   ;;  %v3334_v17 = vsel %vm11126_vm9, %v10302_v46, -1e+30 }
 0x6d0   :  { %v4478_v13 = vpop.xlane.xlu0 %4477  ;;  %v4340_v35 = vpop.xlane.xlu1 %4339 }
 0x6d1   :  { %4360 = vst.msk [vmem:[#allocation2 + $0x60] sm:$0xff] %vm13629_vm11, %v4340_v35  ;;  %vm13634_vm11 = vcmask 236768   ;;  %v3403_v35 = vsel %vm11126_vm9, %v10314_v52, -1e+30 }
 0x6d3   :  { %3489 = vmax.xlane.f32.xlu0 %v3472_v54  ;;  %2868 = vmax.xlane.f32.xlu1 %v2851_v32 }
 0x6d4   :  { %v4547_v39 = vpop.xlane.xlu0 %4546  ;;  %v4409_v57 = vpop.xlane.xlu1 %4408 }
 0x6d5   :  { %4429 = vst.msk [vmem:[#allocation2 + $0x60] sm:$0xff] %vm13630_vm0, %v4409_v57  ;;  %vm13635_vm0 = vcmask 244968   ;;  %v3748_v57 = vsel %vm11126_vm9, %v10329_v18, -1e+30 }
 0x6d6   :  { %4498 = vst.msk [vmem:[#allocation2 + $0x60] sm:$0xff] %vm13631_vm4, %v4478_v13  ;;  %vm13636_vm4 = vcmask 253168   ;;  %v4024_v13 = vsel %vm11126_vm9, %v10376_v20, -1e+30 }
 0x6d7   :  { %4567 = vst.msk [vmem:[#allocation2 + $0x60] sm:$0xff] %vm13632_vm2, %v4547_v39  ;;  %3558 = vmax.xlane.f32.xlu0 %v3541_v16  ;;  %3213 = vmax.xlane.f32.xlu1 %v3196_v50  ;;  %vm13637_vm2 = vcmask 7168   ;;  %v4093_v39 = vsel %vm11126_vm9, %v10342_v33, -1e+30 }
 0x6d8   :  { %v4616_v12 = vpop.xlane.xlu0 %4615  ;;  %v4754_v60 = vpop.xlane.xlu1 %4753 }
 0x6d9   :  { %4636 = vst.msk [vmem:[#allocation2 + $0x60] sm:$0xff] %vm13633_vm6, %v4616_v12  ;;  %vm13638_vm6 = vcmask 261368   ;;  %v4162_v12 = vsel %vm11126_vm9, %v10354_v40, -1e+30 }
 0x6db   :  { %3627 = vmax.xlane.f32.xlu0 %v3610_v28  ;;  %3282 = vmax.xlane.f32.xlu1 %v3265_v24 }
 0x6dc   :  { %v4685_v45 = vpop.xlane.xlu0 %4684  ;;  %v4823_v63 = vpop.xlane.xlu1 %4822 }
 0x6dd   :  { %4705 = vst.msk [vmem:[#allocation2 + $0x60] sm:$0xff] %vm13634_vm11, %v4685_v45  ;;  %vm13639_vm11 = vcmask 15368   ;;  %v4231_v45 = vsel %vm11126_vm9, %v10366_v6, -1e+30 }
 0x6de   :  { %4774 = vst.msk [vmem:[#allocation2 + $0x60] sm:$0xff] %vm13635_vm0, %v4754_v60  ;;  %vm13640_vm0 = vcmask 23568   ;;  %v3817_v60 = vsel %vm11126_vm9, %v10339_v14, -1e+30 }
 0x6df   :  { %4843 = vst.msk [vmem:[#allocation2 + $0x60] sm:$0xff] %vm13636_vm4, %v4823_v63  ;;  %3696 = vmax.xlane.f32.xlu0 %v3679_v26  ;;  %3351 = vmax.xlane.f32.xlu1 %v3334_v17  ;;  %vm13641_vm4 = vcmask 31768   ;;  %v3886_v63 = vsel %vm11126_vm9, %v10351_v1, -1e+30 }
 0x6e0   :  { %v2759_v0 = vpop.xlane.xlu0 %2758  ;;  %v4892_v44 = vpop.xlane.xlu1 %4891 }
 0x6e1   :  { %2776 = vst.msk [vmem:[#allocation2 + $0x78] sm:$0xff] %vm13637_vm2, %v2759_v0  ;;  %vm13642_vm2 = vcmask 39968   ;;  %v4576_v0 = vsel %vm11126_vm9, %v10434_v19, -1e+30 }
 0x6e2   :  { %4912 = vst.msk [vmem:[#allocation2 + $0x60] sm:$0xff] %vm13638_vm6, %v4892_v44  ;;  %vm13643_vm6 = vcmask 48168   ;;  %v3955_v44 = vsel %vm11126_vm9, %v10363_v51, -1e+30 }
 0x6e3   :  { %4041 = vmax.xlane.f32.xlu0 %v4024_v13  ;;  %3420 = vmax.xlane.f32.xlu1 %v3403_v35 }
 0x6e4   :  { %v2828_v54 = vpop.xlane.xlu0 %2827  ;;  %v3035_v32 = vpop.xlane.xlu1 %3034 }
 0x6e5   :  { %2845 = vst.msk [vmem:[#allocation2 + $0x78] sm:$0xff] %vm13639_vm11, %v2828_v54  ;;  %vm13644_vm11 = vcmask 56368   ;;  %v4645_v54 = vsel %vm11126_vm9, %v10391_v25, -1e+30 }
 0x6e7   :  { %4110 = vmax.xlane.f32.xlu0 %v4093_v39  ;;  %3765 = vmax.xlane.f32.xlu1 %v3748_v57 }
 0x6e8   :  { %v2897_v16 = vpop.xlane.xlu0 %2896  ;;  %v3104_v50 = vpop.xlane.xlu1 %3103 }
 0x6e9   :  { %2914 = vst.msk [vmem:[#allocation2 + $0x78] sm:$0xff] %vm13640_vm0, %v2897_v16  ;;  %vm13645_vm0 = vcmask 64568   ;;  %v4714_v16 = vsel %vm11126_vm9, %v10404_v3, -1e+30 }
 0x6eb   :  { %4179 = vmax.xlane.f32.xlu0 %v4162_v12  ;;  %3834 = vmax.xlane.f32.xlu1 %v3817_v60  ;;  %v13649_v60 = vsel %vm10076_vm3, 1.0, %v9851_v7 }
 0x6ec   :  { %v2966_v28 = vpop.xlane.xlu0 %2965  ;;  %v3173_v24 = vpop.xlane.xlu1 %3172 }
 0x6ed   :  { %2983 = vst.msk [vmem:[#allocation2 + $0x78] sm:$0xff] %vm13641_vm4, %v2966_v28  ;;  %vm13646_vm4 = vcmask 72768  }
 0x6ee   :  { %3052 = vst.msk [vmem:[#allocation2 + $0x78] sm:$0xff] %vm13642_vm2, %v3035_v32  ;;  %vm13647_vm2 = vcmask 80968   ;;  %v4300_v32 = vsel %vm11126_vm9, %v10379_v37, -1e+30 }
 0x6ef   :  { %3121 = vst.msk [vmem:[#allocation2 + $0x78] sm:$0xff] %vm13643_vm6, %v3104_v50  ;;  %4248 = vmax.xlane.f32.xlu0 %v4231_v45  ;;  %3903 = vmax.xlane.f32.xlu1 %v3886_v63  ;;  %vm2280_vm6 = vcmp.le.f32.partialorder %v10083_v53, %v10567_v61  ;;  %v4369_v50 = vsel %vm11126_vm9, %v10388_v38, -1e+30  ;;  %v4438_v45 = vsel %vm11126_vm9, %v10401_v27, -1e+30 }
 0x6f0   :  { %3190 = vst.msk [vmem:[#allocation2 + $0x78] sm:$0xff] %vm13644_vm11, %v3173_v24  ;;  %v3311_v26 = vpop.xlane.xlu0 %3310  ;;  %v3242_v17 = vpop.xlane.xlu1 %3241  ;;  %vm2296_vm11 = vcmp.lt.f32.partialorder %v10567_v61, 5e+29  ;;  %v11255_v61 = vld [vmem:[%s13117_s1] sm:$0xff]  ;;  %v4783_v24 = vsel %vm11126_vm9, %v10416_v41, -1e+30 }
 0x6f1   :  { %3259 = vst.msk [vmem:[#allocation2 + $0x78] sm:$0xff] %vm13645_vm0, %v3242_v17  ;;  %vm13648_vm0 = vcmask 89168   ;;  %v4852_v63 = vsel %vm11126_vm9, %v10437_v22, -1e+30 }
 0x6f2   :  { %3328 = vst.msk [vmem:[#allocation2 + $0x78] sm:$0xff] %vm13646_vm4, %v3311_v26  ;;  %vm2344_vm4 = vmand %vm2280_vm6, %vm2296_vm11  ;;  %vm13651_vm6 = vcmask 105568   ;;  %vm13652_vm11 = vcmask 113768   ;;  %v4507_v26 = vsel %vm11126_vm9, %v10413_v42, -1e+30  ;;  %vm13659_vm9 = vcmask 154768  }
 0x6f3   :  { %4593 = vmax.xlane.f32.xlu0 %v4576_v0  ;;  %3972 = vmax.xlane.f32.xlu1 %v3955_v44  ;;  %v2360_v28 = vsel %vm2344_vm4, 1.0, %v13649_v60  ;;  %vm13653_vm4 = vcmask 121968  }
 0x6f4   :  { %v3380_v13 = vpop.xlane.xlu0 %3379  ;;  %v3587_v35 = vpop.xlane.xlu1 %3586  ;;  %vm2392_vm3 = vcmp.gt.f32.partialorder %v2360_v28, 0.0 }
 0x6f5   :  { %3397 = vst.msk [vmem:[#allocation2 + $0x78] sm:$0xff] %vm13647_vm2, %v3380_v13  ;;  %vm13650_vm2 = vcmask 97368  }
 0x6f7   :  { %4662 = vmax.xlane.f32.xlu0 %v4645_v54  ;;  %4317 = vmax.xlane.f32.xlu1 %v4300_v32 }
 0x6f8   :  { %v3449_v39 = vpop.xlane.xlu0 %3448  ;;  %v3656_v57 = vpop.xlane.xlu1 %3655 }
 0x6f9   :  { %3466 = vst.msk [vmem:[#allocation2 + $0x78] sm:$0xff] %vm13648_vm0, %v3449_v39  ;;  %vm2376_vm0 = vcmp.gt.f32.partialorder %v11255_v61, 0.0 }
 0x6fb   :  { %4731 = vmax.xlane.f32.xlu0 %v4714_v16  ;;  %4386 = vmax.xlane.f32.xlu1 %v4369_v50 }
 0x6fc   :  { %v3518_v53 = vpop.xlane.xlu0 %3517  ;;  %v3725_v12 = vpop.xlane.xlu1 %3724 }
 0x6fd   :  { %3535 = vst.msk [vmem:[#allocation2 + $0x78] sm:$0xff] %vm13650_vm2, %v3518_v53  ;;  %vm13654_vm2 = vcmask 130168  }
 0x6fe   :  { %3604 = vst.msk [vmem:[#allocation2 + $0x78] sm:$0xff] %vm13651_vm6, %v3587_v35  ;;  %vm13655_vm6 = vcmask 138368  }
 0x6ff   :  { %3673 = vst.msk [vmem:[#allocation2 + $0x78] sm:$0xff] %vm13652_vm11, %v3656_v57  ;;  %4800 = vmax.xlane.f32.xlu0 %v4783_v24  ;;  %4455 = vmax.xlane.f32.xlu1 %v4438_v45  ;;  %vm11282_vm11 = vmor %vm2376_vm0, %vm2392_vm3  ;;  %vm13660_vm3 = vcmask 162968  }
 0x700   :  { %3742 = vst.msk [vmem:[#allocation2 + $0x78] sm:$0xff] %vm13653_vm4, %v3725_v12  ;;  %v3863_v7 = vpop.xlane.xlu0 %3862  ;;  %v3794_v49 = vpop.xlane.xlu1 %3793  ;;  %vm13658_vm4 = vcmask 146568   ;;  %v2712_v13 = vsel %vm11282_vm11, %v10223_v29, -1e+30  ;;  %v2988_v30 = vsel %vm11282_vm11, %v10250_v23, -1e+30 }
 0x701   :  { %3811 = vst.msk [vmem:[#allocation2 + $0x78] sm:$0xff] %vm13654_vm2, %v3794_v49  ;;  %v2781_v32 = vsel %vm11282_vm11, %v10247_v59, -1e+30  ;;  %v3057_v39 = vsel %vm11282_vm11, %v10268_v48, -1e+30  ;;  %vm13661_vm2 = vcmask 171168  }
 0x702   :  { %3880 = vst.msk [vmem:[#allocation2 + $0x78] sm:$0xff] %vm13655_vm6, %v3863_v7  ;;  %v2850_v50 = vsel %vm11282_vm11, %v10265_v31, -1e+30  ;;  %v3126_v53 = vsel %vm11282_vm11, %v10278_v21, -1e+30  ;;  %vm13662_vm6 = vcmask 179368  }
 0x703   :  { %4869 = vmax.xlane.f32.xlu0 %v4852_v63  ;;  %4524 = vmax.xlane.f32.xlu1 %v4507_v26  ;;  %v2919_v28 = vsel %vm11282_vm11, %v10226_v5, -1e+30  ;;  %v3195_v24 = vsel %vm11282_vm11, %v10281_v56, -1e+30  ;;  %v3264_v49 = vsel %vm11282_vm11, %v10290_v58, -1e+30 }
 0x704   :  { %v3932_v0 = vpop.xlane.xlu0 %3931  ;;  %v4139_v44 = vpop.xlane.xlu1 %4138  ;;  %v3540_v63 = vsel %vm11282_vm11, %v10293_v55, -1e+30 }
 0x705   :  { %3949 = vst.msk [vmem:[#allocation2 + $0x78] sm:$0xff] %vm13658_vm4, %v3932_v0  ;;  %vm13663_vm4 = vcmask 187568  }
 0x707   :  { %2728 = vmax.xlane.f32.xlu0 %v2712_v13  ;;  %3004 = vmax.xlane.f32.xlu1 %v2988_v30  ;;  %v3609_v13 = vsel %vm11282_vm11, %v10305_v10, -1e+30 }
 0x708   :  { %v4001_v35 = vpop.xlane.xlu0 %4000  ;;  %v4208_v54 = vpop.xlane.xlu1 %4207 }
 0x709   :  { %4018 = vst.msk [vmem:[#allocation2 + $0x78] sm:$0xff] %vm13659_vm9, %v4001_v35  ;;  %vm13664_vm9 = vcmask 195768  }
 0x70b   :  { %2797 = vmax.xlane.f32.xlu0 %v2781_v32  ;;  %3073 = vmax.xlane.f32.xlu1 %v3057_v39  ;;  %v3678_v32 = vsel %vm11282_vm11, %v10317_v11, -1e+30 }
 0x70c   :  { %v4070_v57 = vpop.xlane.xlu0 %4069  ;;  %v4277_v16 = vpop.xlane.xlu1 %4276 }
 0x70d   :  { %4087 = vst.msk [vmem:[#allocation2 + $0x78] sm:$0xff] %vm13660_vm3, %v4070_v57  ;;  %vm13665_vm3 = vcmask 203968  }
 0x70e   :  { %4156 = vst.msk [vmem:[#allocation2 + $0x78] sm:$0xff] %vm13661_vm2, %v4139_v44  ;;  %vm13666_vm2 = vcmask 212168   ;;  %v3333_v44 = vsel %vm11282_vm11, %v10302_v46, -1e+30 }
 0x70f   :  { %4225 = vst.msk [vmem:[#allocation2 + $0x78] sm:$0xff] %vm13662_vm6, %v4208_v54  ;;  %2866 = vmax.xlane.f32.xlu0 %v2850_v50  ;;  %3142 = vmax.xlane.f32.xlu1 %v3126_v53  ;;  %vm13667_vm6 = vcmask 7168   ;;  %v3402_v54 = vsel %vm11282_vm11, %v10314_v52, -1e+30  ;;  %v3747_v50 = vsel %vm11282_vm11, %v10329_v18, -1e+30 }
 0x710   :  { %4294 = vst.msk [vmem:[#allocation2 + $0x78] sm:$0xff] %vm13663_vm4, %v4277_v16  ;;  %v4415_v12 = vpop.xlane.xlu0 %4414  ;;  %v4346_v60 = vpop.xlane.xlu1 %4345  ;;  %vm13668_vm4 = vcmask 220368   ;;  %v3471_v16 = vsel %vm11282_vm11, %v10326_v15, -1e+30 }
 0x711   :  { %4363 = vst.msk [vmem:[#allocation2 + $0x78] sm:$0xff] %vm13664_vm9, %v4346_v60  ;;  %vm13669_vm9 = vcmask 15368   ;;  %v3816_v60 = vsel %vm11282_vm11, %v10339_v14, -1e+30 }
 0x712   :  { %4432 = vst.msk [vmem:[#allocation2 + $0x78] sm:$0xff] %vm13665_vm3, %v4415_v12  ;;  %vm13670_vm3 = vcmask 228568  }
 0x713   :  { %2935 = vmax.xlane.f32.xlu0 %v2919_v28  ;;  %3211 = vmax.xlane.f32.xlu1 %v3195_v24  ;;  %v4092_v28 = vsel %vm11282_vm11, %v10342_v33, -1e+30 }
 0x714   :  { %v4484_v45 = vpop.xlane.xlu0 %4483  ;;  %v2757_v7 = vpop.xlane.xlu1 %2756 }
 0x715   :  { %4501 = vst.msk [vmem:[#allocation2 + $0x78] sm:$0xff] %vm13666_vm2, %v4484_v45  ;;  %vm13671_vm2 = vcmask 23568  }
 0x716   :  { %2775 = vst.msk [vmem:[#allocation2 + $0x70] sm:$0xff] %vm13667_vm6, %v2757_v7  ;;  %vm13672_vm6 = vcmask 31768   ;;  %v3885_v7 = vsel %vm11282_vm11, %v10351_v1, -1e+30 }
 0x717   :  { %3280 = vmax.xlane.f32.xlu0 %v3264_v49  ;;  %3556 = vmax.xlane.f32.xlu1 %v3540_v63  ;;  %v4161_v49 = vsel %vm11282_vm11, %v10354_v40, -1e+30 }
 0x718   :  { %v4553_v26 = vpop.xlane.xlu0 %4552  ;;  %v2826_v0 = vpop.xlane.xlu1 %2825 }
 0x719   :  { %4570 = vst.msk [vmem:[#allocation2 + $0x78] sm:$0xff] %vm13668_vm4, %v4553_v26  ;;  %vm13673_vm4 = vcmask 39968  }
 0x71a   :  { %2844 = vst.msk [vmem:[#allocation2 + $0x70] sm:$0xff] %vm13669_vm9, %v2826_v0  ;;  %vm13674_vm9 = vcmask 48168   ;;  %v3954_v0 = vsel %vm11282_vm11, %v10363_v51, -1e+30 }
 0x71b   :  { %3349 = vmax.xlane.f32.xlu0 %v3333_v44  ;;  %3625 = vmax.xlane.f32.xlu1 %v3609_v13  ;;  %v4230_v44 = vsel %vm11282_vm11, %v10366_v6, -1e+30 }
 0x71c   :  { %v4622_v30 = vpop.xlane.xlu0 %4621  ;;  %v2895_v35 = vpop.xlane.xlu1 %2894 }
 0x71d   :  { %4639 = vst.msk [vmem:[#allocation2 + $0x78] sm:$0xff] %vm13670_vm3, %v4622_v30  ;;  %vm13675_vm3 = vcmask 56368  }
 0x71e   :  { %2913 = vst.msk [vmem:[#allocation2 + $0x70] sm:$0xff] %vm13671_vm2, %v2895_v35  ;;  %vm13676_vm2 = vcmask 64568   ;;  %v4023_v35 = vsel %vm11282_vm11, %v10376_v20, -1e+30 }
 0x71f   :  { %3418 = vmax.xlane.f32.xlu0 %v3402_v54  ;;  %3694 = vmax.xlane.f32.xlu1 %v3678_v32  ;;  %v4299_v54 = vsel %vm11282_vm11, %v10379_v37, -1e+30 }
 0x720   :  { %v3102_v39 = vpop.xlane.xlu0 %3101  ;;  %v2964_v57 = vpop.xlane.xlu1 %2963 }
 0x721   :  { %2982 = vst.msk [vmem:[#allocation2 + $0x70] sm:$0xff] %vm13672_vm6, %v2964_v57  ;;  %vm13677_vm6 = vcmask 72768   ;;  %v4368_v57 = vsel %vm11282_vm11, %v10388_v38, -1e+30 }
 0x723   :  { %3487 = vmax.xlane.f32.xlu0 %v3471_v16  ;;  %3763 = vmax.xlane.f32.xlu1 %v3747_v50  ;;  %v4644_v16 = vsel %vm11282_vm11, %v10391_v25, -1e+30 }
 0x724   :  { %v3171_v53 = vpop.xlane.xlu0 %3170  ;;  %v3033_v12 = vpop.xlane.xlu1 %3032 }
 0x725   :  { %3051 = vst.msk [vmem:[#allocation2 + $0x70] sm:$0xff] %vm13673_vm4, %v3033_v12  ;;  %vm13678_vm4 = vcmask 80968   ;;  %v4437_v12 = vsel %vm11282_vm11, %v10401_v27, -1e+30 }
 0x726   :  { %3120 = vst.msk [vmem:[#allocation2 + $0x70] sm:$0xff] %vm13674_vm9, %v3102_v39  ;;  %vm13679_vm9 = vcmask 89168  }
 0x727   :  { %3189 = vst.msk [vmem:[#allocation2 + $0x70] sm:$0xff] %vm13675_vm3, %v3171_v53  ;;  %3832 = vmax.xlane.f32.xlu0 %v3816_v60  ;;  %4108 = vmax.xlane.f32.xlu1 %v4092_v28  ;;  %vm13680_vm3 = vcmask 97368   ;;  %v4713_v60 = vsel %vm11282_vm11, %v10404_v3, -1e+30  ;;  %v11403_v28 = vld [vmem:[%s13117_s1 + $0x18] sm:$0xff] }
 0x728   :  { %v3240_v24 = vpop.xlane.xlu0 %3239  ;;  %v3378_v45 = vpop.xlane.xlu1 %3377 }
 0x729   :  { %3258 = vst.msk [vmem:[#allocation2 + $0x70] sm:$0xff] %vm13676_vm2, %v3240_v24  ;;  %vm13681_vm2 = vcmask 105568  }
 0x72b   :  { %3901 = vmax.xlane.f32.xlu0 %v3885_v7  ;;  %4177 = vmax.xlane.f32.xlu1 %v4161_v49 }
 0x72c   :  { %v3309_v63 = vpop.xlane.xlu0 %3308  ;;  %v3447_v26 = vpop.xlane.xlu1 %3446 }
 0x72d   :  { %3327 = vst.msk [vmem:[#allocation2 + $0x70] sm:$0xff] %vm13677_vm6, %v3309_v63  ;;  %vm13682_vm6 = vcmask 113768   ;;  %v4506_v63 = vsel %vm11282_vm11, %v10413_v42, -1e+30 }
 0x72e   :  { %3396 = vst.msk [vmem:[#allocation2 + $0x70] sm:$0xff] %vm13678_vm4, %v3378_v45  ;;  %vm2283_vm4 = vcmp.le.f32.partialorder %v10100_v47, %v10575_v34  ;;  %v13686_v45 = vld [vmem:[#allocation16_spill] sm:$0xff] }
 0x72f   :  { %3465 = vst.msk [vmem:[#allocation2 + $0x70] sm:$0xff] %vm13679_vm9, %v3447_v26  ;;  %3970 = vmax.xlane.f32.xlu0 %v3954_v0  ;;  %4246 = vmax.xlane.f32.xlu1 %v4230_v44  ;;  %vm2299_vm9 = vcmp.lt.f32.partialorder %v10575_v34, 5e+29  ;;  %v13687_v7 = vsel %vm10090_vm1, 1.0, %v13686_v45  ;;  %v4782_v26 = vsel %vm11282_vm11, %v10416_v41, -1e+30 }
 0x730   :  { %v3654_v13 = vpop.xlane.xlu0 %3653  ;;  %v3516_v30 = vpop.xlane.xlu1 %3515 }
 0x731   :  { %3534 = vst.msk [vmem:[#allocation2 + $0x70] sm:$0xff] %vm13680_vm3, %v3516_v30  ;;  %vm13683_vm3 = vcmask 121968   ;;  %v4851_v30 = vsel %vm11282_vm11, %v10437_v22, -1e+30 }
 0x733   :  { %4039 = vmax.xlane.f32.xlu0 %v4023_v35  ;;  %4315 = vmax.xlane.f32.xlu1 %v4299_v54 }
 0x734   :  { %v3723_v32 = vpop.xlane.xlu0 %3722  ;;  %v3585_v39 = vpop.xlane.xlu1 %3584 }
 0x735   :  { %3603 = vst.msk [vmem:[#allocation2 + $0x70] sm:$0xff] %vm13681_vm2, %v3585_v39  ;;  %vm13684_vm2 = vcmask 130168  }
 0x736   :  { %3672 = vst.msk [vmem:[#allocation2 + $0x70] sm:$0xff] %vm13682_vm6, %v3654_v13  ;;  %vm2347_vm6 = vmand %vm2283_vm4, %vm2299_vm9  ;;  %vm13688_vm4 = vcmask 138368   ;;  %vm13689_vm9 = vcmask 146568   ;;  %v4575_v13 = vsel %vm11282_vm11, %v10434_v19, -1e+30  ;;  %vm13696_vm11 = vcmask 187568  }
 0x737   :  { %3741 = vst.msk [vmem:[#allocation2 + $0x70] sm:$0xff] %vm13683_vm3, %v3723_v32  ;;  %4384 = vmax.xlane.f32.xlu0 %v4368_v57  ;;  %4660 = vmax.xlane.f32.xlu1 %v4644_v16  ;;  %v2363_v49 = vsel %vm2347_vm6, 1.0, %v13687_v7  ;;  %vm13690_vm3 = vcmask 154768   ;;  %vm13691_vm6 = vcmask 162968  }
 0x738   :  { %v3792_v50 = vpop.xlane.xlu0 %3791  ;;  %v3930_v53 = vpop.xlane.xlu1 %3929  ;;  %vm2395_vm1 = vcmp.gt.f32.partialorder %v2363_v49, 0.0 }
 0x739   :  { %3810 = vst.msk [vmem:[#allocation2 + $0x70] sm:$0xff] %vm13684_vm2, %v3792_v50  ;;  %vm2379_vm2 = vcmp.gt.f32.partialorder %v11403_v28, 0.0 }
 0x73b   :  { %4453 = vmax.xlane.f32.xlu0 %v4437_v12  ;;  %4729 = vmax.xlane.f32.xlu1 %v4713_v60 }
 0x73c   :  { %v3861_v47 = vpop.xlane.xlu0 %3860  ;;  %v3999_v34 = vpop.xlane.xlu1 %3998 }
 0x73d   :  { %3879 = vst.msk [vmem:[#allocation2 + $0x70] sm:$0xff] %vm13688_vm4, %v3861_v47  ;;  %vm11428_vm4 = vmor %vm2379_vm2, %vm2395_vm1  ;;  %vm13697_vm1 = vcmask 195768  }
 0x73e   :  { %3948 = vst.msk [vmem:[#allocation2 + $0x70] sm:$0xff] %vm13689_vm9, %v3930_v53  ;;  %vm13694_vm9 = vcmask 171168   ;;  %v2715_v39 = vsel %vm11428_vm4, %v10223_v29, -1e+30  ;;  %v2922_v17 = vsel %vm11428_vm4, %v10226_v5, -1e+30 }
 0x73f   :  { %4017 = vst.msk [vmem:[#allocation2 + $0x70] sm:$0xff] %vm13690_vm3, %v3999_v34  ;;  %4522 = vmax.xlane.f32.xlu0 %v4506_v63  ;;  %4798 = vmax.xlane.f32.xlu1 %v4782_v26  ;;  %vm13695_vm3 = vcmask 179368   ;;  %v2784_v50 = vsel %vm11428_vm4, %v10247_v59, -1e+30  ;;  %v2991_v53 = vsel %vm11428_vm4, %v10250_v23, -1e+30 }
 0x740   :  { %v4206_v0 = vpop.xlane.xlu0 %4205  ;;  %v4068_v44 = vpop.xlane.xlu1 %4067  ;;  %v2853_v47 = vsel %vm11428_vm4, %v10265_v31, -1e+30  ;;  %v3060_v34 = vsel %vm11428_vm4, %v10268_v48, -1e+30  ;;  %v3198_v7 = vsel %vm11428_vm4, %v10281_v56, -1e+30 }
 0x741   :  { %4086 = vst.msk [vmem:[#allocation2 + $0x70] sm:$0xff] %vm13691_vm6, %v4068_v44  ;;  %vm13698_vm6 = vcmask 203968   ;;  %v3129_v49 = vsel %vm11428_vm4, %v10278_v21, -1e+30  ;;  %v3474_v44 = vsel %vm11428_vm4, %v10326_v15, -1e+30 }
 0x743   :  { %4591 = vmax.xlane.f32.xlu0 %v4575_v13  ;;  %4867 = vmax.xlane.f32.xlu1 %v4851_v30  ;;  %v5142_v13 = vld [vmem:[#allocation9] sm:$0xff]  ;;  %v5143_v30 = vld [vmem:[#allocation9 + $0x8] sm:$0xff] }
 0x744   :  { %v4275_v54 = vpop.xlane.xlu0 %4274  ;;  %v4137_v32 = vpop.xlane.xlu1 %4136 }
 0x745   :  { %4155 = vst.msk [vmem:[#allocation2 + $0x70] sm:$0xff] %vm13694_vm9, %v4137_v32  ;;  %vm13699_vm9 = vcmask 212168  }
 0x746   :  { %4224 = vst.msk [vmem:[#allocation2 + $0x70] sm:$0xff] %vm13695_vm3, %v4206_v0  ;;  %vm13700_vm3 = vcmask 220368   ;;  %v3267_v0 = vsel %vm11428_vm4, %v10290_v58, -1e+30 }
 0x747   :  { %4293 = vst.msk [vmem:[#allocation2 + $0x70] sm:$0xff] %vm13696_vm11, %v4275_v54  ;;  %2734 = vmax.xlane.f32.xlu0 %v2715_v39  ;;  %2941 = vmax.xlane.f32.xlu1 %v2922_v17  ;;  %vm13701_vm11 = vcmask 228568   ;;  %v7679_v39 = vpack.c.bf16 %v5143_v30, %v5142_v13  ;;  %v3336_v17 = vsel %vm11428_vm4, %v10302_v46, -1e+30  ;;  %v4026_v13 = vsel %vm11428_vm4, %v10376_v20, -1e+30 }
 0x748   :  { %v4344_v57 = vpop.xlane.xlu0 %4343  ;;  %v4482_v16 = vpop.xlane.xlu1 %4481 }
 0x749   :  { %4362 = vst.msk [vmem:[#allocation2 + $0x70] sm:$0xff] %vm13697_vm1, %v4344_v57  ;;  %vm13702_vm1 = vcmask 236768   ;;  %v3543_v57 = vsel %vm11428_vm4, %v10293_v55, -1e+30  ;;  %7680 = vmatprep.subr.bf16.mxu1 %v7679_v39 }
 0x74a   :  { %7682 = vmatpush3.bf16.msra.mxu1 %v7679_v39 }
 0x74b   :  { %2803 = vmax.xlane.f32.xlu0 %v2784_v50  ;;  %3010 = vmax.xlane.f32.xlu1 %v2991_v53  ;;  %v5145_v50 = vld [vmem:[#allocation9 + $0x18] sm:$0xff] }
 0x74c   :  { %v4413_v12 = vpop.xlane.xlu0 %4412  ;;  %v4551_v60 = vpop.xlane.xlu1 %4550 }
 0x74d   :  { %4431 = vst.msk [vmem:[#allocation2 + $0x70] sm:$0xff] %vm13698_vm6, %v4413_v12  ;;  %vm13703_vm6 = vcmask 7168  }
 0x74e   :  { %4500 = vst.msk [vmem:[#allocation2 + $0x70] sm:$0xff] %vm13699_vm9, %v4482_v16  ;;  %v5144_v16 = vld [vmem:[#allocation9 + $0x10] sm:$0xff]  ;;  %vm13704_vm9 = vcmask 15368  }
 0x74f   :  { %4569 = vst.msk [vmem:[#allocation2 + $0x70] sm:$0xff] %vm13700_vm3, %v4551_v60  ;;  %2872 = vmax.xlane.f32.xlu0 %v2853_v47  ;;  %3079 = vmax.xlane.f32.xlu1 %v3060_v34  ;;  %v7683_v60 = vpack.c.bf16 %v5145_v50, %v5144_v16  ;;  %v3405_v47 = vsel %vm11428_vm4, %v10314_v52, -1e+30  ;;  %v3612_v34 = vsel %vm11428_vm4, %v10305_v10, -1e+30  ;;  %vm13705_vm3 = vcmask 23568  }
 0x750   :  { %v2938_v24 = vpop.xlane.xlu0 %2937  ;;  %v4620_v45 = vpop.xlane.xlu1 %4619  ;;  %v4164_v16 = vsel %vm11428_vm4, %v10354_v40, -1e+30 }
 0x751   :  { %4638 = vst.msk [vmem:[#allocation2 + $0x70] sm:$0xff] %vm13701_vm11, %v4620_v45  ;;  %7684 = vmatprep.subr.bf16.mxu1 %v7683_v60  ;;  %vm13706_vm11 = vcmask 31768  }
 0x752   :  { %7686 = vmatpush3.bf16.msra.mxu1 %v7683_v60  ;;  %v4233_v60 = vsel %vm11428_vm4, %v10366_v6, -1e+30 }
 0x753   :  { %3217 = vmax.xlane.f32.xlu0 %v3198_v7  ;;  %3148 = vmax.xlane.f32.xlu1 %v3129_v49  ;;  %v3750_v49 = vsel %vm11428_vm4, %v10329_v18, -1e+30 }
 0x754   :  { %v3007_v63 = vpop.xlane.xlu0 %3006  ;;  %v4689_v26 = vpop.xlane.xlu1 %4688 }
 0x755   :  { %4707 = vst.msk [vmem:[#allocation2 + $0x70] sm:$0xff] %vm13702_vm1, %v4689_v26  ;;  %v3681_v26 = vsel %vm11428_vm4, %v10317_v11, -1e+30  ;;  %vm13707_vm1 = vcmask 39968  }
 0x757   :  { %3286 = vmax.xlane.f32.xlu0 %v3267_v0  ;;  %3493 = vmax.xlane.f32.xlu1 %v3474_v44 }
 0x758   :  { %v3076_v54 = vpop.xlane.xlu0 %3075  ;;  %v2731_v32 = vpop.xlane.xlu1 %2730 }
 0x759   :  { %2762 = vst.msk [vmem:[#allocation2 + $0x8] sm:$0xff] %vm13703_vm6, %v2731_v32  ;;  %vm13708_vm6 = vcmask 48168   ;;  %v4095_v32 = vsel %vm11428_vm4, %v10342_v33, -1e+30 }
 0x75b   :  { %3355 = vmax.xlane.f32.xlu0 %v3336_v17  ;;  %3562 = vmax.xlane.f32.xlu1 %v3543_v57  ;;  %v3957_v57 = vsel %vm11428_vm4, %v10363_v51, -1e+30 }
 0x75c   :  { %v3145_v53 = vpop.xlane.xlu0 %3144  ;;  %v2800_v12 = vpop.xlane.xlu1 %2799 }
 0x75d   :  { %2831 = vst.msk [vmem:[#allocation2 + $0x8] sm:$0xff] %vm13704_vm9, %v2800_v12  ;;  %vm13709_vm9 = vcmask 56368   ;;  %v4302_v12 = vsel %vm11428_vm4, %v10379_v37, -1e+30 }
 0x75f   :  { %3424 = vmax.xlane.f32.xlu0 %v3405_v47  ;;  %3631 = vmax.xlane.f32.xlu1 %v3612_v34 }
 0x760   :  { %v3490_v45 = vpop.xlane.xlu0 %3489  ;;  %v2869_v7 = vpop.xlane.xlu1 %2868 }
 0x761   :  { %2900 = vst.msk [vmem:[#allocation2 + $0x8] sm:$0xff] %vm13705_vm3, %v2869_v7  ;;  %vm13710_vm3 = vcmask 64568   ;;  %v4647_v7 = vsel %vm11428_vm4, %v10391_v25, -1e+30 }
 0x762   :  { %2969 = vst.msk [vmem:[#allocation2 + $0x8] sm:$0xff] %vm13706_vm11, %v2938_v24  ;;  %v3819_v24 = vsel %vm11428_vm4, %v10339_v14, -1e+30  ;;  %vm13711_vm11 = vcmask 72768  }
 0x763   :  { %3038 = vst.msk [vmem:[#allocation2 + $0x8] sm:$0xff] %vm13707_vm1, %v3007_v63  ;;  %3769 = vmax.xlane.f32.xlu0 %v3750_v49  ;;  %3700 = vmax.xlane.f32.xlu1 %v3681_v26  ;;  %vm13712_vm1 = vcmask 80968   ;;  %v13719_v49 = vld [vmem:[#allocation58_spill] sm:$0xff] }
 0x764   :  { %3107 = vst.msk [vmem:[#allocation2 + $0x8] sm:$0xff] %vm13708_vm6, %v3076_v54  ;;  %v3559_v0 = vpop.xlane.xlu0 %3558  ;;  %v3214_v44 = vpop.xlane.xlu1 %3213  ;;  %v3888_v54 = vsel %vm11428_vm4, %v10351_v1, -1e+30  ;;  %vm13713_vm6 = vcmask 89168   ;;  %v13720_v26 = vld [vmem:[#allocation42_spill] sm:$0xff] }
 0x765   :  { %3176 = vst.msk [vmem:[#allocation2 + $0x8] sm:$0xff] %vm13709_vm9, %v3145_v53  ;;  %vm13714_vm9 = vcmask 97368  }
 0x766   :  { %3245 = vst.msk [vmem:[#allocation2 + $0x8] sm:$0xff] %vm13710_vm3, %v3214_v44  ;;  %vm13715_vm3 = vcmask 105568  }
 0x767   :  { %3838 = vmax.xlane.f32.xlu0 %v3819_v24  ;;  %4045 = vmax.xlane.f32.xlu1 %v4026_v13  ;;  %v4440_v24 = vsel %vm11428_vm4, %v10401_v27, -1e+30  ;;  %v4716_v13 = vsel %vm11428_vm4, %v10404_v3, -1e+30 }
 0x768   :  { %v3628_v63 = vpop.xlane.xlu0 %3627  ;;  %v3283_v30 = vpop.xlane.xlu1 %3282 }
 0x769   :  { %3314 = vst.msk [vmem:[#allocation2 + $0x8] sm:$0xff] %vm13711_vm11, %v3283_v30  ;;  %vm13716_vm11 = vcmask 113768  }
 0x76b   :  { %3907 = vmax.xlane.f32.xlu0 %v3888_v54  ;;  %4114 = vmax.xlane.f32.xlu1 %v4095_v32  ;;  %v11548_v54 = vld [vmem:[%s13117_s1 + $0x10] sm:$0xff] }
 0x76c   :  { %v3697_v39 = vpop.xlane.xlu0 %3696  ;;  %v3352_v17 = vpop.xlane.xlu1 %3351 }
 0x76d   :  { %3383 = vst.msk [vmem:[#allocation2 + $0x8] sm:$0xff] %vm13712_vm1, %v3352_v17  ;;  %vm13717_vm1 = vcmask 121968  }
 0x76f   :  { %3976 = vmax.xlane.f32.xlu0 %v3957_v57  ;;  %4183 = vmax.xlane.f32.xlu1 %v4164_v16  ;;  %v4509_v16 = vsel %vm11428_vm4, %v10413_v42, -1e+30 }
 0x770   :  { %v4042_v50 = vpop.xlane.xlu0 %4041  ;;  %v3421_v53 = vpop.xlane.xlu1 %3420 }
 0x771   :  { %3452 = vst.msk [vmem:[#allocation2 + $0x8] sm:$0xff] %vm13713_vm6, %v3421_v53  ;;  %vm13718_vm6 = vcmask 130168   ;;  %v4785_v53 = vsel %vm11428_vm4, %v10416_v41, -1e+30 }
 0x772   :  { %3521 = vst.msk [vmem:[#allocation2 + $0x8] sm:$0xff] %vm13714_vm9, %v3490_v45  ;;  %v4371_v45 = vsel %vm11428_vm4, %v10388_v38, -1e+30  ;;  %vm2282_vm9 = vcmp.le.f32.partialorder %v13720_v26, %v13719_v49 }
 0x773   :  { %3590 = vst.msk [vmem:[#allocation2 + $0x8] sm:$0xff] %vm13715_vm3, %v3559_v0  ;;  %4321 = vmax.xlane.f32.xlu0 %v4302_v12  ;;  %4252 = vmax.xlane.f32.xlu1 %v4233_v60  ;;  %vm2298_vm3 = vcmp.lt.f32.partialorder %v13719_v49, 5e+29 }
 0x774   :  { %3659 = vst.msk [vmem:[#allocation2 + $0x8] sm:$0xff] %vm13716_vm11, %v3628_v63  ;;  %v4111_v47 = vpop.xlane.xlu0 %4110  ;;  %v3766_v34 = vpop.xlane.xlu1 %3765  ;;  %vm13721_vm11 = vcmask 138368  }
 0x775   :  { %3728 = vst.msk [vmem:[#allocation2 + $0x8] sm:$0xff] %vm13717_vm1, %v3697_v39  ;;  %vm2346_vm1 = vmand %vm2282_vm9, %vm2298_vm3  ;;  %v13723_v39 = vld [vmem:[#allocation17_spill] sm:$0xff]  ;;  %vm13268_vm9 = vcmp.gt.f32.partialorder %v11548_v54, 0.0 }
 0x776   :  { %3797 = vst.msk [vmem:[#allocation2 + $0x8] sm:$0xff] %vm13718_vm6, %v3766_v34  ;;  %v13724_v17 = vsel %vm10104_vm12, 1.0, %v13723_v39  ;;  %vm13725_vm6 = vcmask 146568   ;;  %vm13727_vm12 = vcmask 162968   ;;  %v4578_v34 = vsel %vm11428_vm4, %v10434_v19, -1e+30 }
 0x777   :  { %4390 = vmax.xlane.f32.xlu0 %v4371_v45  ;;  %4666 = vmax.xlane.f32.xlu1 %v4647_v7  ;;  %v2362_v57 = vsel %vm2346_vm1, 1.0, %v13724_v17  ;;  %v4854_v45 = vsel %vm11428_vm4, %v10437_v22, -1e+30  ;;  %vm13734_vm4 = vcmask 203968  }
 0x778   :  { %v4180_v0 = vpop.xlane.xlu0 %4179  ;;  %v3835_v44 = vpop.xlane.xlu1 %3834  ;;  %vm2394_vm3 = vcmp.gt.f32.partialorder %v2362_v57, 0.0 }
 0x779   :  { %3866 = vst.msk [vmem:[#allocation2 + $0x8] sm:$0xff] %vm13721_vm11, %v3835_v44  ;;  %vm13726_vm11 = vcmask 154768   ;;  %vm11572_vm1 = vmor %vm13268_vm9, %vm2394_vm3  ;;  %vm13736_vm3 = vcmask 220368   ;;  %vm13856_vm9 = vcmask 203968  }
 0x77a   :  { %v2990_v35 = vsel %vm11572_vm1, %v10250_v23, -1e+30  ;;  %v2714_v26 = vsel %vm11572_vm1, %v10223_v29, -1e+30  ;;  %v2852_v32 = vsel %vm11572_vm1, %v10265_v31, -1e+30 }
 0x77b   :  { %4459 = vmax.xlane.f32.xlu0 %v4440_v24  ;;  %4735 = vmax.xlane.f32.xlu1 %v4716_v13  ;;  %v2783_v24 = vsel %vm11572_vm1, %v10247_v59, -1e+30  ;;  %v3197_v57 = vsel %vm11572_vm1, %v10281_v56, -1e+30 }
 0x77c   :  { %v4249_v63 = vpop.xlane.xlu0 %4248  ;;  %v3904_v30 = vpop.xlane.xlu1 %3903 }
 0x77d   :  { %3935 = vst.msk [vmem:[#allocation2 + $0x8] sm:$0xff] %vm13725_vm6, %v3904_v30  ;;  %vm13730_vm6 = vcmask 171168   ;;  %v3128_v30 = vsel %vm11572_vm1, %v10278_v21, -1e+30 }
 0x77f   :  { %4528 = vmax.xlane.f32.xlu0 %v4509_v16  ;;  %4804 = vmax.xlane.f32.xlu1 %v4785_v53  ;;  %v2921_v16 = vsel %vm11572_vm1, %v10226_v5, -1e+30 }
 0x780   :  { %v4594_v12 = vpop.xlane.xlu0 %4593  ;;  %v3973_v60 = vpop.xlane.xlu1 %3972 }
 0x781   :  { %4004 = vst.msk [vmem:[#allocation2 + $0x8] sm:$0xff] %vm13726_vm11, %v3973_v60  ;;  %vm13731_vm11 = vcmask 179368  }
 0x782   :  { %4073 = vst.msk [vmem:[#allocation2 + $0x8] sm:$0xff] %vm13727_vm12, %v4042_v50  ;;  %vm13732_vm12 = vcmask 187568  }
 0x783   :  { %4142 = vst.msk [vmem:[#allocation2 + $0x8] sm:$0xff] %vm13730_vm6, %v4111_v47  ;;  %4597 = vmax.xlane.f32.xlu0 %v4578_v34  ;;  %4873 = vmax.xlane.f32.xlu1 %v4854_v45  ;;  %vm13737_vm6 = vcmask 228568   ;;  %v3266_v34 = vsel %vm11572_vm1, %v10290_v58, -1e+30 }
 0x784   :  { %4211 = vst.msk [vmem:[#allocation2 + $0x8] sm:$0xff] %vm13731_vm11, %v4180_v0  ;;  %v4663_v50 = vpop.xlane.xlu0 %4662  ;;  %v4318_v49 = vpop.xlane.xlu1 %4317  ;;  %v3059_v0 = vsel %vm11572_vm1, %v10268_v48, -1e+30  ;;  %vm13738_vm11 = vcmask 236768  }
 0x785   :  { %4280 = vst.msk [vmem:[#allocation2 + $0x8] sm:$0xff] %vm13732_vm12, %v4249_v63  ;;  %vm13739_vm12 = vcmask 244968  }
 0x786   :  { %4349 = vst.msk [vmem:[#allocation2 + $0x8] sm:$0xff] %vm13733_vm8, %v4318_v49  ;;  %vm13735_vm8 = vcmask 212168   ;;  %v3611_v49 = vsel %vm11572_vm1, %v10305_v10, -1e+30 }
 0x787   :  { %3008 = vmax.xlane.f32.xlu0 %v2990_v35  ;;  %2732 = vmax.xlane.f32.xlu1 %v2714_v26  ;;  %v3335_v35 = vsel %vm11572_vm1, %v10302_v46, -1e+30 }
 0x788   :  { %v4732_v47 = vpop.xlane.xlu0 %4731  ;;  %v4387_v44 = vpop.xlane.xlu1 %4386 }
 0x789   :  { %4418 = vst.msk [vmem:[#allocation2 + $0x8] sm:$0xff] %vm13734_vm4, %v4387_v44  ;;  %vm13740_vm4 = vcmask 253168   ;;  %v3680_v44 = vsel %vm11572_vm1, %v10317_v11, -1e+30 }
 0x78b   :  { %3077 = vmax.xlane.f32.xlu0 %v3059_v0  ;;  %2801 = vmax.xlane.f32.xlu1 %v2783_v24  ;;  %v3404_v0 = vsel %vm11572_vm1, %v10314_v52, -1e+30 }
 0x78c   :  { %v4801_v13 = vpop.xlane.xlu0 %4800  ;;  %v4456_v63 = vpop.xlane.xlu1 %4455 }
 0x78d   :  { %4487 = vst.msk [vmem:[#allocation2 + $0x8] sm:$0xff] %vm13735_vm8, %v4456_v63  ;;  %vm13741_vm8 = vcmask 7168   ;;  %v3749_v63 = vsel %vm11572_vm1, %v10329_v18, -1e+30 }
 0x78f   :  { %3146 = vmax.xlane.f32.xlu0 %v3128_v30  ;;  %2870 = vmax.xlane.f32.xlu1 %v2852_v32  ;;  %v3473_v30 = vsel %vm11572_vm1, %v10326_v15, -1e+30 }
 0x790   :  { %v4870_v39 = vpop.xlane.xlu0 %4869  ;;  %v4525_v17 = vpop.xlane.xlu1 %4524 }
 0x791   :  { %4556 = vst.msk [vmem:[#allocation2 + $0x8] sm:$0xff] %vm13736_vm3, %v4525_v17  ;;  %vm13742_vm3 = vcmask 261368   ;;  %v4094_v17 = vsel %vm11572_vm1, %v10342_v33, -1e+30 }
 0x792   :  { %4625 = vst.msk [vmem:[#allocation2 + $0x8] sm:$0xff] %vm13737_vm6, %v4594_v12  ;;  %v3542_v12 = vsel %vm11572_vm1, %v10293_v55, -1e+30  ;;  %vm13743_vm6 = vcmask 15368  }
 0x793   :  { %4694 = vst.msk [vmem:[#allocation2 + $0x8] sm:$0xff] %vm13738_vm11, %v4663_v50  ;;  %3215 = vmax.xlane.f32.xlu0 %v3197_v57  ;;  %2939 = vmax.xlane.f32.xlu1 %v2921_v16  ;;  %vm13744_vm11 = vcmask 23568   ;;  %v3818_v57 = vsel %vm11572_vm1, %v10339_v14, -1e+30 }
 0x794   :  { %4763 = vst.msk [vmem:[#allocation2 + $0x8] sm:$0xff] %vm13739_vm12, %v4732_v47  ;;  %v2729_v53 = vpop.xlane.xlu0 %2728  ;;  %v3005_v60 = vpop.xlane.xlu1 %3004  ;;  %vm13745_vm12 = vcmask 31768  }
 0x795   :  { %4832 = vst.msk [vmem:[#allocation2 + $0x8] sm:$0xff] %vm13740_vm4, %v4801_v13  ;;  %vm13746_vm4 = vcmask 39968  }
 0x796   :  { %2761 = vst.msk [vmem:[#allocation2] sm:$0xff] %vm13741_vm8, %v2729_v53  ;;  %vm13747_vm8 = vcmask 48168  }
 0x797   :  { %4901 = vst.msk [vmem:[#allocation2 + $0x8] sm:$0xff] %vm13742_vm3, %v4870_v39  ;;  %3560 = vmax.xlane.f32.xlu0 %v3542_v12  ;;  %3284 = vmax.xlane.f32.xlu1 %v3266_v34  ;;  %vm13748_vm3 = vcmask 56368   ;;  %v3887_v12 = vsel %vm11572_vm1, %v10351_v1, -1e+30 }
 0x798   :  { %v2798_v45 = vpop.xlane.xlu0 %2797  ;;  %v3074_v50 = vpop.xlane.xlu1 %3073 }
 0x799   :  { %2830 = vst.msk [vmem:[#allocation2] sm:$0xff] %vm13743_vm6, %v2798_v45  ;;  %vm13749_vm6 = vcmask 64568  }
 0x79b   :  { %3629 = vmax.xlane.f32.xlu0 %v3611_v49  ;;  %3353 = vmax.xlane.f32.xlu1 %v3335_v35  ;;  %v3956_v49 = vsel %vm11572_vm1, %v10363_v51, -1e+30 }
 0x79c   :  { %v2867_v26 = vpop.xlane.xlu0 %2866  ;;  %v3143_v47 = vpop.xlane.xlu1 %3142 }
 0x79d   :  { %2899 = vst.msk [vmem:[#allocation2] sm:$0xff] %vm13744_vm11, %v2867_v26  ;;  %vm13750_vm11 = vcmask 72768  }
 0x79f   :  { %3698 = vmax.xlane.f32.xlu0 %v3680_v44  ;;  %3422 = vmax.xlane.f32.xlu1 %v3404_v0  ;;  %v4025_v44 = vsel %vm11572_vm1, %v10376_v20, -1e+30  ;;  %v13755_v0 = vld [vmem:[#allocation59_spill] sm:$0xff] }
 0x7a0   :  { %v2936_v24 = vpop.xlane.xlu0 %2935  ;;  %v3212_v13 = vpop.xlane.xlu1 %3211 }
 0x7a1   :  { %2968 = vst.msk [vmem:[#allocation2] sm:$0xff] %vm13745_vm12, %v2936_v24  ;;  %vm13751_vm12 = vcmask 80968   ;;  %v13756_v24 = vld [vmem:[#allocation44_spill] sm:$0xff] }
 0x7a2   :  { %3037 = vst.msk [vmem:[#allocation2] sm:$0xff] %vm13746_vm4, %v3005_v60  ;;  %v4163_v60 = vsel %vm11572_vm1, %v10354_v40, -1e+30  ;;  %vm13752_vm4 = vcmask 89168  }
 0x7a3   :  { %3106 = vst.msk [vmem:[#allocation2] sm:$0xff] %vm13747_vm8, %v3074_v50  ;;  %3767 = vmax.xlane.f32.xlu0 %v3749_v63  ;;  %3491 = vmax.xlane.f32.xlu1 %v3473_v30  ;;  %v4232_v50 = vsel %vm11572_vm1, %v10366_v6, -1e+30  ;;  %vm13753_vm8 = vcmask 97368   ;;  %v4715_v30 = vsel %vm11572_vm1, %v10404_v3, -1e+30 }
 0x7a4   :  { %3175 = vst.msk [vmem:[#allocation2] sm:$0xff] %vm13748_vm3, %v3143_v47  ;;  %v3281_v32 = vpop.xlane.xlu0 %3280  ;;  %v3557_v39 = vpop.xlane.xlu1 %3556  ;;  %vm13754_vm3 = vcmask 105568   ;;  %v4301_v47 = vsel %vm11572_vm1, %v10379_v37, -1e+30 }
 0x7a5   :  { %3244 = vst.msk [vmem:[#allocation2] sm:$0xff] %vm13749_vm6, %v3212_v13  ;;  %vm2285_vm6 = vcmp.le.f32.partialorder %v13756_v24, %v13755_v0 }
 0x7a6   :  { %3313 = vst.msk [vmem:[#allocation2] sm:$0xff] %vm13750_vm11, %v3281_v32  ;;  %vm2301_vm11 = vcmp.lt.f32.partialorder %v13755_v0, 5e+29  ;;  %v4370_v32 = vsel %vm11572_vm1, %v10388_v38, -1e+30 }
 0x7a7   :  { %4112 = vmax.xlane.f32.xlu0 %v4094_v17  ;;  %3836 = vmax.xlane.f32.xlu1 %v3818_v57  ;;  %v11689_v57 = vld [vmem:[%s13117_s1 + $0x28] sm:$0xff] }
 0x7a8   :  { %v3350_v16 = vpop.xlane.xlu0 %3349  ;;  %v3626_v53 = vpop.xlane.xlu1 %3625 }
 0x7a9   :  { %3382 = vst.msk [vmem:[#allocation2] sm:$0xff] %vm13751_vm12, %v3350_v16  ;;  %vm13757_vm12 = vcmask 113768   ;;  %v13761_v16 = vld [vmem:[#allocation43_spill] sm:$0xff] }
 0x7ab   :  { %4181 = vmax.xlane.f32.xlu0 %v4163_v60  ;;  %3905 = vmax.xlane.f32.xlu1 %v3887_v12 }
 0x7ac   :  { %v3419_v34 = vpop.xlane.xlu0 %3418  ;;  %v3695_v45 = vpop.xlane.xlu1 %3694 }
 0x7ad   :  { %3451 = vst.msk [vmem:[#allocation2] sm:$0xff] %vm13752_vm4, %v3419_v34  ;;  %vm13758_vm4 = vcmask 121968   ;;  %v4784_v34 = vsel %vm11572_vm1, %v10416_v41, -1e+30 }
 0x7af   :  { %4250 = vmax.xlane.f32.xlu0 %v4232_v50  ;;  %3974 = vmax.xlane.f32.xlu1 %v3956_v49 }
 0x7b0   :  { %v3488_v35 = vpop.xlane.xlu0 %3487  ;;  %v3764_v26 = vpop.xlane.xlu1 %3763 }
 0x7b1   :  { %3520 = vst.msk [vmem:[#allocation2] sm:$0xff] %vm13753_vm8, %v3488_v35  ;;  %vm13759_vm8 = vcmask 130168   ;;  %v4853_v35 = vsel %vm11572_vm1, %v10437_v22, -1e+30 }
 0x7b2   :  { %3589 = vst.msk [vmem:[#allocation2] sm:$0xff] %vm13754_vm3, %v3557_v39  ;;  %vm2349_vm3 = vmand %vm2285_vm6, %vm2301_vm11  ;;  %vm13762_vm6 = vnez %v13761_v16  ;;  %vm13266_vm11 = vcmp.gt.f32.partialorder %v11689_v57, 0.0 }
 0x7b3   :  { %3658 = vst.msk [vmem:[#allocation2] sm:$0xff] %vm13757_vm12, %v3626_v53  ;;  %4319 = vmax.xlane.f32.xlu0 %v4301_v47  ;;  %4043 = vmax.xlane.f32.xlu1 %v4025_v44  ;;  %v13763_v53 = vld [vmem:[#allocation24_spill] sm:$0xff] }
 0x7b4   :  { %3727 = vst.msk [vmem:[#allocation2] sm:$0xff] %vm13758_vm4, %v3695_v45  ;;  %v3833_v13 = vpop.xlane.xlu0 %3832  ;;  %v4109_v63 = vpop.xlane.xlu1 %4108  ;;  %v13764_v60 = vsel %vm13762_vm6, 1.0, %v13763_v53  ;;  %v4439_v45 = vsel %vm11572_vm1, %v10401_v27, -1e+30  ;;  %vm13766_vm4 = vcmask 154768   ;;  %vm13770_vm6 = vcmask 171168  }
 0x7b5   :  { %3796 = vst.msk [vmem:[#allocation2] sm:$0xff] %vm13759_vm8, %v3764_v26  ;;  %v2365_v12 = vsel %vm2349_vm3, 1.0, %v13764_v60  ;;  %v4508_v26 = vsel %vm11572_vm1, %v10413_v42, -1e+30  ;;  %vm13769_vm3 = vcmask 162968  }
 0x7b6   :  { %3865 = vst.msk [vmem:[#allocation2] sm:$0xff] %vm13760_vm15, %v3833_v13  ;;  %vm13765_vm15 = vcmask 146568   ;;  %vm2397_vm12 = vcmp.gt.f32.partialorder %v2365_v12, 0.0  ;;  %v4577_v13 = vsel %vm11572_vm1, %v10434_v19, -1e+30 }
 0x7b7   :  { %4733 = vmax.xlane.f32.xlu0 %v4715_v30  ;;  %4388 = vmax.xlane.f32.xlu1 %v4370_v32  ;;  %vm11712_vm8 = vmor %vm13266_vm11, %vm2397_vm12  ;;  %vm13772_vm12 = vcmask 187568  }
 0x7b8   :  { %v3902_v39 = vpop.xlane.xlu0 %3901  ;;  %v4178_v17 = vpop.xlane.xlu1 %4177  ;;  %v2924_v24 = vsel %vm11712_vm8, %v10226_v5, -1e+30  ;;  %v3062_v53 = vsel %vm11712_vm8, %v10268_v48, -1e+30  ;;  %v2717_v60 = vsel %vm11712_vm8, %v10223_v29, -1e+30 }
 0x7b9   :  { %3934 = vst.msk [vmem:[#allocation2] sm:$0xff] %vm13765_vm15, %v3902_v39  ;;  %vm13771_vm15 = vcmask 179368   ;;  %v4646_v39 = vsel %vm11572_vm1, %v10391_v25, -1e+30  ;;  %v3131_v7 = vsel %vm11712_vm8, %v10278_v21, -1e+30 }
 0x7ba   :  { %vm13777_vm1 = vcmask 228568  }
 0x7bb   :  { %4802 = vmax.xlane.f32.xlu0 %v4784_v34  ;;  %4457 = vmax.xlane.f32.xlu1 %v4439_v45  ;;  %v2786_v45 = vsel %vm11712_vm8, %v10247_v59, -1e+30 }
 0x7bc   :  { %v3971_v50 = vpop.xlane.xlu0 %3970  ;;  %v4247_v49 = vpop.xlane.xlu1 %4246 }
 0x7bd   :  { %4003 = vst.msk [vmem:[#allocation2] sm:$0xff] %vm13766_vm4, %v3971_v50  ;;  %vm13773_vm4 = vcmask 195768  }
 0x7bf   :  { %4871 = vmax.xlane.f32.xlu0 %v4853_v35  ;;  %4526 = vmax.xlane.f32.xlu1 %v4508_v26  ;;  %v3476_v35 = vsel %vm11712_vm8, %v10326_v15, -1e+30  ;;  %v2855_v26 = vsel %vm11712_vm8, %v10265_v31, -1e+30 }
 0x7c0   :  { %v4040_v44 = vpop.xlane.xlu0 %4039  ;;  %v4316_v0 = vpop.xlane.xlu1 %4315 }
 0x7c1   :  { %4072 = vst.msk [vmem:[#allocation2] sm:$0xff] %vm13769_vm3, %v4040_v44  ;;  %vm13774_vm3 = vcmask 203968  }
 0x7c2   :  { %4141 = vst.msk [vmem:[#allocation2] sm:$0xff] %vm13770_vm6, %v4109_v63  ;;  %v2993_v63 = vsel %vm11712_vm8, %v10250_v23, -1e+30  ;;  %vm13775_vm6 = vcmask 212168  }
 0x7c3   :  { %4210 = vst.msk [vmem:[#allocation2] sm:$0xff] %vm13771_vm15, %v4178_v17  ;;  %2945 = vmax.xlane.f32.xlu0 %v2924_v24  ;;  %4595 = vmax.xlane.f32.xlu1 %v4577_v13  ;;  %vm13776_vm15 = vcmask 220368   ;;  %v3545_v24 = vsel %vm11712_vm8, %v10293_v55, -1e+30  ;;  %v3200_v13 = vsel %vm11712_vm8, %v10281_v56, -1e+30 }
 0x7c4   :  { %4279 = vst.msk [vmem:[#allocation2] sm:$0xff] %vm13772_vm12, %v4247_v49  ;;  %v4385_v30 = vpop.xlane.xlu0 %4384  ;;  %v4661_v32 = vpop.xlane.xlu1 %4660  ;;  %vm13778_vm12 = vcmask 236768  }
 0x7c5   :  { %4348 = vst.msk [vmem:[#allocation2] sm:$0xff] %vm13773_vm4, %v4316_v0  ;;  %vm13779_vm4 = vcmask 244968  }
 0x7c6   :  { %4417 = vst.msk [vmem:[#allocation2] sm:$0xff] %vm13774_vm3, %v4385_v30  ;;  %vm13780_vm3 = vcmask 253168   ;;  %v8023_v30 = vld [vmem:[#allocation8] ss:$0 sm:$0xff] }
 0x7c7   :  { %3014 = vmax.xlane.f32.xlu0 %v2993_v63  ;;  %4664 = vmax.xlane.f32.xlu1 %v4646_v39 }
 0x7c8   :  { %v4454_v17 = vpop.xlane.xlu0 %4453  ;;  %v4730_v16 = vpop.xlane.xlu1 %4729 }
 0x7c9   :  { %4486 = vst.msk [vmem:[#allocation2] sm:$0xff] %vm13775_vm6, %v4454_v17  ;;  %vm13781_vm6 = vcmask 261368  }
 0x7cb   :  { %3083 = vmax.xlane.f32.xlu0 %v3062_v53  ;;  %2738 = vmax.xlane.f32.xlu1 %v2717_v60  ;;  %v3614_v60 = vsel %vm11712_vm8, %v10305_v10, -1e+30 }
 0x7cc   :  { %v4523_v12 = vpop.xlane.xlu0 %4522  ;;  %v4799_v34 = vpop.xlane.xlu1 %4798 }
 0x7cd   :  { %4555 = vst.msk [vmem:[#allocation2] sm:$0xff] %vm13776_vm15, %v4523_v12  ;;  %vm13782_vm15 = vcmask 7168   ;;  %v3269_v12 = vsel %vm11712_vm8, %v10290_v58, -1e+30 }
 0x7cf   :  { %3152 = vmax.xlane.f32.xlu0 %v3131_v7  ;;  %2807 = vmax.xlane.f32.xlu1 %v2786_v45 }
 0x7d0   :  { %v4592_v50 = vpop.xlane.xlu0 %4591  ;;  %v4868_v49 = vpop.xlane.xlu1 %4867 }
 0x7d1   :  { %4624 = vst.msk [vmem:[#allocation2] sm:$0xff] %vm13777_vm1, %v4592_v50  ;;  %vm13785_vm1 = vcmask 15368  }
 0x7d2   :  { %4693 = vst.msk [vmem:[#allocation2] sm:$0xff] %vm13778_vm12, %v4661_v32  ;;  %v13783_v32 = vld [vmem:[#allocation19_spill] sm:$0xff]  ;;  %vm13786_vm12 = vcmask 23568  }
 0x7d3   :  { %4762 = vst.msk [vmem:[#allocation2] sm:$0xff] %vm13779_vm4, %v4730_v16  ;;  %3497 = vmax.xlane.f32.xlu0 %v3476_v35  ;;  %2876 = vmax.xlane.f32.xlu1 %v2855_v26  ;;  %v5009_v63 = vadd.f32 %v8023_v30, %v13783_v32  ;;  %v13784_v16 = vld [vmem:[#allocation23_spill] sm:$0xff]  ;;  %vm5146_vm4 = vcmask 261120  }
 0x7d4   :  { %4831 = vst.msk [vmem:[#allocation2] sm:$0xff] %vm13780_vm3, %v4799_v34  ;;  %v2735_v44 = vpop.xlane.xlu0 %2734  ;;  %v2942_v0 = vpop.xlane.xlu1 %2941  ;;  %v5014_v53 = vadd.f32 %v8023_v30, %v13784_v16  ;;  %v8024_v34 = vld [vmem:[%s13120_s4] ss:$0 sm:$0xff]  ;;  %v4917_v35 = vld [vmem:[#allocation2 + $0x8] sm:$0xff]  ;;  %vm13787_vm3 = vcmask 31768  }
 0x7d5   :  { %4900 = vst.msk [vmem:[#allocation2] sm:$0xff] %vm13781_vm6, %v4868_v49  ;;  %v5110_v7 = vadd.f32 %v8024_v34, %v5009_v63  ;;  %vm13788_vm6 = vcmask 39968   ;;  %v4028_v63 = vsel %vm11712_vm8, %v10376_v20, -1e+30 }
 0x7d6   :  { %2764 = vst.msk [vmem:[#allocation2 + $0x18] sm:$0xff] %vm13782_vm15, %v2735_v44  ;;  %v5111_v26 = vadd.f32 %v8024_v34, %v5014_v53  ;;  %vm13789_vm15 = vcmask 48168   ;;  %v4097_v53 = vsel %vm11712_vm8, %v10342_v33, -1e+30 }
 0x7d7   :  { %3566 = vmax.xlane.f32.xlu0 %v3545_v24  ;;  %3221 = vmax.xlane.f32.xlu1 %v3200_v13  ;;  %v3683_v24 = vsel %vm11712_vm8, %v10317_v11, -1e+30  ;;  %v3338_v13 = vsel %vm11712_vm8, %v10302_v46, -1e+30 }
 0x7d8   :  { %v2804_v39 = vpop.xlane.xlu0 %2803  ;;  %v3011_v17 = vpop.xlane.xlu1 %3010  ;;  %v11789_v30 = vadd.f32 %v5111_v26, %v4917_v35  ;;  %v4235_v35 = vsel %vm11712_vm8, %v10366_v6, -1e+30  ;;  %v3890_v26 = vsel %vm11712_vm8, %v10351_v1, -1e+30 }
 0x7d9   :  { %2833 = vst.msk [vmem:[#allocation2 + $0x18] sm:$0xff] %vm13785_vm1, %v2804_v39  ;;  %vm13790_vm1 = vcmask 56368   ;;  %v3407_v39 = vsel %vm11712_vm8, %v10314_v52, -1e+30 }
 0x7db   :  { %3635 = vmax.xlane.f32.xlu0 %v3614_v60  ;;  %3290 = vmax.xlane.f32.xlu1 %v3269_v12  ;;  %v3752_v60 = vsel %vm11712_vm8, %v10329_v18, -1e+30 }
 0x7dc   :  { %v2873_v45 = vpop.xlane.xlu0 %2872  ;;  %v3080_v50 = vpop.xlane.xlu1 %3079  ;;  %v4916_v49 = vld [vmem:[#allocation2] sm:$0xff] }
 0x7dd   :  { %2902 = vst.msk [vmem:[#allocation2 + $0x18] sm:$0xff] %vm13786_vm12, %v2873_v45  ;;  %v11779_v44 = vadd.f32 %v5110_v7, %v4916_v49  ;;  %vm13791_vm12 = vcmask 64568   ;;  %v4166_v7 = vsel %vm11712_vm8, %v10354_v40, -1e+30  ;;  %v3821_v45 = vsel %vm11712_vm8, %v10339_v14, -1e+30 }
 0x7de   :  { %2971 = vst.msk [vmem:[#allocation2 + $0x18] sm:$0xff] %vm13787_vm3, %v2942_v0  ;;  %vm13792_vm3 = vcmask 72768  }
 0x7df   :  { %3040 = vst.msk [vmem:[#allocation2 + $0x18] sm:$0xff] %vm13788_vm6, %v3011_v17  ;;  %3704 = vmax.xlane.f32.xlu0 %v3683_v24  ;;  %3359 = vmax.xlane.f32.xlu1 %v3338_v13  ;;  %vm13793_vm6 = vcmask 80968  }
 0x7e0   :  { %3109 = vst.msk [vmem:[#allocation2 + $0x18] sm:$0xff] %vm13789_vm15, %v3080_v50  ;;  %7215 = vmatprep.mubr.msk.f32.mxu1 %vm5146_vm4, %v11779_v44  ;;  %v3218_v0 = vpop.xlane.xlu0 %3217  ;;  %v3149_v32 = vpop.xlane.xlu1 %3148  ;;  %vm13794_vm15 = vcmask 89168  }
 0x7e1   :  { %7216 = vmatmul.mubr.msk.f32.vlgmr.msra.gmra.mrb[26].mxu1 %vm5146_vm4, %v11789_v30  ;;  %3178 = vst.msk [vmem:[#allocation2 + $0x18] sm:$0xff] %vm13790_vm1, %v3149_v32  ;;  %vm13795_vm1 = vcmask 97368   ;;  %v3959_v32 = vsel %vm11712_vm8, %v10363_v51, -1e+30 }
 0x7e2   :  { %3247 = vst.msk [vmem:[#allocation2 + $0x18] sm:$0xff] %vm13791_vm12, %v3218_v0  ;;  %vm13796_vm12 = vcmask 105568   ;;  %v4304_v0 = vsel %vm11712_vm8, %v10379_v37, -1e+30 }
 0x7e3   :  { %4049 = vmax.xlane.f32.xlu0 %v4028_v63  ;;  %3428 = vmax.xlane.f32.xlu1 %v3407_v39 }
 0x7e4   :  { %v3287_v17 = vpop.xlane.xlu0 %3286  ;;  %v3494_v16 = vpop.xlane.xlu1 %3493 }
 0x7e5   :  { %3316 = vst.msk [vmem:[#allocation2 + $0x18] sm:$0xff] %vm13792_vm3, %v3287_v17  ;;  %vm13797_vm3 = vcmask 113768   ;;  %v4649_v17 = vsel %vm11712_vm8, %v10391_v25, -1e+30 }
 0x7e7   :  { %4118 = vmax.xlane.f32.xlu0 %v4097_v53  ;;  %3773 = vmax.xlane.f32.xlu1 %v3752_v60  ;;  %v13801_v53 = vld [vmem:[#allocation60_spill] sm:$0xff]  ;;  %v13802_v60 = vld [vmem:[#allocation46_spill] sm:$0xff] }
 0x7e8   :  { %v3356_v12 = vpop.xlane.xlu0 %3355  ;;  %v3563_v34 = vpop.xlane.xlu1 %3562 }
 0x7e9   :  { %3385 = vst.msk [vmem:[#allocation2 + $0x18] sm:$0xff] %vm13793_vm6, %v3356_v12  ;;  %vm13798_vm6 = vcmask 121968  }
 0x7eb   :  { %4187 = vmax.xlane.f32.xlu0 %v4166_v7  ;;  %3842 = vmax.xlane.f32.xlu1 %v3821_v45  ;;  %v4718_v7 = vsel %vm11712_vm8, %v10404_v3, -1e+30  ;;  %v4442_v45 = vsel %vm11712_vm8, %v10401_v27, -1e+30 }
 0x7ec   :  { %v3425_v50 = vpop.xlane.xlu0 %3424  ;;  %v3632_v49 = vpop.xlane.xlu1 %3631 }
 0x7ed   :  { %3454 = vst.msk [vmem:[#allocation2 + $0x18] sm:$0xff] %vm13794_vm15, %v3425_v50  ;;  %vm13799_vm15 = vcmask 130168  }
 0x7ee   :  { %3523 = vst.msk [vmem:[#allocation2 + $0x18] sm:$0xff] %vm13795_vm1, %v3494_v16  ;;  %vm13800_vm1 = vcmask 138368   ;;  %v4373_v16 = vsel %vm11712_vm8, %v10388_v38, -1e+30 }
 0x7ef   :  { %3592 = vst.msk [vmem:[#allocation2 + $0x18] sm:$0xff] %vm13796_vm12, %v3563_v34  ;;  %4256 = vmax.xlane.f32.xlu0 %v4235_v35  ;;  %3911 = vmax.xlane.f32.xlu1 %v3890_v26  ;;  %vm2284_vm12 = vcmp.le.f32.partialorder %v13802_v60, %v13801_v53  ;;  %v11856_v35 = vld [vmem:[%s13117_s1 + $0x20] sm:$0xff]  ;;  %v13804_v26 = vld [vmem:[#allocation45_spill] sm:$0xff] }
 0x7f0   :  { %3661 = vst.msk [vmem:[#allocation2 + $0x18] sm:$0xff] %vm13797_vm3, %v3632_v49  ;;  %v3770_v24 = vpop.xlane.xlu0 %3769  ;;  %v3701_v13 = vpop.xlane.xlu1 %3700  ;;  %vm2300_vm3 = vcmp.lt.f32.partialorder %v13801_v53, 5e+29  ;;  %vm13267_vm11 = vcmp.gt.f32.partialorder %v11856_v35, 0.0  ;;  %v4580_v53 = vsel %vm11712_vm8, %v10434_v19, -1e+30 }
 0x7f1   :  { %3730 = vst.msk [vmem:[#allocation2 + $0x18] sm:$0xff] %vm13798_vm6, %v3701_v13  ;;  %vm13803_vm6 = vcmask 146568  }
 0x7f2   :  { %3799 = vst.msk [vmem:[#allocation2 + $0x18] sm:$0xff] %vm13799_vm15, %v3770_v24  ;;  %vm2348_vm15 = vmand %vm2284_vm12, %vm2300_vm3  ;;  %v13806_v24 = vld [vmem:[#allocation18_spill] sm:$0xff]  ;;  %vm13808_vm12 = vcmask 154768   ;;  %vm13809_vm3 = vcmask 162968  }
 0x7f3   :  { %4325 = vmax.xlane.f32.xlu0 %v4304_v0  ;;  %3980 = vmax.xlane.f32.xlu1 %v3959_v32  ;;  %v4787_v32 = vsel %vm11712_vm8, %v10416_v41, -1e+30 }
 0x7f4   :  { %v3839_v63 = vpop.xlane.xlu0 %3838  ;;  %v4046_v39 = vpop.xlane.xlu1 %4045 }
 0x7f5   :  { %3868 = vst.msk [vmem:[#allocation2 + $0x18] sm:$0xff] %vm13800_vm1, %v3839_v63  ;;  %vm13805_vm1 = vnez %v13804_v26  ;;  %v4511_v63 = vsel %vm11712_vm8, %v10413_v42, -1e+30 }
 0x7f6   :  { %v13807_v13 = vsel %vm13805_vm1, 1.0, %v13806_v24 }
 0x7f7   :  { %4670 = vmax.xlane.f32.xlu0 %v4649_v17  ;;  %4394 = vmax.xlane.f32.xlu1 %v4373_v16  ;;  %v2364_v0 = vsel %vm2348_vm15, 1.0, %v13807_v13  ;;  %vm13811_vm15 = vcmask 179368  }
 0x7f8   :  { %v3908_v12 = vpop.xlane.xlu0 %3907  ;;  %v4115_v34 = vpop.xlane.xlu1 %4114  ;;  %vm2396_vm1 = vcmp.gt.f32.partialorder %v2364_v0, 0.0 }
 0x7f9   :  { %3937 = vst.msk [vmem:[#allocation2 + $0x18] sm:$0xff] %vm13803_vm6, %v3908_v12  ;;  %vm13810_vm6 = vcmask 171168  }
 0x7fb   :  { %4739 = vmax.xlane.f32.xlu0 %v4718_v7  ;;  %4463 = vmax.xlane.f32.xlu1 %v4442_v45 }
 0x7fc   :  { %v3977_v50 = vpop.xlane.xlu0 %3976  ;;  %v4184_v49 = vpop.xlane.xlu1 %4183 }
 0x7fd   :  { %4006 = vst.msk [vmem:[#allocation2 + $0x18] sm:$0xff] %vm13808_vm12, %v3977_v50  ;;  %vm13812_vm12 = vcmask 187568  }
 0x7fe   :  { %4075 = vst.msk [vmem:[#allocation2 + $0x18] sm:$0xff] %vm13809_vm3, %v4046_v39  ;;  %vm13813_vm3 = vcmask 195768   ;;  %v4856_v39 = vsel %vm11712_vm8, %v10437_v22, -1e+30  ;;  %vm13817_vm8 = vcmask 212168  }
 0x7ff   :  { %4144 = vst.msk [vmem:[#allocation2 + $0x18] sm:$0xff] %vm13810_vm6, %v4115_v34  ;;  %4808 = vmax.xlane.f32.xlu0 %v4787_v32  ;;  %4532 = vmax.xlane.f32.xlu1 %v4511_v63  ;;  %vm11883_vm6 = vmor %vm13267_vm11, %vm2396_vm1  ;;  %vm13818_vm1 = vcmask 220368   ;;  %vm13849_vm11 = vcmask 162968  }
 0x800   :  { %4213 = vst.msk [vmem:[#allocation2 + $0x18] sm:$0xff] %vm13811_vm15, %v4184_v49  ;;  %v4322_v17 = vpop.xlane.xlu0 %4321  ;;  %v4253_v16 = vpop.xlane.xlu1 %4252  ;;  %vm13816_vm15 = vcmask 203968   ;;  %v2716_v7 = vsel %vm11883_vm6, %v10223_v29, -1e+30  ;;  %v2992_v47 = vsel %vm11883_vm6, %v10250_v23, -1e+30 }
 0x801   :  { %4282 = vst.msk [vmem:[#allocation2 + $0x18] sm:$0xff] %vm13812_vm12, %v4253_v16  ;;  %v2785_v49 = vsel %vm11883_vm6, %v10247_v59, -1e+30  ;;  %v3061_v26 = vsel %vm11883_vm6, %v10268_v48, -1e+30  ;;  %vm13819_vm12 = vcmask 228568  }
 0x802   :  { %4351 = vst.msk [vmem:[#allocation2 + $0x18] sm:$0xff] %vm13813_vm3, %v4322_v17  ;;  %v2854_v0 = vsel %vm11883_vm6, %v10265_v31, -1e+30  ;;  %v3130_v32 = vsel %vm11883_vm6, %v10278_v21, -1e+30  ;;  %vm13820_vm3 = vcmask 236768  }
 0x803   :  { %4877 = vmax.xlane.f32.xlu0 %v4856_v39  ;;  %4601 = vmax.xlane.f32.xlu1 %v4580_v53  ;;  %v2923_v16 = vsel %vm11883_vm6, %v10226_v5, -1e+30  ;;  %v3199_v39 = vsel %vm11883_vm6, %v10281_v56, -1e+30 }
 0x804   :  { %v4391_v12 = vpop.xlane.xlu0 %4390  ;;  %v4667_v34 = vpop.xlane.xlu1 %4666 }
 0x805   :  { %4420 = vst.msk [vmem:[#allocation2 + $0x18] sm:$0xff] %vm13816_vm15, %v4391_v12  ;;  %vm13821_vm15 = vcmask 244968  }
 0x807   :  { %2736 = vmax.xlane.f32.xlu0 %v2716_v7  ;;  %3012 = vmax.xlane.f32.xlu1 %v2992_v47  ;;  %v3544_v7 = vsel %vm11883_vm6, %v10293_v55, -1e+30 }
 0x808   :  { %v4460_v45 = vpop.xlane.xlu0 %4459  ;;  %v4736_v50 = vpop.xlane.xlu1 %4735 }
 0x809   :  { %4489 = vst.msk [vmem:[#allocation2 + $0x18] sm:$0xff] %vm13817_vm8, %v4460_v45  ;;  %vm13822_vm8 = vcmask 253168  }
 0x80b   :  { %2805 = vmax.xlane.f32.xlu0 %v2785_v49  ;;  %3081 = vmax.xlane.f32.xlu1 %v3061_v26  ;;  %v3613_v49 = vsel %vm11883_vm6, %v10305_v10, -1e+30 }
 0x80c   :  { %v4529_v24 = vpop.xlane.xlu0 %4528  ;;  %v4805_v13 = vpop.xlane.xlu1 %4804 }
 0x80d   :  { %4558 = vst.msk [vmem:[#allocation2 + $0x18] sm:$0xff] %vm13818_vm1, %v4529_v24  ;;  %vm13823_vm1 = vcmask 261368  }
 0x80f   :  { %2874 = vmax.xlane.f32.xlu0 %v2854_v0  ;;  %3150 = vmax.xlane.f32.xlu1 %v3130_v32  ;;  %v3682_v0 = vsel %vm11883_vm6, %v10317_v11, -1e+30 }
 0x810   :  { %v4598_v63 = vpop.xlane.xlu0 %4597  ;;  %v4874_v17 = vpop.xlane.xlu1 %4873 }
 0x811   :  { %4627 = vst.msk [vmem:[#allocation2 + $0x18] sm:$0xff] %vm13819_vm12, %v4598_v63  ;;  %vm13824_vm12 = vcmask 7168  }
 0x812   :  { %4696 = vst.msk [vmem:[#allocation2 + $0x18] sm:$0xff] %vm13820_vm3, %v4667_v34  ;;  %v3268_v34 = vsel %vm11883_vm6, %v10290_v58, -1e+30  ;;  %vm13825_vm3 = vcmask 15368  }
 0x813   :  { %4765 = vst.msk [vmem:[#allocation2 + $0x18] sm:$0xff] %vm13821_vm15, %v4736_v50  ;;  %2943 = vmax.xlane.f32.xlu0 %v2923_v16  ;;  %3219 = vmax.xlane.f32.xlu1 %v3199_v39  ;;  %v3337_v50 = vsel %vm11883_vm6, %v10302_v46, -1e+30  ;;  %vm13826_vm15 = vcmask 23568   ;;  %v3751_v16 = vsel %vm11883_vm6, %v10329_v18, -1e+30 }
 0x814   :  { %4834 = vst.msk [vmem:[#allocation2 + $0x18] sm:$0xff] %vm13822_vm8, %v4805_v13  ;;  %v3009_v53 = vpop.xlane.xlu0 %3008  ;;  %v2733_v12 = vpop.xlane.xlu1 %2732  ;;  %v3406_v13 = vsel %vm11883_vm6, %v10314_v52, -1e+30  ;;  %vm13827_vm8 = vcmask 31768  }
 0x815   :  { %4903 = vst.msk [vmem:[#allocation2 + $0x18] sm:$0xff] %vm13823_vm1, %v4874_v17  ;;  %vm13828_vm1 = vcmask 39968   ;;  %v3475_v17 = vsel %vm11883_vm6, %v10326_v15, -1e+30 }
 0x816   :  { %2763 = vst.msk [vmem:[#allocation2 + $0x10] sm:$0xff] %vm13824_vm12, %v2733_v12  ;;  %vm13829_vm12 = vcmask 48168  }
 0x817   :  { %3288 = vmax.xlane.f32.xlu0 %v3268_v34  ;;  %3564 = vmax.xlane.f32.xlu1 %v3544_v7  ;;  %v4096_v34 = vsel %vm11883_vm6, %v10342_v33, -1e+30 }
 0x818   :  { %v3078_v47 = vpop.xlane.xlu0 %3077  ;;  %v2802_v45 = vpop.xlane.xlu1 %2801 }
 0x819   :  { %2832 = vst.msk [vmem:[#allocation2 + $0x10] sm:$0xff] %vm13825_vm3, %v2802_v45  ;;  %vm13830_vm3 = vcmask 56368   ;;  %v3889_v45 = vsel %vm11883_vm6, %v10351_v1, -1e+30 }
 0x81b   :  { %3357 = vmax.xlane.f32.xlu0 %v3337_v50  ;;  %3633 = vmax.xlane.f32.xlu1 %v3613_v49  ;;  %v4165_v50 = vsel %vm11883_vm6, %v10354_v40, -1e+30 }
 0x81c   :  { %v3147_v26 = vpop.xlane.xlu0 %3146  ;;  %v2871_v24 = vpop.xlane.xlu1 %2870 }
 0x81d   :  { %2901 = vst.msk [vmem:[#allocation2 + $0x10] sm:$0xff] %vm13826_vm15, %v2871_v24  ;;  %vm13831_vm15 = vcmask 64568   ;;  %v3958_v24 = vsel %vm11883_vm6, %v10363_v51, -1e+30 }
 0x81f   :  { %3426 = vmax.xlane.f32.xlu0 %v3406_v13  ;;  %3702 = vmax.xlane.f32.xlu1 %v3682_v0  ;;  %v4234_v13 = vsel %vm11883_vm6, %v10366_v6, -1e+30 }
 0x820   :  { %v3216_v32 = vpop.xlane.xlu0 %3215  ;;  %v2940_v63 = vpop.xlane.xlu1 %2939 }
 0x821   :  { %2970 = vst.msk [vmem:[#allocation2 + $0x10] sm:$0xff] %vm13827_vm8, %v2940_v63  ;;  %vm13832_vm8 = vcmask 72768   ;;  %v4027_v63 = vsel %vm11883_vm6, %v10376_v20, -1e+30 }
 0x822   :  { %3039 = vst.msk [vmem:[#allocation2 + $0x10] sm:$0xff] %vm13828_vm1, %v3009_v53  ;;  %v3820_v53 = vsel %vm11883_vm6, %v10339_v14, -1e+30  ;;  %vm13833_vm1 = vcmask 80968  }
 0x823   :  { %3108 = vst.msk [vmem:[#allocation2 + $0x10] sm:$0xff] %vm13829_vm12, %v3078_v47  ;;  %3495 = vmax.xlane.f32.xlu0 %v3475_v17  ;;  %3771 = vmax.xlane.f32.xlu1 %v3751_v16  ;;  %vm13834_vm12 = vcmask 89168   ;;  %v4303_v17 = vsel %vm11883_vm6, %v10379_v37, -1e+30 }
 0x824   :  { %3177 = vst.msk [vmem:[#allocation2 + $0x10] sm:$0xff] %vm13830_vm3, %v3147_v26  ;;  %v3561_v39 = vpop.xlane.xlu0 %3560  ;;  %v3285_v12 = vpop.xlane.xlu1 %3284  ;;  %vm13835_vm3 = vcmask 97368  }
 0x825   :  { %3246 = vst.msk [vmem:[#allocation2 + $0x10] sm:$0xff] %vm13831_vm15, %v3216_v32  ;;  %vm13836_vm15 = vcmask 105568  }
 0x826   :  { %3315 = vst.msk [vmem:[#allocation2 + $0x10] sm:$0xff] %vm13832_vm8, %v3285_v12  ;;  %vm13837_vm8 = vcmask 113768  }
 0x827   :  { %3840 = vmax.xlane.f32.xlu0 %v3820_v53  ;;  %4116 = vmax.xlane.f32.xlu1 %v4096_v34  ;;  %v4372_v53 = vsel %vm11883_vm6, %v10388_v38, -1e+30  ;;  %v13841_v34 = vld [vmem:[#allocation61_spill] sm:$0xff] }
 0x828   :  { %v3630_v7 = vpop.xlane.xlu0 %3629  ;;  %v3354_v47 = vpop.xlane.xlu1 %3353 }
 0x829   :  { %3384 = vst.msk [vmem:[#allocation2 + $0x10] sm:$0xff] %vm13833_vm1, %v3354_v47  ;;  %vm13838_vm1 = vcmask 121968  }
 0x82b   :  { %3909 = vmax.xlane.f32.xlu0 %v3889_v45  ;;  %4185 = vmax.xlane.f32.xlu1 %v4165_v50  ;;  %v4510_v50 = vsel %vm11883_vm6, %v10413_v42, -1e+30 }
 0x82c   :  { %v3699_v49 = vpop.xlane.xlu0 %3698  ;;  %v3423_v26 = vpop.xlane.xlu1 %3422 }
 0x82d   :  { %3453 = vst.msk [vmem:[#allocation2 + $0x10] sm:$0xff] %vm13834_vm12, %v3423_v26  ;;  %vm13839_vm12 = vcmask 130168  }
 0x82f   :  { %3978 = vmax.xlane.f32.xlu0 %v3958_v24  ;;  %4254 = vmax.xlane.f32.xlu1 %v4234_v13  ;;  %v12003_v13 = vld [vmem:[%s13117_s1 + $0x38] sm:$0xff] }
 0x830   :  { %v3768_v0 = vpop.xlane.xlu0 %3767  ;;  %v3492_v32 = vpop.xlane.xlu1 %3491 }
 0x831   :  { %3522 = vst.msk [vmem:[#allocation2 + $0x10] sm:$0xff] %vm13835_vm3, %v3492_v32  ;;  %vm13840_vm3 = vcmask 138368   ;;  %v13846_v32 = vld [vmem:[#allocation20_spill] sm:$0xff] }
 0x832   :  { %3591 = vst.msk [vmem:[#allocation2 + $0x10] sm:$0xff] %vm13836_vm15, %v3561_v39  ;;  %v4441_v39 = vsel %vm11883_vm6, %v10401_v27, -1e+30 }
 0x833   :  { %3660 = vst.msk [vmem:[#allocation2 + $0x10] sm:$0xff] %vm13837_vm8, %v3630_v7  ;;  %4047 = vmax.xlane.f32.xlu0 %v4027_v63  ;;  %4323 = vmax.xlane.f32.xlu1 %v4303_v17  ;;  %v13842_v7 = vld [vmem:[#allocation48_spill] sm:$0xff]  ;;  %vm2303_vm8 = vcmp.lt.f32.partialorder %v13841_v34, 5e+29 }
 0x834   :  { %3729 = vst.msk [vmem:[#allocation2 + $0x10] sm:$0xff] %vm13838_vm1, %v3699_v49  ;;  %v4113_v16 = vpop.xlane.xlu0 %4112  ;;  %v3837_v12 = vpop.xlane.xlu1 %3836  ;;  %vm2287_vm15 = vcmp.le.f32.partialorder %v13842_v7, %v13841_v34  ;;  %vm13843_vm1 = vcmask 146568   ;;  %v4717_v49 = vsel %vm11883_vm6, %v10404_v3, -1e+30  ;;  %v4648_v7 = vsel %vm11883_vm6, %v10391_v25, -1e+30 }
 0x835   :  { %3798 = vst.msk [vmem:[#allocation2 + $0x10] sm:$0xff] %vm13839_vm12, %v3768_v0  ;;  %vm2351_vm12 = vmand %vm2287_vm15, %vm2303_vm8  ;;  %v13844_v0 = vld [vmem:[#allocation47_spill] sm:$0xff]  ;;  %vm13848_vm15 = vcmask 154768   ;;  %vm13269_vm8 = vcmp.gt.f32.partialorder %v12003_v13, 0.0 }
 0x836   :  { %3867 = vst.msk [vmem:[#allocation2 + $0x10] sm:$0xff] %vm13840_vm3, %v3837_v12  ;;  %vm13845_vm3 = vnez %v13844_v0  ;;  %v4579_v12 = vsel %vm11883_vm6, %v10434_v19, -1e+30 }
 0x837   :  { %4461 = vmax.xlane.f32.xlu0 %v4441_v39  ;;  %4392 = vmax.xlane.f32.xlu1 %v4372_v53  ;;  %v13847_v63 = vsel %vm13845_vm3, 1.0, %v13846_v32  ;;  %v4786_v39 = vsel %vm11883_vm6, %v10416_v41, -1e+30 }
 0x838   :  { %v4182_v47 = vpop.xlane.xlu0 %4181  ;;  %v3906_v45 = vpop.xlane.xlu1 %3905  ;;  %v2367_v17 = vsel %vm2351_vm12, 1.0, %v13847_v63  ;;  %vm13850_vm12 = vcmask 171168  }
 0x839   :  { %3936 = vst.msk [vmem:[#allocation2 + $0x10] sm:$0xff] %vm13843_vm1, %v3906_v45  ;;  %vm2399_vm1 = vcmp.gt.f32.partialorder %v2367_v17, 0.0  ;;  %v4855_v45 = vsel %vm11883_vm6, %v10437_v22, -1e+30  ;;  %vm13857_vm6 = vcmask 212168  }
 0x83a   :  { %vm12027_vm3 = vmor %vm13269_vm8, %vm2399_vm1  ;;  %vm13859_vm1 = vcmask 228568   ;;  %vm13897_vm8 = vcmask 195768  }
 0x83b   :  { %4530 = vmax.xlane.f32.xlu0 %v4510_v50  ;;  %4737 = vmax.xlane.f32.xlu1 %v4717_v49  ;;  %v2719_v60 = vsel %vm12027_vm3, %v10223_v29, -1e+30  ;;  %v2995_v32 = vsel %vm12027_vm3, %v10250_v23, -1e+30 }
 0x83c   :  { %v4251_v26 = vpop.xlane.xlu0 %4250  ;;  %v3975_v24 = vpop.xlane.xlu1 %3974 }
 0x83d   :  { %4005 = vst.msk [vmem:[#allocation2 + $0x10] sm:$0xff] %vm13848_vm15, %v3975_v24  ;;  %vm13853_vm15 = vcmask 179368   ;;  %v2926_v24 = vsel %vm12027_vm3, %v10226_v5, -1e+30 }
 0x83f   :  { %4599 = vmax.xlane.f32.xlu0 %v4579_v12  ;;  %4806 = vmax.xlane.f32.xlu1 %v4786_v39  ;;  %v2857_v12 = vsel %vm12027_vm3, %v10265_v31, -1e+30  ;;  %v3064_v39 = vsel %vm12027_vm3, %v10268_v48, -1e+30 }
 0x840   :  { %v4320_v53 = vpop.xlane.xlu0 %4319  ;;  %v4044_v34 = vpop.xlane.xlu1 %4043 }
 0x841   :  { %4074 = vst.msk [vmem:[#allocation2 + $0x10] sm:$0xff] %vm13849_vm11, %v4044_v34  ;;  %vm13854_vm11 = vcmask 187568  }
 0x842   :  { %4143 = vst.msk [vmem:[#allocation2 + $0x10] sm:$0xff] %vm13850_vm12, %v4113_v16  ;;  %vm13855_vm12 = vcmask 195768  }
 0x843   :  { %4212 = vst.msk [vmem:[#allocation2 + $0x10] sm:$0xff] %vm13853_vm15, %v4182_v47  ;;  %4668 = vmax.xlane.f32.xlu0 %v4648_v7  ;;  %4875 = vmax.xlane.f32.xlu1 %v4855_v45  ;;  %v3202_v7 = vsel %vm12027_vm3, %v10281_v56, -1e+30  ;;  %v3133_v45 = vsel %vm12027_vm3, %v10278_v21, -1e+30  ;;  %vm13860_vm15 = vcmask 236768  }
 0x844   :  { %4281 = vst.msk [vmem:[#allocation2 + $0x10] sm:$0xff] %vm13854_vm11, %v4251_v26  ;;  %v4734_v16 = vpop.xlane.xlu0 %4733  ;;  %v4389_v49 = vpop.xlane.xlu1 %4388  ;;  %v2788_v26 = vsel %vm12027_vm3, %v10247_v59, -1e+30  ;;  %vm13861_vm11 = vcmask 244968  }
 0x845   :  { %4350 = vst.msk [vmem:[#allocation2 + $0x10] sm:$0xff] %vm13855_vm12, %v4320_v53  ;;  %vm13862_vm12 = vcmask 253168  }
 0x846   :  { %4419 = vst.msk [vmem:[#allocation2 + $0x10] sm:$0xff] %vm13856_vm9, %v4389_v49  ;;  %vm13858_vm9 = vcmask 220368  }
 0x847   :  { %2742 = vmax.xlane.f32.xlu0 %v2719_v60  ;;  %2949 = vmax.xlane.f32.xlu1 %v2926_v24  ;;  %v3271_v24 = vsel %vm12027_vm3, %v10290_v58, -1e+30 }
 0x848   :  { %v4803_v47 = vpop.xlane.xlu0 %4802  ;;  %v4458_v0 = vpop.xlane.xlu1 %4457 }
 0x849   :  { %4488 = vst.msk [vmem:[#allocation2 + $0x10] sm:$0xff] %vm13857_vm6, %v4458_v0  ;;  %v3478_v0 = vsel %vm12027_vm3, %v10326_v15, -1e+30  ;;  %vm13863_vm6 = vcmask 261368  }
 0x84b   :  { %2811 = vmax.xlane.f32.xlu0 %v2788_v26  ;;  %3018 = vmax.xlane.f32.xlu1 %v2995_v32 }
 0x84c   :  { %v4872_v63 = vpop.xlane.xlu0 %4871  ;;  %v4527_v17 = vpop.xlane.xlu1 %4526 }
 0x84d   :  { %4557 = vst.msk [vmem:[#allocation2 + $0x10] sm:$0xff] %vm13858_vm9, %v4527_v17  ;;  %vm13864_vm9 = vcmask 7168   ;;  %v3547_v17 = vsel %vm12027_vm3, %v10293_v55, -1e+30 }
 0x84f   :  { %2880 = vmax.xlane.f32.xlu0 %v2857_v12  ;;  %3087 = vmax.xlane.f32.xlu1 %v3064_v39  ;;  %v3616_v39 = vsel %vm12027_vm3, %v10305_v10, -1e+30 }
 0x850   :  { %v2946_v53 = vpop.xlane.xlu0 %2945  ;;  %v4596_v34 = vpop.xlane.xlu1 %4595 }
 0x851   :  { %4626 = vst.msk [vmem:[#allocation2 + $0x10] sm:$0xff] %vm13859_vm1, %v4596_v34  ;;  %vm13865_vm1 = vcmask 15368  }
 0x853   :  { %3225 = vmax.xlane.f32.xlu0 %v3202_v7  ;;  %3156 = vmax.xlane.f32.xlu1 %v3133_v45  ;;  %v4919_v7 = vld [vmem:[#allocation2 + $0x18] sm:$0xff] }
 0x854   :  { %v3015_v49 = vpop.xlane.xlu0 %3014  ;;  %v4665_v60 = vpop.xlane.xlu1 %4664 }
 0x855   :  { %4695 = vst.msk [vmem:[#allocation2 + $0x10] sm:$0xff] %vm13860_vm15, %v4665_v60  ;;  %vm13867_vm15 = vcmask 23568  }
 0x856   :  { %4764 = vst.msk [vmem:[#allocation2 + $0x10] sm:$0xff] %vm13861_vm11, %v4734_v16  ;;  %v3340_v16 = vsel %vm12027_vm3, %v10302_v46, -1e+30  ;;  %vm13868_vm11 = vcmask 31768  }
 0x857   :  { %4833 = vst.msk [vmem:[#allocation2 + $0x10] sm:$0xff] %vm13862_vm12, %v4803_v47  ;;  %3294 = vmax.xlane.f32.xlu0 %v3271_v24  ;;  %3501 = vmax.xlane.f32.xlu1 %v3478_v0  ;;  %v13866_v24 = vld [vmem:[#allocation27_spill] sm:$0xff]  ;;  %vm13870_vm12 = vcmask 39968  }
 0x858   :  { %4902 = vst.msk [vmem:[#allocation2 + $0x10] sm:$0xff] %vm13863_vm6, %v4872_v63  ;;  %v3084_v26 = vpop.xlane.xlu0 %3083  ;;  %v2739_v32 = vpop.xlane.xlu1 %2738  ;;  %v3409_v63 = vsel %vm12027_vm3, %v10314_v52, -1e+30  ;;  %vm13871_vm6 = vcmask 48168  }
 0x859   :  { %2766 = vst.msk [vmem:[#allocation2 + $0x28] sm:$0xff] %vm13864_vm9, %v2739_v32  ;;  %v3754_v32 = vsel %vm12027_vm3, %v10329_v18, -1e+30  ;;  %vm13872_vm9 = vcmask 56368  }
 0x85b   :  { %3363 = vmax.xlane.f32.xlu0 %v3340_v16  ;;  %3570 = vmax.xlane.f32.xlu1 %v3547_v17  ;;  %v3685_v16 = vsel %vm12027_vm3, %v10317_v11, -1e+30  ;;  %v13869_v17 = vld [vmem:[#allocation28_spill] sm:$0xff] }
 0x85c   :  { %v3153_v12 = vpop.xlane.xlu0 %3152  ;;  %v2808_v47 = vpop.xlane.xlu1 %2807 }
 0x85d   :  { %2835 = vst.msk [vmem:[#allocation2 + $0x28] sm:$0xff] %vm13865_vm1, %v2808_v47  ;;  %v12100_v47 = vadd.f32 %v13869_v17, %v4919_v7  ;;  %vm13873_vm1 = vcmask 64568   ;;  %v4168_v7 = vsel %vm12027_vm3, %v10354_v40, -1e+30 }
 0x85f   :  { %3432 = vmax.xlane.f32.xlu0 %v3409_v63  ;;  %3639 = vmax.xlane.f32.xlu1 %v3616_v39  ;;  %v4918_v34 = vld [vmem:[#allocation2 + $0x10] sm:$0xff]  ;;  %v3823_v39 = vsel %vm12027_vm3, %v10339_v14, -1e+30 }
 0x860   :  { %v3498_v45 = vpop.xlane.xlu0 %3497  ;;  %v2877_v60 = vpop.xlane.xlu1 %2876  ;;  %v12087_v0 = vadd.f32 %v13866_v24, %v4918_v34 }
 0x861   :  { %2904 = vst.msk [vmem:[#allocation2 + $0x28] sm:$0xff] %vm13867_vm15, %v2877_v60  ;;  %vm13874_vm15 = vcmask 72768  }
 0x862   :  { %2973 = vst.msk [vmem:[#allocation2 + $0x28] sm:$0xff] %vm13868_vm11, %v2946_v53  ;;  %7218 = vmatprep.mubr.msk.f32.mxu1 %vm5146_vm4, %v12087_v0  ;;  %vm13875_vm11 = vcmask 80968  }
 0x863   :  { %3042 = vst.msk [vmem:[#allocation2 + $0x28] sm:$0xff] %vm13870_vm12, %v3015_v49  ;;  %3777 = vmax.xlane.f32.xlu0 %v3754_v32  ;;  %3708 = vmax.xlane.f32.xlu1 %v3685_v16  ;;  %v4099_v49 = vsel %vm12027_vm3, %v10342_v33, -1e+30  ;;  %v3961_v32 = vsel %vm12027_vm3, %v10363_v51, -1e+30  ;;  %vm13876_vm12 = vcmask 89168  }
 0x864   :  { %3111 = vst.msk [vmem:[#allocation2 + $0x28] sm:$0xff] %vm13871_vm6, %v3084_v26  ;;  %7219 = vmatmul.mubr.msk.f32.gmra.mrb[28].mxu1 %vm5146_vm4, %v12100_v47  ;;  %v3567_v53 = vpop.xlane.xlu0 %3566  ;;  %v3222_v63 = vpop.xlane.xlu1 %3221  ;;  %v4237_v16 = vsel %vm12027_vm3, %v10366_v6, -1e+30  ;;  %vm13877_vm6 = vcmask 97368  }
 0x865   :  { %3180 = vst.msk [vmem:[#allocation2 + $0x28] sm:$0xff] %vm13872_vm9, %v3153_v12  ;;  %v3892_v12 = vsel %vm12027_vm3, %v10351_v1, -1e+30  ;;  %vm13878_vm9 = vcmask 105568  }
 0x866   :  { %3249 = vst.msk [vmem:[#allocation2 + $0x28] sm:$0xff] %vm13873_vm1, %v3222_v63  ;;  %vm13879_vm1 = vcmask 113768  }
 0x867   :  { %3846 = vmax.xlane.f32.xlu0 %v3823_v39  ;;  %4122 = vmax.xlane.f32.xlu1 %v4099_v49  ;;  %v4030_v39 = vsel %vm12027_vm3, %v10376_v20, -1e+30  ;;  %v4306_v49 = vsel %vm12027_vm3, %v10379_v37, -1e+30 }
 0x868   :  { %v3636_v26 = vpop.xlane.xlu0 %3635  ;;  %v3291_v34 = vpop.xlane.xlu1 %3290 }
 0x869   :  { %3318 = vst.msk [vmem:[#allocation2 + $0x28] sm:$0xff] %vm13874_vm15, %v3291_v34  ;;  %vm13880_vm15 = vcmask 121968  }
 0x86b   :  { %3915 = vmax.xlane.f32.xlu0 %v3892_v12  ;;  %4191 = vmax.xlane.f32.xlu1 %v4168_v7  ;;  %v4651_v7 = vsel %vm12027_vm3, %v10391_v25, -1e+30 }
 0x86c   :  { %v3705_v60 = vpop.xlane.xlu0 %3704  ;;  %v3360_v24 = vpop.xlane.xlu1 %3359 }
 0x86d   :  { %3387 = vst.msk [vmem:[#allocation2 + $0x28] sm:$0xff] %vm13875_vm11, %v3360_v24  ;;  %vm13881_vm11 = vcmask 130168   ;;  %v13882_v24 = vld [vmem:[#allocation62_spill] sm:$0xff] }
 0x86f   :  { %3984 = vmax.xlane.f32.xlu0 %v3961_v32  ;;  %4260 = vmax.xlane.f32.xlu1 %v4237_v16  ;;  %v4720_v16 = vsel %vm12027_vm3, %v10404_v3, -1e+30 }
 0x870   :  { %v4050_v17 = vpop.xlane.xlu0 %4049  ;;  %v3429_v63 = vpop.xlane.xlu1 %3428 }
 0x871   :  { %3456 = vst.msk [vmem:[#allocation2 + $0x28] sm:$0xff] %vm13876_vm12, %v3429_v63 }
 0x872   :  { %3525 = vst.msk [vmem:[#allocation2 + $0x28] sm:$0xff] %vm13877_vm6, %v3498_v45  ;;  %v4375_v45 = vsel %vm12027_vm3, %v10388_v38, -1e+30  ;;  %vm2302_vm6 = vcmp.lt.f32.partialorder %v13882_v24, 5e+29 }
 0x873   :  { %3594 = vst.msk [vmem:[#allocation2 + $0x28] sm:$0xff] %vm13878_vm9, %v3567_v53  ;;  %4053 = vmax.xlane.f32.xlu0 %v4030_v39  ;;  %4329 = vmax.xlane.f32.xlu1 %v4306_v49  ;;  %v13883_v53 = vld [vmem:[#allocation50_spill] sm:$0xff]  ;;  %vm13884_vm9 = vcmask 138368   ;;  %v12159_v49 = vld [vmem:[%s13117_s1 + $0x30] sm:$0xff] }
 0x874   :  { %3663 = vst.msk [vmem:[#allocation2 + $0x28] sm:$0xff] %vm13879_vm1, %v3636_v26  ;;  %v4119_v34 = vpop.xlane.xlu0 %4118  ;;  %v3774_v12 = vpop.xlane.xlu1 %3773  ;;  %vm2286_vm12 = vcmp.le.f32.partialorder %v13883_v53, %v13882_v24  ;;  %v4513_v53 = vsel %vm12027_vm3, %v10413_v42, -1e+30 }
 0x875   :  { %3732 = vst.msk [vmem:[#allocation2 + $0x28] sm:$0xff] %vm13880_vm15, %v3705_v60  ;;  %vm2350_vm1 = vmand %vm2286_vm12, %vm2302_vm6  ;;  %v4444_v60 = vsel %vm12027_vm3, %v10401_v27, -1e+30  ;;  %vm13270_vm12 = vcmp.gt.f32.partialorder %v12159_v49, 0.0 }
 0x876   :  { %3801 = vst.msk [vmem:[#allocation2 + $0x28] sm:$0xff] %vm13881_vm11, %v3774_v12  ;;  %v13885_v12 = vld [vmem:[#allocation49_spill] sm:$0xff]  ;;  %vm13889_vm11 = vcmask 146568  }
 0x877   :  { %4398 = vmax.xlane.f32.xlu0 %v4375_v45  ;;  %4674 = vmax.xlane.f32.xlu1 %v4651_v7  ;;  %vm13886_vm15 = vnez %v13885_v12  ;;  %v13887_v45 = vld [vmem:[#allocation21_spill] sm:$0xff]  ;;  %v4858_v12 = vsel %vm12027_vm3, %v10437_v22, -1e+30 }
 0x878   :  { %v4188_v26 = vpop.xlane.xlu0 %4187  ;;  %v3843_v32 = vpop.xlane.xlu1 %3842  ;;  %v13888_v7 = vsel %vm13886_vm15, 1.0, %v13887_v45 }
 0x879   :  { %3870 = vst.msk [vmem:[#allocation2 + $0x28] sm:$0xff] %vm13884_vm9, %v3843_v32  ;;  %v2366_v24 = vsel %vm2350_vm1, 1.0, %v13888_v7  ;;  %v4789_v32 = vsel %vm12027_vm3, %v10416_v41, -1e+30  ;;  %vm13890_vm9 = vcmask 154768   ;;  %vm13891_vm1 = vcmask 162968  }
 0x87a   :  { %vm2398_vm6 = vcmp.gt.f32.partialorder %v2366_v24, 0.0 }
 0x87b   :  { %4467 = vmax.xlane.f32.xlu0 %v4444_v60  ;;  %4743 = vmax.xlane.f32.xlu1 %v4720_v16  ;;  %vm12183_vm15 = vmor %vm13270_vm12, %vm2398_vm6  ;;  %vm13899_vm6 = vcmask 212168   ;;  %vm13924_vm12 = vcmask 138368  }
 0x87c   :  { %v4257_v63 = vpop.xlane.xlu0 %4256  ;;  %v3912_v39 = vpop.xlane.xlu1 %3911  ;;  %v2994_v50 = vsel %vm12183_vm15, %v10250_v23, -1e+30  ;;  %v2718_v24 = vsel %vm12183_vm15, %v10223_v29, -1e+30 }
 0x87d   :  { %3939 = vst.msk [vmem:[#allocation2 + $0x28] sm:$0xff] %vm13889_vm11, %v3912_v39  ;;  %v4582_v39 = vsel %vm12027_vm3, %v10434_v19, -1e+30  ;;  %vm13894_vm11 = vcmask 171168   ;;  %vm13898_vm3 = vcmask 203968  }
 0x87f   :  { %4536 = vmax.xlane.f32.xlu0 %v4513_v53  ;;  %4812 = vmax.xlane.f32.xlu1 %v4789_v32  ;;  %v2787_v53 = vsel %vm12183_vm15, %v10247_v59, -1e+30 }
 0x880   :  { %v4326_v60 = vpop.xlane.xlu0 %4325  ;;  %v3981_v16 = vpop.xlane.xlu1 %3980 }
 0x881   :  { %4008 = vst.msk [vmem:[#allocation2 + $0x28] sm:$0xff] %vm13890_vm9, %v3981_v16  ;;  %vm13895_vm9 = vcmask 179368   ;;  %v3132_v16 = vsel %vm12183_vm15, %v10278_v21, -1e+30 }
 0x882   :  { %4077 = vst.msk [vmem:[#allocation2 + $0x28] sm:$0xff] %vm13891_vm1, %v4050_v17  ;;  %vm13896_vm1 = vcmask 187568  }
 0x883   :  { %4146 = vst.msk [vmem:[#allocation2 + $0x28] sm:$0xff] %vm13894_vm11, %v4119_v34  ;;  %4605 = vmax.xlane.f32.xlu0 %v4582_v39  ;;  %4881 = vmax.xlane.f32.xlu1 %v4858_v12  ;;  %v2856_v39 = vsel %vm12183_vm15, %v10265_v31, -1e+30  ;;  %vm13901_vm11 = vcmask 228568  }
 0x884   :  { %4215 = vst.msk [vmem:[#allocation2 + $0x28] sm:$0xff] %vm13895_vm9, %v4188_v26  ;;  %v4671_v17 = vpop.xlane.xlu0 %4670  ;;  %v4395_v7 = vpop.xlane.xlu1 %4394  ;;  %vm13902_vm9 = vcmask 236768  }
 0x885   :  { %4284 = vst.msk [vmem:[#allocation2 + $0x28] sm:$0xff] %vm13896_vm1, %v4257_v63  ;;  %v3063_v63 = vsel %vm12183_vm15, %v10268_v48, -1e+30  ;;  %vm13903_vm1 = vcmask 244968  }
 0x886   :  { %4353 = vst.msk [vmem:[#allocation2 + $0x28] sm:$0xff] %vm13897_vm8, %v4326_v60  ;;  %vm13900_vm8 = vcmask 220368  }
 0x887   :  { %4422 = vst.msk [vmem:[#allocation2 + $0x28] sm:$0xff] %vm13898_vm3, %v4395_v7  ;;  %3016 = vmax.xlane.f32.xlu0 %v2994_v50  ;;  %2740 = vmax.xlane.f32.xlu1 %v2718_v24  ;;  %v3201_v50 = vsel %vm12183_vm15, %v10281_v56, -1e+30  ;;  %v2925_v24 = vsel %vm12183_vm15, %v10226_v5, -1e+30  ;;  %vm13904_vm3 = vcmask 253168  }
 0x888   :  { %v4740_v34 = vpop.xlane.xlu0 %4739  ;;  %v4464_v26 = vpop.xlane.xlu1 %4463 }
 0x889   :  { %4491 = vst.msk [vmem:[#allocation2 + $0x28] sm:$0xff] %vm13899_vm6, %v4464_v26  ;;  %vm13905_vm6 = vcmask 261368  }
 0x88b   :  { %3085 = vmax.xlane.f32.xlu0 %v3063_v63  ;;  %2809 = vmax.xlane.f32.xlu1 %v2787_v53  ;;  %v3270_v53 = vsel %vm12183_vm15, %v10290_v58, -1e+30 }
 0x88c   :  { %v4809_v32 = vpop.xlane.xlu0 %4808  ;;  %v4533_v60 = vpop.xlane.xlu1 %4532 }
 0x88d   :  { %4560 = vst.msk [vmem:[#allocation2 + $0x28] sm:$0xff] %vm13900_vm8, %v4533_v60  ;;  %vm13906_vm8 = vcmask 7168  }
 0x88f   :  { %3154 = vmax.xlane.f32.xlu0 %v3132_v16  ;;  %2878 = vmax.xlane.f32.xlu1 %v2856_v39  ;;  %v3339_v16 = vsel %vm12183_vm15, %v10302_v46, -1e+30 }
 0x890   :  { %v4878_v12 = vpop.xlane.xlu0 %4877  ;;  %v4602_v7 = vpop.xlane.xlu1 %4601 }
 0x891   :  { %4629 = vst.msk [vmem:[#allocation2 + $0x28] sm:$0xff] %vm13901_vm11, %v4602_v7  ;;  %vm13907_vm11 = vcmask 15368   ;;  %v3684_v7 = vsel %vm12183_vm15, %v10317_v11, -1e+30 }
 0x892   :  { %4698 = vst.msk [vmem:[#allocation2 + $0x28] sm:$0xff] %vm13902_vm9, %v4671_v17  ;;  %v3546_v17 = vsel %vm12183_vm15, %v10293_v55, -1e+30  ;;  %vm13908_vm9 = vcmask 23568  }
 0x893   :  { %4767 = vst.msk [vmem:[#allocation2 + $0x28] sm:$0xff] %vm13903_vm1, %v4740_v34  ;;  %3223 = vmax.xlane.f32.xlu0 %v3201_v50  ;;  %2947 = vmax.xlane.f32.xlu1 %v2925_v24  ;;  %v3408_v50 = vsel %vm12183_vm15, %v10314_v52, -1e+30  ;;  %vm13909_vm1 = vcmask 31768  }
 0x894   :  { %4836 = vst.msk [vmem:[#allocation2 + $0x28] sm:$0xff] %vm13904_vm3, %v4809_v32  ;;  %v2737_v26 = vpop.xlane.xlu0 %2736  ;;  %v3013_v63 = vpop.xlane.xlu1 %3012  ;;  %v3615_v32 = vsel %vm12183_vm15, %v10305_v10, -1e+30  ;;  %vm13910_vm3 = vcmask 39968  }
 0x895   :  { %4905 = vst.msk [vmem:[#allocation2 + $0x28] sm:$0xff] %vm13905_vm6, %v4878_v12  ;;  %vm13911_vm6 = vcmask 48168  }
 0x896   :  { %2765 = vst.msk [vmem:[#allocation2 + $0x20] sm:$0xff] %vm13906_vm8, %v2737_v26  ;;  %vm13912_vm8 = vcmask 56368  }
 0x897   :  { %3568 = vmax.xlane.f32.xlu0 %v3546_v17  ;;  %3292 = vmax.xlane.f32.xlu1 %v3270_v53  ;;  %v3753_v17 = vsel %vm12183_vm15, %v10329_v18, -1e+30  ;;  %v3477_v53 = vsel %vm12183_vm15, %v10326_v15, -1e+30 }
 0x898   :  { %v2806_v34 = vpop.xlane.xlu0 %2805  ;;  %v3082_v60 = vpop.xlane.xlu1 %3081 }
 0x899   :  { %2834 = vst.msk [vmem:[#allocation2 + $0x20] sm:$0xff] %vm13907_vm11, %v2806_v34  ;;  %vm13913_vm11 = vcmask 64568  }
 0x89b   :  { %3637 = vmax.xlane.f32.xlu0 %v3615_v32  ;;  %3361 = vmax.xlane.f32.xlu1 %v3339_v16  ;;  %v3822_v16 = vsel %vm12183_vm15, %v10339_v14, -1e+30 }
 0x89c   :  { %v2875_v39 = vpop.xlane.xlu0 %2874  ;;  %v3151_v12 = vpop.xlane.xlu1 %3150 }
 0x89d   :  { %2903 = vst.msk [vmem:[#allocation2 + $0x20] sm:$0xff] %vm13908_vm9, %v2875_v39  ;;  %vm13914_vm9 = vcmask 72768  }
 0x89f   :  { %3706 = vmax.xlane.f32.xlu0 %v3684_v7  ;;  %3430 = vmax.xlane.f32.xlu1 %v3408_v50  ;;  %v3891_v7 = vsel %vm12183_vm15, %v10351_v1, -1e+30 }
 0x8a0   :  { %v2944_v24 = vpop.xlane.xlu0 %2943  ;;  %v3220_v26 = vpop.xlane.xlu1 %3219 }
 0x8a1   :  { %2972 = vst.msk [vmem:[#allocation2 + $0x20] sm:$0xff] %vm13909_vm1, %v2944_v24  ;;  %vm13915_vm1 = vcmask 80968  }
 0x8a2   :  { %3041 = vst.msk [vmem:[#allocation2 + $0x20] sm:$0xff] %vm13910_vm3, %v3013_v63  ;;  %v4167_v63 = vsel %vm12183_vm15, %v10354_v40, -1e+30  ;;  %vm13916_vm3 = vcmask 89168  }
 0x8a3   :  { %3110 = vst.msk [vmem:[#allocation2 + $0x20] sm:$0xff] %vm13911_vm6, %v3082_v60  ;;  %3775 = vmax.xlane.f32.xlu0 %v3753_v17  ;;  %3499 = vmax.xlane.f32.xlu1 %v3477_v53  ;;  %v3960_v17 = vsel %vm12183_vm15, %v10363_v51, -1e+30  ;;  %vm13917_vm6 = vcmask 97368  }
 0x8a4   :  { %3179 = vst.msk [vmem:[#allocation2 + $0x20] sm:$0xff] %vm13912_vm8, %v3151_v12  ;;  %v3289_v34 = vpop.xlane.xlu0 %3288  ;;  %v3565_v32 = vpop.xlane.xlu1 %3564  ;;  %v4236_v12 = vsel %vm12183_vm15, %v10366_v6, -1e+30  ;;  %vm13918_vm8 = vcmask 105568  }
 0x8a5   :  { %3248 = vst.msk [vmem:[#allocation2 + $0x20] sm:$0xff] %vm13913_vm11, %v3220_v26  ;;  %v4305_v26 = vsel %vm12183_vm15, %v10379_v37, -1e+30 }
 0x8a6   :  { %3317 = vst.msk [vmem:[#allocation2 + $0x20] sm:$0xff] %vm13914_vm9, %v3289_v34 }
 0x8a7   :  { %4189 = vmax.xlane.f32.xlu0 %v4167_v63  ;;  %3844 = vmax.xlane.f32.xlu1 %v3822_v16  ;;  %v4374_v63 = vsel %vm12183_vm15, %v10388_v38, -1e+30  ;;  %v4029_v16 = vsel %vm12183_vm15, %v10376_v20, -1e+30 }
 0x8a8   :  { %v3358_v60 = vpop.xlane.xlu0 %3357  ;;  %v3634_v39 = vpop.xlane.xlu1 %3633 }
 0x8a9   :  { %3386 = vst.msk [vmem:[#allocation2 + $0x20] sm:$0xff] %vm13915_vm1, %v3358_v60  ;;  %v13919_v60 = vld [vmem:[#allocation63_spill] sm:$0xff]  ;;  %vm13921_vm1 = vcmask 113768  }
 0x8aa   :  { %vm2305_vm9 = vcmp.lt.f32.partialorder %v13919_v60, 5e+29 }
 0x8ab   :  { %4258 = vmax.xlane.f32.xlu0 %v4236_v12  ;;  %3913 = vmax.xlane.f32.xlu1 %v3891_v7  ;;  %v13920_v12 = vld [vmem:[#allocation52_spill] sm:$0xff] }
 0x8ac   :  { %v3427_v50 = vpop.xlane.xlu0 %3426  ;;  %v3703_v24 = vpop.xlane.xlu1 %3702  ;;  %vm2289_vm11 = vcmp.le.f32.partialorder %v13920_v12, %v13919_v60 }
 0x8ad   :  { %3455 = vst.msk [vmem:[#allocation2 + $0x20] sm:$0xff] %vm13916_vm3, %v3427_v50  ;;  %vm13922_vm3 = vcmask 121968  }
 0x8af   :  { %4327 = vmax.xlane.f32.xlu0 %v4305_v26  ;;  %3982 = vmax.xlane.f32.xlu1 %v3960_v17  ;;  %v4719_v17 = vsel %vm12183_vm15, %v10404_v3, -1e+30 }
 0x8b0   :  { %v3496_v53 = vpop.xlane.xlu0 %3495  ;;  %v3772_v34 = vpop.xlane.xlu1 %3771 }
 0x8b1   :  { %3524 = vst.msk [vmem:[#allocation2 + $0x20] sm:$0xff] %vm13917_vm6, %v3496_v53  ;;  %vm13923_vm6 = vcmask 130168   ;;  %v12304_v53 = vld [vmem:[%s13117_s1 + $0x48] sm:$0xff] }
 0x8b2   :  { %3593 = vst.msk [vmem:[#allocation2 + $0x20] sm:$0xff] %vm13918_vm8, %v3565_v32  ;;  %vm2353_vm8 = vmand %vm2289_vm11, %vm2305_vm9  ;;  %vm2385_vm11 = vcmp.gt.f32.partialorder %v12304_v53, 0.0 }
 0x8b3   :  { %3662 = vst.msk [vmem:[#allocation2 + $0x20] sm:$0xff] %vm13921_vm1, %v3634_v39  ;;  %4396 = vmax.xlane.f32.xlu0 %v4374_v63  ;;  %4051 = vmax.xlane.f32.xlu1 %v4029_v16  ;;  %v4098_v39 = vsel %vm12183_vm15, %v10342_v33, -1e+30  ;;  %13925 = vst [vmem:[#allocation40_spill] sm:$0xff] %v12304_v53  ;;  %v13927_v63 = vld [vmem:[#allocation26_spill] sm:$0xff]  ;;  %vm13930_vm1 = vcmask 154768  }
 0x8b4   :  { %3731 = vst.msk [vmem:[#allocation2 + $0x20] sm:$0xff] %vm13922_vm3, %v3703_v24  ;;  %v12289_v32 = vpop.f32.mrb[26].mxu1  ;;  %v3841_v7 = vpop.xlane.xlu0 %3840  ;;  %v13928_v16 = vsel %vm10174_vm14, 1.0, %v13927_v63  ;;  %v4512_v63 = vsel %vm12183_vm15, %v10413_v42, -1e+30  ;;  %vm13933_vm3 = vcmask 162968  }
 0x8b5   :  { %3800 = vst.msk [vmem:[#allocation2 + $0x20] sm:$0xff] %vm13923_vm6, %v3772_v34  ;;  %v12292_v50 = vpop.f32.mrb[27].mxu1  ;;  %v4117_v26 = vpop.xlane.xlu1 %4116  ;;  %v2369_v60 = vsel %vm2353_vm8, 1.0, %v13928_v16  ;;  %vm13934_vm6 = vcmask 171168   ;;  %vm13935_vm8 = vcmask 179368  }
 0x8b6   :  { %3869 = vst.msk [vmem:[#allocation2 + $0x20] sm:$0xff] %vm13924_vm12, %v3841_v7  ;;  %vm13929_vm12 = vcmask 146568   ;;  %v4788_v7 = vsel %vm12183_vm15, %v10416_v41, -1e+30  ;;  %vm2401_vm9 = vcmp.gt.f32.partialorder %v2369_v60, 0.0 }
 0x8b7   :  { %4741 = vmax.xlane.f32.xlu0 %v4719_v17  ;;  %4120 = vmax.xlane.f32.xlu1 %v4098_v39  ;;  %v4443_v17 = vsel %vm12183_vm15, %v10401_v27, -1e+30  ;;  %vm12327_vm14 = vmor %vm2385_vm11, %vm2401_vm9  ;;  %vm13937_vm9 = vcmask 195768  }
 0x8b8   :  { %v3910_v24 = vpop.xlane.xlu0 %3909  ;;  %v4791_v53 = vsel %vm12327_vm14, %v10416_v41, -1e+30 }
 0x8b9   :  { %3938 = vst.msk [vmem:[#allocation2 + $0x20] sm:$0xff] %vm13929_vm12, %v3910_v24  ;;  %v4186_v12 = vpop.xlane.xlu1 %4185  ;;  %v4857_v24 = vsel %vm12183_vm15, %v10437_v22, -1e+30  ;;  %vm13936_vm12 = vcmask 187568  }
 0x8bb   :  { %4810 = vmax.xlane.f32.xlu0 %v4788_v7  ;;  %4465 = vmax.xlane.f32.xlu1 %v4443_v17  ;;  %v2928_v17 = vsel %vm12327_vm14, %v10226_v5, -1e+30 }
 0x8bc   :  { %v3979_v39 = vpop.xlane.xlu0 %3978 }
 0x8bd   :  { %4007 = vst.msk [vmem:[#allocation2 + $0x20] sm:$0xff] %vm13930_vm1, %v3979_v39  ;;  %v4255_v34 = vpop.xlane.xlu1 %4254  ;;  %v4581_v39 = vsel %vm12183_vm15, %v10434_v19, -1e+30  ;;  %vm13938_vm1 = vcmask 203968  }
 0x8bf   :  { %4879 = vmax.xlane.f32.xlu0 %v4857_v24  ;;  %4534 = vmax.xlane.f32.xlu1 %v4512_v63 }
 0x8c0   :  { %v4048_v60 = vpop.xlane.xlu0 %4047 }
 0x8c1   :  { %4076 = vst.msk [vmem:[#allocation2 + $0x20] sm:$0xff] %vm13933_vm3, %v4048_v60  ;;  %v4324_v7 = vpop.xlane.xlu1 %4323  ;;  %v4650_v60 = vsel %vm12183_vm15, %v10391_v25, -1e+30  ;;  %vm13939_vm3 = vcmask 212168   ;;  %vm13941_vm15 = vcmask 228568  }
 0x8c2   :  { %4145 = vst.msk [vmem:[#allocation2 + $0x20] sm:$0xff] %vm13934_vm6, %v4117_v26  ;;  %v2997_v26 = vsel %vm12327_vm14, %v10250_v23, -1e+30  ;;  %vm13940_vm6 = vcmask 220368  }
 0x8c3   :  { %4214 = vst.msk [vmem:[#allocation2 + $0x20] sm:$0xff] %vm13935_vm8, %v4186_v12  ;;  %2953 = vmax.xlane.f32.xlu0 %v2928_v17  ;;  %4603 = vmax.xlane.f32.xlu1 %v4581_v39  ;;  %v2721_v17 = vsel %vm12327_vm14, %v10223_v29, -1e+30  ;;  %vm13942_vm8 = vcmask 236768  }
 0x8c4   :  { %4283 = vst.msk [vmem:[#allocation2 + $0x20] sm:$0xff] %vm13936_vm12, %v4255_v34  ;;  %v4462_v24 = vpop.xlane.xlu0 %4461  ;;  %vm13943_vm12 = vcmask 244968  }
 0x8c5   :  { %4352 = vst.msk [vmem:[#allocation2 + $0x20] sm:$0xff] %vm13937_vm9, %v4324_v7  ;;  %v4393_v63 = vpop.xlane.xlu1 %4392  ;;  %v3066_v7 = vsel %vm12327_vm14, %v10268_v48, -1e+30  ;;  %vm13944_vm9 = vcmask 253168  }
 0x8c6   :  { %4421 = vst.msk [vmem:[#allocation2 + $0x20] sm:$0xff] %vm13938_vm1, %v4393_v63  ;;  %v2790_v63 = vsel %vm12327_vm14, %v10247_v59, -1e+30  ;;  %vm13945_vm1 = vcmask 261368  }
 0x8c7   :  { %4490 = vst.msk [vmem:[#allocation2 + $0x20] sm:$0xff] %vm13939_vm3, %v4462_v24  ;;  %3022 = vmax.xlane.f32.xlu0 %v2997_v26  ;;  %4672 = vmax.xlane.f32.xlu1 %v4650_v60  ;;  %v3135_v24 = vsel %vm12327_vm14, %v10278_v21, -1e+30  ;;  %vm13946_vm3 = vcmask 7168  }
 0x8c8   :  { %v4531_v12 = vpop.xlane.xlu0 %4530 }
 0x8c9   :  { %4559 = vst.msk [vmem:[#allocation2 + $0x20] sm:$0xff] %vm13940_vm6, %v4531_v12  ;;  %v4738_v34 = vpop.xlane.xlu1 %4737  ;;  %v3480_v12 = vsel %vm12327_vm14, %v10326_v15, -1e+30  ;;  %vm13947_vm6 = vcmask 15368  }
 0x8cb   :  { %3091 = vmax.xlane.f32.xlu0 %v3066_v7  ;;  %2746 = vmax.xlane.f32.xlu1 %v2721_v17  ;;  %v2859_v7 = vsel %vm12327_vm14, %v10265_v31, -1e+30 }
 0x8cc   :  { %v4600_v45 = vpop.xlane.xlu0 %4599 }
 0x8cd   :  { %4628 = vst.msk [vmem:[#allocation2 + $0x20] sm:$0xff] %vm13941_vm15, %v4600_v45  ;;  %v4807_v39 = vpop.xlane.xlu1 %4806  ;;  %vm13949_vm15 = vcmask 23568  }
 0x8cf   :  { %3160 = vmax.xlane.f32.xlu0 %v3135_v24  ;;  %2815 = vmax.xlane.f32.xlu1 %v2790_v63  ;;  %v3204_v24 = vsel %vm12327_vm14, %v10281_v56, -1e+30 }
 0x8d0   :  { %v4669_v26 = vpop.xlane.xlu0 %4668 }
 0x8d1   :  { %4697 = vst.msk [vmem:[#allocation2 + $0x20] sm:$0xff] %vm13942_vm8, %v4669_v26  ;;  %v4876_v60 = vpop.xlane.xlu1 %4875  ;;  %v3618_v26 = vsel %vm12327_vm14, %v10305_v10, -1e+30  ;;  %vm13950_vm8 = vcmask 31768  }
 0x8d2   :  { %4766 = vst.msk [vmem:[#allocation2 + $0x20] sm:$0xff] %vm13943_vm12, %v4738_v34  ;;  %v3549_v34 = vsel %vm12327_vm14, %v10293_v55, -1e+30  ;;  %vm13952_vm12 = vcmask 39968  }
 0x8d3   :  { %4835 = vst.msk [vmem:[#allocation2 + $0x20] sm:$0xff] %vm13944_vm9, %v4807_v39  ;;  %3505 = vmax.xlane.f32.xlu0 %v3480_v12  ;;  %2884 = vmax.xlane.f32.xlu1 %v2859_v7  ;;  %v4921_v7 = vld [vmem:[#allocation2 + $0x28] sm:$0xff]  ;;  %vm13953_vm9 = vcmask 48168  }
 0x8d4   :  { %4904 = vst.msk [vmem:[#allocation2 + $0x20] sm:$0xff] %vm13945_vm1, %v4876_v60  ;;  %v2743_v17 = vpop.xlane.xlu0 %2742  ;;  %v3273_v60 = vsel %vm12327_vm14, %v10290_v58, -1e+30  ;;  %vm13954_vm1 = vcmask 56368  }
 0x8d5   :  { %2768 = vst.msk [vmem:[#allocation2 + $0x38] sm:$0xff] %vm13946_vm3, %v2743_v17  ;;  %v2950_v45 = vpop.xlane.xlu1 %2949  ;;  %vm13955_vm3 = vcmask 64568  }
 0x8d7   :  { %3574 = vmax.xlane.f32.xlu0 %v3549_v34  ;;  %3229 = vmax.xlane.f32.xlu1 %v3204_v24 }
 0x8d8   :  { %v2812_v63 = vpop.xlane.xlu0 %2811 }
 0x8d9   :  { %2837 = vst.msk [vmem:[#allocation2 + $0x38] sm:$0xff] %vm13947_vm6, %v2812_v63  ;;  %v3019_v39 = vpop.xlane.xlu1 %3018  ;;  %v3687_v63 = vsel %vm12327_vm14, %v10317_v11, -1e+30  ;;  %vm13956_vm6 = vcmask 72768  }
 0x8db   :  { %3643 = vmax.xlane.f32.xlu0 %v3618_v26  ;;  %3298 = vmax.xlane.f32.xlu1 %v3273_v60  ;;  %v4920_v12 = vld [vmem:[#allocation2 + $0x20] sm:$0xff]  ;;  %v3342_v26 = vsel %vm12327_vm14, %v10302_v46, -1e+30  ;;  %v13951_v60 = vld [vmem:[#allocation25_spill] sm:$0xff] }
 0x8dc   :  { %v2881_v17 = vpop.xlane.xlu0 %2880  ;;  %v12389_v34 = vadd.f32 %v13948_v8, %v4920_v12  ;;  %v12402_v43 = vadd.f32 %v13951_v60, %v4921_v7  ;;  %v3756_v12 = vsel %vm12327_vm14, %v10329_v18, -1e+30  ;;  %v3411_v7 = vsel %vm12327_vm14, %v10314_v52, -1e+30 }
 0x8dd   :  { %2906 = vst.msk [vmem:[#allocation2 + $0x38] sm:$0xff] %vm13949_vm15, %v2881_v17  ;;  %v3088_v24 = vpop.xlane.xlu1 %3087  ;;  %vm13957_vm15 = vcmask 80968  }
 0x8de   :  { %2975 = vst.msk [vmem:[#allocation2 + $0x38] sm:$0xff] %vm13950_vm8, %v2950_v45  ;;  %7221 = vmatprep.mubr.msk.f32.mxu1 %vm5146_vm4, %v12389_v34  ;;  %vm13958_vm8 = vcmask 89168  }
 0x8df   :  { %3044 = vst.msk [vmem:[#allocation2 + $0x38] sm:$0xff] %vm13952_vm12, %v3019_v39  ;;  %3712 = vmax.xlane.f32.xlu0 %v3687_v63  ;;  %3367 = vmax.xlane.f32.xlu1 %v3342_v26  ;;  %v3825_v63 = vsel %vm12327_vm14, %v10339_v14, -1e+30  ;;  %vm13959_vm12 = vcmask 97368  }
 0x8e0   :  { %3113 = vst.msk [vmem:[#allocation2 + $0x38] sm:$0xff] %vm13953_vm9, %v3088_v24  ;;  %7222 = vmatmul.mubr.msk.f32.gmra.mrb[30].mxu1 %vm5146_vm4, %v12402_v43  ;;  %v3226_v8 = vpop.xlane.xlu0 %3225  ;;  %v4101_v24 = vsel %vm12327_vm14, %v10342_v33, -1e+30  ;;  %vm13960_vm9 = vcmask 105568  }
 0x8e1   :  { %v3157_v45 = vpop.xlane.xlu1 %3156 }
 0x8e2   :  { %3182 = vst.msk [vmem:[#allocation2 + $0x38] sm:$0xff] %vm13954_vm1, %v3157_v45  ;;  %v3894_v45 = vsel %vm12327_vm14, %v10351_v1, -1e+30  ;;  %vm13961_vm1 = vcmask 113768  }
 0x8e3   :  { %3251 = vst.msk [vmem:[#allocation2 + $0x38] sm:$0xff] %vm13955_vm3, %v3226_v8  ;;  %3781 = vmax.xlane.f32.xlu0 %v3756_v12  ;;  %3436 = vmax.xlane.f32.xlu1 %v3411_v7  ;;  %v4170_v8 = vsel %vm12327_vm14, %v10354_v40, -1e+30  ;;  %vm13962_vm3 = vcmask 121968  }
 0x8e4   :  { %v3295_v39 = vpop.xlane.xlu0 %3294 }
 0x8e5   :  { %3320 = vst.msk [vmem:[#allocation2 + $0x38] sm:$0xff] %vm13956_vm6, %v3295_v39  ;;  %v3502_v17 = vpop.xlane.xlu1 %3501  ;;  %v4239_v39 = vsel %vm12327_vm14, %v10366_v6, -1e+30  ;;  %vm13963_vm6 = vcmask 130168  }
 0x8e7   :  { %4126 = vmax.xlane.f32.xlu0 %v4101_v24  ;;  %3850 = vmax.xlane.f32.xlu1 %v3825_v63  ;;  %v3963_v24 = vsel %vm12327_vm14, %v10363_v51, -1e+30 }
 0x8e8   :  { %v3364_v26 = vpop.xlane.xlu0 %3363 }
 0x8e9   :  { %3389 = vst.msk [vmem:[#allocation2 + $0x38] sm:$0xff] %vm13957_vm15, %v3364_v26  ;;  %v3571_v60 = vpop.xlane.xlu1 %3570  ;;  %vm13964_vm15 = vcmask 138368  }
 0x8eb   :  { %4195 = vmax.xlane.f32.xlu0 %v4170_v8  ;;  %3919 = vmax.xlane.f32.xlu1 %v3894_v45  ;;  %v4032_v8 = vsel %vm12327_vm14, %v10376_v20, -1e+30 }
 0x8ec   :  { %v3433_v12 = vpop.xlane.xlu0 %3432 }
 0x8ed   :  { %3458 = vst.msk [vmem:[#allocation2 + $0x38] sm:$0xff] %vm13958_vm8, %v3433_v12  ;;  %v3640_v7 = vpop.xlane.xlu1 %3639  ;;  %v4653_v12 = vsel %vm12327_vm14, %v10391_v25, -1e+30 }
 0x8ee   :  { %3527 = vst.msk [vmem:[#allocation2 + $0x38] sm:$0xff] %vm13959_vm12, %v3502_v17  ;;  %v4308_v17 = vsel %vm12327_vm14, %v10379_v37, -1e+30 }
 0x8ef   :  { %3596 = vst.msk [vmem:[#allocation2 + $0x38] sm:$0xff] %vm13960_vm9, %v3571_v60  ;;  %4264 = vmax.xlane.f32.xlu0 %v4239_v39  ;;  %3988 = vmax.xlane.f32.xlu1 %v3963_v24  ;;  %v13965_v39 = vld [vmem:[#allocation64_spill] sm:$0xff]  ;;  %v13966_v24 = vld [vmem:[#allocation54_spill] sm:$0xff]  ;;  %vm13967_vm9 = vcmask 146568  }
 0x8f0   :  { %3665 = vst.msk [vmem:[#allocation2 + $0x38] sm:$0xff] %vm13961_vm1, %v3640_v7  ;;  %v3778_v63 = vpop.xlane.xlu0 %3777  ;;  %v4377_v7 = vsel %vm12327_vm14, %v10388_v38, -1e+30  ;;  %vm2288_vm8 = vcmp.le.f32.partialorder %v13966_v24, %v13965_v39  ;;  %vm2304_vm12 = vcmp.lt.f32.partialorder %v13965_v39, 5e+29  ;;  %v13970_v39 = vld [vmem:[#allocation22_spill] sm:$0xff] }
 0x8f1   :  { %v3709_v26 = vpop.xlane.xlu1 %3708  ;;  %vm2352_vm1 = vmand %vm2288_vm8, %vm2304_vm12  ;;  %vm13973_vm12 = vcmask 162968  }
 0x8f2   :  { %3734 = vst.msk [vmem:[#allocation2 + $0x38] sm:$0xff] %vm13962_vm3, %v3709_v26 }
 0x8f3   :  { %3803 = vst.msk [vmem:[#allocation2 + $0x38] sm:$0xff] %vm13963_vm6, %v3778_v63  ;;  %4333 = vmax.xlane.f32.xlu0 %v4308_v17  ;;  %4057 = vmax.xlane.f32.xlu1 %v4032_v8  ;;  %v4722_v17 = vsel %vm12327_vm14, %v10404_v3, -1e+30  ;;  %v4446_v8 = vsel %vm12327_vm14, %v10401_v27, -1e+30  ;;  %vm13972_vm6 = vcmask 154768  }
 0x8f4   :  { %v3847_v60 = vpop.xlane.xlu0 %3846 }
 0x8f5   :  { %3872 = vst.msk [vmem:[#allocation2 + $0x38] sm:$0xff] %vm13964_vm15, %v3847_v60  ;;  %v4123_v45 = vpop.xlane.xlu1 %4122 }
 0x8f7   :  { %4678 = vmax.xlane.f32.xlu0 %v4653_v12  ;;  %4402 = vmax.xlane.f32.xlu1 %v4377_v7  ;;  %v12468_v12 = vld [vmem:[%s13117_s1 + $0x40] sm:$0xff]  ;;  %v13968_v7 = vld [vmem:[#allocation53_spill] sm:$0xff] }
 0x8f8   :  { %v3916_v63 = vpop.xlane.xlu0 %3915  ;;  %vm13969_vm3 = vnez %v13968_v7  ;;  %vm2384_vm15 = vcmp.gt.f32.partialorder %v12468_v12, 0.0 }
 0x8f9   :  { %3941 = vst.msk [vmem:[#allocation2 + $0x38] sm:$0xff] %vm13967_vm9, %v3916_v63  ;;  %v4192_v26 = vpop.xlane.xlu1 %4191  ;;  %v13971_v24 = vsel %vm13969_vm3, 1.0, %v13970_v39  ;;  %vm13974_vm9 = vcmask 171168   ;;  %v4584_v39 = vsel %vm12327_vm14, %v10434_v19, -1e+30  ;;  %vm13977_vm3 = vcmask 179368  }
 0x8fa   :  { %v2368_v63 = vsel %vm2352_vm1, 1.0, %v13971_v24 }
 0x8fb   :  { %4747 = vmax.xlane.f32.xlu0 %v4722_v17  ;;  %4471 = vmax.xlane.f32.xlu1 %v4446_v8  ;;  %v4515_v17 = vsel %vm12327_vm14, %v10413_v42, -1e+30  ;;  %vm2400_vm8 = vcmp.gt.f32.partialorder %v2368_v63, 0.0 }
 0x8fc   :  { %v3985_v60 = vpop.xlane.xlu0 %3984  ;;  %vm12492_vm1 = vmor %vm2384_vm15, %vm2400_vm8  ;;  %vm13982_vm8 = vcmask 220368  }
 0x8fd   :  { %4010 = vst.msk [vmem:[#allocation2 + $0x38] sm:$0xff] %vm13972_vm6, %v3985_v60  ;;  %v4261_v9 = vpop.xlane.xlu1 %4260  ;;  %v4860_v60 = vsel %vm12327_vm14, %v10437_v22, -1e+30  ;;  %vm13978_vm6 = vcmask 187568   ;;  %v2720_v16 = vsel %vm12492_vm1, %v10223_v29, -1e+30 }
 0x8fe   :  { %v2996_v63 = vsel %vm12492_vm1, %v10250_v23, -1e+30  ;;  %vm13981_vm14 = vcmask 212168  }
 0x8ff   :  { %4816 = vmax.xlane.f32.xlu0 %v4791_v53  ;;  %4540 = vmax.xlane.f32.xlu1 %v4515_v17  ;;  %v2789_v17 = vsel %vm12492_vm1, %v10247_v59, -1e+30 }
 0x900   :  { %v4054_v8 = vpop.xlane.xlu0 %4053 }
 0x901   :  { %4079 = vst.msk [vmem:[#allocation2 + $0x38] sm:$0xff] %vm13973_vm12, %v4054_v8  ;;  %v4330_v7 = vpop.xlane.xlu1 %4329  ;;  %vm13979_vm12 = vcmask 195768   ;;  %v3065_v8 = vsel %vm12492_vm1, %v10268_v48, -1e+30 }
 0x902   :  { %4148 = vst.msk [vmem:[#allocation2 + $0x38] sm:$0xff] %vm13974_vm9, %v4123_v45  ;;  %vm13980_vm9 = vcmask 203968  }
 0x903   :  { %4217 = vst.msk [vmem:[#allocation2 + $0x38] sm:$0xff] %vm13977_vm3, %v4192_v26  ;;  %4885 = vmax.xlane.f32.xlu0 %v4860_v60  ;;  %4609 = vmax.xlane.f32.xlu1 %v4584_v39  ;;  %v3134_v60 = vsel %vm12492_vm1, %v10278_v21, -1e+30  ;;  %vm13983_vm3 = vcmask 228568   ;;  %v2927_v39 = vsel %vm12492_vm1, %v10226_v5, -1e+30 }
 0x904   :  { %4286 = vst.msk [vmem:[#allocation2 + $0x38] sm:$0xff] %vm13978_vm6, %v4261_v9  ;;  %v4399_v45 = vpop.xlane.xlu0 %4398  ;;  %vm13984_vm6 = vcmask 236768   ;;  %v3272_v5 = vsel %vm12492_vm1, %v10290_v58, -1e+30 }
 0x905   :  { %4355 = vst.msk [vmem:[#allocation2 + $0x38] sm:$0xff] %vm13979_vm12, %v4330_v7  ;;  %v4675_v24 = vpop.xlane.xlu1 %4674  ;;  %v2858_v7 = vsel %vm12492_vm1, %v10265_v31, -1e+30  ;;  %v3203_v31 = vsel %vm12492_vm1, %v10281_v56, -1e+30  ;;  %vm13985_vm12 = vcmask 244968  }
 0x906   :  { %4424 = vst.msk [vmem:[#allocation2 + $0x38] sm:$0xff] %vm13980_vm9, %v4399_v45  ;;  %vm13986_vm9 = vcmask 253168   ;;  %v3548_v56 = vsel %vm12492_vm1, %v10293_v55, -1e+30  ;;  %v3410_v55 = vsel %vm12492_vm1, %v10314_v52, -1e+30 }
 0x907   :  { %2744 = vmax.xlane.f32.xlu0 %v2720_v16  ;;  %3020 = vmax.xlane.f32.xlu1 %v2996_v63  ;;  %v3341_v63 = vsel %vm12492_vm1, %v10302_v46, -1e+30 }
 0x908   :  { %v4468_v26 = vpop.xlane.xlu0 %4467 }
 0x909   :  { %4493 = vst.msk [vmem:[#allocation2 + $0x38] sm:$0xff] %vm13981_vm14, %v4468_v26  ;;  %v4744_v9 = vpop.xlane.xlu1 %4743  ;;  %vm13987_vm14 = vcmask 261368   ;;  %v3617_v26 = vsel %vm12492_vm1, %v10305_v10, -1e+30  ;;  %v3479_v10 = vsel %vm12492_vm1, %v10326_v15, -1e+30 }
 0x90a   :  { %v3893_v15 = vsel %vm12492_vm1, %v10351_v1, -1e+30  ;;  %v4169_v1 = vsel %vm12492_vm1, %v10354_v40, -1e+30  ;;  %v4100_v40 = vsel %vm12492_vm1, %v10342_v33, -1e+30 }
 0x90b   :  { %2813 = vmax.xlane.f32.xlu0 %v2789_v17  ;;  %3089 = vmax.xlane.f32.xlu1 %v3065_v8  ;;  %v3686_v17 = vsel %vm12492_vm1, %v10317_v11, -1e+30  ;;  %v4445_v33 = vsel %vm12492_vm1, %v10401_v27, -1e+30  ;;  %v4514_v27 = vsel %vm12492_vm1, %v10413_v42, -1e+30 }
 0x90c   :  { %v4537_v29 = vpop.xlane.xlu0 %4536 }
 0x90d   :  { %4562 = vst.msk [vmem:[#allocation2 + $0x38] sm:$0xff] %vm13982_vm8, %v4537_v29  ;;  %v4813_v23 = vpop.xlane.xlu1 %4812  ;;  %vm13988_vm8 = vcmask 7168   ;;  %v3755_v29 = vsel %vm12492_vm1, %v10329_v18, -1e+30  ;;  %v3824_v18 = vsel %vm12492_vm1, %v10339_v14, -1e+30 }
 0x90f   :  { %2882 = vmax.xlane.f32.xlu0 %v2858_v7  ;;  %3158 = vmax.xlane.f32.xlu1 %v3134_v60  ;;  %v3962_v60 = vsel %vm12492_vm1, %v10363_v51, -1e+30 }
 0x910   :  { %v4606_v59 = vpop.xlane.xlu0 %4605 }
 0x911   :  { %4631 = vst.msk [vmem:[#allocation2 + $0x38] sm:$0xff] %vm13983_vm3, %v4606_v59  ;;  %v4882_v48 = vpop.xlane.xlu1 %4881  ;;  %vm13989_vm3 = vcmask 15368  }
 0x912   :  { %4700 = vst.msk [vmem:[#allocation2 + $0x38] sm:$0xff] %vm13984_vm6, %v4675_v24  ;;  %vm13990_vm6 = vcmask 23568  }
 0x913   :  { %4769 = vst.msk [vmem:[#allocation2 + $0x38] sm:$0xff] %vm13985_vm12, %v4744_v9  ;;  %2951 = vmax.xlane.f32.xlu0 %v2927_v39  ;;  %3227 = vmax.xlane.f32.xlu1 %v3203_v31  ;;  %vm13991_vm12 = vcmask 31768   ;;  %v4238_v39 = vsel %vm12492_vm1, %v10366_v6, -1e+30 }
 0x914   :  { %4838 = vst.msk [vmem:[#allocation2 + $0x38] sm:$0xff] %vm13986_vm9, %v4813_v23  ;;  %v3017_v21 = vpop.xlane.xlu0 %3016  ;;  %vm13992_vm9 = vcmask 39968  }
 0x915   :  { %4907 = vst.msk [vmem:[#allocation2 + $0x38] sm:$0xff] %vm13987_vm14, %v4882_v48  ;;  %v2741_v45 = vpop.xlane.xlu1 %2740  ;;  %vm13993_vm14 = vcmask 48168   ;;  %v4031_v48 = vsel %vm12492_vm1, %v10376_v20, -1e+30 }
 0x916   :  { %2767 = vst.msk [vmem:[#allocation2 + $0x30] sm:$0xff] %vm13988_vm8, %v2741_v45  ;;  %vm13994_vm8 = vcmask 56368  }
 0x917   :  { %3296 = vmax.xlane.f32.xlu0 %v3272_v5  ;;  %3572 = vmax.xlane.f32.xlu1 %v3548_v56 }
 0x918   :  { %v3086_v24 = vpop.xlane.xlu0 %3085 }
 0x919   :  { %v2810_v16 = vpop.xlane.xlu1 %2809 }
 0x91a   :  { %2836 = vst.msk [vmem:[#allocation2 + $0x30] sm:$0xff] %vm13989_vm3, %v2810_v16  ;;  %vm13995_vm3 = vcmask 64568  }
 0x91b   :  { %3365 = vmax.xlane.f32.xlu0 %v3341_v63  ;;  %3641 = vmax.xlane.f32.xlu1 %v3617_v26  ;;  %v4583_v26 = vsel %vm12492_vm1, %v10434_v19, -1e+30 }
 0x91c   :  { %v3155_v58 = vpop.xlane.xlu0 %3154 }
 0x91d   :  { %v2879_v9 = vpop.xlane.xlu1 %2878 }
 0x91e   :  { %2905 = vst.msk [vmem:[#allocation2 + $0x30] sm:$0xff] %vm13990_vm6, %v2879_v9  ;;  %vm13996_vm6 = vcmask 72768  }
 0x91f   :  { %3434 = vmax.xlane.f32.xlu0 %v3410_v55  ;;  %3710 = vmax.xlane.f32.xlu1 %v3686_v17  ;;  %v4652_v55 = vsel %vm12492_vm1, %v10391_v25, -1e+30  ;;  %v4859_v17 = vsel %vm12492_vm1, %v10437_v22, -1e+30 }
 0x920   :  { %v3224_v46 = vpop.xlane.xlu0 %3223 }
 0x921   :  { %v2948_v8 = vpop.xlane.xlu1 %2947 }
 0x922   :  { %2974 = vst.msk [vmem:[#allocation2 + $0x30] sm:$0xff] %vm13991_vm12, %v2948_v8  ;;  %vm13997_vm12 = vcmask 80968   ;;  %v4864_v8 = vsel %vm10561_vm7, %v10437_v22, -1e+30  ;;  %vm14013_vm7 = vcmask 212168  }
 0x923   :  { %3043 = vst.msk [vmem:[#allocation2 + $0x30] sm:$0xff] %vm13992_vm9, %v3017_v21  ;;  %3503 = vmax.xlane.f32.xlu0 %v3479_v10  ;;  %3779 = vmax.xlane.f32.xlu1 %v3755_v29  ;;  %vm13998_vm9 = vcmask 89168   ;;  %v4307_v21 = vsel %vm12492_vm1, %v10379_v37, -1e+30  ;;  %v4376_v37 = vsel %vm12492_vm1, %v10388_v38, -1e+30 }
 0x924   :  { %3112 = vst.msk [vmem:[#allocation2 + $0x30] sm:$0xff] %vm13993_vm14, %v3086_v24  ;;  %v3569_v52 = vpop.xlane.xlu0 %3568  ;;  %vm13999_vm14 = vcmask 97368   ;;  %v4721_v38 = vsel %vm12492_vm1, %v10404_v3, -1e+30  ;;  %v4659_v10 = vsel %vm10862_vm13, %v10391_v25, -1e+30 }
 0x925   :  { %3181 = vst.msk [vmem:[#allocation2 + $0x30] sm:$0xff] %vm13994_vm8, %v3155_v58  ;;  %v3293_v11 = vpop.xlane.xlu1 %3292  ;;  %vm14000_vm8 = vcmask 105568   ;;  %v4790_v58 = vsel %vm12492_vm1, %v10416_v41, -1e+30  ;;  %vm14011_vm1 = vcmask 195768  }
 0x926   :  { %3250 = vst.msk [vmem:[#allocation2 + $0x30] sm:$0xff] %vm13995_vm3, %v3224_v46  ;;  %vm14001_vm3 = vcmask 113768   ;;  %v4728_v25 = vsel %vm10862_vm13, %v10404_v3, -1e+30  ;;  %v4796_v3 = vsel %vm10985_vm10, %v10416_v41, -1e+30 }
 0x927   :  { %3319 = vst.msk [vmem:[#allocation2 + $0x30] sm:$0xff] %vm13996_vm6, %v3293_v11  ;;  %3917 = vmax.xlane.f32.xlu0 %v3893_v15  ;;  %3848 = vmax.xlane.f32.xlu1 %v3824_v18  ;;  %vm14002_vm6 = vcmask 121968   ;;  %v5340_v15 = vld [vmem:[%s13124_s8] sm:$0xff]  ;;  %v5341_v18 = vld [vmem:[%s13124_s8 + $0x8] sm:$0xff] }
 0x928   :  { %v3638_v23 = vpop.xlane.xlu0 %3637 }
 0x929   :  { %v3362_v7 = vpop.xlane.xlu1 %3361 }
 0x92a   :  { %3388 = vst.msk [vmem:[#allocation2 + $0x30] sm:$0xff] %vm13997_vm12, %v3362_v7  ;;  %vm14003_vm12 = vcmask 130168   ;;  %v7687_v7 = vpack.c.bf16 %v5341_v18, %v5340_v15 }
 0x92b   :  { %3986 = vmax.xlane.f32.xlu0 %v3962_v60  ;;  %4193 = vmax.xlane.f32.xlu1 %v4169_v1 }
 0x92c   :  { %v3707_v59 = vpop.xlane.xlu0 %3706  ;;  %7688 = vmatprep.subr.bf16.mxu1 %v7687_v7 }
 0x92d   :  { %v3431_v14 = vpop.xlane.xlu1 %3430  ;;  %7690 = vmatpush3.bf16.msra.mxu1 %v7687_v7 }
 0x92e   :  { %3457 = vst.msk [vmem:[#allocation2 + $0x30] sm:$0xff] %vm13998_vm9, %v3431_v14  ;;  %vm14004_vm9 = vcmask 138368   ;;  %v4866_v14 = vsel %vm10862_vm13, %v10437_v22, -1e+30 }
 0x92f   :  { %4055 = vmax.xlane.f32.xlu0 %v4031_v48  ;;  %4262 = vmax.xlane.f32.xlu1 %v4238_v39 }
 0x930   :  { %v3776_v51 = vpop.xlane.xlu0 %3775 }
 0x931   :  { %v3500_v31 = vpop.xlane.xlu1 %3499 }
 0x932   :  { %3526 = vst.msk [vmem:[#allocation2 + $0x30] sm:$0xff] %vm13999_vm14, %v3500_v31  ;;  %vm14005_vm14 = vcmask 146568  }
 0x933   :  { %3595 = vst.msk [vmem:[#allocation2 + $0x30] sm:$0xff] %vm14000_vm8, %v3569_v52  ;;  %4124 = vmax.xlane.f32.xlu0 %v4100_v40  ;;  %4331 = vmax.xlane.f32.xlu1 %v4307_v21  ;;  %vm14006_vm8 = vcmask 154768   ;;  %v5343_v40 = vld [vmem:[%s13124_s8 + $0x18] sm:$0xff] }
 0x934   :  { %3664 = vst.msk [vmem:[#allocation2 + $0x30] sm:$0xff] %vm14001_vm3, %v3638_v23  ;;  %v4190_v6 = vpop.xlane.xlu0 %4189  ;;  %vm14007_vm3 = vcmask 162968   ;;  %v4797_v23 = vsel %vm10862_vm13, %v10416_v41, -1e+30  ;;  %vm14023_vm13 = vcmask 23568  }
 0x935   :  { %3733 = vst.msk [vmem:[#allocation2 + $0x30] sm:$0xff] %vm14002_vm6, %v3707_v59  ;;  %v3845_v20 = vpop.xlane.xlu1 %3844  ;;  %vm14008_vm6 = vcmask 171168   ;;  %v4865_v59 = vsel %vm10985_vm10, %v10437_v22, -1e+30  ;;  %vm14021_vm10 = vcmask 15368   ;;  %v4923_v22 = vld [vmem:[#allocation2 + $0x38] sm:$0xff] }
 0x936   :  { %3802 = vst.msk [vmem:[#allocation2 + $0x30] sm:$0xff] %vm14003_vm12, %v3776_v51  ;;  %vm14009_vm12 = vcmask 179368  }
 0x937   :  { %3871 = vst.msk [vmem:[#allocation2 + $0x30] sm:$0xff] %vm14004_vm9, %v3845_v20  ;;  %v12602_v45 = vpop.f32.mrb[28].mxu1  ;;  %4469 = vmax.xlane.f32.xlu0 %v4445_v33  ;;  %4400 = vmax.xlane.f32.xlu1 %v4376_v37  ;;  %vm14010_vm9 = vcmask 187568   ;;  %v7691_v20 = vpack.c.bf16 %v5343_v40, %v5342_v2  ;;  %v14022_v37 = vld [vmem:[#allocation31_spill] sm:$0xff] }
 0x938   :  { %v12604_v5 = vpop.f32.mrb[29].mxu1  ;;  %v4259_v56 = vpop.xlane.xlu0 %4258 }
 0x939   :  { %v3914_v24 = vpop.xlane.xlu1 %3913  ;;  %7692 = vmatprep.subr.bf16.mxu1 %v7691_v20 }
 0x93a   :  { %3940 = vst.msk [vmem:[#allocation2 + $0x30] sm:$0xff] %vm14005_vm14, %v3914_v24  ;;  %vm14012_vm14 = vcmask 203968   ;;  %v14024_v24 = vld [vmem:[#allocation30_spill] sm:$0xff]  ;;  %7694 = vmatpush3.bf16.msra.mxu1 %v7691_v20 }
 0x93b   :  { %4538 = vmax.xlane.f32.xlu0 %v4514_v27  ;;  %4745 = vmax.xlane.f32.xlu1 %v4721_v38  ;;  %v12682_v27 = vadd.f32 %v14024_v24, %v4923_v22 }
 0x93c   :  { %v4328_v16 = vpop.xlane.xlu0 %4327 }
 0x93d   :  { %v3983_v63 = vpop.xlane.xlu1 %3982 }
 0x93e   :  { %4009 = vst.msk [vmem:[#allocation2 + $0x30] sm:$0xff] %vm14006_vm8, %v3983_v63  ;;  %vm14014_vm8 = vcmask 220368  }
 0x93f   :  { %4607 = vmax.xlane.f32.xlu0 %v4583_v26  ;;  %4814 = vmax.xlane.f32.xlu1 %v4790_v58 }
 0x940   :  { %v4397_v42 = vpop.xlane.xlu0 %4396 }
 0x941   :  { %v4052_v9 = vpop.xlane.xlu1 %4051 }
 0x942   :  { %4078 = vst.msk [vmem:[#allocation2 + $0x30] sm:$0xff] %vm14007_vm3, %v4052_v9  ;;  %vm14015_vm3 = vcmask 228568  }
 0x943   :  { %4676 = vmax.xlane.f32.xlu0 %v4652_v55  ;;  %4883 = vmax.xlane.f32.xlu1 %v4859_v17 }
 0x944   :  { %v4742_v19 = vpop.xlane.xlu0 %4741 }
 0x945   :  { %v4121_v46 = vpop.xlane.xlu1 %4120 }
 0x946   :  { %4147 = vst.msk [vmem:[#allocation2 + $0x30] sm:$0xff] %vm14008_vm6, %v4121_v46  ;;  %vm14016_vm6 = vcmask 236768  }
 0x947   :  { %4216 = vst.msk [vmem:[#allocation2 + $0x30] sm:$0xff] %vm14009_vm12, %v4190_v6  ;;  %4893 = vmax.xlane.f32.xlu0 %v4864_v8  ;;  %4690 = vmax.xlane.f32.xlu1 %v4659_v10  ;;  %vm14017_vm12 = vcmask 244968  }
 0x948   :  { %4285 = vst.msk [vmem:[#allocation2 + $0x30] sm:$0xff] %vm14010_vm9, %v4259_v56  ;;  %v4811_v53 = vpop.xlane.xlu0 %4810  ;;  %vm14018_vm9 = vcmask 253168  }
 0x949   :  { %4354 = vst.msk [vmem:[#allocation2 + $0x30] sm:$0xff] %vm14011_vm1, %v4328_v16  ;;  %v4466_v29 = vpop.xlane.xlu1 %4465  ;;  %vm14019_vm1 = vcmask 261368  }
 0x94a   :  { %4423 = vst.msk [vmem:[#allocation2 + $0x30] sm:$0xff] %vm14012_vm14, %v4397_v42  ;;  %vm14020_vm14 = vcmask 7168  }
 0x94b   :  { %4492 = vst.msk [vmem:[#allocation2 + $0x30] sm:$0xff] %vm14013_vm7, %v4466_v29  ;;  %4757 = vmax.xlane.f32.xlu0 %v4727_v62  ;;  %4759 = vmax.xlane.f32.xlu1 %v4728_v25  ;;  %vm14025_vm7 = vcmask 31768  }
 0x94c   :  { %v4880_v52 = vpop.xlane.xlu0 %4879 }
 0x94d   :  { %v4535_v11 = vpop.xlane.xlu1 %4534 }
 0x94e   :  { %4561 = vst.msk [vmem:[#allocation2 + $0x30] sm:$0xff] %vm14014_vm8, %v4535_v11  ;;  %vm14026_vm8 = vcmask 39968  }
 0x94f   :  { %4826 = vmax.xlane.f32.xlu0 %v4796_v3  ;;  %4828 = vmax.xlane.f32.xlu1 %v4797_v23 }
 0x950   :  { %v2954_v60 = vpop.xlane.xlu0 %2953 }
 0x951   :  { %v4604_v1 = vpop.xlane.xlu1 %4603 }
 0x952   :  { %4630 = vst.msk [vmem:[#allocation2 + $0x30] sm:$0xff] %vm14015_vm3, %v4604_v1  ;;  %vm14027_vm3 = vcmask 48168  }
 0x953   :  { %4895 = vmax.xlane.f32.xlu0 %v4865_v59  ;;  %4897 = vmax.xlane.f32.xlu1 %v4866_v14 }
 0x954   :  { %v3023_v41 = vpop.xlane.xlu0 %3022 }
 0x955   :  { %v4673_v48 = vpop.xlane.xlu1 %4672 }
 0x956   :  { %4699 = vst.msk [vmem:[#allocation2 + $0x30] sm:$0xff] %vm14016_vm6, %v4673_v48  ;;  %vm14028_vm6 = vcmask 56368  }
 0x957   :  { %4768 = vst.msk [vmem:[#allocation2 + $0x30] sm:$0xff] %vm14017_vm12, %v4742_v19  ;;  %vm14029_vm12 = vcmask 64568  }
 0x958   :  { %4837 = vst.msk [vmem:[#allocation2 + $0x30] sm:$0xff] %vm14018_vm9, %v4811_v53  ;;  %v3092_v39 = vpop.xlane.xlu0 %3091  ;;  %vm14030_vm9 = vcmask 72768  }
 0x959   :  { %4906 = vst.msk [vmem:[#allocation2 + $0x30] sm:$0xff] %vm14019_vm1, %v4880_v52  ;;  %v2747_v51 = vpop.xlane.xlu1 %2746  ;;  %vm14031_vm1 = vcmask 80968  }
 0x95a   :  { %2770 = vst.msk [vmem:[#allocation2 + $0x48] sm:$0xff] %vm14020_vm14, %v2747_v51  ;;  %vm14032_vm14 = vcmask 89168  }
 0x95c   :  { %v3161_v36 = vpop.xlane.xlu0 %3160 }
 0x95d   :  { %v2816_v31 = vpop.xlane.xlu1 %2815 }
 0x95e   :  { %2839 = vst.msk [vmem:[#allocation2 + $0x48] sm:$0xff] %vm14021_vm10, %v2816_v31  ;;  %vm14033_vm10 = vcmask 97368  }
 0x960   :  { %v3506_v21 = vpop.xlane.xlu0 %3505  ;;  %v4922_v6 = vld [vmem:[#allocation2 + $0x30] sm:$0xff] }
 0x961   :  { %v2885_v33 = vpop.xlane.xlu1 %2884  ;;  %v12678_v56 = vadd.f32 %v14022_v37, %v4922_v6 }
 0x962   :  { %2908 = vst.msk [vmem:[#allocation2 + $0x48] sm:$0xff] %vm14023_vm13, %v2885_v33  ;;  %vm14034_vm13 = vcmask 105568  }
 0x963   :  { %2977 = vst.msk [vmem:[#allocation2 + $0x48] sm:$0xff] %vm14025_vm7, %v2954_v60  ;;  %7224 = vmatprep.mubr.msk.f32.mxu1 %vm5146_vm4, %v12678_v56  ;;  %vm14035_vm7 = vcmask 113768  }
 0x964   :  { %3046 = vst.msk [vmem:[#allocation2 + $0x48] sm:$0xff] %vm14026_vm8, %v3023_v41  ;;  %7225 = vmatmul.mubr.msk.f32.gmra.mrb[32].mxu1 %vm5146_vm4, %v12682_v27  ;;  %v3575_v38 = vpop.xlane.xlu0 %3574  ;;  %vm14036_vm8 = vcmask 121968  }
 0x965   :  { %3115 = vst.msk [vmem:[#allocation2 + $0x48] sm:$0xff] %vm14027_vm3, %v3092_v39  ;;  %v3230_v16 = vpop.xlane.xlu1 %3229  ;;  %vm14037_vm3 = vcmask 130168  }
 0x966   :  { %3184 = vst.msk [vmem:[#allocation2 + $0x48] sm:$0xff] %vm14028_vm6, %v3161_v36  ;;  %vm14038_vm6 = vcmask 138368  }
 0x967   :  { %3253 = vst.msk [vmem:[#allocation2 + $0x48] sm:$0xff] %vm14029_vm12, %v3230_v16  ;;  %vm14039_vm12 = vcmask 146568  }
 0x968   :  { %v3644_v63 = vpop.xlane.xlu0 %3643 }
 0x969   :  { %v3299_v26 = vpop.xlane.xlu1 %3298 }
 0x96a   :  { %3322 = vst.msk [vmem:[#allocation2 + $0x48] sm:$0xff] %vm14030_vm9, %v3299_v26  ;;  %vm14040_vm9 = vcmask 154768  }
 0x96c   :  { %v3713_v58 = vpop.xlane.xlu0 %3712 }
 0x96d   :  { %v3368_v42 = vpop.xlane.xlu1 %3367 }
 0x96e   :  { %3391 = vst.msk [vmem:[#allocation2 + $0x48] sm:$0xff] %vm14031_vm1, %v3368_v42  ;;  %vm14041_vm1 = vcmask 162968  }
 0x970   :  { %v3782_v9 = vpop.xlane.xlu0 %3781 }
 0x971   :  { %v3437_v55 = vpop.xlane.xlu1 %3436 }
 0x972   :  { %3460 = vst.msk [vmem:[#allocation2 + $0x48] sm:$0xff] %vm14032_vm14, %v3437_v55  ;;  %vm14042_vm14 = vcmask 171168  }
 0x973   :  { %3529 = vst.msk [vmem:[#allocation2 + $0x48] sm:$0xff] %vm14033_vm10, %v3506_v21  ;;  %vm14043_vm10 = vcmask 179368  }
 0x974   :  { %3598 = vst.msk [vmem:[#allocation2 + $0x48] sm:$0xff] %vm14034_vm13, %v3575_v38  ;;  %v4127_v17 = vpop.xlane.xlu0 %4126  ;;  %vm14044_vm13 = vcmask 187568  }
 0x975   :  { %3667 = vst.msk [vmem:[#allocation2 + $0x48] sm:$0xff] %vm14035_vm7, %v3644_v63  ;;  %v3851_v19 = vpop.xlane.xlu1 %3850  ;;  %vm14045_vm7 = vcmask 195768  }
 0x976   :  { %3736 = vst.msk [vmem:[#allocation2 + $0x48] sm:$0xff] %vm14036_vm8, %v3713_v58  ;;  %vm14046_vm8 = vcmask 203968  }
 0x977   :  { %3805 = vst.msk [vmem:[#allocation2 + $0x48] sm:$0xff] %vm14037_vm3, %v3782_v9  ;;  %vm14047_vm3 = vcmask 212168  }
 0x978   :  { %3874 = vst.msk [vmem:[#allocation2 + $0x48] sm:$0xff] %vm14038_vm6, %v3851_v19  ;;  %v4196_v46 = vpop.xlane.xlu0 %4195  ;;  %vm14048_vm6 = vcmask 220368  }
 0x979   :  { %v3920_v8 = vpop.xlane.xlu1 %3919 }
 0x97a   :  { %3943 = vst.msk [vmem:[#allocation2 + $0x48] sm:$0xff] %vm14039_vm12, %v3920_v8  ;;  %vm14049_vm12 = vcmask 228568  }
 0x97c   :  { %v4265_v10 = vpop.xlane.xlu0 %4264 }
 0x97d   :  { %v3989_v53 = vpop.xlane.xlu1 %3988 }
 0x97e   :  { %4012 = vst.msk [vmem:[#allocation2 + $0x48] sm:$0xff] %vm14040_vm9, %v3989_v53  ;;  %vm14050_vm9 = vcmask 236768  }
 0x980   :  { %v4334_v29 = vpop.xlane.xlu0 %4333 }
 0x981   :  { %v4058_v62 = vpop.xlane.xlu1 %4057 }
 0x982   :  { %4081 = vst.msk [vmem:[#allocation2 + $0x48] sm:$0xff] %vm14041_vm1, %v4058_v62  ;;  %vm14051_vm1 = vcmask 244968  }
 0x983   :  { %4150 = vst.msk [vmem:[#allocation2 + $0x48] sm:$0xff] %vm14042_vm14, %v4127_v17  ;;  %vm14052_vm14 = vcmask 253168  }
 0x984   :  { %4219 = vst.msk [vmem:[#allocation2 + $0x48] sm:$0xff] %vm14043_vm10, %v4196_v46  ;;  %v4679_v25 = vpop.xlane.xlu0 %4678  ;;  %vm14053_vm10 = vcmask 7168  }
 0x985   :  { %4288 = vst.msk [vmem:[#allocation2 + $0x48] sm:$0xff] %vm14044_vm13, %v4265_v10  ;;  %v4403_v52 = vpop.xlane.xlu1 %4402  ;;  %vm14054_vm13 = vcmask 261368  }
 0x986   :  { %4357 = vst.msk [vmem:[#allocation2 + $0x48] sm:$0xff] %vm14045_vm7, %v4334_v29  ;;  %vm14055_vm7 = vcmask 15368  }
 0x987   :  { %4426 = vst.msk [vmem:[#allocation2 + $0x48] sm:$0xff] %vm14046_vm8, %v4403_v52  ;;  %vm14056_vm8 = vcmask 23568  }
 0x988   :  { %v4748_v11 = vpop.xlane.xlu0 %4747 }
 0x989   :  { %v4472_v15 = vpop.xlane.xlu1 %4471 }
 0x98a   :  { %4495 = vst.msk [vmem:[#allocation2 + $0x48] sm:$0xff] %vm14047_vm3, %v4472_v15  ;;  %vm14057_vm3 = vcmask 31768  }
 0x98c   :  { %v4817_v18 = vpop.xlane.xlu0 %4816 }
 0x98d   :  { %v4541_v3 = vpop.xlane.xlu1 %4540 }
 0x98e   :  { %4564 = vst.msk [vmem:[#allocation2 + $0x48] sm:$0xff] %vm14048_vm6, %v4541_v3  ;;  %vm14058_vm6 = vcmask 39968   ;;  %v4926_v3 = vld [vmem:[#allocation2 + $0x50] sm:$0xff] }
 0x990   :  { %v4886_v23 = vpop.xlane.xlu0 %4885 }
 0x991   :  { %v4610_v7 = vpop.xlane.xlu1 %4609 }
 0x992   :  { %4633 = vst.msk [vmem:[#allocation2 + $0x48] sm:$0xff] %vm14049_vm12, %v4610_v7  ;;  %vm14059_vm12 = vcmask 48168   ;;  %v14090_v7 = vld [vmem:[#allocation33_spill] sm:$0xff] }
 0x993   :  { %4702 = vst.msk [vmem:[#allocation2 + $0x48] sm:$0xff] %vm14050_vm9, %v4679_v25  ;;  %vm14060_vm9 = vcmask 56368  }
 0x994   :  { %4771 = vst.msk [vmem:[#allocation2 + $0x48] sm:$0xff] %vm14051_vm1, %v4748_v11  ;;  %v2745_v60 = vpop.xlane.xlu0 %2744  ;;  %vm14061_vm1 = vcmask 64568  }
 0x995   :  { %4840 = vst.msk [vmem:[#allocation2 + $0x48] sm:$0xff] %vm14052_vm14, %v4817_v18  ;;  %v3021_v1 = vpop.xlane.xlu1 %3020  ;;  %vm14062_vm14 = vcmask 72768  }
 0x996   :  { %2769 = vst.msk [vmem:[#allocation2 + $0x40] sm:$0xff] %vm14053_vm10, %v2745_v60  ;;  %vm14063_vm10 = vcmask 80968  }
 0x997   :  { %4909 = vst.msk [vmem:[#allocation2 + $0x48] sm:$0xff] %vm14054_vm13, %v4886_v23  ;;  %vm14064_vm13 = vcmask 89168  }
 0x998   :  { %v2814_v59 = vpop.xlane.xlu0 %2813 }
 0x999   :  { %2838 = vst.msk [vmem:[#allocation2 + $0x40] sm:$0xff] %vm14055_vm7, %v2814_v59  ;;  %v3090_v14 = vpop.xlane.xlu1 %3089  ;;  %vm14065_vm7 = vcmask 97368   ;;  %v14092_v59 = vld [vmem:[#allocation32_spill] sm:$0xff] }
 0x99c   :  { %v2883_v41 = vpop.xlane.xlu0 %2882 }
 0x99d   :  { %2907 = vst.msk [vmem:[#allocation2 + $0x40] sm:$0xff] %vm14056_vm8, %v2883_v41  ;;  %v3159_v48 = vpop.xlane.xlu1 %3158  ;;  %vm14066_vm8 = vcmask 105568   ;;  %v14094_v41 = vld [vmem:[#allocation35_spill] sm:$0xff] }
 0x99e   :  { %v4925_v15 = vld [vmem:[#allocation2 + $0x48] sm:$0xff] }
 0x9a0   :  { %v2952_v39 = vpop.xlane.xlu0 %2951 }
 0x9a1   :  { %2976 = vst.msk [vmem:[#allocation2 + $0x40] sm:$0xff] %vm14057_vm3, %v2952_v39  ;;  %v3228_v51 = vpop.xlane.xlu1 %3227  ;;  %vm14067_vm3 = vcmask 113768   ;;  %v4927_v39 = vld [vmem:[#allocation2 + $0x58] sm:$0xff] }
 0x9a2   :  { %3045 = vst.msk [vmem:[#allocation2 + $0x40] sm:$0xff] %vm14058_vm6, %v3021_v1  ;;  %vm14068_vm6 = vcmask 121968  }
 0x9a3   :  { %3114 = vst.msk [vmem:[#allocation2 + $0x40] sm:$0xff] %vm14059_vm12, %v3090_v14  ;;  %vm14069_vm12 = vcmask 130168   ;;  %v5135_v14 = vadd.f32 %v14092_v59, %v4925_v15 }
 0x9a4   :  { %3183 = vst.msk [vmem:[#allocation2 + $0x40] sm:$0xff] %vm14060_vm9, %v3159_v48  ;;  %v3297_v36 = vpop.xlane.xlu0 %3296  ;;  %vm14070_vm9 = vcmask 138368   ;;  %v5136_v48 = vadd.f32 %v14094_v41, %v4926_v3 }
 0x9a5   :  { %3252 = vst.msk [vmem:[#allocation2 + $0x40] sm:$0xff] %vm14061_vm1, %v3228_v51  ;;  %v3573_v31 = vpop.xlane.xlu1 %3572  ;;  %vm14071_vm1 = vcmask 146568   ;;  %v4928_v51 = vld [vmem:[#allocation2 + $0x60] sm:$0xff] }
 0x9a6   :  { %3321 = vst.msk [vmem:[#allocation2 + $0x40] sm:$0xff] %vm14062_vm14, %v3297_v36  ;;  %vm14072_vm14 = vcmask 154768  }
 0x9a8   :  { %v3366_v22 = vpop.xlane.xlu0 %3365 }
 0x9a9   :  { %3390 = vst.msk [vmem:[#allocation2 + $0x40] sm:$0xff] %vm14063_vm10, %v3366_v22  ;;  %v3642_v2 = vpop.xlane.xlu1 %3641  ;;  %vm14073_vm10 = vcmask 162968   ;;  %v14096_v22 = vld [vmem:[#allocation34_spill] sm:$0xff] }
 0x9ac   :  { %v3435_v40 = vpop.xlane.xlu0 %3434 }
 0x9ad   :  { %3459 = vst.msk [vmem:[#allocation2 + $0x40] sm:$0xff] %vm14064_vm13, %v3435_v40  ;;  %v3711_v21 = vpop.xlane.xlu1 %3710  ;;  %vm14074_vm13 = vcmask 171168   ;;  %v14098_v40 = vld [vmem:[#allocation37_spill] sm:$0xff] }
 0x9b0   :  { %v3504_v6 = vpop.xlane.xlu0 %3503 }
 0x9b1   :  { %3528 = vst.msk [vmem:[#allocation2 + $0x40] sm:$0xff] %vm14065_vm7, %v3504_v6  ;;  %v3780_v20 = vpop.xlane.xlu1 %3779  ;;  %vm14075_vm7 = vcmask 179368  }
 0x9b2   :  { %3597 = vst.msk [vmem:[#allocation2 + $0x40] sm:$0xff] %vm14066_vm8, %v3573_v31  ;;  %vm14076_vm8 = vcmask 187568  }
 0x9b3   :  { %3666 = vst.msk [vmem:[#allocation2 + $0x40] sm:$0xff] %vm14067_vm3, %v3642_v2  ;;  %v12731_v33 = vpop.f32.mrb[30].mxu1  ;;  %vm14077_vm3 = vcmask 195768   ;;  %v5137_v2 = vadd.f32 %v14096_v22, %v4927_v39 }
 0x9b4   :  { %3735 = vst.msk [vmem:[#allocation2 + $0x40] sm:$0xff] %vm14068_vm6, %v3711_v21  ;;  %v12734_v37 = vpop.f32.mrb[31].mxu1  ;;  %v3918_v24 = vpop.xlane.xlu0 %3917  ;;  %vm14078_vm6 = vcmask 203968   ;;  %v5138_v21 = vadd.f32 %v14098_v40, %v4928_v51 }
 0x9b5   :  { %3804 = vst.msk [vmem:[#allocation2 + $0x40] sm:$0xff] %vm14069_vm12, %v3780_v20  ;;  %v3849_v38 = vpop.xlane.xlu1 %3848  ;;  %vm14079_vm12 = vcmask 212168   ;;  %v14099_v20 = vld [vmem:[#allocation36_spill] sm:$0xff] }
 0x9b6   :  { %3873 = vst.msk [vmem:[#allocation2 + $0x40] sm:$0xff] %vm14070_vm9, %v3849_v38  ;;  %vm14080_vm9 = vcmask 220368  }
 0x9b7   :  { %3942 = vst.msk [vmem:[#allocation2 + $0x40] sm:$0xff] %vm14071_vm1, %v3918_v24  ;;  %vm14081_vm1 = vcmask 228568  }
 0x9b8   :  { %v3987_v16 = vpop.xlane.xlu0 %3986 }
 0x9b9   :  { %4011 = vst.msk [vmem:[#allocation2 + $0x40] sm:$0xff] %vm14072_vm14, %v3987_v16  ;;  %v4194_v63 = vpop.xlane.xlu1 %4193  ;;  %vm14082_vm14 = vcmask 236768   ;;  %v14100_v16 = vld [vmem:[#allocation39_spill] sm:$0xff] }
 0x9bc   :  { %v4056_v26 = vpop.xlane.xlu0 %4055 }
 0x9bd   :  { %4080 = vst.msk [vmem:[#allocation2 + $0x40] sm:$0xff] %vm14073_vm10, %v4056_v26  ;;  %v4263_v58 = vpop.xlane.xlu1 %4262  ;;  %vm14083_vm10 = vcmask 244968  }
 0x9c0   :  { %v4125_v42 = vpop.xlane.xlu0 %4124 }
 0x9c1   :  { %4149 = vst.msk [vmem:[#allocation2 + $0x40] sm:$0xff] %vm14074_vm13, %v4125_v42  ;;  %v4332_v9 = vpop.xlane.xlu1 %4331  ;;  %vm14084_vm13 = vcmask 253168  }
 0x9c2   :  { %4218 = vst.msk [vmem:[#allocation2 + $0x40] sm:$0xff] %vm14075_vm7, %v4194_v63  ;;  %vm14085_vm7 = vcmask 261368  }
 0x9c3   :  { %4287 = vst.msk [vmem:[#allocation2 + $0x40] sm:$0xff] %vm14076_vm8, %v4263_v58  ;;  %vm14086_vm8 = vmmov %vm14085_vm7  ;;  %v14101_v58 = vld [vmem:[#allocation38_spill] sm:$0xff] }
 0x9c4   :  { %4356 = vst.msk [vmem:[#allocation2 + $0x40] sm:$0xff] %vm14077_vm3, %v4332_v9  ;;  %v4470_v55 = vpop.xlane.xlu0 %4469  ;;  %vm14087_vm3 = vmmov %vm14082_vm14 }
 0x9c5   :  { %v4401_v17 = vpop.xlane.xlu1 %4400 }
 0x9c6   :  { %4425 = vst.msk [vmem:[#allocation2 + $0x40] sm:$0xff] %vm14078_vm6, %v4401_v17  ;;  %vm14088_vm6 = vmmov %vm14083_vm10 }
 0x9c7   :  { %4494 = vst.msk [vmem:[#allocation2 + $0x40] sm:$0xff] %vm14079_vm12, %v4470_v55  ;;  %vm14089_vm12 = vmmov %vm14088_vm6 }
 0x9c8   :  { %v4539_v19 = vpop.xlane.xlu0 %4538 }
 0x9c9   :  { %4563 = vst.msk [vmem:[#allocation2 + $0x40] sm:$0xff] %vm14080_vm9, %v4539_v19  ;;  %v4746_v46 = vpop.xlane.xlu1 %4745  ;;  %vm14091_vm9 = vmmov %vm14084_vm13 }
 0x9cc   :  { %v4608_v8 = vpop.xlane.xlu0 %4607 }
 0x9cd   :  { %4632 = vst.msk [vmem:[#allocation2 + $0x40] sm:$0xff] %vm14081_vm1, %v4608_v8  ;;  %v4815_v10 = vpop.xlane.xlu1 %4814  ;;  %vm14093_vm1 = vmmov %vm14091_vm9 }
 0x9d0   :  { %v4677_v53 = vpop.xlane.xlu0 %4676 }
 0x9d1   :  { %4701 = vst.msk [vmem:[#allocation2 + $0x40] sm:$0xff] %vm14082_vm14, %v4677_v53  ;;  %v4884_v29 = vpop.xlane.xlu1 %4883  ;;  %vm14095_vm14 = vmmov %vm14085_vm7 }
 0x9d2   :  { %4770 = vst.msk [vmem:[#allocation2 + $0x40] sm:$0xff] %vm14083_vm10, %v4746_v46  ;;  %vm14097_vm10 = vmmov %vm14085_vm7 }
 0x9d3   :  { %4839 = vst.msk [vmem:[#allocation2 + $0x40] sm:$0xff] %vm14084_vm13, %v4815_v10  ;;  %vm12805_vm13 = vmpackc.low %vm5146_vm4, %vm5146_vm4 }
 0x9d4   :  { %4908 = vst.msk [vmem:[#allocation2 + $0x40] sm:$0xff] %vm14085_vm7, %v4884_v29  ;;  %v4894_v62 = vpop.xlane.xlu0 %4893  ;;  %vm14105_vm7 = vcmp.gt.f32.partialorder %v11689_v57, 0.0 }
 0x9d5   :  { %4913 = vst.msk [vmem:[#allocation2 + $0x68] sm:$0xff] %vm14086_vm8, %v4894_v62  ;;  %v4691_v25 = vpop.xlane.xlu1 %4690  ;;  %vm14106_vm8 = vcmp.gt.f32.partialorder %v11856_v35, 0.0 }
 0x9d6   :  { %4708 = vst.msk [vmem:[#allocation2 + $0x78] sm:$0xff] %vm14087_vm3, %v4691_v25  ;;  %vm14107_vm3 = vcmp.gt.f32.partialorder %v12003_v13, 0.0 }
 0x9d8   :  { %v4758_v52 = vpop.xlane.xlu0 %4757 }
 0x9d9   :  { %4776 = vst.msk [vmem:[#allocation2 + $0x70] sm:$0xff] %vm14088_vm6, %v4758_v52  ;;  %v4760_v11 = vpop.xlane.xlu1 %4759  ;;  %vm14108_vm6 = vcmp.gt.f32.partialorder %v12159_v49, 0.0 }
 0x9da   :  { %4777 = vst.msk [vmem:[#allocation2 + $0x78] sm:$0xff] %vm14089_vm12, %v4760_v11 }
 0x9db   :  { %v4924_v18 = vld [vmem:[#allocation2 + $0x40] sm:$0xff] }
 0x9dc   :  { %v4827_v23 = vpop.xlane.xlu0 %4826  ;;  %v5134_v60 = vadd.f32 %v14090_v7, %v4924_v18  ;;  %v4929_v6 = vld [vmem:[#allocation2 + $0x68] sm:$0xff] }
 0x9dd   :  { %4845 = vst.msk [vmem:[#allocation2 + $0x70] sm:$0xff] %vm14091_vm9, %v4827_v23  ;;  %v4829_v1 = vpop.xlane.xlu1 %4828  ;;  %v5139_v24 = vadd.f32 %v14099_v20, %v4929_v6 }
 0x9de   :  { %4846 = vst.msk [vmem:[#allocation2 + $0x78] sm:$0xff] %vm14093_vm1, %v4829_v1  ;;  %7227 = vmatprep.mubr.msk.f32.mxu1 %vm5146_vm4, %v5134_v60 }
 0x9df   :  { %7228 = vmatmul.mubr.msk.f32.gmra.mrb[34].mxu1 %vm5146_vm4, %v5135_v14 }
 0x9e0   :  { %v4896_v36 = vpop.xlane.xlu0 %4895  ;;  %7230 = vmatprep.mubr.msk.f32.mxu1 %vm5146_vm4, %v5136_v48 }
 0x9e1   :  { %4914 = vst.msk [vmem:[#allocation2 + $0x70] sm:$0xff] %vm14095_vm14, %v4896_v36  ;;  %v4898_v31 = vpop.xlane.xlu1 %4897 }
 0x9e2   :  { %4915 = vst.msk [vmem:[#allocation2 + $0x78] sm:$0xff] %vm14097_vm10, %v4898_v31 }
 0x9e3   :  { %7231 = vmatmul.mubr.msk.f32.gmra.mrb[36].mxu1 %vm5146_vm4, %v5137_v2 }
 0x9e4   :  { %7233 = vmatprep.mubr.msk.f32.mxu1 %vm5146_vm4, %v5138_v21 }
 0x9e7   :  { %7234 = vmatmul.mubr.msk.f32.gmra.mrb[38].mxu1 %vm5146_vm4, %v5139_v24 }
 0x9e8   :  { %v4930_v38 = vld [vmem:[#allocation2 + $0x70] sm:$0xff] }
 0x9e9   :  { %v5140_v63 = vadd.f32 %v14100_v16, %v4930_v38  ;;  %v4931_v26 = vld [vmem:[#allocation2 + $0x78] sm:$0xff] }
 0x9ea   :  { %v5141_v42 = vadd.f32 %v14101_v58, %v4931_v26  ;;  %v8036_v26 = vld [vmem:[%s13117_s1 + $0x50] sm:$0xff] }
 0x9eb   :  { %7236 = vmatprep.mubr.msk.f32.mxu1 %vm5146_vm4, %v5140_v63 }
 0x9ec   :  { %7237 = vmatmul.mubr.msk.f32.gmra.mrb[40].mxu1 %vm5146_vm4, %v5141_v42 }
 0x9ed   :  { %7247 = vmatprep.mubr.msk.f32.mxu1 %vm5146_vm4, %v11779_v44 }
 0x9f0   :  { %7248 = vmatmul.mubr.msk.f32.vlgmr.msra.gmra.mrb[42].mxu1 %vm5146_vm4, %v11789_v30 }
 0x9f1   :  { %7250 = vmatprep.mubr.msk.f32.mxu1 %vm5146_vm4, %v12087_v0 }
 0x9f4   :  { %7251 = vmatmul.mubr.msk.f32.gmra.mrb[44].mxu1 %vm5146_vm4, %v12100_v47 }
 0x9f5   :  { %7253 = vmatprep.mubr.msk.f32.mxu1 %vm5146_vm4, %v12389_v34 }
 0x9f8   :  { %7254 = vmatmul.mubr.msk.f32.gmra.mrb[46].mxu1 %vm5146_vm4, %v12402_v43 }
 0x9f9   :  { %7256 = vmatprep.mubr.msk.f32.mxu1 %vm5146_vm4, %v12678_v56 }
 0x9fc   :  { %7257 = vmatmul.mubr.msk.f32.gmra.mrb[48].mxu1 %vm5146_vm4, %v12682_v27 }
 0x9fd   :  { %7259 = vmatprep.mubr.msk.f32.mxu1 %vm5146_vm4, %v5134_v60 }
 0xa00   :  { %7260 = vmatmul.mubr.msk.f32.gmra.mrb[50].mxu1 %vm5146_vm4, %v5135_v14 }
 0xa01   :  { %7262 = vmatprep.mubr.msk.f32.mxu1 %vm5146_vm4, %v5136_v48 }
 0xa04   :  { %7263 = vmatmul.mubr.msk.f32.gmra.mrb[52].mxu1 %vm5146_vm4, %v5137_v2 }
 0xa05   :  { %7265 = vmatprep.mubr.msk.f32.mxu1 %vm5146_vm4, %v5138_v21 }
 0xa08   :  { %7266 = vmatmul.mubr.msk.f32.gmra.mrb[54].mxu1 %vm5146_vm4, %v5139_v24 }
 0xa09   :  { %7268 = vmatprep.mubr.msk.f32.mxu1 %vm5146_vm4, %v5140_v63 }
 0xa0c   :  { %7269 = vmatmul.mubr.msk.f32.gmra.mrb[56].mxu1 %vm5146_vm4, %v5141_v42 }
 0xa0d   :  { %7303 = vmatprep.mubr.msk.f32.mxu1 %vm5146_vm4, %v12292_v50 }
 0xa37   :  { %v7226_v43 = vpop.f32.mrb[32].mxu1 }
 0xa38   :  { %v5291_v44 = vpop.f32.mrb[33].mxu1 }
 0xab2   :  { %v7229_v30 = vpop.f32.mrb[34].mxu1 }
 0xab3   :  { %v5301_v0 = vpop.f32.mrb[35].mxu1 }
 0xab6   :  { %v7232_v47 = vpop.f32.mrb[36].mxu1 }
 0xab7   :  { %v5311_v34 = vpop.f32.mrb[37].mxu1 }
 0xaba   :  { %v7235_v56 = vpop.f32.mrb[38].mxu1 }
 0xabb   :  { %v5321_v27 = vpop.f32.mrb[39].mxu1 }
 0xabf   :  { %v7238_v9 = vpop.f32.mrb[40].mxu1 }
 0xac0   :  { %v5331_v55 = vpop.f32.mrb[41].mxu1 }
 0xac3   :  { %v7249_v17 = vpop.f32.mrb[42].mxu1 }
 0xac4   :  { %v5410_v19 = vpop.f32.mrb[43].mxu1 }
 0xac5   :  { %v7695_v8 = vpack.c.bf16 %v7249_v17, %v5410_v19  ;;  %v14116_v19 = vld [vmem:[#allocation65_spill] sm:$0xff] }
 0xac6   :  { %vm14117_vm14 = vcmp.gt.f32.partialorder %v14116_v19, 0.0 }
 0xac7   :  { %v7252_v50 = vpop.f32.mrb[44].mxu1  ;;  %7697 = vmatprep.subr.msk.bf16.mxu1 %vm12805_vm13, %v7695_v8 }
 0xac8   :  { %v5420_v10 = vpop.f32.mrb[45].mxu1  ;;  %7700 = vmatpush3.bf16.xpose.msk.msra.mxu1 %vm12805_vm13, %v7695_v8 }
 0xac9   :  { %v7701_v53 = vpack.c.bf16 %v7252_v50, %v5420_v10  ;;  %v14118_v50 = vld [vmem:[#allocation66_spill] sm:$0xff] }
 0xaca   :  { %vm14119_vm10 = vcmp.gt.f32.partialorder %v14118_v50, 0.0 }
 0xacb   :  { %v7255_v29 = vpop.f32.mrb[46].mxu1  ;;  %7703 = vmatprep.subr.msk.bf16.mxu1 %vm12805_vm13, %v7701_v53 }
 0xacc   :  { %v5430_v62 = vpop.f32.mrb[47].mxu1 }
 0xacd   :  { %v7707_v25 = vpack.c.bf16 %v7255_v29, %v5430_v62  ;;  %v14120_v29 = vld [vmem:[#allocation67_spill] sm:$0xff] }
 0xacf   :  { %v7258_v52 = vpop.f32.mrb[48].mxu1 }
 0xad0   :  { %v5440_v11 = vpop.f32.mrb[49].mxu1  ;;  %7706 = vmatpush3.bf16.xpose.msk.msra.mxu1 %vm12805_vm13, %v7701_v53 }
 0xad1   :  { %v7713_v15 = vpack.c.bf16 %v7258_v52, %v5440_v11  ;;  %7709 = vmatprep.subr.msk.bf16.mxu1 %vm12805_vm13, %v7707_v25  ;;  %v8026_v52 = vld [vmem:[%s13117_s1] sm:$0xff] }
 0xad3   :  { %v7261_v18 = vpop.f32.mrb[50].mxu1 }
 0xad4   :  { %v5450_v3 = vpop.f32.mrb[51].mxu1 }
 0xad5   :  { %v7719_v23 = vpack.c.bf16 %v7261_v18, %v5450_v3  ;;  %v8028_v18 = vld [vmem:[%s13117_s1 + $0x10] sm:$0xff] }
 0xad7   :  { %v7264_v7 = vpop.f32.mrb[52].mxu1 }
 0xad8   :  { %v5460_v60 = vpop.f32.mrb[53].mxu1  ;;  %7712 = vmatpush3.bf16.xpose.msk.msra.mxu1 %vm12805_vm13, %v7707_v25  ;;  %v8025_v25 = vld [vmem:[%s13117_s1 + $0x8] sm:$0xff] }
 0xad9   :  { %v7725_v1 = vpack.c.bf16 %v7264_v7, %v5460_v60  ;;  %7715 = vmatprep.subr.msk.bf16.mxu1 %vm12805_vm13, %v7713_v15  ;;  %v7743_v11 = vpack.c.bf16 %v8025_v25, %v8026_v52  ;;  %v8030_v7 = vld [vmem:[%s13117_s1 + $0x20] sm:$0xff] }
 0xadb   :  { %v7267_v59 = vpop.f32.mrb[54].mxu1 }
 0xadc   :  { %v5470_v14 = vpop.f32.mrb[55].mxu1 }
 0xadd   :  { %v7731_v41 = vpack.c.bf16 %v7267_v59, %v5470_v14  ;;  %v8032_v59 = vld [vmem:[%s13117_s1 + $0x30] sm:$0xff] }
 0xadf   :  { %v7270_v48 = vpop.f32.mrb[56].mxu1 }
 0xae0   :  { %v5480_v39 = vpop.f32.mrb[57].mxu1  ;;  %7718 = vmatpush3.bf16.xpose.msk.msra.mxu1 %vm12805_vm13, %v7713_v15  ;;  %v8027_v15 = vld [vmem:[%s13117_s1 + $0x18] sm:$0xff] }
 0xae1   :  { %v7737_v51 = vpack.c.bf16 %v7270_v48, %v5480_v39  ;;  %7721 = vmatprep.subr.msk.bf16.mxu1 %vm12805_vm13, %v7719_v23  ;;  %v7747_v3 = vpack.c.bf16 %v8027_v15, %v8028_v18  ;;  %v8034_v48 = vld [vmem:[%s13117_s1 + $0x40] sm:$0xff] }
 0xae8   :  { %7724 = vmatpush3.bf16.xpose.msk.msra.mxu1 %vm12805_vm13, %v7719_v23  ;;  %v8029_v23 = vld [vmem:[%s13117_s1 + $0x28] sm:$0xff] }
 0xae9   :  { %7727 = vmatprep.subr.msk.bf16.mxu1 %vm12805_vm13, %v7725_v1  ;;  %v7751_v60 = vpack.c.bf16 %v8029_v23, %v8030_v7 }
 0xaf0   :  { %7730 = vmatpush3.bf16.xpose.msk.msra.mxu1 %vm12805_vm13, %v7725_v1  ;;  %v8031_v1 = vld [vmem:[%s13117_s1 + $0x38] sm:$0xff] }
 0xaf1   :  { %7733 = vmatprep.subr.msk.bf16.mxu1 %vm12805_vm13, %v7731_v41  ;;  %v7755_v14 = vpack.c.bf16 %v8031_v1, %v8032_v59 }
 0xaf8   :  { %7736 = vmatpush3.bf16.xpose.msk.msra.mxu1 %vm12805_vm13, %v7731_v41  ;;  %v8033_v41 = vld [vmem:[%s13117_s1 + $0x48] sm:$0xff] }
 0xaf9   :  { %7739 = vmatprep.subr.msk.bf16.mxu1 %vm12805_vm13, %v7737_v51  ;;  %v7759_v39 = vpack.c.bf16 %v8033_v41, %v8034_v48 }
 0xb00   :  { %7742 = vmatpush3.bf16.xpose.msk.msra.mxu1 %vm12805_vm13, %v7737_v51  ;;  %vm14121_vm13 = vcmp.gt.f32.partialorder %v14120_v29, 0.0 }
 0xb01   :  { %7744 = vmatprep.subr.bf16.mxu1 %v7743_v11 }
 0xb07   :  { %7304 = vmatmul.mubr.msk.f32.vlgmr.msra.gmra.mrb[58].mxu1 %vm5146_vm4, %v12289_v32 }
 0xb08   :  { %7306 = vmatprep.mubr.msk.f32.mxu1 %vm5146_vm4, %v12604_v5  ;;  %7746 = vmatpush3.bf16.msra.mxu1 %v7743_v11 }
 0xb09   :  { %7748 = vmatprep.subr.bf16.mxu1 %v7747_v3 }
 0xb0b   :  { %7307 = vmatmul.mubr.msk.f32.gmra.mrb[60].mxu1 %vm5146_vm4, %v12602_v45 }
 0xb0c   :  { %7309 = vmatprep.mubr.msk.f32.mxu1 %vm5146_vm4, %v12734_v37  ;;  %7750 = vmatpush3.bf16.msra.mxu1 %v7747_v3 }
 0xb0d   :  { %7752 = vmatprep.subr.bf16.mxu1 %v7751_v60 }
 0xb0f   :  { %7310 = vmatmul.mubr.msk.f32.gmra.mrb[62].mxu1 %vm5146_vm4, %v12731_v33 }
 0xb10   :  { %7312 = vmatprep.mubr.msk.f32.mxu1 %vm5146_vm4, %v5291_v44  ;;  %7754 = vmatpush3.bf16.msra.mxu1 %v7751_v60 }
 0xb11   :  { %7756 = vmatprep.subr.bf16.mxu1 %v7755_v14 }
 0xb13   :  { %7313 = vmatmul.mubr.msk.f32.gmra.mrb[64].mxu1 %vm5146_vm4, %v7226_v43 }
 0xb14   :  { %7315 = vmatprep.mubr.msk.f32.mxu1 %vm5146_vm4, %v5301_v0  ;;  %7758 = vmatpush3.bf16.msra.mxu1 %v7755_v14 }
 0xb15   :  { %7760 = vmatprep.subr.bf16.mxu1 %v7759_v39 }
 0xb17   :  { %7316 = vmatmul.mubr.msk.f32.gmra.mrb[66].mxu1 %vm5146_vm4, %v7229_v30  ;;  %v14110_v30 = vld [vmem:[#allocation55_spill] sm:$0xff] }
 0xb18   :  { %7318 = vmatprep.mubr.msk.f32.mxu1 %vm5146_vm4, %v5311_v34  ;;  %vm14111_vm12 = vcmp.gt.f32.partialorder %v14110_v30, 0.0  ;;  %v14112_v34 = vld [vmem:[#allocation56_spill] sm:$0xff]  ;;  %7762 = vmatpush3.bf16.msra.mxu1 %v7759_v39 }
 0xb19   :  { %vm14113_vm9 = vcmp.gt.f32.partialorder %v14112_v34, 0.0 }
 0xb1b   :  { %7319 = vmatmul.mubr.msk.f32.gmra.mrb[68].mxu1 %vm5146_vm4, %v7232_v47 }
 0xb1c   :  { %7321 = vmatprep.mubr.msk.f32.mxu1 %vm5146_vm4, %v5321_v27 }
 0xb1f   :  { %7322 = vmatmul.mubr.msk.f32.gmra.mrb[70].mxu1 %vm5146_vm4, %v7235_v56 }
 0xb20   :  { %7324 = vmatprep.mubr.msk.f32.mxu1 %vm5146_vm4, %v5331_v55 }
 0xb23   :  { %7325 = vmatmul.mubr.msk.f32.gmra.mrb[72].mxu1 %vm5146_vm4, %v7238_v9  ;;  %vm14104_vm4 = vcmp.gt.f32.partialorder %v11548_v54, 0.0  ;;  %v14114_v9 = vld [vmem:[#allocation57_spill] sm:$0xff] }
 0xb24   :  { %vm14115_vm1 = vcmp.gt.f32.partialorder %v14114_v9, 0.0 }
 0xbda   :  { %v7305_v32 = vpop.f32.mrb[58].mxu1 }
 0xbdb   :  { %v12863_v45 = vsel %vm2377_vm5, %v7305_v32, -1e+30  ;;  %v5651_v5 = vpop.f32.mrb[59].mxu1 }
 0xbdc   :  { %v12867_v33 = vsel %vm2376_vm0, %v5651_v5, -1e+30  ;;  %5748 = vmax.xlane.f32.xlu1 %v12863_v45 }
 0xbdd   :  { %5746 = vmax.xlane.f32.xlu0 %v12867_v33 }
 0xbde   :  { %v7308_v37 = vpop.f32.mrb[60].mxu1 }
 0xbdf   :  { %v12873_v36 = vsel %vm2379_vm2, %v7308_v37, -1e+30  ;;  %v5661_v31 = vpop.f32.mrb[61].mxu1 }
 0xbe0   :  { %v12877_v22 = vsel %vm14104_vm4, %v5661_v31, -1e+30  ;;  %5752 = vmax.xlane.f32.xlu1 %v12873_v36 }
 0xbe1   :  { %5750 = vmax.xlane.f32.xlu0 %v12877_v22 }
 0xbe2   :  { %v7311_v2 = vpop.f32.mrb[62].mxu1 }
 0xbe3   :  { %v12883_v40 = vsel %vm14105_vm7, %v7311_v2, -1e+30  ;;  %v5671_v21 = vpop.f32.mrb[63].mxu1 }
 0xbe4   :  { %v12887_v6 = vsel %vm14106_vm8, %v5671_v21, -1e+30  ;;  %5756 = vmax.xlane.f32.xlu1 %v12883_v40 }
 0xbe5   :  { %5754 = vmax.xlane.f32.xlu0 %v12887_v6 }
 0xbe6   :  { %v7314_v20 = vpop.f32.mrb[64].mxu1 }
 0xbe7   :  { %v12893_v24 = vsel %vm14107_vm3, %v7314_v20, -1e+30  ;;  %v5681_v38 = vpop.f32.mrb[65].mxu1 }
 0xbe8   :  { %v12897_v16 = vsel %vm14108_vm6, %v5681_v38, -1e+30  ;;  %5760 = vmax.xlane.f32.xlu1 %v12893_v24 }
 0xbe9   :  { %5758 = vmax.xlane.f32.xlu0 %v12897_v16 }
 0xbea   :  { %v7317_v63 = vpop.f32.mrb[66].mxu1 }
 0xbeb   :  { %v12903_v58 = vsel %vm2385_vm11, %v7317_v63, -1e+30  ;;  %v5691_v42 = vpop.f32.mrb[67].mxu1 }
 0xbec   :  { %v12907_v43 = vsel %vm2384_vm15, %v5691_v42, -1e+30  ;;  %5764 = vmax.xlane.f32.xlu1 %v12903_v58 }
 0xbed   :  { %5762 = vmax.xlane.f32.xlu0 %v12907_v43 }
 0xbee   :  { %v7320_v44 = vpop.f32.mrb[68].mxu1 }
 0xbef   :  { %v12913_v0 = vsel %vm14111_vm12, %v7320_v44, -1e+30  ;;  %v5701_v47 = vpop.f32.mrb[69].mxu1 }
 0xbf0   :  { %v12917_v56 = vsel %vm14113_vm9, %v5701_v47, -1e+30  ;;  %5768 = vmax.xlane.f32.xlu1 %v12913_v0 }
 0xbf1   :  { %5766 = vmax.xlane.f32.xlu0 %v12917_v56 }
 0xbf2   :  { %v7323_v27 = vpop.f32.mrb[70].mxu1 }
 0xbf3   :  { %v12923_v55 = vsel %vm14115_vm1, %v7323_v27, -1e+30  ;;  %v5711_v17 = vpop.f32.mrb[71].mxu1 }
 0xbf4   :  { %v12927_v46 = vsel %vm14117_vm14, %v5711_v17, -1e+30  ;;  %5772 = vmax.xlane.f32.xlu1 %v12923_v55 }
 0xbf5   :  { %5770 = vmax.xlane.f32.xlu0 %v12927_v46 }
 0xbf6   :  { %v7326_v8 = vpop.f32.mrb[72].mxu1 }
 0xbf7   :  { %v12933_v10 = vsel %vm14119_vm10, %v7326_v8, -1e+30  ;;  %v5721_v53 = vpop.f32.mrb[73].mxu1 }
 0xbf8   :  { %v12937_v62 = vsel %vm14121_vm13, %v5721_v53, -1e+30  ;;  %5776 = vmax.xlane.f32.xlu1 %v12933_v10 }
 0xbf9   :  { %5774 = vmax.xlane.f32.xlu0 %v12937_v62 }
 0xc69   :  { %v5749_v51 = vpop.xlane.xlu1 %5748 }
 0xc6a   :  { %vm5779_vm4 = vcmp.gt.f32.partialorder %v5749_v51, -5e+29  ;;  %v5747_v32 = vpop.xlane.xlu0 %5746 }
 0xc6b   :  { %v5795_v5 = vsel %vm5779_vm4, %v5749_v51, 0.0  ;;  %vm5778_vm7 = vcmp.gt.f32.partialorder %v5747_v32, -5e+29 }
 0xc6c   :  { %v5811_v37 = vsub.f32 %v12863_v45, %v5795_v5  ;;  %v5794_v31 = vsel %vm5778_vm7, %v5747_v32, 0.0  ;;  %vm14123_vm7 = vcmp.gt.f32.partialorder %v11689_v57, 0.0 }
 0xc6d   :  { %v5810_v2 = vsub.f32 %v12867_v33, %v5794_v31  ;;  %v5753_v21 = vpop.xlane.xlu1 %5752 }
 0xc6e   :  { %v5828_v20 = vmul.f32 1.442695, %v5811_v37  ;;  %vm5781_vm8 = vcmp.gt.f32.partialorder %v5753_v21, -5e+29  ;;  %v5751_v38 = vpop.xlane.xlu0 %5750 }
 0xc6f   :  { %v5826_v63 = vmul.f32 1.442695, %v5810_v2  ;;  %v5797_v42 = vsel %vm5781_vm8, %v5753_v21, 0.0  ;;  %vm5780_vm3 = vcmp.gt.f32.partialorder %v5751_v38, -5e+29  ;;  %vm14124_vm8 = vcmp.gt.f32.partialorder %v11856_v35, 0.0 }
 0xc70   :  { %7944 = vpow2.f32 %v5828_v20  ;;  %v5813_v44 = vsub.f32 %v12873_v36, %v5797_v42  ;;  %v5796_v47 = vsel %vm5780_vm3, %v5751_v38, 0.0 }
 0xc71   :  { %7946 = vpow2.f32 %v5826_v63  ;;  %v5812_v27 = vsub.f32 %v12877_v22, %v5796_v47  ;;  %v5757_v17 = vpop.xlane.xlu1 %5756 }
 0xc72   :  { %v5832_v8 = vmul.f32 1.442695, %v5813_v44  ;;  %vm5783_vm6 = vcmp.gt.f32.partialorder %v5757_v17, -5e+29  ;;  %v5755_v45 = vpop.xlane.xlu0 %5754 }
 0xc73   :  { %v5830_v53 = vmul.f32 1.442695, %v5812_v27  ;;  %v5799_v33 = vsel %vm5783_vm6, %v5757_v17, 0.0  ;;  %vm5782_vm12 = vcmp.gt.f32.partialorder %v5755_v45, -5e+29 }
 0xc74   :  { %7948 = vpow2.f32 %v5832_v8  ;;  %v5815_v25 = vsub.f32 %v12883_v40, %v5799_v33  ;;  %v5798_v52 = vsel %vm5782_vm12, %v5755_v45, 0.0  ;;  %vm14125_vm12 = vcmp.gt.f32.partialorder %v12003_v13, 0.0 }
 0xc75   :  { %7950 = vpow2.f32 %v5830_v53  ;;  %v5814_v11 = vsub.f32 %v12887_v6, %v5798_v52  ;;  %v5761_v15 = vpop.xlane.xlu1 %5760 }
 0xc76   :  { %v5836_v36 = vmul.f32 1.442695, %v5815_v25  ;;  %vm5785_vm9 = vcmp.gt.f32.partialorder %v5761_v15, -5e+29  ;;  %v5759_v18 = vpop.xlane.xlu0 %5758 }
 0xc77   :  { %v5834_v3 = vmul.f32 1.442695, %v5814_v11  ;;  %v5801_v22 = vsel %vm5785_vm9, %v5761_v15, 0.0  ;;  %vm5784_vm1 = vcmp.gt.f32.partialorder %v5759_v18, -5e+29  ;;  %vm14126_vm9 = vcmp.gt.f32.partialorder %v12159_v49, 0.0 }
 0xc78   :  { %7952 = vpow2.f32 %v5836_v36  ;;  %v5817_v23 = vsub.f32 %v12893_v24, %v5801_v22  ;;  %v5800_v7 = vsel %vm5784_vm1, %v5759_v18, 0.0  ;;  %vm14129_vm1 = vcmp.gt.f32.partialorder %v14114_v9, 0.0  ;;  %v8040_v9 = vld [vmem:[%s13117_s1 + $0x70] sm:$0xff] }
 0xc79   :  { %7954 = vpow2.f32 %v5834_v3  ;;  %v5816_v60 = vsub.f32 %v12897_v16, %v5800_v7  ;;  %v5765_v1 = vpop.xlane.xlu1 %5764 }
 0xc7a   :  { %v7945_v40 = vpop.eup %7944  ;;  %v5840_v59 = vmul.f32 1.442695, %v5817_v23  ;;  %vm5787_vm14 = vcmp.gt.f32.partialorder %v5765_v1, -5e+29  ;;  %v5763_v14 = vpop.xlane.xlu0 %5762 }
 0xc7b   :  { %v7947_v6 = vpop.eup %7946  ;;  %v5838_v41 = vmul.f32 1.442695, %v5816_v60  ;;  %v5803_v48 = vsel %vm5787_vm14, %v5765_v1, 0.0  ;;  %vm5786_vm10 = vcmp.gt.f32.partialorder %v5763_v14, -5e+29  ;;  %v12981_v39 = vsel %vm2377_vm5, %v7945_v40, 0.0 }
 0xc7c   :  { %7956 = vpow2.f32 %v5840_v59  ;;  %v5819_v24 = vsub.f32 %v12903_v58, %v5803_v48  ;;  %v5802_v51 = vsel %vm5786_vm10, %v5763_v14, 0.0  ;;  %5876 = vadd.xlane.f32.xlu1 %v12981_v39  ;;  %v12987_v16 = vsel %vm2376_vm0, %v7947_v6, 0.0  ;;  %v8037_v14 = vld [vmem:[%s13117_s1 + $0x68] sm:$0xff] }
 0xc7d   :  { %7958 = vpow2.f32 %v5838_v41  ;;  %v5818_v32 = vsub.f32 %v12907_v43, %v5802_v51  ;;  %v5769_v5 = vpop.xlane.xlu1 %5768  ;;  %5874 = vadd.xlane.f32.xlu0 %v12987_v16  ;;  %vm14122_vm0 = vcmp.gt.f32.partialorder %v11548_v54, 0.0  ;;  %vm14130_vm14 = vcmp.gt.f32.partialorder %v14116_v19, 0.0  ;;  %v8039_v51 = vld [vmem:[%s13117_s1 + $0x78] sm:$0xff] }
 0xc7e   :  { %v7949_v37 = vpop.eup %7948  ;;  %v5844_v4 = vmul.f32 1.442695, %v5819_v24  ;;  %vm5789_vm5 = vcmp.gt.f32.partialorder %v5769_v5, -5e+29  ;;  %v5767_v31 = vpop.xlane.xlu0 %5766  ;;  %vm14131_vm10 = vcmp.gt.f32.partialorder %v14118_v50, 0.0 }
 0xc7f   :  { %v7951_v2 = vpop.eup %7950  ;;  %v5842_v21 = vmul.f32 1.442695, %v5818_v32  ;;  %v5805_v58 = vsel %vm5789_vm5, %v5769_v5, 0.0  ;;  %vm5788_vm13 = vcmp.gt.f32.partialorder %v5767_v31, -5e+29  ;;  %v12993_v20 = vsel %vm2379_vm2, %v7949_v37, 0.0 }
 0xc80   :  { %7960 = vpow2.f32 %v5844_v4  ;;  %v5821_v61 = vsub.f32 %v12913_v0, %v5805_v58  ;;  %v5804_v38 = vsel %vm5788_vm13, %v5767_v31, 0.0  ;;  %5880 = vadd.xlane.f32.xlu1 %v12993_v20  ;;  %v12999_v43 = vsel %vm14122_vm0, %v7951_v2, 0.0 }
 0xc81   :  { %7962 = vpow2.f32 %v5842_v21  ;;  %v5820_v63 = vsub.f32 %v12917_v56, %v5804_v38  ;;  %v5773_v42 = vpop.xlane.xlu1 %5772  ;;  %5878 = vadd.xlane.f32.xlu0 %v12999_v43  ;;  %v7771_v32 = vpack.c.bf16 %v8039_v51, %v8040_v9  ;;  %vm14132_vm5 = vcmp.gt.f32.partialorder %v14120_v29, 0.0 }
 0xc82   :  { %v7953_v44 = vpop.eup %7952  ;;  %v5848_v28 = vmul.f32 1.442695, %v5821_v61  ;;  %vm5791_vm2 = vcmp.gt.f32.partialorder %v5773_v42, -5e+29  ;;  %v5771_v47 = vpop.xlane.xlu0 %5770 }
 0xc83   :  { %v7955_v27 = vpop.eup %7954  ;;  %v5846_v17 = vmul.f32 1.442695, %v5820_v63  ;;  %v5807_v0 = vsel %vm5791_vm2, %v5773_v42, 0.0  ;;  %vm5790_vm4 = vcmp.gt.f32.partialorder %v5771_v47, -5e+29  ;;  %v13005_v8 = vsel %vm14123_vm7, %v7953_v44, 0.0 }
 0xc84   :  { %7964 = vpow2.f32 %v5848_v28  ;;  %v5823_v54 = vsub.f32 %v12923_v55, %v5807_v0  ;;  %v5806_v45 = vsel %vm5790_vm4, %v5771_v47, 0.0  ;;  %5884 = vadd.xlane.f32.xlu1 %v13005_v8  ;;  %v13011_v56 = vsel %vm14124_vm8, %v7955_v27, 0.0 }
 0xc85   :  { %7966 = vpow2.f32 %v5846_v17  ;;  %v5822_v53 = vsub.f32 %v12927_v46, %v5806_v45  ;;  %v5777_v33 = vpop.xlane.xlu1 %5776  ;;  %5882 = vadd.xlane.f32.xlu0 %v13011_v56 }
 0xc86   :  { %v7957_v25 = vpop.eup %7956  ;;  %v5852_v57 = vmul.f32 1.442695, %v5823_v54  ;;  %vm5793_vm3 = vcmp.gt.f32.partialorder %v5777_v33, -5e+29  ;;  %v5775_v52 = vpop.xlane.xlu0 %5774 }
 0xc87   :  { %v7959_v11 = vpop.eup %7958  ;;  %v5850_v15 = vmul.f32 1.442695, %v5822_v53  ;;  %v5809_v55 = vsel %vm5793_vm3, %v5777_v33, 0.0  ;;  %vm5792_vm6 = vcmp.gt.f32.partialorder %v5775_v52, -5e+29  ;;  %v13017_v36 = vsel %vm14125_vm12, %v7957_v25, 0.0 }
 0xc88   :  { %7968 = vpow2.f32 %v5852_v57  ;;  %v5825_v35 = vsub.f32 %v12933_v10, %v5809_v55  ;;  %v5808_v18 = vsel %vm5792_vm6, %v5775_v52, 0.0  ;;  %5888 = vadd.xlane.f32.xlu1 %v13017_v36  ;;  %v13023_v46 = vsel %vm14126_vm9, %v7959_v11, 0.0  ;;  %v8035_v10 = vld [vmem:[%s13117_s1 + $0x58] sm:$0xff] }
 0xc89   :  { %7970 = vpow2.f32 %v5850_v15  ;;  %v5824_v3 = vsub.f32 %v12937_v62, %v5808_v18  ;;  %5886 = vadd.xlane.f32.xlu0 %v13023_v46  ;;  %v7763_v62 = vpack.c.bf16 %v8035_v10, %v8036_v26 }
 0xc8a   :  { %v7961_v22 = vpop.eup %7960  ;;  %v5856_v23 = vmul.f32 1.442695, %v5825_v35 }
 0xc8b   :  { %v7963_v13 = vpop.eup %7962  ;;  %v5854_v7 = vmul.f32 1.442695, %v5824_v3  ;;  %v13029_v60 = vsel %vm2385_vm11, %v7961_v22, 0.0  ;;  %vm14127_vm11 = vcmp.gt.f32.partialorder %v14110_v30, 0.0  ;;  %7764 = vmatprep.subr.bf16.mxu1 %v7763_v62  ;;  %v8038_v30 = vld [vmem:[%s13117_s1 + $0x60] sm:$0xff]  ;;  %s8167_s1 = smov [#allocation11]  }
 0xc8c   :  { %7972 = vpow2.f32 %v5856_v23  ;;  %5892 = vadd.xlane.f32.xlu1 %v13029_v60  ;;  %v13034_v49 = vsel %vm2384_vm15, %v7963_v13, 0.0  ;;  %vm14128_vm15 = vcmp.gt.f32.partialorder %v14112_v34, 0.0  ;;  %7766 = vmatpush3.bf16.msra.mxu1 %v7763_v62  ;;  %v7767_v6 = vpack.c.bf16 %v8037_v14, %v8038_v30  ;;  %s6265_s25 = sshll.u32 %s8167_s1, 4  ;;  %s6266_s25 = int_to_ptr.vmem [resolvable:$true] %s6265_s25 }
 0xc8d   :  { %7974 = vpow2.f32 %v5854_v7  ;;  %5890 = vadd.xlane.f32.xlu0 %v13034_v49  ;;  %s8129_s26 = scalar_lea.vmem %s6266_s25, 2048  ;;  %p8134_p5 = scmp.lt.s32.totalorder %s6266_s25, %s6266_s25 }
 0xc8e   :  { %v7965_v1 = vpop.eup %7964  ;;  %7768 = vmatprep.subr.bf16.mxu1 %v7767_v6  ;;  %p8130_p4 = scmp.ne.s32.totalorder %s6266_s25, %s8129_s26  ;;  %p8135_p6 = scmp.lt.s32.totalorder %s8129_s26, %s8129_s26 }
 0xc8f   :  { %v7967_v40 = vpop.eup %7966  ;;  %v13045_v59 = vsel %vm14127_vm11, %v7965_v1, 0.0 }
 0xc90   :  { %5896 = vadd.xlane.f32.xlu1 %v13045_v59  ;;  %v13050_v12 = vsel %vm14128_vm15, %v7967_v40, 0.0  ;;  %7770 = vmatpush3.bf16.msra.mxu1 %v7767_v6  ;;  %p8136_p7 = por %p8135_p6, %p8134_p5 }
 0xc91   :  { %5894 = vadd.xlane.f32.xlu0 %v13050_v12  ;;  %7772 = vmatprep.subr.bf16.mxu1 %v7771_v32 }
 0xc92   :  { %v7969_v41 = vpop.eup %7968  ;;  %p8137_p8 = pnand %p8136_p7, %p8130_p4 }
 0xc93   :  { %v7971_v48 = vpop.eup %7970  ;;  %v13061_v24 = vsel %vm14129_vm1, %v7969_v41, 0.0 }
 0xc94   :  { %5900 = vadd.xlane.f32.xlu1 %v13061_v24  ;;  %v13066_v34 = vsel %vm14130_vm14, %v7971_v48, 0.0  ;;  %7774 = vmatpush3.bf16.msra.mxu1 %v7771_v32 }
 0xc95   :  { %5898 = vadd.xlane.f32.xlu0 %v13066_v34 }
 0xc96   :  { %v7973_v5 = vpop.eup %7972 }
 0xc97   :  { %v7975_v37 = vpop.eup %7974  ;;  %v13077_v4 = vsel %vm14131_vm10, %v7973_v5, 0.0 }
 0xc98   :  { %5904 = vadd.xlane.f32.xlu1 %v13077_v4  ;;  %v13082_v19 = vsel %vm14132_vm5, %v7975_v37, 0.0 }
 0xc99   :  { %5902 = vadd.xlane.f32.xlu0 %v13082_v19 }
 0xd09   :  { %v5877_v31 = vpop.xlane.xlu1 %5876 }
 0xd0a   :  { %v5907_v2 = vmax.f32 %v5877_v31, 1e-12  ;;  %v5875_v21 = vpop.xlane.xlu0 %5874 }
 0xd0b   :  { %v5906_v58 = vmax.f32 %v5875_v21, 1e-12 }
 0xd0c   :  { %7976 = vrcp.f32 %v5907_v2 }
 0xd0d   :  { %7978 = vrcp.f32 %v5906_v58  ;;  %v5881_v61 = vpop.xlane.xlu1 %5880 }
 0xd0e   :  { %v5909_v50 = vmax.f32 %v5881_v61, 1e-12  ;;  %v5879_v38 = vpop.xlane.xlu0 %5878 }
 0xd0f   :  { %v5908_v63 = vmax.f32 %v5879_v38, 1e-12 }
 0xd10   :  { %7980 = vrcp.f32 %v5909_v50 }
 0xd11   :  { %7982 = vrcp.f32 %v5908_v63  ;;  %v5885_v42 = vpop.xlane.xlu1 %5884 }
 0xd12   :  { %v5911_v44 = vmax.f32 %v5885_v42, 1e-12  ;;  %v5883_v29 = vpop.xlane.xlu0 %5882 }
 0xd13   :  { %v5910_v28 = vmax.f32 %v5883_v29, 1e-12 }
 0xd14   :  { %7984 = vrcp.f32 %v5911_v44 }
 0xd15   :  { %7986 = vrcp.f32 %v5910_v28  ;;  %v5889_v47 = vpop.xlane.xlu1 %5888 }
 0xd16   :  { %v7977_v27 = vpop.eup %7976  ;;  %v5913_v17 = vmax.f32 %v5889_v47, 1e-12  ;;  %v5887_v0 = vpop.xlane.xlu0 %5886 }
 0xd17   :  { %v7979_v54 = vpop.eup %7978  ;;  %v5912_v45 = vmax.f32 %v5887_v0, 1e-12  ;;  %v5939_v53 = vmul.f32 %v7977_v27, %v12981_v39 }
 0xd18   :  { %7988 = vrcp.f32 %v5913_v17  ;;  %v5938_v33 = vmul.f32 %v7979_v54, %v12987_v16 }
 0xd19   :  { %7990 = vrcp.f32 %v5912_v45  ;;  %v5893_v25 = vpop.xlane.xlu1 %5892 }
 0xd1a   :  { %v7981_v57 = vpop.eup %7980  ;;  %v5915_v52 = vmax.f32 %v5893_v25, 1e-12  ;;  %7359 = vmatprep.mubr.f32.mxu1 %v5938_v33  ;;  %v5891_v11 = vpop.xlane.xlu0 %5890  ;;  %v7775_v15 = vpack.c.bf16 %v5939_v53, %v5938_v33 }
 0xd1b   :  { %v7983_v55 = vpop.eup %7982  ;;  %v5914_v35 = vmax.f32 %v5891_v11, 1e-12  ;;  %7360 = vmatmul.mubr.f32.vlgmr.msra.gmra.mrb[74].mxu1 %v5939_v53  ;;  %v5941_v18 = vmul.f32 %v7981_v57, %v12993_v20 }
 0xd1c   :  { %7992 = vrcp.f32 %v5915_v52  ;;  %7776 = vmatprep.subr.bf16.mxu1 %v7775_v15  ;;  %v5940_v3 = vmul.f32 %v7983_v55, %v12999_v43 }
 0xd1d   :  { %7994 = vrcp.f32 %v5914_v35  ;;  %v5897_v39 = vpop.xlane.xlu1 %5896  ;;  %7778 = vmatpush3.bf16.xpose.msra.mxu1 %v7775_v15 }
 0xd1e   :  { %v7985_v16 = vpop.eup %7984  ;;  %v5917_v22 = vmax.f32 %v5897_v39, 1e-12  ;;  %7362 = vmatprep.mubr.f32.mxu1 %v5940_v3  ;;  %v5895_v23 = vpop.xlane.xlu0 %5894  ;;  %v7779_v13 = vpack.c.bf16 %v5941_v18, %v5940_v3 }
 0xd1f   :  { %v7987_v7 = vpop.eup %7986  ;;  %v5916_v10 = vmax.f32 %v5895_v23, 1e-12  ;;  %7363 = vmatmul.mubr.f32.gmra.mrb[76].mxu1 %v5941_v18  ;;  %v5943_v20 = vmul.f32 %v7985_v16, %v13005_v8 }
 0xd20   :  { %7996 = vrcp.f32 %v5917_v22  ;;  %7780 = vmatprep.subr.bf16.mxu1 %v7779_v13  ;;  %v5942_v26 = vmul.f32 %v7987_v7, %v13011_v56 }
 0xd21   :  { %7998 = vrcp.f32 %v5916_v10  ;;  %v5901_v62 = vpop.xlane.xlu1 %5900 }
 0xd22   :  { %v7989_v43 = vpop.eup %7988  ;;  %v5919_v1 = vmax.f32 %v5901_v62, 1e-12  ;;  %7365 = vmatprep.mubr.f32.mxu1 %v5942_v26  ;;  %v5899_v40 = vpop.xlane.xlu0 %5898  ;;  %v7783_v41 = vpack.c.bf16 %v5943_v20, %v5942_v26 }
 0xd23   :  { %v7991_v14 = vpop.eup %7990  ;;  %v5918_v30 = vmax.f32 %v5899_v40, 1e-12  ;;  %7366 = vmatmul.mubr.f32.gmra.mrb[78].mxu1 %v5943_v20  ;;  %v5945_v56 = vmul.f32 %v7989_v43, %v13017_v36 }
 0xd24   :  { %8000 = vrcp.f32 %v5919_v1  ;;  %v5944_v6 = vmul.f32 %v7991_v14, %v13023_v46 }
 0xd25   :  { %8002 = vrcp.f32 %v5918_v30  ;;  %v5905_v48 = vpop.xlane.xlu1 %5904  ;;  %7782 = vmatpush3.bf16.xpose.msra.mxu1 %v7779_v13 }
 0xd26   :  { %v7993_v51 = vpop.eup %7992  ;;  %v5921_v8 = vmax.f32 %v5905_v48, 1e-12  ;;  %7368 = vmatprep.mubr.f32.mxu1 %v5944_v6  ;;  %7784 = vmatprep.subr.bf16.mxu1 %v7783_v41  ;;  %v5903_v9 = vpop.xlane.xlu0 %5902  ;;  %v7787_v21 = vpack.c.bf16 %v5945_v56, %v5944_v6 }
 0xd27   :  { %v7995_v32 = vpop.eup %7994  ;;  %v5920_v5 = vmax.f32 %v5903_v9, 1e-12  ;;  %7369 = vmatmul.mubr.f32.gmra.mrb[80].mxu1 %v5945_v56  ;;  %v5947_v46 = vmul.f32 %v7993_v51, %v13029_v60 }
 0xd28   :  { %8004 = vrcp.f32 %v5921_v8  ;;  %v5946_v37 = vmul.f32 %v7995_v32, %v13034_v49 }
 0xd29   :  { %8006 = vrcp.f32 %v5920_v5 }
 0xd2a   :  { %v7997_v31 = vpop.eup %7996  ;;  %7371 = vmatprep.mubr.f32.mxu1 %v5946_v37 }
 0xd2b   :  { %v7999_v2 = vpop.eup %7998  ;;  %7372 = vmatmul.mubr.f32.gmra.mrb[82].mxu1 %v5947_v46  ;;  %v5949_v58 = vmul.f32 %v7997_v31, %v13045_v59 }
 0xd2c   :  { %v5948_v36 = vmul.f32 %v7999_v2, %v13050_v12  ;;  %v7791_v12 = vpack.c.bf16 %v5947_v46, %v5946_v37 }
 0xd2d   :  { %7786 = vmatpush3.bf16.xpose.msra.mxu1 %v7783_v41 }
 0xd2e   :  { %v8001_v61 = vpop.eup %8000  ;;  %7374 = vmatprep.mubr.f32.mxu1 %v5948_v36  ;;  %7788 = vmatprep.subr.bf16.mxu1 %v7787_v21  ;;  %v7795_v59 = vpack.c.bf16 %v5949_v58, %v5948_v36 }
 0xd2f   :  { %v8003_v50 = vpop.eup %8002  ;;  %7375 = vmatmul.mubr.f32.gmra.mrb[84].mxu1 %v5949_v58  ;;  %v5951_v38 = vmul.f32 %v8001_v61, %v13061_v24 }
 0xd30   :  { %v5950_v49 = vmul.f32 %v8003_v50, %v13066_v34 }
 0xd32   :  { %v8005_v60 = vpop.eup %8004  ;;  %7377 = vmatprep.mubr.f32.mxu1 %v5950_v49  ;;  %v7799_v29 = vpack.c.bf16 %v5951_v38, %v5950_v49 }
 0xd33   :  { %v8007_v63 = vpop.eup %8006  ;;  %7378 = vmatmul.mubr.f32.gmra.mrb[86].mxu1 %v5951_v38  ;;  %v5953_v44 = vmul.f32 %v8005_v60, %v13077_v4 }
 0xd34   :  { %v5952_v42 = vmul.f32 %v8007_v63, %v13082_v19 }
 0xd35   :  { %7790 = vmatpush3.bf16.xpose.msra.mxu1 %v7787_v21 }
 0xd36   :  { %7380 = vmatprep.mubr.f32.mxu1 %v5952_v42  ;;  %7792 = vmatprep.subr.bf16.mxu1 %v7791_v12  ;;  %v7803_v24 = vpack.c.bf16 %v5953_v44, %v5952_v42 }
 0xd37   :  { %7381 = vmatmul.mubr.f32.gmra.mrb[88].mxu1 %v5953_v44 }
 0xd3d   :  { %7794 = vmatpush3.bf16.xpose.msra.mxu1 %v7791_v12 }
 0xd3e   :  { %7796 = vmatprep.subr.bf16.mxu1 %v7795_v59 }
 0xd45   :  { %7798 = vmatpush3.bf16.xpose.msra.mxu1 %v7795_v59 }
 0xd46   :  { %7800 = vmatprep.subr.bf16.mxu1 %v7799_v29 }
 0xd4d   :  { %7802 = vmatpush3.bf16.xpose.msra.mxu1 %v7799_v29 }
 0xd4e   :  { %7804 = vmatprep.subr.bf16.mxu1 %v7803_v24 }
 0xd55   :  { %7806 = vmatpush3.bf16.xpose.msra.mxu1 %v7803_v24 }
 0xdee   :  { %v7361_v34 = vpop.f32.mrb[74].mxu1 }
 0xdef   :  { %v6020_v28 = vpop.f32.mrb[75].mxu1 }
 0xdf0   :  { %7415 = vmatprep.mubr.f32.mxu1 %v6020_v28 }
 0xdf1   :  { %7416 = vmatmul.mubr.f32.vlgmr.msra.gmra.mrb[90].mxu1 %v7361_v34 }
 0xdf2   :  { %v7364_v19 = vpop.f32.mrb[76].mxu1 }
 0xdf3   :  { %v6030_v47 = vpop.f32.mrb[77].mxu1 }
 0xdf4   :  { %7418 = vmatprep.mubr.f32.mxu1 %v6030_v47 }
 0xdf5   :  { %7419 = vmatmul.mubr.f32.gmra.mrb[92].mxu1 %v7364_v19 }
 0xdf6   :  { %v7367_v4 = vpop.f32.mrb[78].mxu1 }
 0xdf7   :  { %v6040_v27 = vpop.f32.mrb[79].mxu1 }
 0xdf8   :  { %7421 = vmatprep.mubr.f32.mxu1 %v6040_v27 }
 0xdf9   :  { %7422 = vmatmul.mubr.f32.gmra.mrb[94].mxu1 %v7367_v4 }
 0xdfa   :  { %v7370_v17 = vpop.f32.mrb[80].mxu1 }
 0xdfb   :  { %v6050_v0 = vpop.f32.mrb[81].mxu1 }
 0xdfc   :  { %7424 = vmatprep.mubr.f32.mxu1 %v6050_v0 }
 0xdfd   :  { %7425 = vmatmul.mubr.f32.gmra.mrb[96].mxu1 %v7370_v17 }
 0xdfe   :  { %v7373_v54 = vpop.f32.mrb[82].mxu1 }
 0xdff   :  { %v6060_v45 = vpop.f32.mrb[83].mxu1 }
 0xe00   :  { %7427 = vmatprep.mubr.f32.mxu1 %v6060_v45 }
 0xe01   :  { %7428 = vmatmul.mubr.f32.gmra.mrb[98].mxu1 %v7373_v54 }
 0xe02   :  { %v7376_v53 = vpop.f32.mrb[84].mxu1 }
 0xe03   :  { %v6070_v33 = vpop.f32.mrb[85].mxu1 }
 0xe04   :  { %7430 = vmatprep.mubr.f32.mxu1 %v6070_v33 }
 0xe05   :  { %7431 = vmatmul.mubr.f32.gmra.mrb[100].mxu1 %v7376_v53 }
 0xe06   :  { %v7379_v25 = vpop.f32.mrb[86].mxu1 }
 0xe07   :  { %v6080_v57 = vpop.f32.mrb[87].mxu1 }
 0xe08   :  { %7433 = vmatprep.mubr.f32.mxu1 %v6080_v57 }
 0xe09   :  { %7434 = vmatmul.mubr.f32.gmra.mrb[102].mxu1 %v7379_v25 }
 0xe0a   :  { %v7382_v52 = vpop.f32.mrb[88].mxu1 }
 0xe0b   :  { %v6090_v11 = vpop.f32.mrb[89].mxu1 }
 0xe0c   :  { %7436 = vmatprep.mubr.f32.mxu1 %v6090_v11 }
 0xe0d   :  { %7437 = vmatmul.mubr.f32.gmra.mrb[104].mxu1 %v7382_v52 }
 0xec4   :  { %v7417_v15 = vpop.f32.mrb[90].mxu1 }
 0xec5   :  { %6245 = vst [vmem:[#allocation11 + $0x8] sm:$0xff] %v7417_v15  ;;  %v6165_v55 = vpop.f32.mrb[91].mxu1 }
 0xec6   :  { %6244 = vst [vmem:[#allocation11] sm:$0xff] %v6165_v55 }
 0xec8   :  { %v7420_v35 = vpop.f32.mrb[92].mxu1 }
 0xec9   :  { %6247 = vst [vmem:[#allocation11 + $0x18] sm:$0xff] %v7420_v35  ;;  %v6175_v18 = vpop.f32.mrb[93].mxu1 }
 0xeca   :  { %6246 = vst [vmem:[#allocation11 + $0x10] sm:$0xff] %v6175_v18 }
 0xecc   :  { %v7423_v3 = vpop.f32.mrb[94].mxu1 }
 0xecd   :  { %6249 = vst [vmem:[#allocation11 + $0x28] sm:$0xff] %v7423_v3  ;;  %v6185_v39 = vpop.f32.mrb[95].mxu1 }
 0xece   :  { %6248 = vst [vmem:[#allocation11 + $0x20] sm:$0xff] %v6185_v39 }
 0xed0   :  { %v7426_v16 = vpop.f32.mrb[96].mxu1 }
 0xed1   :  { %6251 = vst [vmem:[#allocation11 + $0x38] sm:$0xff] %v7426_v16  ;;  %v6195_v22 = vpop.f32.mrb[97].mxu1 }
 0xed2   :  { %6250 = vst [vmem:[#allocation11 + $0x30] sm:$0xff] %v6195_v22 }
 0xed4   :  { %v7429_v23 = vpop.f32.mrb[98].mxu1 }
 0xed5   :  { %6253 = vst [vmem:[#allocation11 + $0x48] sm:$0xff] %v7429_v23  ;;  %v6205_v13 = vpop.f32.mrb[99].mxu1 }
 0xed6   :  { %6252 = vst [vmem:[#allocation11 + $0x40] sm:$0xff] %v6205_v13 }
 0xed8   :  { %v7432_v7 = vpop.f32.mrb[100].mxu1 }
 0xed9   :  { %6255 = vst [vmem:[#allocation11 + $0x58] sm:$0xff] %v7432_v7  ;;  %v6215_v10 = vpop.f32.mrb[101].mxu1 }
 0xeda   :  { %6254 = vst [vmem:[#allocation11 + $0x50] sm:$0xff] %v6215_v10 }
 0xedc   :  { %v7435_v26 = vpop.f32.mrb[102].mxu1 }
 0xedd   :  { %6257 = vst [vmem:[#allocation11 + $0x68] sm:$0xff] %v7435_v26  ;;  %v6225_v20 = vpop.f32.mrb[103].mxu1 }
 0xede   :  { %6256 = vst [vmem:[#allocation11 + $0x60] sm:$0xff] %v6225_v20 }
 0xee0   :  { %v7438_v62 = vpop.f32.mrb[104].mxu1 }
 0xee1   :  { %6259 = vst [vmem:[#allocation11 + $0x78] sm:$0xff] %v7438_v62  ;;  %v6235_v43 = vpop.f32.mrb[105].mxu1 }
 0xee2   :  { %6258 = vst [vmem:[#allocation11 + $0x70] sm:$0xff] %v6235_v43 }
 0xee3   :  { %8140 = shalt.err (!%p8137_p8)
}
 0xee4   :  { %s8141_s4 = scalar_lea.hbm %s13125_s9, 2048 }
 0xee5   :  { %p8142_p9 = scmp.ne.s32.totalorder %s13125_s9, %s8141_s4  ;;  %p8145_p10 = scmp.lt.u32.totalorder %s8141_s4, %s13125_s9 }
 0xee7   :  { %p8147_p11 = pnand %p8145_p10, %p8142_p9 }
 0xee9   :  { %8150 = shalt.err (!%p8147_p11)
}
 0xeea   :  { %6271 = dma.vmem_to_hbm [thread:$0]  %s6266_s25, 2048, %s13125_s9, [#allocation5], %s8163_s6, %s8163_s6, %s8164_s11  }
 0xeeb   :  { %8157 = dma.done.wait [#allocation5], 2048  }
 0xeec   :  { %8158 = vsyncadd [#allocation5], 4294965248 }
 0xeed   :  { %6275 = vsyncpa [#allocation4], 1 }
 0xeee   :  { %6276 = vsyncpa [#allocation7], 1 }
 0xeef   :  { %6277 = vsyncpa [#allocation10], 1 }
 0xef0   :  { %6278 = vsyncpa [#allocation5], 1 }

</bundles_post_ra>
